<compile_context>
chip_gen: v7x
topology: tpu7x:2x2x1
jax: 0.10.0
libtpu: 0.0.40
codegen_flags: <defaults>
</compile_context>

<pallas_src>
import jax
import jax.numpy as jnp
from jax.experimental import pallas as pl
from jax.experimental.pallas import tpu as pltpu

OUT_ROWS = 1024 * 8   # 8192  (hard-coded in the PyTorch module)
OUT_COLS = 4096
TM = 512              # row tile; block = (512, 4096) f32 = 8 MiB (double-buffered)


def _scale_cast_kernel(x_ref, o_ref):
    # Hot path: multiply by 0.5 and cast float32 -> int8 (truncates toward
    # zero, matching torch .type(torch.CharTensor) for in-range values).
    o_ref[...] = (x_ref[...] * 0.5).astype(jnp.int8)


def reshape_casting(x: jax.Array) -> jax.Array:
    # Glue: the module's hard-coded reshape to (8192, 4096). Pure metadata
    # for a contiguous row-major buffer; no data movement.
    y = jnp.reshape(x, (OUT_ROWS, OUT_COLS))

    n_elems = OUT_ROWS * OUT_COLS
    cost = pl.CostEstimate(
        flops=n_elems,                       # one multiply per element
        transcendentals=0,
        bytes_accessed=n_elems * 4 + n_elems,  # f32 read + int8 write
    )

    return pl.pallas_call(
        _scale_cast_kernel,
        out_shape=jax.ShapeDtypeStruct((OUT_ROWS, OUT_COLS), jnp.int8),
        grid=(OUT_ROWS // TM,),
        in_specs=[pl.BlockSpec((TM, OUT_COLS), lambda i: (i, 0))],
        out_specs=pl.BlockSpec((TM, OUT_COLS), lambda i: (i, 0)),
        compiler_params=pltpu.CompilerParams(
            dimension_semantics=("parallel",),
            # 2 x 8 MiB input bufs + 2 x 2 MiB output bufs = 20 MiB + headroom.
            vmem_limit_bytes=28 * 1024 * 1024,
        ),
        cost_estimate=cost,
    )(y)


if __name__ == "__main__":
    # The module's reshape requires exactly 8192*4096 elements; build input
    # directly at that (hard-coded) shape.
    key = jax.random.PRNGKey(0)
    x = 10.0 * jax.random.normal(key, (OUT_ROWS, OUT_COLS), dtype=jnp.float32)

    out = jax.block_until_ready(reshape_casting(x))

    # Sanity check against a plain-JAX reference.
    ref = (x * 0.5).astype(jnp.int8)
    assert out.shape == (OUT_ROWS, OUT_COLS)
    assert out.dtype == jnp.int8
    assert bool(jnp.all(out == ref))

    print("KERNEL_OK")
</pallas_src>

<mosaic_0001>
module attributes {stable_mosaic.version = 11 : i64} {
  func.func @_scale_cast_kernel(%arg0: i32, %arg1: memref<512x4096xf32, #tpu.memory_space<vmem>>, %arg2: memref<512x4096xi8, #tpu.memory_space<vmem>>) attributes {dimension_semantics = [#tpu.dimension_semantics<parallel>], iteration_bounds = array<i64: 16>, scalar_prefetch = 0 : i64, scratch_operands = 0 : i64, tpu.core_type = #tpu.core_type<tc>, window_params = [{transform_indices = @transform_0, window_bounds = array<i64: 512, 4096>}, {transform_indices = @transform_1, window_bounds = array<i64: 512, 4096>}]} {
    %c0 = arith.constant 0 : index
    %c0_0 = arith.constant 0 : index
    %0 = vector.load %arg1[%c0, %c0_0] : memref<512x4096xf32, #tpu.memory_space<vmem>>, vector<512x4096xf32>
    %cst = arith.constant 5.000000e-01 : f32
    %1 = vector.broadcast %cst : f32 to vector<512x4096xf32>
    %2 = arith.mulf %0, %1 : vector<512x4096xf32>
    %3 = arith.fptosi %2 : vector<512x4096xf32> to vector<512x4096xi8>
    %c0_1 = arith.constant 0 : index
    %c0_2 = arith.constant 0 : index
    %4 = vector.load %arg2[%c0_1, %c0_2] : memref<512x4096xi8, #tpu.memory_space<vmem>>, vector<512x4096xi8>
    tpu.vector_store %arg2[%c0_1, %c0_2], %3 {strides = array<i32>} : memref<512x4096xi8, #tpu.memory_space<vmem>>, vector<512x4096xi8>,
    return
  }
  func.func @transform_0(%arg0: i32) -> (i32, i32) {
    %c0_i32 = arith.constant 0 : i32
    %c0_i32_0 = arith.constant 0 : i32
    return %arg0, %c0_i32 : i32, i32
  }
  func.func @transform_1(%arg0: i32) -> (i32, i32) {
    %c0_i32 = arith.constant 0 : i32
    %c0_i32_0 = arith.constant 0 : i32
    return %arg0, %c0_i32 : i32, i32
  }
}

</mosaic_0001>

<bundles_post_ra>
// kernel: tpu_custom_call.1
= control target key start
LH: loop header
LB: loop body
LE: loop exit
PB: predicated region body
PF: predicated region fallthrough
CT: control target
= control target key end

     0   :  { %6 = vsyncpa [#allocation3], 0  ;;  %s14914_s0 = inlined_call_operand.hbm [shape: f32[8192,4096], index: 0, kind: input, shape index: {}]   ;;  %s14915_s1 = inlined_call_operand.hbm [shape: s8[8192,4096], index: 1, kind: output, shape index: {}]  }
   0x1   :  { %8 = vsyncpa [#allocation3 + $0x1], 0 }
   0x2   :  { %9 = vsyncpa [#allocation4], 0 }
   0x3   :  { %11 = vsyncpa [#allocation4 + $0x1], 0  ;;  %s12186_s6 = smov 0   ;;  %s12188_s7 = smov 0  }
   0x4   :  { %s12190_s8 = smov 0   ;;  %s12192_s9 = smov 0  }
   0x5 LB: > { %s12207_s10 = sadd.s32 4294967295, %s12168_s9   ;;  %s12002_s11 = sadd.s32 4294967294, %s12168_s9   ;;  %s12168_s9 = sphi %s12192_s9, %s14927_s9   ;;  %s12164_s8 = sphi %s12190_s8, %s14926_s8   ;;  %s12160_s7 = sphi %s12188_s7, %s14925_s7   ;;  %s12156_s6 = sphi %s12186_s6, %s14924_s6  }
   0x6   : > { %s12211_s12 = sadd.s32 1, %s12168_s9   ;;  %s24_s13 = sadd.s32 1, %s12164_s8 }
   0x7   : > { %s21_s14 = ssub.s32 %s12168_s9, %s12211_s12  ;;  %p31_p0 = scmp.ne.s32.totalorder %s12164_s8, %s12160_s7 }
   0x8   : > { %p22_p1 = scmp.eq.s32.totalorder %s21_s14, 0  ;;  %p32_p2 = scmp.eq.s32.totalorder %s12168_s9, 0 }
   0x9   : > { %p37_p3 = scmp.ne.s32.totalorder %s12160_s7, %s12156_s6  ;;  %p38_p4 = scmp.eq.s32.totalorder %s12207_s10, 0 }
   0xa   : > { %s12223_s15 = scalar_select %p22_p1, %s12164_s8, %s24_s13  }
   0xb   : > { %p12225_p5 = por %p32_p2, %p31_p0  ;;  %p12229_p6 = por %p38_p4, %p37_p3 }
   0xc   : > { %p61_p7 = scmp.eq.s32.totalorder %s12207_s10, 15  ;;  %p67_p8 = scmp.eq.s32.totalorder %s12002_s11, 15 }
   0xd   : > { %p12034_p9 = scmp.lt.s32.totalorder %s12168_s9, 16  ;;  %s87_s20 = sand.u32 1, %s12164_s8  }
   0xe   : > { %p12235_p10 = por %p61_p7, %p31_p0  ;;  %p12239_p11 = por %p67_p8, %p37_p3 }
   0xf   : > { %s12019_s21 = sshll.u32 %s12168_s9, 18  ;;  %s12005_s22 = sshll.u32 %s87_s20, 14 }
  0x10   : > { %s14919_s18 = scalar_select %p12235_p10, 1, 0 }
  0x11   : > { %s14920_s19 = scalar_select %p12239_p11, 1, 0 }
  0x12   : > { %s12248_s25 = scalar_lea.hbm %s14914_s0, %s12019_s21  ;;  %s91_s26 = scalar_lea.vmem [#allocation2], %s12005_s22 }
  0x13   : > { %s99_s27 = sshll.u32 %s91_s26, 4  ;;  %p12252_p12 = pnand %p12034_p9, %p12225_p5  ;;  %s12256_s27 = int_to_ptr.vmem [resolvable:$true] %s99_s27 }
  0x14   : > { %s12258_s29 = scalar_lea.sflag [#allocation3], %s87_s20  ;;  %s12072_s30 = scalar_lea.hbm %s12248_s25, 262144 }
  0x15   : > { %p12073_p13 = scmp.ne.s32.totalorder %s12248_s25, %s12072_s30  ;;  %p12074_p0 = pneg %p12252_p12 }
  0x16   : > { %s12077_s4 = scalar_lea.hbm %s14914_s0, 4194304  ;;  %p12078_p3 = scmp.lt.u32.totalorder %s12248_s25, %s14914_s0 }
  0x17   : > { %p12075_p1 = pnand %p12074_p0, %p12073_p13  ;;  %p12079_p4 = scmp.lt.u32.totalorder %s12077_s4, %s12072_s30 }
  0x18   : > { %p12081_p7 = scmp.lt.u32.totalorder %s12072_s30, %s12248_s25 }
  0x19   : > { %p12076_p2 = pneg %p12075_p1  ;;  %p12080_p5 = por %p12079_p4, %p12078_p3 }
  0x1b   : > { %p12082_p8 = por %p12081_p7, %p12080_p5 }
  0x1d   : > { %p12083_p9 = pnand %p12082_p8, %p12076_p2 }
  0x1f   : > { %12086 = shalt.err (!%p12083_p9)
}
  0x20   : > { %s12087_s13 = scalar_lea.vmem %s12256_s27, 262144  ;;  %s12170_s14 = smov [#allocation2]  }
  0x21   : > { %p12088_p13 = scmp.ne.s32.totalorder %s12256_s27, %s12087_s13  ;;  %s12092_s16 = sshll.u32 %s12170_s14, 4  ;;  %s12093_s16 = int_to_ptr.vmem [resolvable:$false] %s12092_s16 }
  0x22   : > { %s12094_s20 = scalar_lea.vmem %s12093_s16, 524288  ;;  %p12095_p10 = scmp.lt.s32.totalorder %s12256_s27, %s12093_s16 }
  0x23   : > { %p12090_p1 = pnand %p12088_p13, %p12074_p0  ;;  %p12096_p3 = scmp.lt.s32.totalorder %s12094_s20, %s12087_s13 }
  0x25   : > { %p12091_p11 = pneg %p12090_p1  ;;  %p12097_p4 = por %p12096_p3, %p12095_p10 }
  0x27   : > { %p12098_p5 = pnand %p12097_p4, %p12091_p11 }
  0x29   : > { %12101 = shalt.err (!%p12098_p5)
}
  0x2a   : > { %s12171_s21 = smov 4096   ;;  %s12172_s22 = smov 256  }
  0x2b   : > { %12029 = dma.hbm_to_vmem [thread:$0]  (!%p12252_p12), %s12248_s25, 262144, %s12256_s27, %s12258_s29, %s12171_s21, %s12171_s21, %s12172_s22  }
  0x2c   : > { %p12009_p0 = scmp.ge.s32.totalorder %s12168_s9, 1  ;;  %p107_p2 = scmp.lt.s32.totalorder %s12168_s9, 17 }
  0x2e   : > { %p108_p7 = pnand %p12009_p0, %p107_p2 }
  0x2f   : > { %s12289_s23 = sand.u32 (!%p108_p7), 1, %s12160_s7  }
  0x30   : > { %111 = sbr.rel (%p108_p7) target bundleno = 1485 (0x5cd), region = 24  ;;  %s12010_s24 = sshll.u32 (!%p108_p7), %s12289_s23, 14 }
  0x31   : > { %s114_s26 = scalar_lea.sflag (!%p108_p7), [#allocation3], %s12289_s23  ;;  %s12293_s30 = scalar_lea.vmem (!%p108_p7), [#allocation2], %s12010_s24 }
  0x37   : > { %12147 = dma.done.wait (%p12229_p6), %s114_s26, 262144  }
  0x38   : > { %12149 = vsyncadd (%p12229_p6), %s114_s26, 4294705152  ;;  %v138_v0 = vld [vmem:[%s12293_s30] sm:$0xff]  ;;  %v139_v7 = vld [vmem:[%s12293_s30 + $0x8] sm:$0xff]  ;;  %s12011_s17 = sshll.u32 %s12289_s23, 12  ;;  %s12021_s27 = sshll.u32 %s12207_s10, 16 }
  0x39   : > { %v170_v1 = vld [vmem:[%s12293_s30 + $0x100] sm:$0xff]  ;;  %v2186_v4 = vmul.f32 0.5, %v138_v0  ;;  %v171_v8 = vld [vmem:[%s12293_s30 + $0x108] sm:$0xff]  ;;  %v2187_v12 = vmul.f32 0.5, %v139_v7  ;;  %v140_v14 = vld [vmem:[%s12293_s30 + $0x10] sm:$0xff]  ;;  %s12322_s25 = scalar_lea.vmem [#allocation5], %s12011_s17  ;;  %s14868_s3 = scalar_lea.hbm %s14915_s1, %s12021_s27 }
  0x3a   : > { %v202_v2 = vld [vmem:[%s12293_s30 + $0x200] sm:$0xff]  ;;  %v2218_v5 = vmul.f32 0.5, %v170_v1  ;;  %v203_v10 = vld [vmem:[%s12293_s30 + $0x208] sm:$0xff]  ;;  %v2219_v13 = vmul.f32 0.5, %v171_v8  ;;  %v172_v19 = vld [vmem:[%s12293_s30 + $0x110] sm:$0xff]  ;;  %v2188_v29 = vmul.f32 0.5, %v140_v14 }
  0x3b   : > { %v234_v3 = vld [vmem:[%s12293_s30 + $0x300] sm:$0xff]  ;;  %v2250_v6 = vmul.f32 0.5, %v202_v2  ;;  %v235_v11 = vld [vmem:[%s12293_s30 + $0x308] sm:$0xff]  ;;  %v4234_v15 = vtrunc.f32 %v2186_v4  ;;  %v2251_v18 = vmul.f32 0.5, %v203_v10  ;;  %v204_v20 = vld [vmem:[%s12293_s30 + $0x210] sm:$0xff]  ;;  %v4235_v23 = vtrunc.f32 %v2187_v12  ;;  %s11929_s28 = sshll.u32 %s12322_s25, 4  ;;  %s14870_s28 = int_to_ptr.vmem [resolvable:$true] %s11929_s28 }
  0x3c   : > { %v2282_v9 = vmul.f32 0.5, %v234_v3  ;;  %v4266_v16 = vtrunc.f32 %v2218_v5  ;;  %v2283_v22 = vmul.f32 0.5, %v235_v11  ;;  %v4267_v24 = vtrunc.f32 %v2219_v13  ;;  %v236_v25 = vld [vmem:[%s12293_s30 + $0x310] sm:$0xff]  ;;  %v141_v26 = vld [vmem:[%s12293_s30 + $0x18] sm:$0xff]  ;;  %v142_v42 = vld [vmem:[%s12293_s30 + $0x20] sm:$0xff]  ;;  %s11915_s4 = scalar_lea.sflag [#allocation4], %s12289_s23 }
  0x3d   : > { %v4298_v17 = vtrunc.f32 %v2250_v6  ;;  %v4299_v28 = vtrunc.f32 %v2251_v18  ;;  %v2220_v30 = vmul.f32 0.5, %v172_v19  ;;  %v173_v31 = vld [vmem:[%s12293_s30 + $0x118] sm:$0xff]  ;;  %v2252_v35 = vmul.f32 0.5, %v204_v20  ;;  %v174_v47 = vld [vmem:[%s12293_s30 + $0x120] sm:$0xff]  ;;  %v143_v58 = vld [vmem:[%s12293_s30 + $0x28] sm:$0xff]  ;;  %s12102_s10 = scalar_lea.vmem %s14870_s28, 65536 }
  0x3e   : > { %v4330_v21 = vtrunc.f32 %v2282_v9  ;;  %v6282_v27 = vpack.c.f32.eXmY %v4234_v15, %v4266_v16, 312  ;;  %v4331_v33 = vtrunc.f32 %v2283_v22  ;;  %v6292_v34 = vpack.c.f32.eXmY %v4235_v23, %v4267_v24, 312  ;;  %v205_v36 = vld [vmem:[%s12293_s30 + $0x218] sm:$0xff]  ;;  %v206_v52 = vld [vmem:[%s12293_s30 + $0x220] sm:$0xff]  ;;  %v175_v63 = vld [vmem:[%s12293_s30 + $0x128] sm:$0xff]  ;;  %p12103_p6 = scmp.ne.s32.totalorder %s14870_s28, %s12102_s10  ;;  %p14922_p10 = scmp.ne.s32.totalorder %s14919_s18, 0 }
  0x3f   : > { %v237_v37 = vld [vmem:[%s12293_s30 + $0x318] sm:$0xff]  ;;  %v2284_v38 = vmul.f32 0.5, %v236_v25  ;;  %v4236_v39 = vtrunc.f32 %v2188_v29  ;;  %v4268_v40 = vtrunc.f32 %v2220_v30  ;;  %v2189_v41 = vmul.f32 0.5, %v141_v26  ;;  %v238_v53 = vld [vmem:[%s12293_s30 + $0x320] sm:$0xff]  ;;  %v207_v0 = vld [vmem:[%s12293_s30 + $0x228] sm:$0xff]  ;;  %s12173_s5 = smov [#allocation5]  }
  0x40   : > { %v6286_v32 = vpack.c.f32.eXmY %v4298_v17, %v4330_v21, 312  ;;  %v6296_v44 = vpack.c.f32.eXmY %v4299_v28, %v4331_v33, 312  ;;  %v4300_v45 = vtrunc.f32 %v2252_v35  ;;  %v2221_v46 = vmul.f32 0.5, %v173_v31  ;;  %v239_v5 = vld [vmem:[%s12293_s30 + $0x328] sm:$0xff]  ;;  %v144_v10 = vld [vmem:[%s12293_s30 + $0x30] sm:$0xff]  ;;  %v145_v22 = vld [vmem:[%s12293_s30 + $0x38] sm:$0xff]  ;;  %p12104_p11 = pnand %p12103_p6, %p14922_p10 }
  0x41   : > { %v4332_v48 = vtrunc.f32 %v2284_v38  ;;  %v6302_v49 = vpack.c.f32.eXmY %v4236_v39, %v4268_v40, 312  ;;  %v2253_v50 = vmul.f32 0.5, %v205_v36  ;;  %v2285_v51 = vmul.f32 0.5, %v237_v37  ;;  %v176_v15 = vld [vmem:[%s12293_s30 + $0x130] sm:$0xff]  ;;  %v177_v31 = vld [vmem:[%s12293_s30 + $0x138] sm:$0xff]  ;;  %v146_v38 = vld [vmem:[%s12293_s30 + $0x40] sm:$0xff] }
  0x42   : > { %v6290_v43 = vpack.c.b8 %v6286_v32, %v6282_v27  ;;  %v6300_v54 = vpack.c.b8 %v6296_v44, %v6292_v34  ;;  %v4237_v55 = vtrunc.f32 %v2189_v41  ;;  %v4269_v56 = vtrunc.f32 %v2221_v46  ;;  %v208_v16 = vld [vmem:[%s12293_s30 + $0x230] sm:$0xff]  ;;  %v209_v32 = vld [vmem:[%s12293_s30 + $0x238] sm:$0xff]  ;;  %p12105_p12 = pneg %p12104_p11  ;;  %s12106_s11 = sshll.u32 %s12173_s5, 4  ;;  %s12107_s11 = int_to_ptr.vmem [resolvable:$false] %s12106_s11 }
  0x43   : > { %v2190_v57 = vmul.f32 0.5, %v142_v42  ;;  %v6306_v59 = vpack.c.f32.eXmY %v4300_v45, %v4332_v48, 312  ;;  %v4301_v60 = vtrunc.f32 %v2253_v50  ;;  %v4333_v61 = vtrunc.f32 %v2285_v51  ;;  %v240_v17 = vld [vmem:[%s12293_s30 + $0x330] sm:$0xff]  ;;  %v241_v33 = vld [vmem:[%s12293_s30 + $0x338] sm:$0xff]  ;;  %v210_v48 = vld [vmem:[%s12293_s30 + $0x240] sm:$0xff]  ;;  %s12108_s13 = scalar_lea.vmem %s12107_s11, 131072  ;;  %p12109_p8 = scmp.lt.s32.totalorder %s14870_s28, %s12107_s11 }
  0x44   : > { %11402 = vst [vmem:[%s12322_s25] sm:$0xff] %v6290_v43  ;;  %v2222_v62 = vmul.f32 0.5, %v174_v47  ;;  %11403 = vst [vmem:[%s12322_s25 + $0x8] sm:$0xff] %v6300_v54  ;;  %v6312_v1 = vpack.c.f32.eXmY %v4237_v55, %v4269_v56, 312  ;;  %v2254_v2 = vmul.f32 0.5, %v206_v52  ;;  %v2286_v3 = vmul.f32 0.5, %v238_v53  ;;  %v178_v43 = vld [vmem:[%s12293_s30 + $0x140] sm:$0xff]  ;;  %p12110_p9 = scmp.lt.s32.totalorder %s12108_s13, %s12102_s10 }
  0x45   : > { %v4238_v4 = vtrunc.f32 %v2190_v57  ;;  %v6310_v6 = vpack.c.b8 %v6306_v59, %v6302_v49  ;;  %v6316_v7 = vpack.c.f32.eXmY %v4301_v60, %v4333_v61, 312  ;;  %v2191_v9 = vmul.f32 0.5, %v143_v58  ;;  %v242_v49 = vld [vmem:[%s12293_s30 + $0x340] sm:$0xff]  ;;  %v147_v54 = vld [vmem:[%s12293_s30 + $0x48] sm:$0xff] }
  0x46   : > { %v4270_v8 = vtrunc.f32 %v2222_v62  ;;  %v4302_v11 = vtrunc.f32 %v2254_v2  ;;  %v4334_v12 = vtrunc.f32 %v2286_v3  ;;  %v2223_v13 = vmul.f32 0.5, %v175_v63  ;;  %v179_v59 = vld [vmem:[%s12293_s30 + $0x148] sm:$0xff]  ;;  %p12111_p13 = por %p12110_p9, %p12109_p8 }
  0x47   : > { %v2255_v14 = vmul.f32 0.5, %v207_v0  ;;  %11404 = vst [vmem:[%s12322_s25 + $0x10] sm:$0xff] %v6310_v6  ;;  %v6320_v18 = vpack.c.b8 %v6316_v7, %v6312_v1  ;;  %v2287_v20 = vmul.f32 0.5, %v239_v5  ;;  %v4239_v21 = vtrunc.f32 %v2191_v9  ;;  %v211_v60 = vld [vmem:[%s12293_s30 + $0x248] sm:$0xff]  ;;  %v148_v6 = vld [vmem:[%s12293_s30 + $0x50] sm:$0xff] }
  0x48   : > { %v6322_v19 = vpack.c.f32.eXmY %v4238_v4, %v4270_v8, 312  ;;  %v6326_v23 = vpack.c.f32.eXmY %v4302_v11, %v4334_v12, 312  ;;  %v4271_v24 = vtrunc.f32 %v2223_v13  ;;  %v2192_v26 = vmul.f32 0.5, %v144_v10  ;;  %v243_v1 = vld [vmem:[%s12293_s30 + $0x348] sm:$0xff]  ;;  %v180_v11 = vld [vmem:[%s12293_s30 + $0x150] sm:$0xff]  ;;  %p12112_p1 = pnand %p12111_p13, %p12105_p12 }
  0x49   : > { %v4303_v25 = vtrunc.f32 %v2255_v14  ;;  %11405 = vst [vmem:[%s12322_s25 + $0x18] sm:$0xff] %v6320_v18  ;;  %v4335_v27 = vtrunc.f32 %v2287_v20  ;;  %v2224_v28 = vmul.f32 0.5, %v176_v15  ;;  %v2256_v29 = vmul.f32 0.5, %v208_v16  ;;  %v212_v12 = vld [vmem:[%s12293_s30 + $0x250] sm:$0xff]  ;;  %v149_v18 = vld [vmem:[%s12293_s30 + $0x58] sm:$0xff] }
  0x4a   : > { %v2288_v30 = vmul.f32 0.5, %v240_v17  ;;  %v6330_v34 = vpack.c.b8 %v6326_v23, %v6322_v19  ;;  %v6332_v35 = vpack.c.f32.eXmY %v4239_v21, %v4271_v24, 312  ;;  %v4240_v36 = vtrunc.f32 %v2192_v26  ;;  %v244_v13 = vld [vmem:[%s12293_s30 + $0x350] sm:$0xff] }
  0x4b   : > { %v2193_v37 = vmul.f32 0.5, %v145_v22  ;;  %v6336_v39 = vpack.c.f32.eXmY %v4303_v25, %v4335_v27, 312  ;;  %v4272_v40 = vtrunc.f32 %v2224_v28  ;;  %v4304_v41 = vtrunc.f32 %v2256_v29  ;;  %v181_v27 = vld [vmem:[%s12293_s30 + $0x158] sm:$0xff] }
  0x4c   : > { %v4336_v42 = vtrunc.f32 %v2288_v30  ;;  %11406 = vst [vmem:[%s12322_s25 + $0x20] sm:$0xff] %v6330_v34  ;;  %v2225_v44 = vmul.f32 0.5, %v177_v31  ;;  %v2257_v45 = vmul.f32 0.5, %v209_v32  ;;  %v2289_v46 = vmul.f32 0.5, %v241_v33  ;;  %v213_v28 = vld [vmem:[%s12293_s30 + $0x258] sm:$0xff]  ;;  %v150_v34 = vld [vmem:[%s12293_s30 + $0x60] sm:$0xff] }
  0x4d   : > { %v4241_v47 = vtrunc.f32 %v2193_v37  ;;  %v6340_v50 = vpack.c.b8 %v6336_v39, %v6332_v35  ;;  %v6342_v51 = vpack.c.f32.eXmY %v4240_v36, %v4272_v40, 312  ;;  %v2194_v53 = vmul.f32 0.5, %v146_v38  ;;  %v245_v29 = vld [vmem:[%s12293_s30 + $0x358] sm:$0xff]  ;;  %v182_v39 = vld [vmem:[%s12293_s30 + $0x160] sm:$0xff] }
  0x4e   : > { %v6346_v52 = vpack.c.f32.eXmY %v4304_v41, %v4336_v42, 312  ;;  %v4273_v55 = vtrunc.f32 %v2225_v44  ;;  %v4305_v56 = vtrunc.f32 %v2257_v45  ;;  %v4337_v57 = vtrunc.f32 %v2289_v46  ;;  %v214_v44 = vld [vmem:[%s12293_s30 + $0x260] sm:$0xff] }
  0x4f   : > { %v2226_v58 = vmul.f32 0.5, %v178_v43  ;;  %11407 = vst [vmem:[%s12322_s25 + $0x28] sm:$0xff] %v6340_v50  ;;  %v2258_v62 = vmul.f32 0.5, %v210_v48  ;;  %v2290_v63 = vmul.f32 0.5, %v242_v49  ;;  %v4242_v0 = vtrunc.f32 %v2194_v53  ;;  %v246_v45 = vld [vmem:[%s12293_s30 + $0x360] sm:$0xff]  ;;  %v151_v50 = vld [vmem:[%s12293_s30 + $0x68] sm:$0xff] }
  0x50   : > { %v6350_v61 = vpack.c.b8 %v6346_v52, %v6342_v51  ;;  %v6352_v2 = vpack.c.f32.eXmY %v4241_v47, %v4273_v55, 312  ;;  %v6356_v3 = vpack.c.f32.eXmY %v4305_v56, %v4337_v57, 312  ;;  %v2195_v5 = vmul.f32 0.5, %v147_v54  ;;  %v183_v55 = vld [vmem:[%s12293_s30 + $0x168] sm:$0xff] }
  0x51   : > { %v4274_v4 = vtrunc.f32 %v2226_v58  ;;  %v4306_v7 = vtrunc.f32 %v2258_v62  ;;  %v4338_v8 = vtrunc.f32 %v2290_v63  ;;  %v2227_v9 = vmul.f32 0.5, %v179_v59  ;;  %v215_v56 = vld [vmem:[%s12293_s30 + $0x268] sm:$0xff] }
  0x52   : > { %11408 = vst [vmem:[%s12322_s25 + $0x30] sm:$0xff] %v6350_v61  ;;  %v2259_v10 = vmul.f32 0.5, %v211_v60  ;;  %v6360_v14 = vpack.c.b8 %v6356_v3, %v6352_v2  ;;  %v2291_v16 = vmul.f32 0.5, %v243_v1  ;;  %v4243_v17 = vtrunc.f32 %v2195_v5  ;;  %v247_v61 = vld [vmem:[%s12293_s30 + $0x368] sm:$0xff]  ;;  %v152_v2 = vld [vmem:[%s12293_s30 + $0x70] sm:$0xff] }
  0x53   : > { %v6362_v15 = vpack.c.f32.eXmY %v4242_v0, %v4274_v4, 312  ;;  %v6366_v19 = vpack.c.f32.eXmY %v4306_v7, %v4338_v8, 312  ;;  %v4275_v20 = vtrunc.f32 %v2227_v9  ;;  %v2196_v22 = vmul.f32 0.5, %v148_v6  ;;  %v184_v7 = vld [vmem:[%s12293_s30 + $0x170] sm:$0xff] }
  0x54   : > { %v4307_v21 = vtrunc.f32 %v2259_v10  ;;  %11409 = vst [vmem:[%s12322_s25 + $0x38] sm:$0xff] %v6360_v14  ;;  %v4339_v23 = vtrunc.f32 %v2291_v16  ;;  %v2228_v24 = vmul.f32 0.5, %v180_v11  ;;  %v2260_v25 = vmul.f32 0.5, %v212_v12  ;;  %v216_v8 = vld [vmem:[%s12293_s30 + $0x270] sm:$0xff]  ;;  %v153_v14 = vld [vmem:[%s12293_s30 + $0x78] sm:$0xff] }
  0x55   : > { %v2292_v26 = vmul.f32 0.5, %v244_v13  ;;  %v6370_v30 = vpack.c.b8 %v6366_v19, %v6362_v15  ;;  %v6372_v31 = vpack.c.f32.eXmY %v4243_v17, %v4275_v20, 312  ;;  %v4244_v32 = vtrunc.f32 %v2196_v22  ;;  %v248_v9 = vld [vmem:[%s12293_s30 + $0x370] sm:$0xff] }
  0x56   : > { %v2197_v33 = vmul.f32 0.5, %v149_v18  ;;  %v6376_v35 = vpack.c.f32.eXmY %v4307_v21, %v4339_v23, 312  ;;  %v4276_v36 = vtrunc.f32 %v2228_v24  ;;  %v4308_v37 = vtrunc.f32 %v2260_v25  ;;  %v185_v23 = vld [vmem:[%s12293_s30 + $0x178] sm:$0xff] }
  0x57   : > { %v4340_v38 = vtrunc.f32 %v2292_v26  ;;  %11410 = vst [vmem:[%s12322_s25 + $0x40] sm:$0xff] %v6370_v30  ;;  %v2229_v40 = vmul.f32 0.5, %v181_v27  ;;  %v2261_v41 = vmul.f32 0.5, %v213_v28  ;;  %v2293_v42 = vmul.f32 0.5, %v245_v29  ;;  %v217_v24 = vld [vmem:[%s12293_s30 + $0x278] sm:$0xff]  ;;  %v154_v30 = vld [vmem:[%s12293_s30 + $0x80] sm:$0xff] }
  0x58   : > { %v4245_v43 = vtrunc.f32 %v2197_v33  ;;  %v6380_v46 = vpack.c.b8 %v6376_v35, %v6372_v31  ;;  %v6382_v47 = vpack.c.f32.eXmY %v4244_v32, %v4276_v36, 312  ;;  %v2198_v49 = vmul.f32 0.5, %v150_v34  ;;  %v249_v25 = vld [vmem:[%s12293_s30 + $0x378] sm:$0xff]  ;;  %v186_v35 = vld [vmem:[%s12293_s30 + $0x180] sm:$0xff] }
  0x59   : > { %v6386_v48 = vpack.c.f32.eXmY %v4308_v37, %v4340_v38, 312  ;;  %v4277_v51 = vtrunc.f32 %v2229_v40  ;;  %v4309_v52 = vtrunc.f32 %v2261_v41  ;;  %v4341_v53 = vtrunc.f32 %v2293_v42  ;;  %v218_v40 = vld [vmem:[%s12293_s30 + $0x280] sm:$0xff] }
  0x5a   : > { %v2230_v54 = vmul.f32 0.5, %v182_v39  ;;  %11411 = vst [vmem:[%s12322_s25 + $0x48] sm:$0xff] %v6380_v46  ;;  %v2262_v58 = vmul.f32 0.5, %v214_v44  ;;  %v2294_v59 = vmul.f32 0.5, %v246_v45  ;;  %v4246_v60 = vtrunc.f32 %v2198_v49  ;;  %v250_v41 = vld [vmem:[%s12293_s30 + $0x380] sm:$0xff]  ;;  %v155_v46 = vld [vmem:[%s12293_s30 + $0x88] sm:$0xff] }
  0x5b   : > { %v6390_v57 = vpack.c.b8 %v6386_v48, %v6382_v47  ;;  %v6392_v62 = vpack.c.f32.eXmY %v4245_v43, %v4277_v51, 312  ;;  %v6396_v63 = vpack.c.f32.eXmY %v4309_v52, %v4341_v53, 312  ;;  %v2199_v1 = vmul.f32 0.5, %v151_v50  ;;  %v187_v51 = vld [vmem:[%s12293_s30 + $0x188] sm:$0xff] }
  0x5c   : > { %v4278_v0 = vtrunc.f32 %v2230_v54  ;;  %v4310_v3 = vtrunc.f32 %v2262_v58  ;;  %v4342_v4 = vtrunc.f32 %v2294_v59  ;;  %v2231_v5 = vmul.f32 0.5, %v183_v55  ;;  %v219_v52 = vld [vmem:[%s12293_s30 + $0x288] sm:$0xff] }
  0x5d   : > { %11412 = vst [vmem:[%s12322_s25 + $0x50] sm:$0xff] %v6390_v57  ;;  %v2263_v6 = vmul.f32 0.5, %v215_v56  ;;  %v6400_v10 = vpack.c.b8 %v6396_v63, %v6392_v62  ;;  %v2295_v12 = vmul.f32 0.5, %v247_v61  ;;  %v4247_v13 = vtrunc.f32 %v2199_v1  ;;  %v251_v57 = vld [vmem:[%s12293_s30 + $0x388] sm:$0xff]  ;;  %v156_v62 = vld [vmem:[%s12293_s30 + $0x90] sm:$0xff] }
  0x5e   : > { %v6402_v11 = vpack.c.f32.eXmY %v4246_v60, %v4278_v0, 312  ;;  %v6406_v15 = vpack.c.f32.eXmY %v4310_v3, %v4342_v4, 312  ;;  %v4279_v16 = vtrunc.f32 %v2231_v5  ;;  %v2200_v18 = vmul.f32 0.5, %v152_v2  ;;  %v188_v3 = vld [vmem:[%s12293_s30 + $0x190] sm:$0xff] }
  0x5f   : > { %v4311_v17 = vtrunc.f32 %v2263_v6  ;;  %11413 = vst [vmem:[%s12322_s25 + $0x58] sm:$0xff] %v6400_v10  ;;  %v4343_v19 = vtrunc.f32 %v2295_v12  ;;  %v2232_v20 = vmul.f32 0.5, %v184_v7  ;;  %v2264_v21 = vmul.f32 0.5, %v216_v8  ;;  %v220_v4 = vld [vmem:[%s12293_s30 + $0x290] sm:$0xff]  ;;  %v157_v10 = vld [vmem:[%s12293_s30 + $0x98] sm:$0xff] }
  0x60   : > { %v2296_v22 = vmul.f32 0.5, %v248_v9  ;;  %v6410_v26 = vpack.c.b8 %v6406_v15, %v6402_v11  ;;  %v6412_v27 = vpack.c.f32.eXmY %v4247_v13, %v4279_v16, 312  ;;  %v4248_v28 = vtrunc.f32 %v2200_v18  ;;  %v252_v5 = vld [vmem:[%s12293_s30 + $0x390] sm:$0xff] }
  0x61   : > { %v2201_v29 = vmul.f32 0.5, %v153_v14  ;;  %v6416_v31 = vpack.c.f32.eXmY %v4311_v17, %v4343_v19, 312  ;;  %v4280_v32 = vtrunc.f32 %v2232_v20  ;;  %v4312_v33 = vtrunc.f32 %v2264_v21  ;;  %v189_v19 = vld [vmem:[%s12293_s30 + $0x198] sm:$0xff] }
  0x62   : > { %v4344_v34 = vtrunc.f32 %v2296_v22  ;;  %11414 = vst [vmem:[%s12322_s25 + $0x60] sm:$0xff] %v6410_v26  ;;  %v2233_v36 = vmul.f32 0.5, %v185_v23  ;;  %v2265_v37 = vmul.f32 0.5, %v217_v24  ;;  %v2297_v38 = vmul.f32 0.5, %v249_v25  ;;  %v221_v20 = vld [vmem:[%s12293_s30 + $0x298] sm:$0xff]  ;;  %v158_v26 = vld [vmem:[%s12293_s30 + $0xa0] sm:$0xff] }
  0x63   : > { %v4249_v39 = vtrunc.f32 %v2201_v29  ;;  %v6420_v42 = vpack.c.b8 %v6416_v31, %v6412_v27  ;;  %v6422_v43 = vpack.c.f32.eXmY %v4248_v28, %v4280_v32, 312  ;;  %v2202_v45 = vmul.f32 0.5, %v154_v30  ;;  %v253_v21 = vld [vmem:[%s12293_s30 + $0x398] sm:$0xff]  ;;  %v190_v31 = vld [vmem:[%s12293_s30 + $0x1a0] sm:$0xff] }
  0x64   : > { %v6426_v44 = vpack.c.f32.eXmY %v4312_v33, %v4344_v34, 312  ;;  %v4281_v47 = vtrunc.f32 %v2233_v36  ;;  %v4313_v48 = vtrunc.f32 %v2265_v37  ;;  %v4345_v49 = vtrunc.f32 %v2297_v38  ;;  %v222_v36 = vld [vmem:[%s12293_s30 + $0x2a0] sm:$0xff] }
  0x65   : > { %v2234_v50 = vmul.f32 0.5, %v186_v35  ;;  %11415 = vst [vmem:[%s12322_s25 + $0x68] sm:$0xff] %v6420_v42  ;;  %v2266_v54 = vmul.f32 0.5, %v218_v40  ;;  %v2298_v55 = vmul.f32 0.5, %v250_v41  ;;  %v4250_v56 = vtrunc.f32 %v2202_v45  ;;  %v254_v37 = vld [vmem:[%s12293_s30 + $0x3a0] sm:$0xff]  ;;  %v159_v42 = vld [vmem:[%s12293_s30 + $0xa8] sm:$0xff] }
  0x66   : > { %v6430_v53 = vpack.c.b8 %v6426_v44, %v6422_v43  ;;  %v6432_v58 = vpack.c.f32.eXmY %v4249_v39, %v4281_v47, 312  ;;  %v6436_v59 = vpack.c.f32.eXmY %v4313_v48, %v4345_v49, 312  ;;  %v2203_v61 = vmul.f32 0.5, %v155_v46  ;;  %v191_v47 = vld [vmem:[%s12293_s30 + $0x1a8] sm:$0xff] }
  0x67   : > { %v4282_v60 = vtrunc.f32 %v2234_v50  ;;  %v4314_v63 = vtrunc.f32 %v2266_v54  ;;  %v4346_v0 = vtrunc.f32 %v2298_v55  ;;  %v2235_v1 = vmul.f32 0.5, %v187_v51  ;;  %v223_v48 = vld [vmem:[%s12293_s30 + $0x2a8] sm:$0xff] }
  0x68   : > { %11416 = vst [vmem:[%s12322_s25 + $0x70] sm:$0xff] %v6430_v53  ;;  %v2267_v2 = vmul.f32 0.5, %v219_v52  ;;  %v6440_v6 = vpack.c.b8 %v6436_v59, %v6432_v58  ;;  %v2299_v8 = vmul.f32 0.5, %v251_v57  ;;  %v4251_v9 = vtrunc.f32 %v2203_v61  ;;  %v255_v53 = vld [vmem:[%s12293_s30 + $0x3a8] sm:$0xff]  ;;  %v160_v58 = vld [vmem:[%s12293_s30 + $0xb0] sm:$0xff] }
  0x69   : > { %v6442_v7 = vpack.c.f32.eXmY %v4250_v56, %v4282_v60, 312  ;;  %v6446_v11 = vpack.c.f32.eXmY %v4314_v63, %v4346_v0, 312  ;;  %v4283_v12 = vtrunc.f32 %v2235_v1  ;;  %v2204_v14 = vmul.f32 0.5, %v156_v62  ;;  %v192_v63 = vld [vmem:[%s12293_s30 + $0x1b0] sm:$0xff] }
  0x6a   : > { %v4315_v13 = vtrunc.f32 %v2267_v2  ;;  %11417 = vst [vmem:[%s12322_s25 + $0x78] sm:$0xff] %v6440_v6  ;;  %v4347_v15 = vtrunc.f32 %v2299_v8  ;;  %v2236_v16 = vmul.f32 0.5, %v188_v3  ;;  %v2268_v17 = vmul.f32 0.5, %v220_v4  ;;  %v224_v0 = vld [vmem:[%s12293_s30 + $0x2b0] sm:$0xff]  ;;  %v161_v6 = vld [vmem:[%s12293_s30 + $0xb8] sm:$0xff] }
  0x6b   : > { %v2300_v18 = vmul.f32 0.5, %v252_v5  ;;  %v6450_v22 = vpack.c.b8 %v6446_v11, %v6442_v7  ;;  %v6452_v23 = vpack.c.f32.eXmY %v4251_v9, %v4283_v12, 312  ;;  %v4252_v24 = vtrunc.f32 %v2204_v14  ;;  %v256_v1 = vld [vmem:[%s12293_s30 + $0x3b0] sm:$0xff] }
  0x6c   : > { %v2205_v25 = vmul.f32 0.5, %v157_v10  ;;  %v6456_v27 = vpack.c.f32.eXmY %v4315_v13, %v4347_v15, 312  ;;  %v4284_v28 = vtrunc.f32 %v2236_v16  ;;  %v4316_v29 = vtrunc.f32 %v2268_v17  ;;  %v193_v15 = vld [vmem:[%s12293_s30 + $0x1b8] sm:$0xff] }
  0x6d   : > { %v4348_v30 = vtrunc.f32 %v2300_v18  ;;  %11418 = vst [vmem:[%s12322_s25 + $0x80] sm:$0xff] %v6450_v22  ;;  %v2237_v32 = vmul.f32 0.5, %v189_v19  ;;  %v2269_v33 = vmul.f32 0.5, %v221_v20  ;;  %v2301_v34 = vmul.f32 0.5, %v253_v21  ;;  %v225_v16 = vld [vmem:[%s12293_s30 + $0x2b8] sm:$0xff]  ;;  %v162_v22 = vld [vmem:[%s12293_s30 + $0xc0] sm:$0xff] }
  0x6e   : > { %v4253_v35 = vtrunc.f32 %v2205_v25  ;;  %v6460_v38 = vpack.c.b8 %v6456_v27, %v6452_v23  ;;  %v6462_v39 = vpack.c.f32.eXmY %v4252_v24, %v4284_v28, 312  ;;  %v2206_v41 = vmul.f32 0.5, %v158_v26  ;;  %v257_v17 = vld [vmem:[%s12293_s30 + $0x3b8] sm:$0xff]  ;;  %v194_v27 = vld [vmem:[%s12293_s30 + $0x1c0] sm:$0xff] }
  0x6f   : > { %v6466_v40 = vpack.c.f32.eXmY %v4316_v29, %v4348_v30, 312  ;;  %v4285_v43 = vtrunc.f32 %v2237_v32  ;;  %v4317_v44 = vtrunc.f32 %v2269_v33  ;;  %v4349_v45 = vtrunc.f32 %v2301_v34  ;;  %v226_v32 = vld [vmem:[%s12293_s30 + $0x2c0] sm:$0xff] }
  0x70   : > { %v2238_v46 = vmul.f32 0.5, %v190_v31  ;;  %11419 = vst [vmem:[%s12322_s25 + $0x88] sm:$0xff] %v6460_v38  ;;  %v2270_v50 = vmul.f32 0.5, %v222_v36  ;;  %v2302_v51 = vmul.f32 0.5, %v254_v37  ;;  %v4254_v52 = vtrunc.f32 %v2206_v41  ;;  %v258_v33 = vld [vmem:[%s12293_s30 + $0x3c0] sm:$0xff]  ;;  %v163_v38 = vld [vmem:[%s12293_s30 + $0xc8] sm:$0xff] }
  0x71   : > { %v6470_v49 = vpack.c.b8 %v6466_v40, %v6462_v39  ;;  %v6472_v54 = vpack.c.f32.eXmY %v4253_v35, %v4285_v43, 312  ;;  %v6476_v55 = vpack.c.f32.eXmY %v4317_v44, %v4349_v45, 312  ;;  %v2207_v57 = vmul.f32 0.5, %v159_v42  ;;  %v195_v43 = vld [vmem:[%s12293_s30 + $0x1c8] sm:$0xff] }
  0x72   : > { %v4286_v56 = vtrunc.f32 %v2238_v46  ;;  %v4318_v59 = vtrunc.f32 %v2270_v50  ;;  %v4350_v60 = vtrunc.f32 %v2302_v51  ;;  %v2239_v61 = vmul.f32 0.5, %v191_v47  ;;  %v227_v44 = vld [vmem:[%s12293_s30 + $0x2c8] sm:$0xff] }
  0x73   : > { %11420 = vst [vmem:[%s12322_s25 + $0x90] sm:$0xff] %v6470_v49  ;;  %v2271_v62 = vmul.f32 0.5, %v223_v48  ;;  %v6480_v2 = vpack.c.b8 %v6476_v55, %v6472_v54  ;;  %v2303_v4 = vmul.f32 0.5, %v255_v53  ;;  %v4255_v5 = vtrunc.f32 %v2207_v57  ;;  %v259_v49 = vld [vmem:[%s12293_s30 + $0x3c8] sm:$0xff]  ;;  %v164_v54 = vld [vmem:[%s12293_s30 + $0xd0] sm:$0xff] }
  0x74   : > { %v6482_v3 = vpack.c.f32.eXmY %v4254_v52, %v4286_v56, 312  ;;  %v6486_v7 = vpack.c.f32.eXmY %v4318_v59, %v4350_v60, 312  ;;  %v4287_v8 = vtrunc.f32 %v2239_v61  ;;  %v2208_v10 = vmul.f32 0.5, %v160_v58  ;;  %v196_v59 = vld [vmem:[%s12293_s30 + $0x1d0] sm:$0xff] }
  0x75   : > { %v4319_v9 = vtrunc.f32 %v2271_v62  ;;  %11421 = vst [vmem:[%s12322_s25 + $0x98] sm:$0xff] %v6480_v2  ;;  %v4351_v11 = vtrunc.f32 %v2303_v4  ;;  %v2240_v12 = vmul.f32 0.5, %v192_v63  ;;  %v2272_v13 = vmul.f32 0.5, %v224_v0  ;;  %v228_v60 = vld [vmem:[%s12293_s30 + $0x2d0] sm:$0xff]  ;;  %v165_v2 = vld [vmem:[%s12293_s30 + $0xd8] sm:$0xff] }
  0x76   : > { %v2304_v14 = vmul.f32 0.5, %v256_v1  ;;  %v6490_v18 = vpack.c.b8 %v6486_v7, %v6482_v3  ;;  %v6492_v19 = vpack.c.f32.eXmY %v4255_v5, %v4287_v8, 312  ;;  %v4256_v20 = vtrunc.f32 %v2208_v10  ;;  %v260_v61 = vld [vmem:[%s12293_s30 + $0x3d0] sm:$0xff] }
  0x77   : > { %v2209_v21 = vmul.f32 0.5, %v161_v6  ;;  %v6496_v23 = vpack.c.f32.eXmY %v4319_v9, %v4351_v11, 312  ;;  %v4288_v24 = vtrunc.f32 %v2240_v12  ;;  %v4320_v25 = vtrunc.f32 %v2272_v13  ;;  %v197_v11 = vld [vmem:[%s12293_s30 + $0x1d8] sm:$0xff] }
  0x78   : > { %v4352_v26 = vtrunc.f32 %v2304_v14  ;;  %11422 = vst [vmem:[%s12322_s25 + $0xa0] sm:$0xff] %v6490_v18  ;;  %v2241_v28 = vmul.f32 0.5, %v193_v15  ;;  %v2273_v29 = vmul.f32 0.5, %v225_v16  ;;  %v2305_v30 = vmul.f32 0.5, %v257_v17  ;;  %v229_v12 = vld [vmem:[%s12293_s30 + $0x2d8] sm:$0xff]  ;;  %v166_v18 = vld [vmem:[%s12293_s30 + $0xe0] sm:$0xff] }
  0x79   : > { %v4257_v31 = vtrunc.f32 %v2209_v21  ;;  %v6500_v34 = vpack.c.b8 %v6496_v23, %v6492_v19  ;;  %v6502_v35 = vpack.c.f32.eXmY %v4256_v20, %v4288_v24, 312  ;;  %v2210_v37 = vmul.f32 0.5, %v162_v22  ;;  %v261_v13 = vld [vmem:[%s12293_s30 + $0x3d8] sm:$0xff]  ;;  %v198_v23 = vld [vmem:[%s12293_s30 + $0x1e0] sm:$0xff] }
  0x7a   : > { %v6506_v36 = vpack.c.f32.eXmY %v4320_v25, %v4352_v26, 312  ;;  %v4289_v39 = vtrunc.f32 %v2241_v28  ;;  %v4321_v40 = vtrunc.f32 %v2273_v29  ;;  %v4353_v41 = vtrunc.f32 %v2305_v30  ;;  %v230_v28 = vld [vmem:[%s12293_s30 + $0x2e0] sm:$0xff] }
  0x7b   : > { %v2242_v42 = vmul.f32 0.5, %v194_v27  ;;  %11423 = vst [vmem:[%s12322_s25 + $0xa8] sm:$0xff] %v6500_v34  ;;  %v2274_v46 = vmul.f32 0.5, %v226_v32  ;;  %v2306_v47 = vmul.f32 0.5, %v258_v33  ;;  %v4258_v48 = vtrunc.f32 %v2210_v37  ;;  %v262_v29 = vld [vmem:[%s12293_s30 + $0x3e0] sm:$0xff]  ;;  %v167_v34 = vld [vmem:[%s12293_s30 + $0xe8] sm:$0xff] }
  0x7c   : > { %v6510_v45 = vpack.c.b8 %v6506_v36, %v6502_v35  ;;  %v6512_v50 = vpack.c.f32.eXmY %v4257_v31, %v4289_v39, 312  ;;  %v6516_v51 = vpack.c.f32.eXmY %v4321_v40, %v4353_v41, 312  ;;  %v2211_v53 = vmul.f32 0.5, %v163_v38  ;;  %v199_v39 = vld [vmem:[%s12293_s30 + $0x1e8] sm:$0xff] }
  0x7d   : > { %v4290_v52 = vtrunc.f32 %v2242_v42  ;;  %v4322_v55 = vtrunc.f32 %v2274_v46  ;;  %v4354_v56 = vtrunc.f32 %v2306_v47  ;;  %v2243_v57 = vmul.f32 0.5, %v195_v43  ;;  %v231_v40 = vld [vmem:[%s12293_s30 + $0x2e8] sm:$0xff] }
  0x7e   : > { %11424 = vst [vmem:[%s12322_s25 + $0xb0] sm:$0xff] %v6510_v45  ;;  %v2275_v58 = vmul.f32 0.5, %v227_v44  ;;  %v6520_v62 = vpack.c.b8 %v6516_v51, %v6512_v50  ;;  %v2307_v0 = vmul.f32 0.5, %v259_v49  ;;  %v4259_v1 = vtrunc.f32 %v2211_v53  ;;  %v263_v45 = vld [vmem:[%s12293_s30 + $0x3e8] sm:$0xff]  ;;  %v168_v50 = vld [vmem:[%s12293_s30 + $0xf0] sm:$0xff] }
  0x7f   : > { %v6522_v63 = vpack.c.f32.eXmY %v4258_v48, %v4290_v52, 312  ;;  %v6526_v3 = vpack.c.f32.eXmY %v4322_v55, %v4354_v56, 312  ;;  %v4291_v4 = vtrunc.f32 %v2243_v57  ;;  %v2212_v6 = vmul.f32 0.5, %v164_v54  ;;  %v200_v55 = vld [vmem:[%s12293_s30 + $0x1f0] sm:$0xff] }
  0x80   : > { %v4323_v5 = vtrunc.f32 %v2275_v58  ;;  %11425 = vst [vmem:[%s12322_s25 + $0xb8] sm:$0xff] %v6520_v62  ;;  %v4355_v7 = vtrunc.f32 %v2307_v0  ;;  %v2244_v8 = vmul.f32 0.5, %v196_v59  ;;  %v2276_v9 = vmul.f32 0.5, %v228_v60  ;;  %v232_v56 = vld [vmem:[%s12293_s30 + $0x2f0] sm:$0xff]  ;;  %v169_v62 = vld [vmem:[%s12293_s30 + $0xf8] sm:$0xff] }
  0x81   : > { %v2308_v10 = vmul.f32 0.5, %v260_v61  ;;  %v6530_v14 = vpack.c.b8 %v6526_v3, %v6522_v63  ;;  %v6532_v15 = vpack.c.f32.eXmY %v4259_v1, %v4291_v4, 312  ;;  %v4260_v16 = vtrunc.f32 %v2212_v6  ;;  %v264_v57 = vld [vmem:[%s12293_s30 + $0x3f0] sm:$0xff] }
  0x82   : > { %v2213_v17 = vmul.f32 0.5, %v165_v2  ;;  %v6536_v19 = vpack.c.f32.eXmY %v4323_v5, %v4355_v7, 312  ;;  %v4292_v20 = vtrunc.f32 %v2244_v8  ;;  %v4324_v21 = vtrunc.f32 %v2276_v9  ;;  %v201_v7 = vld [vmem:[%s12293_s30 + $0x1f8] sm:$0xff] }
  0x83   : > { %v4356_v22 = vtrunc.f32 %v2308_v10  ;;  %11426 = vst [vmem:[%s12322_s25 + $0xc0] sm:$0xff] %v6530_v14  ;;  %v2245_v24 = vmul.f32 0.5, %v197_v11  ;;  %v2277_v25 = vmul.f32 0.5, %v229_v12  ;;  %v2309_v26 = vmul.f32 0.5, %v261_v13  ;;  %v233_v8 = vld [vmem:[%s12293_s30 + $0x2f8] sm:$0xff]  ;;  %v266_v14 = vld [vmem:[%s12293_s30 + $0x400] sm:$0xff] }
  0x84   : > { %v4261_v27 = vtrunc.f32 %v2213_v17  ;;  %v6540_v30 = vpack.c.b8 %v6536_v19, %v6532_v15  ;;  %v6542_v31 = vpack.c.f32.eXmY %v4260_v16, %v4292_v20, 312  ;;  %v2214_v33 = vmul.f32 0.5, %v166_v18  ;;  %v265_v9 = vld [vmem:[%s12293_s30 + $0x3f8] sm:$0xff]  ;;  %v298_v19 = vld [vmem:[%s12293_s30 + $0x500] sm:$0xff] }
  0x85   : > { %v6546_v32 = vpack.c.f32.eXmY %v4324_v21, %v4356_v22, 312  ;;  %v4293_v35 = vtrunc.f32 %v2245_v24  ;;  %v4325_v36 = vtrunc.f32 %v2277_v25  ;;  %v4357_v37 = vtrunc.f32 %v2309_v26  ;;  %v330_v24 = vld [vmem:[%s12293_s30 + $0x600] sm:$0xff] }
  0x86   : > { %v2246_v38 = vmul.f32 0.5, %v198_v23  ;;  %11427 = vst [vmem:[%s12322_s25 + $0xc8] sm:$0xff] %v6540_v30  ;;  %v2278_v42 = vmul.f32 0.5, %v230_v28  ;;  %v2310_v43 = vmul.f32 0.5, %v262_v29  ;;  %v4262_v44 = vtrunc.f32 %v2214_v33  ;;  %v362_v25 = vld [vmem:[%s12293_s30 + $0x700] sm:$0xff]  ;;  %v267_v30 = vld [vmem:[%s12293_s30 + $0x408] sm:$0xff] }
  0x87   : > { %v6550_v41 = vpack.c.b8 %v6546_v32, %v6542_v31  ;;  %v6552_v46 = vpack.c.f32.eXmY %v4261_v27, %v4293_v35, 312  ;;  %v6556_v47 = vpack.c.f32.eXmY %v4325_v36, %v4357_v37, 312  ;;  %v2215_v49 = vmul.f32 0.5, %v167_v34  ;;  %v299_v35 = vld [vmem:[%s12293_s30 + $0x508] sm:$0xff] }
  0x88   : > { %v4294_v48 = vtrunc.f32 %v2246_v38  ;;  %v4326_v51 = vtrunc.f32 %v2278_v42  ;;  %v4358_v52 = vtrunc.f32 %v2310_v43  ;;  %v2247_v53 = vmul.f32 0.5, %v199_v39  ;;  %v331_v36 = vld [vmem:[%s12293_s30 + $0x608] sm:$0xff] }
  0x89   : > { %11428 = vst [vmem:[%s12322_s25 + $0xd0] sm:$0xff] %v6550_v41  ;;  %v2279_v54 = vmul.f32 0.5, %v231_v40  ;;  %v6560_v58 = vpack.c.b8 %v6556_v47, %v6552_v46  ;;  %v2311_v60 = vmul.f32 0.5, %v263_v45  ;;  %v4263_v61 = vtrunc.f32 %v2215_v49  ;;  %v363_v41 = vld [vmem:[%s12293_s30 + $0x708] sm:$0xff]  ;;  %v268_v46 = vld [vmem:[%s12293_s30 + $0x410] sm:$0xff] }
  0x8a   : > { %v6562_v59 = vpack.c.f32.eXmY %v4262_v44, %v4294_v48, 312  ;;  %v6566_v63 = vpack.c.f32.eXmY %v4326_v51, %v4358_v52, 312  ;;  %v4295_v0 = vtrunc.f32 %v2247_v53  ;;  %v2216_v2 = vmul.f32 0.5, %v168_v50  ;;  %v300_v51 = vld [vmem:[%s12293_s30 + $0x510] sm:$0xff] }
  0x8b   : > { %v4327_v1 = vtrunc.f32 %v2279_v54  ;;  %11429 = vst [vmem:[%s12322_s25 + $0xd8] sm:$0xff] %v6560_v58  ;;  %v4359_v3 = vtrunc.f32 %v2311_v60  ;;  %v2248_v4 = vmul.f32 0.5, %v200_v55  ;;  %v2280_v5 = vmul.f32 0.5, %v232_v56  ;;  %v332_v52 = vld [vmem:[%s12293_s30 + $0x610] sm:$0xff]  ;;  %v269_v58 = vld [vmem:[%s12293_s30 + $0x418] sm:$0xff] }
  0x8c   : > { %v2312_v6 = vmul.f32 0.5, %v264_v57  ;;  %v6570_v10 = vpack.c.b8 %v6566_v63, %v6562_v59  ;;  %v6572_v11 = vpack.c.f32.eXmY %v4263_v61, %v4295_v0, 312  ;;  %v4264_v12 = vtrunc.f32 %v2216_v2  ;;  %v364_v53 = vld [vmem:[%s12293_s30 + $0x710] sm:$0xff] }
  0x8d   : > { %v2217_v13 = vmul.f32 0.5, %v169_v62  ;;  %v6576_v15 = vpack.c.f32.eXmY %v4327_v1, %v4359_v3, 312  ;;  %v4296_v16 = vtrunc.f32 %v2248_v4  ;;  %v4328_v17 = vtrunc.f32 %v2280_v5  ;;  %v301_v3 = vld [vmem:[%s12293_s30 + $0x518] sm:$0xff] }
  0x8e   : > { %v4360_v18 = vtrunc.f32 %v2312_v6  ;;  %11430 = vst [vmem:[%s12322_s25 + $0xe0] sm:$0xff] %v6570_v10  ;;  %v2249_v20 = vmul.f32 0.5, %v201_v7  ;;  %v2281_v21 = vmul.f32 0.5, %v233_v8  ;;  %v2313_v22 = vmul.f32 0.5, %v265_v9  ;;  %v333_v4 = vld [vmem:[%s12293_s30 + $0x618] sm:$0xff]  ;;  %v270_v10 = vld [vmem:[%s12293_s30 + $0x420] sm:$0xff] }
  0x8f   : > { %v4265_v23 = vtrunc.f32 %v2217_v13  ;;  %v6580_v26 = vpack.c.b8 %v6576_v15, %v6572_v11  ;;  %v6582_v27 = vpack.c.f32.eXmY %v4264_v12, %v4296_v16, 312  ;;  %v2314_v29 = vmul.f32 0.5, %v266_v14  ;;  %v365_v5 = vld [vmem:[%s12293_s30 + $0x718] sm:$0xff]  ;;  %v302_v15 = vld [vmem:[%s12293_s30 + $0x520] sm:$0xff] }
  0x90   : > { %v6586_v28 = vpack.c.f32.eXmY %v4328_v17, %v4360_v18, 312  ;;  %v4297_v31 = vtrunc.f32 %v2249_v20  ;;  %v4329_v32 = vtrunc.f32 %v2281_v21  ;;  %v4361_v33 = vtrunc.f32 %v2313_v22  ;;  %v334_v20 = vld [vmem:[%s12293_s30 + $0x620] sm:$0xff] }
  0x91   : > { %v2346_v34 = vmul.f32 0.5, %v298_v19  ;;  %11431 = vst [vmem:[%s12322_s25 + $0xe8] sm:$0xff] %v6580_v26  ;;  %v2378_v38 = vmul.f32 0.5, %v330_v24  ;;  %v2410_v39 = vmul.f32 0.5, %v362_v25  ;;  %v4362_v40 = vtrunc.f32 %v2314_v29  ;;  %v366_v21 = vld [vmem:[%s12293_s30 + $0x720] sm:$0xff]  ;;  %v271_v26 = vld [vmem:[%s12293_s30 + $0x428] sm:$0xff] }
  0x92   : > { %v6590_v37 = vpack.c.b8 %v6586_v28, %v6582_v27  ;;  %v6592_v42 = vpack.c.f32.eXmY %v4265_v23, %v4297_v31, 312  ;;  %v6596_v43 = vpack.c.f32.eXmY %v4329_v32, %v4361_v33, 312  ;;  %v2315_v45 = vmul.f32 0.5, %v267_v30  ;;  %v303_v31 = vld [vmem:[%s12293_s30 + $0x528] sm:$0xff] }
  0x93   : > { %v4394_v44 = vtrunc.f32 %v2346_v34  ;;  %v4426_v47 = vtrunc.f32 %v2378_v38  ;;  %v4458_v48 = vtrunc.f32 %v2410_v39  ;;  %v2347_v49 = vmul.f32 0.5, %v299_v35  ;;  %v335_v32 = vld [vmem:[%s12293_s30 + $0x628] sm:$0xff] }
  0x94   : > { %11432 = vst [vmem:[%s12322_s25 + $0xf0] sm:$0xff] %v6590_v37  ;;  %v2379_v50 = vmul.f32 0.5, %v331_v36  ;;  %v6600_v54 = vpack.c.b8 %v6596_v43, %v6592_v42  ;;  %v2411_v56 = vmul.f32 0.5, %v363_v41  ;;  %v4363_v57 = vtrunc.f32 %v2315_v45  ;;  %v367_v37 = vld [vmem:[%s12293_s30 + $0x728] sm:$0xff]  ;;  %v272_v42 = vld [vmem:[%s12293_s30 + $0x430] sm:$0xff] }
  0x95   : > { %v6602_v55 = vpack.c.f32.eXmY %v4362_v40, %v4394_v44, 312  ;;  %v6606_v59 = vpack.c.f32.eXmY %v4426_v47, %v4458_v48, 312  ;;  %v4395_v60 = vtrunc.f32 %v2347_v49  ;;  %v2316_v62 = vmul.f32 0.5, %v268_v46  ;;  %v304_v47 = vld [vmem:[%s12293_s30 + $0x530] sm:$0xff] }
  0x96   : > { %v4427_v61 = vtrunc.f32 %v2379_v50  ;;  %11433 = vst [vmem:[%s12322_s25 + $0xf8] sm:$0xff] %v6600_v54  ;;  %v4459_v63 = vtrunc.f32 %v2411_v56  ;;  %v2348_v0 = vmul.f32 0.5, %v300_v51  ;;  %v2380_v1 = vmul.f32 0.5, %v332_v52  ;;  %v336_v48 = vld [vmem:[%s12293_s30 + $0x630] sm:$0xff]  ;;  %v273_v54 = vld [vmem:[%s12293_s30 + $0x438] sm:$0xff] }
  0x97   : > { %v2412_v2 = vmul.f32 0.5, %v364_v53  ;;  %v6610_v6 = vpack.c.b8 %v6606_v59, %v6602_v55  ;;  %v6612_v7 = vpack.c.f32.eXmY %v4363_v57, %v4395_v60, 312  ;;  %v4364_v8 = vtrunc.f32 %v2316_v62  ;;  %v368_v49 = vld [vmem:[%s12293_s30 + $0x730] sm:$0xff] }
  0x98   : > { %v2317_v9 = vmul.f32 0.5, %v269_v58  ;;  %v6616_v11 = vpack.c.f32.eXmY %v4427_v61, %v4459_v63, 312  ;;  %v4396_v12 = vtrunc.f32 %v2348_v0  ;;  %v4428_v13 = vtrunc.f32 %v2380_v1  ;;  %v305_v63 = vld [vmem:[%s12293_s30 + $0x538] sm:$0xff] }
  0x99   : > { %v4460_v14 = vtrunc.f32 %v2412_v2  ;;  %11434 = vst [vmem:[%s12322_s25 + $0x100] sm:$0xff] %v6610_v6  ;;  %v2349_v16 = vmul.f32 0.5, %v301_v3  ;;  %v2381_v17 = vmul.f32 0.5, %v333_v4  ;;  %v2413_v18 = vmul.f32 0.5, %v365_v5  ;;  %v337_v0 = vld [vmem:[%s12293_s30 + $0x638] sm:$0xff]  ;;  %v274_v6 = vld [vmem:[%s12293_s30 + $0x440] sm:$0xff] }
  0x9a   : > { %v4365_v19 = vtrunc.f32 %v2317_v9  ;;  %v6620_v22 = vpack.c.b8 %v6616_v11, %v6612_v7  ;;  %v6622_v23 = vpack.c.f32.eXmY %v4364_v8, %v4396_v12, 312  ;;  %v2318_v25 = vmul.f32 0.5, %v270_v10  ;;  %v369_v1 = vld [vmem:[%s12293_s30 + $0x738] sm:$0xff]  ;;  %v306_v11 = vld [vmem:[%s12293_s30 + $0x540] sm:$0xff] }
  0x9b   : > { %v6626_v24 = vpack.c.f32.eXmY %v4428_v13, %v4460_v14, 312  ;;  %v4397_v27 = vtrunc.f32 %v2349_v16  ;;  %v4429_v28 = vtrunc.f32 %v2381_v17  ;;  %v4461_v29 = vtrunc.f32 %v2413_v18  ;;  %v338_v16 = vld [vmem:[%s12293_s30 + $0x640] sm:$0xff] }
  0x9c   : > { %v2350_v30 = vmul.f32 0.5, %v302_v15  ;;  %11435 = vst [vmem:[%s12322_s25 + $0x108] sm:$0xff] %v6620_v22  ;;  %v2382_v34 = vmul.f32 0.5, %v334_v20  ;;  %v2414_v35 = vmul.f32 0.5, %v366_v21  ;;  %v4366_v36 = vtrunc.f32 %v2318_v25  ;;  %v370_v17 = vld [vmem:[%s12293_s30 + $0x740] sm:$0xff]  ;;  %v275_v22 = vld [vmem:[%s12293_s30 + $0x448] sm:$0xff] }
  0x9d   : > { %v6630_v33 = vpack.c.b8 %v6626_v24, %v6622_v23  ;;  %v6632_v38 = vpack.c.f32.eXmY %v4365_v19, %v4397_v27, 312  ;;  %v6636_v39 = vpack.c.f32.eXmY %v4429_v28, %v4461_v29, 312  ;;  %v2319_v41 = vmul.f32 0.5, %v271_v26  ;;  %v307_v27 = vld [vmem:[%s12293_s30 + $0x548] sm:$0xff] }
  0x9e   : > { %v4398_v40 = vtrunc.f32 %v2350_v30  ;;  %v4430_v43 = vtrunc.f32 %v2382_v34  ;;  %v4462_v44 = vtrunc.f32 %v2414_v35  ;;  %v2351_v45 = vmul.f32 0.5, %v303_v31  ;;  %v339_v28 = vld [vmem:[%s12293_s30 + $0x648] sm:$0xff] }
  0x9f   : > { %11436 = vst [vmem:[%s12322_s25 + $0x110] sm:$0xff] %v6630_v33  ;;  %v2383_v46 = vmul.f32 0.5, %v335_v32  ;;  %v6640_v50 = vpack.c.b8 %v6636_v39, %v6632_v38  ;;  %v2415_v52 = vmul.f32 0.5, %v367_v37  ;;  %v4367_v53 = vtrunc.f32 %v2319_v41  ;;  %v371_v33 = vld [vmem:[%s12293_s30 + $0x748] sm:$0xff]  ;;  %v276_v38 = vld [vmem:[%s12293_s30 + $0x450] sm:$0xff] }
  0xa0   : > { %v6642_v51 = vpack.c.f32.eXmY %v4366_v36, %v4398_v40, 312  ;;  %v6646_v55 = vpack.c.f32.eXmY %v4430_v43, %v4462_v44, 312  ;;  %v4399_v56 = vtrunc.f32 %v2351_v45  ;;  %v2320_v58 = vmul.f32 0.5, %v272_v42  ;;  %v308_v43 = vld [vmem:[%s12293_s30 + $0x550] sm:$0xff] }
  0xa1   : > { %v4431_v57 = vtrunc.f32 %v2383_v46  ;;  %11437 = vst [vmem:[%s12322_s25 + $0x118] sm:$0xff] %v6640_v50  ;;  %v4463_v59 = vtrunc.f32 %v2415_v52  ;;  %v2352_v60 = vmul.f32 0.5, %v304_v47  ;;  %v2384_v61 = vmul.f32 0.5, %v336_v48  ;;  %v340_v44 = vld [vmem:[%s12293_s30 + $0x650] sm:$0xff]  ;;  %v277_v50 = vld [vmem:[%s12293_s30 + $0x458] sm:$0xff] }
  0xa2   : > { %v2416_v62 = vmul.f32 0.5, %v368_v49  ;;  %v6650_v2 = vpack.c.b8 %v6646_v55, %v6642_v51  ;;  %v6652_v3 = vpack.c.f32.eXmY %v4367_v53, %v4399_v56, 312  ;;  %v4368_v4 = vtrunc.f32 %v2320_v58  ;;  %v372_v45 = vld [vmem:[%s12293_s30 + $0x750] sm:$0xff] }
  0xa3   : > { %v2321_v5 = vmul.f32 0.5, %v273_v54  ;;  %v6656_v7 = vpack.c.f32.eXmY %v4431_v57, %v4463_v59, 312  ;;  %v4400_v8 = vtrunc.f32 %v2352_v60  ;;  %v4432_v9 = vtrunc.f32 %v2384_v61  ;;  %v309_v59 = vld [vmem:[%s12293_s30 + $0x558] sm:$0xff] }
  0xa4   : > { %v4464_v10 = vtrunc.f32 %v2416_v62  ;;  %11438 = vst [vmem:[%s12322_s25 + $0x120] sm:$0xff] %v6650_v2  ;;  %v2353_v12 = vmul.f32 0.5, %v305_v63  ;;  %v2385_v13 = vmul.f32 0.5, %v337_v0  ;;  %v2417_v14 = vmul.f32 0.5, %v369_v1  ;;  %v341_v60 = vld [vmem:[%s12293_s30 + $0x658] sm:$0xff]  ;;  %v278_v2 = vld [vmem:[%s12293_s30 + $0x460] sm:$0xff] }
  0xa5   : > { %v4369_v15 = vtrunc.f32 %v2321_v5  ;;  %v6660_v18 = vpack.c.b8 %v6656_v7, %v6652_v3  ;;  %v6662_v19 = vpack.c.f32.eXmY %v4368_v4, %v4400_v8, 312  ;;  %v2322_v21 = vmul.f32 0.5, %v274_v6  ;;  %v373_v61 = vld [vmem:[%s12293_s30 + $0x758] sm:$0xff]  ;;  %v310_v7 = vld [vmem:[%s12293_s30 + $0x560] sm:$0xff] }
  0xa6   : > { %v6666_v20 = vpack.c.f32.eXmY %v4432_v9, %v4464_v10, 312  ;;  %v4401_v23 = vtrunc.f32 %v2353_v12  ;;  %v4433_v24 = vtrunc.f32 %v2385_v13  ;;  %v4465_v25 = vtrunc.f32 %v2417_v14  ;;  %v342_v12 = vld [vmem:[%s12293_s30 + $0x660] sm:$0xff] }
  0xa7   : > { %v2354_v26 = vmul.f32 0.5, %v306_v11  ;;  %11439 = vst [vmem:[%s12322_s25 + $0x128] sm:$0xff] %v6660_v18  ;;  %v2386_v30 = vmul.f32 0.5, %v338_v16  ;;  %v2418_v31 = vmul.f32 0.5, %v370_v17  ;;  %v4370_v32 = vtrunc.f32 %v2322_v21  ;;  %v374_v13 = vld [vmem:[%s12293_s30 + $0x760] sm:$0xff]  ;;  %v279_v18 = vld [vmem:[%s12293_s30 + $0x468] sm:$0xff] }
  0xa8   : > { %v6670_v29 = vpack.c.b8 %v6666_v20, %v6662_v19  ;;  %v6672_v34 = vpack.c.f32.eXmY %v4369_v15, %v4401_v23, 312  ;;  %v6676_v35 = vpack.c.f32.eXmY %v4433_v24, %v4465_v25, 312  ;;  %v2323_v37 = vmul.f32 0.5, %v275_v22  ;;  %v311_v23 = vld [vmem:[%s12293_s30 + $0x568] sm:$0xff] }
  0xa9   : > { %v4402_v36 = vtrunc.f32 %v2354_v26  ;;  %v4434_v39 = vtrunc.f32 %v2386_v30  ;;  %v4466_v40 = vtrunc.f32 %v2418_v31  ;;  %v2355_v41 = vmul.f32 0.5, %v307_v27  ;;  %v343_v24 = vld [vmem:[%s12293_s30 + $0x668] sm:$0xff] }
  0xaa   : > { %11440 = vst [vmem:[%s12322_s25 + $0x130] sm:$0xff] %v6670_v29  ;;  %v2387_v42 = vmul.f32 0.5, %v339_v28  ;;  %v6680_v46 = vpack.c.b8 %v6676_v35, %v6672_v34  ;;  %v2419_v48 = vmul.f32 0.5, %v371_v33  ;;  %v4371_v49 = vtrunc.f32 %v2323_v37  ;;  %v375_v29 = vld [vmem:[%s12293_s30 + $0x768] sm:$0xff]  ;;  %v280_v34 = vld [vmem:[%s12293_s30 + $0x470] sm:$0xff] }
  0xab   : > { %v6682_v47 = vpack.c.f32.eXmY %v4370_v32, %v4402_v36, 312  ;;  %v6686_v51 = vpack.c.f32.eXmY %v4434_v39, %v4466_v40, 312  ;;  %v4403_v52 = vtrunc.f32 %v2355_v41  ;;  %v2324_v54 = vmul.f32 0.5, %v276_v38  ;;  %v312_v39 = vld [vmem:[%s12293_s30 + $0x570] sm:$0xff] }
  0xac   : > { %v4435_v53 = vtrunc.f32 %v2387_v42  ;;  %11441 = vst [vmem:[%s12322_s25 + $0x138] sm:$0xff] %v6680_v46  ;;  %v4467_v55 = vtrunc.f32 %v2419_v48  ;;  %v2356_v56 = vmul.f32 0.5, %v308_v43  ;;  %v2388_v57 = vmul.f32 0.5, %v340_v44  ;;  %v344_v40 = vld [vmem:[%s12293_s30 + $0x670] sm:$0xff]  ;;  %v281_v46 = vld [vmem:[%s12293_s30 + $0x478] sm:$0xff] }
  0xad   : > { %v2420_v58 = vmul.f32 0.5, %v372_v45  ;;  %v6690_v62 = vpack.c.b8 %v6686_v51, %v6682_v47  ;;  %v6692_v63 = vpack.c.f32.eXmY %v4371_v49, %v4403_v52, 312  ;;  %v4372_v0 = vtrunc.f32 %v2324_v54  ;;  %v376_v41 = vld [vmem:[%s12293_s30 + $0x770] sm:$0xff] }
  0xae   : > { %v2325_v1 = vmul.f32 0.5, %v277_v50  ;;  %v6696_v3 = vpack.c.f32.eXmY %v4435_v53, %v4467_v55, 312  ;;  %v4404_v4 = vtrunc.f32 %v2356_v56  ;;  %v4436_v5 = vtrunc.f32 %v2388_v57  ;;  %v313_v55 = vld [vmem:[%s12293_s30 + $0x578] sm:$0xff] }
  0xaf   : > { %v4468_v6 = vtrunc.f32 %v2420_v58  ;;  %11442 = vst [vmem:[%s12322_s25 + $0x140] sm:$0xff] %v6690_v62  ;;  %v2357_v8 = vmul.f32 0.5, %v309_v59  ;;  %v2389_v9 = vmul.f32 0.5, %v341_v60  ;;  %v2421_v10 = vmul.f32 0.5, %v373_v61  ;;  %v345_v56 = vld [vmem:[%s12293_s30 + $0x678] sm:$0xff]  ;;  %v282_v62 = vld [vmem:[%s12293_s30 + $0x480] sm:$0xff] }
  0xb0   : > { %v4373_v11 = vtrunc.f32 %v2325_v1  ;;  %v6700_v14 = vpack.c.b8 %v6696_v3, %v6692_v63  ;;  %v6702_v15 = vpack.c.f32.eXmY %v4372_v0, %v4404_v4, 312  ;;  %v2326_v17 = vmul.f32 0.5, %v278_v2  ;;  %v377_v57 = vld [vmem:[%s12293_s30 + $0x778] sm:$0xff]  ;;  %v314_v3 = vld [vmem:[%s12293_s30 + $0x580] sm:$0xff] }
  0xb1   : > { %v6706_v16 = vpack.c.f32.eXmY %v4436_v5, %v4468_v6, 312  ;;  %v4405_v19 = vtrunc.f32 %v2357_v8  ;;  %v4437_v20 = vtrunc.f32 %v2389_v9  ;;  %v4469_v21 = vtrunc.f32 %v2421_v10  ;;  %v346_v8 = vld [vmem:[%s12293_s30 + $0x680] sm:$0xff] }
  0xb2   : > { %v2358_v22 = vmul.f32 0.5, %v310_v7  ;;  %11443 = vst [vmem:[%s12322_s25 + $0x148] sm:$0xff] %v6700_v14  ;;  %v2390_v26 = vmul.f32 0.5, %v342_v12  ;;  %v2422_v27 = vmul.f32 0.5, %v374_v13  ;;  %v4374_v28 = vtrunc.f32 %v2326_v17  ;;  %v378_v9 = vld [vmem:[%s12293_s30 + $0x780] sm:$0xff]  ;;  %v283_v14 = vld [vmem:[%s12293_s30 + $0x488] sm:$0xff] }
  0xb3   : > { %v6710_v25 = vpack.c.b8 %v6706_v16, %v6702_v15  ;;  %v6712_v30 = vpack.c.f32.eXmY %v4373_v11, %v4405_v19, 312  ;;  %v6716_v31 = vpack.c.f32.eXmY %v4437_v20, %v4469_v21, 312  ;;  %v2327_v33 = vmul.f32 0.5, %v279_v18  ;;  %v315_v19 = vld [vmem:[%s12293_s30 + $0x588] sm:$0xff] }
  0xb4   : > { %v4406_v32 = vtrunc.f32 %v2358_v22  ;;  %v4438_v35 = vtrunc.f32 %v2390_v26  ;;  %v4470_v36 = vtrunc.f32 %v2422_v27  ;;  %v2359_v37 = vmul.f32 0.5, %v311_v23  ;;  %v347_v20 = vld [vmem:[%s12293_s30 + $0x688] sm:$0xff] }
  0xb5   : > { %11444 = vst [vmem:[%s12322_s25 + $0x150] sm:$0xff] %v6710_v25  ;;  %v2391_v38 = vmul.f32 0.5, %v343_v24  ;;  %v6720_v42 = vpack.c.b8 %v6716_v31, %v6712_v30  ;;  %v2423_v44 = vmul.f32 0.5, %v375_v29  ;;  %v4375_v45 = vtrunc.f32 %v2327_v33  ;;  %v379_v25 = vld [vmem:[%s12293_s30 + $0x788] sm:$0xff]  ;;  %v284_v30 = vld [vmem:[%s12293_s30 + $0x490] sm:$0xff] }
  0xb6   : > { %v6722_v43 = vpack.c.f32.eXmY %v4374_v28, %v4406_v32, 312  ;;  %v6726_v47 = vpack.c.f32.eXmY %v4438_v35, %v4470_v36, 312  ;;  %v4407_v48 = vtrunc.f32 %v2359_v37  ;;  %v2328_v50 = vmul.f32 0.5, %v280_v34  ;;  %v316_v35 = vld [vmem:[%s12293_s30 + $0x590] sm:$0xff] }
  0xb7   : > { %v4439_v49 = vtrunc.f32 %v2391_v38  ;;  %11445 = vst [vmem:[%s12322_s25 + $0x158] sm:$0xff] %v6720_v42  ;;  %v4471_v51 = vtrunc.f32 %v2423_v44  ;;  %v2360_v52 = vmul.f32 0.5, %v312_v39  ;;  %v2392_v53 = vmul.f32 0.5, %v344_v40  ;;  %v348_v36 = vld [vmem:[%s12293_s30 + $0x690] sm:$0xff]  ;;  %v285_v42 = vld [vmem:[%s12293_s30 + $0x498] sm:$0xff] }
  0xb8   : > { %v2424_v54 = vmul.f32 0.5, %v376_v41  ;;  %v6730_v58 = vpack.c.b8 %v6726_v47, %v6722_v43  ;;  %v6732_v59 = vpack.c.f32.eXmY %v4375_v45, %v4407_v48, 312  ;;  %v4376_v60 = vtrunc.f32 %v2328_v50  ;;  %v380_v37 = vld [vmem:[%s12293_s30 + $0x790] sm:$0xff] }
  0xb9   : > { %v2329_v61 = vmul.f32 0.5, %v281_v46  ;;  %v6736_v63 = vpack.c.f32.eXmY %v4439_v49, %v4471_v51, 312  ;;  %v4408_v0 = vtrunc.f32 %v2360_v52  ;;  %v4440_v1 = vtrunc.f32 %v2392_v53  ;;  %v317_v51 = vld [vmem:[%s12293_s30 + $0x598] sm:$0xff] }
  0xba   : > { %v4472_v2 = vtrunc.f32 %v2424_v54  ;;  %11446 = vst [vmem:[%s12322_s25 + $0x160] sm:$0xff] %v6730_v58  ;;  %v2361_v4 = vmul.f32 0.5, %v313_v55  ;;  %v2393_v5 = vmul.f32 0.5, %v345_v56  ;;  %v2425_v6 = vmul.f32 0.5, %v377_v57  ;;  %v349_v52 = vld [vmem:[%s12293_s30 + $0x698] sm:$0xff]  ;;  %v286_v58 = vld [vmem:[%s12293_s30 + $0x4a0] sm:$0xff] }
  0xbb   : > { %v4377_v7 = vtrunc.f32 %v2329_v61  ;;  %v6740_v10 = vpack.c.b8 %v6736_v63, %v6732_v59  ;;  %v6742_v11 = vpack.c.f32.eXmY %v4376_v60, %v4408_v0, 312  ;;  %v2330_v13 = vmul.f32 0.5, %v282_v62  ;;  %v381_v53 = vld [vmem:[%s12293_s30 + $0x798] sm:$0xff]  ;;  %v318_v63 = vld [vmem:[%s12293_s30 + $0x5a0] sm:$0xff] }
  0xbc   : > { %v6746_v12 = vpack.c.f32.eXmY %v4440_v1, %v4472_v2, 312  ;;  %v4409_v15 = vtrunc.f32 %v2361_v4  ;;  %v4441_v16 = vtrunc.f32 %v2393_v5  ;;  %v4473_v17 = vtrunc.f32 %v2425_v6  ;;  %v350_v4 = vld [vmem:[%s12293_s30 + $0x6a0] sm:$0xff] }
  0xbd   : > { %v2362_v18 = vmul.f32 0.5, %v314_v3  ;;  %11447 = vst [vmem:[%s12322_s25 + $0x168] sm:$0xff] %v6740_v10  ;;  %v2394_v22 = vmul.f32 0.5, %v346_v8  ;;  %v2426_v23 = vmul.f32 0.5, %v378_v9  ;;  %v4378_v24 = vtrunc.f32 %v2330_v13  ;;  %v382_v5 = vld [vmem:[%s12293_s30 + $0x7a0] sm:$0xff]  ;;  %v287_v10 = vld [vmem:[%s12293_s30 + $0x4a8] sm:$0xff] }
  0xbe   : > { %v6750_v21 = vpack.c.b8 %v6746_v12, %v6742_v11  ;;  %v6752_v26 = vpack.c.f32.eXmY %v4377_v7, %v4409_v15, 312  ;;  %v6756_v27 = vpack.c.f32.eXmY %v4441_v16, %v4473_v17, 312  ;;  %v2331_v29 = vmul.f32 0.5, %v283_v14  ;;  %v319_v15 = vld [vmem:[%s12293_s30 + $0x5a8] sm:$0xff] }
  0xbf   : > { %v4410_v28 = vtrunc.f32 %v2362_v18  ;;  %v4442_v31 = vtrunc.f32 %v2394_v22  ;;  %v4474_v32 = vtrunc.f32 %v2426_v23  ;;  %v2363_v33 = vmul.f32 0.5, %v315_v19  ;;  %v351_v16 = vld [vmem:[%s12293_s30 + $0x6a8] sm:$0xff] }
  0xc0   : > { %11448 = vst [vmem:[%s12322_s25 + $0x170] sm:$0xff] %v6750_v21  ;;  %v2395_v34 = vmul.f32 0.5, %v347_v20  ;;  %v6760_v38 = vpack.c.b8 %v6756_v27, %v6752_v26  ;;  %v2427_v40 = vmul.f32 0.5, %v379_v25  ;;  %v4379_v41 = vtrunc.f32 %v2331_v29  ;;  %v383_v21 = vld [vmem:[%s12293_s30 + $0x7a8] sm:$0xff]  ;;  %v288_v26 = vld [vmem:[%s12293_s30 + $0x4b0] sm:$0xff] }
  0xc1   : > { %v6762_v39 = vpack.c.f32.eXmY %v4378_v24, %v4410_v28, 312  ;;  %v6766_v43 = vpack.c.f32.eXmY %v4442_v31, %v4474_v32, 312  ;;  %v4411_v44 = vtrunc.f32 %v2363_v33  ;;  %v2332_v46 = vmul.f32 0.5, %v284_v30  ;;  %v320_v31 = vld [vmem:[%s12293_s30 + $0x5b0] sm:$0xff] }
  0xc2   : > { %v4443_v45 = vtrunc.f32 %v2395_v34  ;;  %11449 = vst [vmem:[%s12322_s25 + $0x178] sm:$0xff] %v6760_v38  ;;  %v4475_v47 = vtrunc.f32 %v2427_v40  ;;  %v2364_v48 = vmul.f32 0.5, %v316_v35  ;;  %v2396_v49 = vmul.f32 0.5, %v348_v36  ;;  %v352_v32 = vld [vmem:[%s12293_s30 + $0x6b0] sm:$0xff]  ;;  %v289_v38 = vld [vmem:[%s12293_s30 + $0x4b8] sm:$0xff] }
  0xc3   : > { %v2428_v50 = vmul.f32 0.5, %v380_v37  ;;  %v6770_v54 = vpack.c.b8 %v6766_v43, %v6762_v39  ;;  %v6772_v55 = vpack.c.f32.eXmY %v4379_v41, %v4411_v44, 312  ;;  %v4380_v56 = vtrunc.f32 %v2332_v46  ;;  %v384_v33 = vld [vmem:[%s12293_s30 + $0x7b0] sm:$0xff] }
  0xc4   : > { %v2333_v57 = vmul.f32 0.5, %v285_v42  ;;  %v6776_v59 = vpack.c.f32.eXmY %v4443_v45, %v4475_v47, 312  ;;  %v4412_v60 = vtrunc.f32 %v2364_v48  ;;  %v4444_v61 = vtrunc.f32 %v2396_v49  ;;  %v321_v47 = vld [vmem:[%s12293_s30 + $0x5b8] sm:$0xff] }
  0xc5   : > { %v4476_v62 = vtrunc.f32 %v2428_v50  ;;  %11450 = vst [vmem:[%s12322_s25 + $0x180] sm:$0xff] %v6770_v54  ;;  %v2365_v0 = vmul.f32 0.5, %v317_v51  ;;  %v2397_v1 = vmul.f32 0.5, %v349_v52  ;;  %v2429_v2 = vmul.f32 0.5, %v381_v53  ;;  %v353_v48 = vld [vmem:[%s12293_s30 + $0x6b8] sm:$0xff]  ;;  %v290_v54 = vld [vmem:[%s12293_s30 + $0x4c0] sm:$0xff] }
  0xc6   : > { %v4381_v3 = vtrunc.f32 %v2333_v57  ;;  %v6780_v6 = vpack.c.b8 %v6776_v59, %v6772_v55  ;;  %v6782_v7 = vpack.c.f32.eXmY %v4380_v56, %v4412_v60, 312  ;;  %v2334_v9 = vmul.f32 0.5, %v286_v58  ;;  %v385_v49 = vld [vmem:[%s12293_s30 + $0x7b8] sm:$0xff]  ;;  %v322_v59 = vld [vmem:[%s12293_s30 + $0x5c0] sm:$0xff] }
  0xc7   : > { %v6786_v8 = vpack.c.f32.eXmY %v4444_v61, %v4476_v62, 312  ;;  %v4413_v11 = vtrunc.f32 %v2365_v0  ;;  %v4445_v12 = vtrunc.f32 %v2397_v1  ;;  %v4477_v13 = vtrunc.f32 %v2429_v2  ;;  %v354_v0 = vld [vmem:[%s12293_s30 + $0x6c0] sm:$0xff] }
  0xc8   : > { %v2366_v14 = vmul.f32 0.5, %v318_v63  ;;  %11451 = vst [vmem:[%s12322_s25 + $0x188] sm:$0xff] %v6780_v6  ;;  %v2398_v18 = vmul.f32 0.5, %v350_v4  ;;  %v2430_v19 = vmul.f32 0.5, %v382_v5  ;;  %v4382_v20 = vtrunc.f32 %v2334_v9  ;;  %v386_v1 = vld [vmem:[%s12293_s30 + $0x7c0] sm:$0xff]  ;;  %v291_v6 = vld [vmem:[%s12293_s30 + $0x4c8] sm:$0xff] }
  0xc9   : > { %v6790_v17 = vpack.c.b8 %v6786_v8, %v6782_v7  ;;  %v6792_v22 = vpack.c.f32.eXmY %v4381_v3, %v4413_v11, 312  ;;  %v6796_v23 = vpack.c.f32.eXmY %v4445_v12, %v4477_v13, 312  ;;  %v2335_v25 = vmul.f32 0.5, %v287_v10  ;;  %v323_v11 = vld [vmem:[%s12293_s30 + $0x5c8] sm:$0xff] }
  0xca   : > { %v4414_v24 = vtrunc.f32 %v2366_v14  ;;  %v4446_v27 = vtrunc.f32 %v2398_v18  ;;  %v4478_v28 = vtrunc.f32 %v2430_v19  ;;  %v2367_v29 = vmul.f32 0.5, %v319_v15  ;;  %v355_v12 = vld [vmem:[%s12293_s30 + $0x6c8] sm:$0xff] }
  0xcb   : > { %11452 = vst [vmem:[%s12322_s25 + $0x190] sm:$0xff] %v6790_v17  ;;  %v2399_v30 = vmul.f32 0.5, %v351_v16  ;;  %v6800_v34 = vpack.c.b8 %v6796_v23, %v6792_v22  ;;  %v2431_v36 = vmul.f32 0.5, %v383_v21  ;;  %v4383_v37 = vtrunc.f32 %v2335_v25  ;;  %v387_v17 = vld [vmem:[%s12293_s30 + $0x7c8] sm:$0xff]  ;;  %v292_v22 = vld [vmem:[%s12293_s30 + $0x4d0] sm:$0xff] }
  0xcc   : > { %v6802_v35 = vpack.c.f32.eXmY %v4382_v20, %v4414_v24, 312  ;;  %v6806_v39 = vpack.c.f32.eXmY %v4446_v27, %v4478_v28, 312  ;;  %v4415_v40 = vtrunc.f32 %v2367_v29  ;;  %v2336_v42 = vmul.f32 0.5, %v288_v26  ;;  %v324_v27 = vld [vmem:[%s12293_s30 + $0x5d0] sm:$0xff] }
  0xcd   : > { %v4447_v41 = vtrunc.f32 %v2399_v30  ;;  %11453 = vst [vmem:[%s12322_s25 + $0x198] sm:$0xff] %v6800_v34  ;;  %v4479_v43 = vtrunc.f32 %v2431_v36  ;;  %v2368_v44 = vmul.f32 0.5, %v320_v31  ;;  %v2400_v45 = vmul.f32 0.5, %v352_v32  ;;  %v356_v28 = vld [vmem:[%s12293_s30 + $0x6d0] sm:$0xff]  ;;  %v293_v34 = vld [vmem:[%s12293_s30 + $0x4d8] sm:$0xff] }
  0xce   : > { %v2432_v46 = vmul.f32 0.5, %v384_v33  ;;  %v6810_v50 = vpack.c.b8 %v6806_v39, %v6802_v35  ;;  %v6812_v51 = vpack.c.f32.eXmY %v4383_v37, %v4415_v40, 312  ;;  %v4384_v52 = vtrunc.f32 %v2336_v42  ;;  %v388_v29 = vld [vmem:[%s12293_s30 + $0x7d0] sm:$0xff] }
  0xcf   : > { %v2337_v53 = vmul.f32 0.5, %v289_v38  ;;  %v6816_v55 = vpack.c.f32.eXmY %v4447_v41, %v4479_v43, 312  ;;  %v4416_v56 = vtrunc.f32 %v2368_v44  ;;  %v4448_v57 = vtrunc.f32 %v2400_v45  ;;  %v325_v43 = vld [vmem:[%s12293_s30 + $0x5d8] sm:$0xff] }
  0xd0   : > { %v4480_v58 = vtrunc.f32 %v2432_v46  ;;  %11454 = vst [vmem:[%s12322_s25 + $0x1a0] sm:$0xff] %v6810_v50  ;;  %v2369_v60 = vmul.f32 0.5, %v321_v47  ;;  %v2401_v61 = vmul.f32 0.5, %v353_v48  ;;  %v2433_v62 = vmul.f32 0.5, %v385_v49  ;;  %v357_v44 = vld [vmem:[%s12293_s30 + $0x6d8] sm:$0xff]  ;;  %v294_v50 = vld [vmem:[%s12293_s30 + $0x4e0] sm:$0xff] }
  0xd1   : > { %v4385_v63 = vtrunc.f32 %v2337_v53  ;;  %v6820_v2 = vpack.c.b8 %v6816_v55, %v6812_v51  ;;  %v6822_v3 = vpack.c.f32.eXmY %v4384_v52, %v4416_v56, 312  ;;  %v2338_v5 = vmul.f32 0.5, %v290_v54  ;;  %v389_v45 = vld [vmem:[%s12293_s30 + $0x7d8] sm:$0xff]  ;;  %v326_v55 = vld [vmem:[%s12293_s30 + $0x5e0] sm:$0xff] }
  0xd2   : > { %v6826_v4 = vpack.c.f32.eXmY %v4448_v57, %v4480_v58, 312  ;;  %v4417_v7 = vtrunc.f32 %v2369_v60  ;;  %v4449_v8 = vtrunc.f32 %v2401_v61  ;;  %v4481_v9 = vtrunc.f32 %v2433_v62  ;;  %v358_v60 = vld [vmem:[%s12293_s30 + $0x6e0] sm:$0xff] }
  0xd3   : > { %v2370_v10 = vmul.f32 0.5, %v322_v59  ;;  %11455 = vst [vmem:[%s12322_s25 + $0x1a8] sm:$0xff] %v6820_v2  ;;  %v2402_v14 = vmul.f32 0.5, %v354_v0  ;;  %v2434_v15 = vmul.f32 0.5, %v386_v1  ;;  %v4386_v16 = vtrunc.f32 %v2338_v5  ;;  %v390_v61 = vld [vmem:[%s12293_s30 + $0x7e0] sm:$0xff]  ;;  %v295_v2 = vld [vmem:[%s12293_s30 + $0x4e8] sm:$0xff] }
  0xd4   : > { %v6830_v13 = vpack.c.b8 %v6826_v4, %v6822_v3  ;;  %v6832_v18 = vpack.c.f32.eXmY %v4385_v63, %v4417_v7, 312  ;;  %v6836_v19 = vpack.c.f32.eXmY %v4449_v8, %v4481_v9, 312  ;;  %v2339_v21 = vmul.f32 0.5, %v291_v6  ;;  %v327_v7 = vld [vmem:[%s12293_s30 + $0x5e8] sm:$0xff] }
  0xd5   : > { %v4418_v20 = vtrunc.f32 %v2370_v10  ;;  %v4450_v23 = vtrunc.f32 %v2402_v14  ;;  %v4482_v24 = vtrunc.f32 %v2434_v15  ;;  %v2371_v25 = vmul.f32 0.5, %v323_v11  ;;  %v359_v8 = vld [vmem:[%s12293_s30 + $0x6e8] sm:$0xff] }
  0xd6   : > { %11456 = vst [vmem:[%s12322_s25 + $0x1b0] sm:$0xff] %v6830_v13  ;;  %v2403_v26 = vmul.f32 0.5, %v355_v12  ;;  %v6840_v30 = vpack.c.b8 %v6836_v19, %v6832_v18  ;;  %v2435_v32 = vmul.f32 0.5, %v387_v17  ;;  %v4387_v33 = vtrunc.f32 %v2339_v21  ;;  %v391_v13 = vld [vmem:[%s12293_s30 + $0x7e8] sm:$0xff]  ;;  %v296_v18 = vld [vmem:[%s12293_s30 + $0x4f0] sm:$0xff] }
  0xd7   : > { %v6842_v31 = vpack.c.f32.eXmY %v4386_v16, %v4418_v20, 312  ;;  %v6846_v35 = vpack.c.f32.eXmY %v4450_v23, %v4482_v24, 312  ;;  %v4419_v36 = vtrunc.f32 %v2371_v25  ;;  %v2340_v38 = vmul.f32 0.5, %v292_v22  ;;  %v328_v23 = vld [vmem:[%s12293_s30 + $0x5f0] sm:$0xff] }
  0xd8   : > { %v4451_v37 = vtrunc.f32 %v2403_v26  ;;  %11457 = vst [vmem:[%s12322_s25 + $0x1b8] sm:$0xff] %v6840_v30  ;;  %v4483_v39 = vtrunc.f32 %v2435_v32  ;;  %v2372_v40 = vmul.f32 0.5, %v324_v27  ;;  %v2404_v41 = vmul.f32 0.5, %v356_v28  ;;  %v360_v24 = vld [vmem:[%s12293_s30 + $0x6f0] sm:$0xff]  ;;  %v297_v30 = vld [vmem:[%s12293_s30 + $0x4f8] sm:$0xff] }
  0xd9   : > { %v2436_v42 = vmul.f32 0.5, %v388_v29  ;;  %v6850_v46 = vpack.c.b8 %v6846_v35, %v6842_v31  ;;  %v6852_v47 = vpack.c.f32.eXmY %v4387_v33, %v4419_v36, 312  ;;  %v4388_v48 = vtrunc.f32 %v2340_v38  ;;  %v392_v25 = vld [vmem:[%s12293_s30 + $0x7f0] sm:$0xff] }
  0xda   : > { %v2341_v49 = vmul.f32 0.5, %v293_v34  ;;  %v6856_v51 = vpack.c.f32.eXmY %v4451_v37, %v4483_v39, 312  ;;  %v4420_v52 = vtrunc.f32 %v2372_v40  ;;  %v4452_v53 = vtrunc.f32 %v2404_v41  ;;  %v329_v39 = vld [vmem:[%s12293_s30 + $0x5f8] sm:$0xff] }
  0xdb   : > { %v4484_v54 = vtrunc.f32 %v2436_v42  ;;  %11458 = vst [vmem:[%s12322_s25 + $0x1c0] sm:$0xff] %v6850_v46  ;;  %v2373_v56 = vmul.f32 0.5, %v325_v43  ;;  %v2405_v57 = vmul.f32 0.5, %v357_v44  ;;  %v2437_v58 = vmul.f32 0.5, %v389_v45  ;;  %v361_v40 = vld [vmem:[%s12293_s30 + $0x6f8] sm:$0xff]  ;;  %v394_v46 = vld [vmem:[%s12293_s30 + $0x800] sm:$0xff] }
  0xdc   : > { %v4389_v59 = vtrunc.f32 %v2341_v49  ;;  %v6860_v62 = vpack.c.b8 %v6856_v51, %v6852_v47  ;;  %v6862_v63 = vpack.c.f32.eXmY %v4388_v48, %v4420_v52, 312  ;;  %v2342_v1 = vmul.f32 0.5, %v294_v50  ;;  %v393_v41 = vld [vmem:[%s12293_s30 + $0x7f8] sm:$0xff]  ;;  %v426_v51 = vld [vmem:[%s12293_s30 + $0x900] sm:$0xff] }
  0xdd   : > { %v6866_v0 = vpack.c.f32.eXmY %v4452_v53, %v4484_v54, 312  ;;  %v4421_v3 = vtrunc.f32 %v2373_v56  ;;  %v4453_v4 = vtrunc.f32 %v2405_v57  ;;  %v4485_v5 = vtrunc.f32 %v2437_v58  ;;  %v458_v56 = vld [vmem:[%s12293_s30 + $0xa00] sm:$0xff] }
  0xde   : > { %v2374_v6 = vmul.f32 0.5, %v326_v55  ;;  %11459 = vst [vmem:[%s12322_s25 + $0x1c8] sm:$0xff] %v6860_v62  ;;  %v2406_v10 = vmul.f32 0.5, %v358_v60  ;;  %v2438_v11 = vmul.f32 0.5, %v390_v61  ;;  %v4390_v12 = vtrunc.f32 %v2342_v1  ;;  %v490_v57 = vld [vmem:[%s12293_s30 + $0xb00] sm:$0xff]  ;;  %v395_v62 = vld [vmem:[%s12293_s30 + $0x808] sm:$0xff] }
  0xdf   : > { %v6870_v9 = vpack.c.b8 %v6866_v0, %v6862_v63  ;;  %v6872_v14 = vpack.c.f32.eXmY %v4389_v59, %v4421_v3, 312  ;;  %v6876_v15 = vpack.c.f32.eXmY %v4453_v4, %v4485_v5, 312  ;;  %v2343_v17 = vmul.f32 0.5, %v295_v2  ;;  %v427_v3 = vld [vmem:[%s12293_s30 + $0x908] sm:$0xff] }
  0xe0   : > { %v4422_v16 = vtrunc.f32 %v2374_v6  ;;  %v4454_v19 = vtrunc.f32 %v2406_v10  ;;  %v4486_v20 = vtrunc.f32 %v2438_v11  ;;  %v2375_v21 = vmul.f32 0.5, %v327_v7  ;;  %v459_v4 = vld [vmem:[%s12293_s30 + $0xa08] sm:$0xff] }
  0xe1   : > { %11460 = vst [vmem:[%s12322_s25 + $0x1d0] sm:$0xff] %v6870_v9  ;;  %v2407_v22 = vmul.f32 0.5, %v359_v8  ;;  %v6880_v26 = vpack.c.b8 %v6876_v15, %v6872_v14  ;;  %v2439_v28 = vmul.f32 0.5, %v391_v13  ;;  %v4391_v29 = vtrunc.f32 %v2343_v17  ;;  %v491_v9 = vld [vmem:[%s12293_s30 + $0xb08] sm:$0xff]  ;;  %v396_v14 = vld [vmem:[%s12293_s30 + $0x810] sm:$0xff] }
  0xe2   : > { %v6882_v27 = vpack.c.f32.eXmY %v4390_v12, %v4422_v16, 312  ;;  %v6886_v31 = vpack.c.f32.eXmY %v4454_v19, %v4486_v20, 312  ;;  %v4423_v32 = vtrunc.f32 %v2375_v21  ;;  %v2344_v34 = vmul.f32 0.5, %v296_v18  ;;  %v428_v19 = vld [vmem:[%s12293_s30 + $0x910] sm:$0xff] }
  0xe3   : > { %v4455_v33 = vtrunc.f32 %v2407_v22  ;;  %11461 = vst [vmem:[%s12322_s25 + $0x1d8] sm:$0xff] %v6880_v26  ;;  %v4487_v35 = vtrunc.f32 %v2439_v28  ;;  %v2376_v36 = vmul.f32 0.5, %v328_v23  ;;  %v2408_v37 = vmul.f32 0.5, %v360_v24  ;;  %v460_v20 = vld [vmem:[%s12293_s30 + $0xa10] sm:$0xff]  ;;  %v397_v26 = vld [vmem:[%s12293_s30 + $0x818] sm:$0xff] }
  0xe4   : > { %v2440_v38 = vmul.f32 0.5, %v392_v25  ;;  %v6890_v42 = vpack.c.b8 %v6886_v31, %v6882_v27  ;;  %v6892_v43 = vpack.c.f32.eXmY %v4391_v29, %v4423_v32, 312  ;;  %v4392_v44 = vtrunc.f32 %v2344_v34  ;;  %v492_v21 = vld [vmem:[%s12293_s30 + $0xb10] sm:$0xff] }
  0xe5   : > { %v2345_v45 = vmul.f32 0.5, %v297_v30  ;;  %v6896_v47 = vpack.c.f32.eXmY %v4455_v33, %v4487_v35, 312  ;;  %v4424_v48 = vtrunc.f32 %v2376_v36  ;;  %v4456_v49 = vtrunc.f32 %v2408_v37  ;;  %v429_v35 = vld [vmem:[%s12293_s30 + $0x918] sm:$0xff] }
  0xe6   : > { %v4488_v50 = vtrunc.f32 %v2440_v38  ;;  %11462 = vst [vmem:[%s12322_s25 + $0x1e0] sm:$0xff] %v6890_v42  ;;  %v2377_v52 = vmul.f32 0.5, %v329_v39  ;;  %v2409_v53 = vmul.f32 0.5, %v361_v40  ;;  %v2441_v54 = vmul.f32 0.5, %v393_v41  ;;  %v461_v36 = vld [vmem:[%s12293_s30 + $0xa18] sm:$0xff]  ;;  %v398_v42 = vld [vmem:[%s12293_s30 + $0x820] sm:$0xff] }
  0xe7   : > { %v4393_v55 = vtrunc.f32 %v2345_v45  ;;  %v6900_v58 = vpack.c.b8 %v6896_v47, %v6892_v43  ;;  %v6902_v59 = vpack.c.f32.eXmY %v4392_v44, %v4424_v48, 312  ;;  %v2442_v61 = vmul.f32 0.5, %v394_v46  ;;  %v493_v37 = vld [vmem:[%s12293_s30 + $0xb18] sm:$0xff]  ;;  %v430_v47 = vld [vmem:[%s12293_s30 + $0x920] sm:$0xff] }
  0xe8   : > { %v6906_v60 = vpack.c.f32.eXmY %v4456_v49, %v4488_v50, 312  ;;  %v4425_v63 = vtrunc.f32 %v2377_v52  ;;  %v4457_v0 = vtrunc.f32 %v2409_v53  ;;  %v4489_v1 = vtrunc.f32 %v2441_v54  ;;  %v462_v52 = vld [vmem:[%s12293_s30 + $0xa20] sm:$0xff] }
  0xe9   : > { %v2474_v2 = vmul.f32 0.5, %v426_v51  ;;  %11463 = vst [vmem:[%s12322_s25 + $0x1e8] sm:$0xff] %v6900_v58  ;;  %v2506_v6 = vmul.f32 0.5, %v458_v56  ;;  %v2538_v7 = vmul.f32 0.5, %v490_v57  ;;  %v4490_v8 = vtrunc.f32 %v2442_v61  ;;  %v494_v53 = vld [vmem:[%s12293_s30 + $0xb20] sm:$0xff]  ;;  %v399_v58 = vld [vmem:[%s12293_s30 + $0x828] sm:$0xff] }
  0xea   : > { %v6910_v5 = vpack.c.b8 %v6906_v60, %v6902_v59  ;;  %v6912_v10 = vpack.c.f32.eXmY %v4393_v55, %v4425_v63, 312  ;;  %v6916_v11 = vpack.c.f32.eXmY %v4457_v0, %v4489_v1, 312  ;;  %v2443_v13 = vmul.f32 0.5, %v395_v62  ;;  %v431_v63 = vld [vmem:[%s12293_s30 + $0x928] sm:$0xff] }
  0xeb   : > { %v4522_v12 = vtrunc.f32 %v2474_v2  ;;  %v4554_v15 = vtrunc.f32 %v2506_v6  ;;  %v4586_v16 = vtrunc.f32 %v2538_v7  ;;  %v2475_v17 = vmul.f32 0.5, %v427_v3  ;;  %v463_v0 = vld [vmem:[%s12293_s30 + $0xa28] sm:$0xff] }
  0xec   : > { %11464 = vst [vmem:[%s12322_s25 + $0x1f0] sm:$0xff] %v6910_v5  ;;  %v2507_v18 = vmul.f32 0.5, %v459_v4  ;;  %v6920_v22 = vpack.c.b8 %v6916_v11, %v6912_v10  ;;  %v2539_v24 = vmul.f32 0.5, %v491_v9  ;;  %v4491_v25 = vtrunc.f32 %v2443_v13  ;;  %v495_v5 = vld [vmem:[%s12293_s30 + $0xb28] sm:$0xff]  ;;  %v400_v10 = vld [vmem:[%s12293_s30 + $0x830] sm:$0xff] }
  0xed   : > { %v6922_v23 = vpack.c.f32.eXmY %v4490_v8, %v4522_v12, 312  ;;  %v6926_v27 = vpack.c.f32.eXmY %v4554_v15, %v4586_v16, 312  ;;  %v4523_v28 = vtrunc.f32 %v2475_v17  ;;  %v2444_v30 = vmul.f32 0.5, %v396_v14  ;;  %v432_v15 = vld [vmem:[%s12293_s30 + $0x930] sm:$0xff] }
  0xee   : > { %v4555_v29 = vtrunc.f32 %v2507_v18  ;;  %11465 = vst [vmem:[%s12322_s25 + $0x1f8] sm:$0xff] %v6920_v22  ;;  %v4587_v31 = vtrunc.f32 %v2539_v24  ;;  %v2476_v32 = vmul.f32 0.5, %v428_v19  ;;  %v2508_v33 = vmul.f32 0.5, %v460_v20  ;;  %v464_v16 = vld [vmem:[%s12293_s30 + $0xa30] sm:$0xff]  ;;  %v401_v22 = vld [vmem:[%s12293_s30 + $0x838] sm:$0xff] }
  0xef   : > { %v2540_v34 = vmul.f32 0.5, %v492_v21  ;;  %v6930_v38 = vpack.c.b8 %v6926_v27, %v6922_v23  ;;  %v6932_v39 = vpack.c.f32.eXmY %v4491_v25, %v4523_v28, 312  ;;  %v4492_v40 = vtrunc.f32 %v2444_v30  ;;  %v496_v17 = vld [vmem:[%s12293_s30 + $0xb30] sm:$0xff] }
  0xf0   : > { %v2445_v41 = vmul.f32 0.5, %v397_v26  ;;  %v6936_v43 = vpack.c.f32.eXmY %v4555_v29, %v4587_v31, 312  ;;  %v4524_v44 = vtrunc.f32 %v2476_v32  ;;  %v4556_v45 = vtrunc.f32 %v2508_v33  ;;  %v433_v31 = vld [vmem:[%s12293_s30 + $0x938] sm:$0xff] }
  0xf1   : > { %v4588_v46 = vtrunc.f32 %v2540_v34  ;;  %11466 = vst [vmem:[%s12322_s25 + $0x200] sm:$0xff] %v6930_v38  ;;  %v2477_v48 = vmul.f32 0.5, %v429_v35  ;;  %v2509_v49 = vmul.f32 0.5, %v461_v36  ;;  %v2541_v50 = vmul.f32 0.5, %v493_v37  ;;  %v465_v32 = vld [vmem:[%s12293_s30 + $0xa38] sm:$0xff]  ;;  %v402_v38 = vld [vmem:[%s12293_s30 + $0x840] sm:$0xff] }
  0xf2   : > { %v4493_v51 = vtrunc.f32 %v2445_v41  ;;  %v6940_v54 = vpack.c.b8 %v6936_v43, %v6932_v39  ;;  %v6942_v55 = vpack.c.f32.eXmY %v4492_v40, %v4524_v44, 312  ;;  %v2446_v57 = vmul.f32 0.5, %v398_v42  ;;  %v497_v33 = vld [vmem:[%s12293_s30 + $0xb38] sm:$0xff]  ;;  %v434_v43 = vld [vmem:[%s12293_s30 + $0x940] sm:$0xff] }
  0xf3   : > { %v6946_v56 = vpack.c.f32.eXmY %v4556_v45, %v4588_v46, 312  ;;  %v4525_v59 = vtrunc.f32 %v2477_v48  ;;  %v4557_v60 = vtrunc.f32 %v2509_v49  ;;  %v4589_v61 = vtrunc.f32 %v2541_v50  ;;  %v466_v48 = vld [vmem:[%s12293_s30 + $0xa40] sm:$0xff] }
  0xf4   : > { %v2478_v62 = vmul.f32 0.5, %v430_v47  ;;  %11467 = vst [vmem:[%s12322_s25 + $0x208] sm:$0xff] %v6940_v54  ;;  %v2510_v2 = vmul.f32 0.5, %v462_v52  ;;  %v2542_v3 = vmul.f32 0.5, %v494_v53  ;;  %v4494_v4 = vtrunc.f32 %v2446_v57  ;;  %v498_v49 = vld [vmem:[%s12293_s30 + $0xb40] sm:$0xff]  ;;  %v403_v54 = vld [vmem:[%s12293_s30 + $0x848] sm:$0xff] }
  0xf5   : > { %v6950_v1 = vpack.c.b8 %v6946_v56, %v6942_v55  ;;  %v6952_v6 = vpack.c.f32.eXmY %v4493_v51, %v4525_v59, 312  ;;  %v6956_v7 = vpack.c.f32.eXmY %v4557_v60, %v4589_v61, 312  ;;  %v2447_v9 = vmul.f32 0.5, %v399_v58  ;;  %v435_v59 = vld [vmem:[%s12293_s30 + $0x948] sm:$0xff] }
  0xf6   : > { %v4526_v8 = vtrunc.f32 %v2478_v62  ;;  %v4558_v11 = vtrunc.f32 %v2510_v2  ;;  %v4590_v12 = vtrunc.f32 %v2542_v3  ;;  %v2479_v13 = vmul.f32 0.5, %v431_v63  ;;  %v467_v60 = vld [vmem:[%s12293_s30 + $0xa48] sm:$0xff] }
  0xf7   : > { %11468 = vst [vmem:[%s12322_s25 + $0x210] sm:$0xff] %v6950_v1  ;;  %v2511_v14 = vmul.f32 0.5, %v463_v0  ;;  %v6960_v18 = vpack.c.b8 %v6956_v7, %v6952_v6  ;;  %v2543_v20 = vmul.f32 0.5, %v495_v5  ;;  %v4495_v21 = vtrunc.f32 %v2447_v9  ;;  %v499_v1 = vld [vmem:[%s12293_s30 + $0xb48] sm:$0xff]  ;;  %v404_v6 = vld [vmem:[%s12293_s30 + $0x850] sm:$0xff] }
  0xf8   : > { %v6962_v19 = vpack.c.f32.eXmY %v4494_v4, %v4526_v8, 312  ;;  %v6966_v23 = vpack.c.f32.eXmY %v4558_v11, %v4590_v12, 312  ;;  %v4527_v24 = vtrunc.f32 %v2479_v13  ;;  %v2448_v26 = vmul.f32 0.5, %v400_v10  ;;  %v436_v11 = vld [vmem:[%s12293_s30 + $0x950] sm:$0xff] }
  0xf9   : > { %v4559_v25 = vtrunc.f32 %v2511_v14  ;;  %11469 = vst [vmem:[%s12322_s25 + $0x218] sm:$0xff] %v6960_v18  ;;  %v4591_v27 = vtrunc.f32 %v2543_v20  ;;  %v2480_v28 = vmul.f32 0.5, %v432_v15  ;;  %v2512_v29 = vmul.f32 0.5, %v464_v16  ;;  %v468_v12 = vld [vmem:[%s12293_s30 + $0xa50] sm:$0xff]  ;;  %v405_v18 = vld [vmem:[%s12293_s30 + $0x858] sm:$0xff] }
  0xfa   : > { %v2544_v30 = vmul.f32 0.5, %v496_v17  ;;  %v6970_v34 = vpack.c.b8 %v6966_v23, %v6962_v19  ;;  %v6972_v35 = vpack.c.f32.eXmY %v4495_v21, %v4527_v24, 312  ;;  %v4496_v36 = vtrunc.f32 %v2448_v26  ;;  %v500_v13 = vld [vmem:[%s12293_s30 + $0xb50] sm:$0xff] }
  0xfb   : > { %v2449_v37 = vmul.f32 0.5, %v401_v22  ;;  %v6976_v39 = vpack.c.f32.eXmY %v4559_v25, %v4591_v27, 312  ;;  %v4528_v40 = vtrunc.f32 %v2480_v28  ;;  %v4560_v41 = vtrunc.f32 %v2512_v29  ;;  %v437_v27 = vld [vmem:[%s12293_s30 + $0x958] sm:$0xff] }
  0xfc   : > { %v4592_v42 = vtrunc.f32 %v2544_v30  ;;  %11470 = vst [vmem:[%s12322_s25 + $0x220] sm:$0xff] %v6970_v34  ;;  %v2481_v44 = vmul.f32 0.5, %v433_v31  ;;  %v2513_v45 = vmul.f32 0.5, %v465_v32  ;;  %v2545_v46 = vmul.f32 0.5, %v497_v33  ;;  %v469_v28 = vld [vmem:[%s12293_s30 + $0xa58] sm:$0xff]  ;;  %v406_v34 = vld [vmem:[%s12293_s30 + $0x860] sm:$0xff] }
  0xfd   : > { %v4497_v47 = vtrunc.f32 %v2449_v37  ;;  %v6980_v50 = vpack.c.b8 %v6976_v39, %v6972_v35  ;;  %v6982_v51 = vpack.c.f32.eXmY %v4496_v36, %v4528_v40, 312  ;;  %v2450_v53 = vmul.f32 0.5, %v402_v38  ;;  %v501_v29 = vld [vmem:[%s12293_s30 + $0xb58] sm:$0xff]  ;;  %v438_v39 = vld [vmem:[%s12293_s30 + $0x960] sm:$0xff] }
  0xfe   : > { %v6986_v52 = vpack.c.f32.eXmY %v4560_v41, %v4592_v42, 312  ;;  %v4529_v55 = vtrunc.f32 %v2481_v44  ;;  %v4561_v56 = vtrunc.f32 %v2513_v45  ;;  %v4593_v57 = vtrunc.f32 %v2545_v46  ;;  %v470_v44 = vld [vmem:[%s12293_s30 + $0xa60] sm:$0xff] }
  0xff   : > { %v2482_v58 = vmul.f32 0.5, %v434_v43  ;;  %11471 = vst [vmem:[%s12322_s25 + $0x228] sm:$0xff] %v6980_v50  ;;  %v2514_v62 = vmul.f32 0.5, %v466_v48  ;;  %v2546_v63 = vmul.f32 0.5, %v498_v49  ;;  %v4498_v0 = vtrunc.f32 %v2450_v53  ;;  %v502_v45 = vld [vmem:[%s12293_s30 + $0xb60] sm:$0xff]  ;;  %v407_v50 = vld [vmem:[%s12293_s30 + $0x868] sm:$0xff] }
 0x100   : > { %v6990_v61 = vpack.c.b8 %v6986_v52, %v6982_v51  ;;  %v6992_v2 = vpack.c.f32.eXmY %v4497_v47, %v4529_v55, 312  ;;  %v6996_v3 = vpack.c.f32.eXmY %v4561_v56, %v4593_v57, 312  ;;  %v2451_v5 = vmul.f32 0.5, %v403_v54  ;;  %v439_v55 = vld [vmem:[%s12293_s30 + $0x968] sm:$0xff] }
 0x101   : > { %v4530_v4 = vtrunc.f32 %v2482_v58  ;;  %v4562_v7 = vtrunc.f32 %v2514_v62  ;;  %v4594_v8 = vtrunc.f32 %v2546_v63  ;;  %v2483_v9 = vmul.f32 0.5, %v435_v59  ;;  %v471_v56 = vld [vmem:[%s12293_s30 + $0xa68] sm:$0xff] }
 0x102   : > { %11472 = vst [vmem:[%s12322_s25 + $0x230] sm:$0xff] %v6990_v61  ;;  %v2515_v10 = vmul.f32 0.5, %v467_v60  ;;  %v7000_v14 = vpack.c.b8 %v6996_v3, %v6992_v2  ;;  %v2547_v16 = vmul.f32 0.5, %v499_v1  ;;  %v4499_v17 = vtrunc.f32 %v2451_v5  ;;  %v503_v61 = vld [vmem:[%s12293_s30 + $0xb68] sm:$0xff]  ;;  %v408_v2 = vld [vmem:[%s12293_s30 + $0x870] sm:$0xff] }
 0x103   : > { %v7002_v15 = vpack.c.f32.eXmY %v4498_v0, %v4530_v4, 312  ;;  %v7006_v19 = vpack.c.f32.eXmY %v4562_v7, %v4594_v8, 312  ;;  %v4531_v20 = vtrunc.f32 %v2483_v9  ;;  %v2452_v22 = vmul.f32 0.5, %v404_v6  ;;  %v440_v7 = vld [vmem:[%s12293_s30 + $0x970] sm:$0xff] }
 0x104   : > { %v4563_v21 = vtrunc.f32 %v2515_v10  ;;  %11473 = vst [vmem:[%s12322_s25 + $0x238] sm:$0xff] %v7000_v14  ;;  %v4595_v23 = vtrunc.f32 %v2547_v16  ;;  %v2484_v24 = vmul.f32 0.5, %v436_v11  ;;  %v2516_v25 = vmul.f32 0.5, %v468_v12  ;;  %v472_v8 = vld [vmem:[%s12293_s30 + $0xa70] sm:$0xff]  ;;  %v409_v14 = vld [vmem:[%s12293_s30 + $0x878] sm:$0xff] }
 0x105   : > { %v2548_v26 = vmul.f32 0.5, %v500_v13  ;;  %v7010_v30 = vpack.c.b8 %v7006_v19, %v7002_v15  ;;  %v7012_v31 = vpack.c.f32.eXmY %v4499_v17, %v4531_v20, 312  ;;  %v4500_v32 = vtrunc.f32 %v2452_v22  ;;  %v504_v9 = vld [vmem:[%s12293_s30 + $0xb70] sm:$0xff] }
 0x106   : > { %v2453_v33 = vmul.f32 0.5, %v405_v18  ;;  %v7016_v35 = vpack.c.f32.eXmY %v4563_v21, %v4595_v23, 312  ;;  %v4532_v36 = vtrunc.f32 %v2484_v24  ;;  %v4564_v37 = vtrunc.f32 %v2516_v25  ;;  %v441_v23 = vld [vmem:[%s12293_s30 + $0x978] sm:$0xff] }
 0x107   : > { %v4596_v38 = vtrunc.f32 %v2548_v26  ;;  %11474 = vst [vmem:[%s12322_s25 + $0x240] sm:$0xff] %v7010_v30  ;;  %v2485_v40 = vmul.f32 0.5, %v437_v27  ;;  %v2517_v41 = vmul.f32 0.5, %v469_v28  ;;  %v2549_v42 = vmul.f32 0.5, %v501_v29  ;;  %v473_v24 = vld [vmem:[%s12293_s30 + $0xa78] sm:$0xff]  ;;  %v410_v30 = vld [vmem:[%s12293_s30 + $0x880] sm:$0xff] }
 0x108   : > { %v4501_v43 = vtrunc.f32 %v2453_v33  ;;  %v7020_v46 = vpack.c.b8 %v7016_v35, %v7012_v31  ;;  %v7022_v47 = vpack.c.f32.eXmY %v4500_v32, %v4532_v36, 312  ;;  %v2454_v49 = vmul.f32 0.5, %v406_v34  ;;  %v505_v25 = vld [vmem:[%s12293_s30 + $0xb78] sm:$0xff]  ;;  %v442_v35 = vld [vmem:[%s12293_s30 + $0x980] sm:$0xff] }
 0x109   : > { %v7026_v48 = vpack.c.f32.eXmY %v4564_v37, %v4596_v38, 312  ;;  %v4533_v51 = vtrunc.f32 %v2485_v40  ;;  %v4565_v52 = vtrunc.f32 %v2517_v41  ;;  %v4597_v53 = vtrunc.f32 %v2549_v42  ;;  %v474_v40 = vld [vmem:[%s12293_s30 + $0xa80] sm:$0xff] }
 0x10a   : > { %v2486_v54 = vmul.f32 0.5, %v438_v39  ;;  %11475 = vst [vmem:[%s12322_s25 + $0x248] sm:$0xff] %v7020_v46  ;;  %v2518_v58 = vmul.f32 0.5, %v470_v44  ;;  %v2550_v59 = vmul.f32 0.5, %v502_v45  ;;  %v4502_v60 = vtrunc.f32 %v2454_v49  ;;  %v506_v41 = vld [vmem:[%s12293_s30 + $0xb80] sm:$0xff]  ;;  %v411_v46 = vld [vmem:[%s12293_s30 + $0x888] sm:$0xff] }
 0x10b   : > { %v7030_v57 = vpack.c.b8 %v7026_v48, %v7022_v47  ;;  %v7032_v62 = vpack.c.f32.eXmY %v4501_v43, %v4533_v51, 312  ;;  %v7036_v63 = vpack.c.f32.eXmY %v4565_v52, %v4597_v53, 312  ;;  %v2455_v1 = vmul.f32 0.5, %v407_v50  ;;  %v443_v51 = vld [vmem:[%s12293_s30 + $0x988] sm:$0xff] }
 0x10c   : > { %v4534_v0 = vtrunc.f32 %v2486_v54  ;;  %v4566_v3 = vtrunc.f32 %v2518_v58  ;;  %v4598_v4 = vtrunc.f32 %v2550_v59  ;;  %v2487_v5 = vmul.f32 0.5, %v439_v55  ;;  %v475_v52 = vld [vmem:[%s12293_s30 + $0xa88] sm:$0xff] }
 0x10d   : > { %11476 = vst [vmem:[%s12322_s25 + $0x250] sm:$0xff] %v7030_v57  ;;  %v2519_v6 = vmul.f32 0.5, %v471_v56  ;;  %v7040_v10 = vpack.c.b8 %v7036_v63, %v7032_v62  ;;  %v2551_v12 = vmul.f32 0.5, %v503_v61  ;;  %v4503_v13 = vtrunc.f32 %v2455_v1  ;;  %v507_v57 = vld [vmem:[%s12293_s30 + $0xb88] sm:$0xff]  ;;  %v412_v62 = vld [vmem:[%s12293_s30 + $0x890] sm:$0xff] }
 0x10e   : > { %v7042_v11 = vpack.c.f32.eXmY %v4502_v60, %v4534_v0, 312  ;;  %v7046_v15 = vpack.c.f32.eXmY %v4566_v3, %v4598_v4, 312  ;;  %v4535_v16 = vtrunc.f32 %v2487_v5  ;;  %v2456_v18 = vmul.f32 0.5, %v408_v2  ;;  %v444_v3 = vld [vmem:[%s12293_s30 + $0x990] sm:$0xff] }
 0x10f   : > { %v4567_v17 = vtrunc.f32 %v2519_v6  ;;  %11477 = vst [vmem:[%s12322_s25 + $0x258] sm:$0xff] %v7040_v10  ;;  %v4599_v19 = vtrunc.f32 %v2551_v12  ;;  %v2488_v20 = vmul.f32 0.5, %v440_v7  ;;  %v2520_v21 = vmul.f32 0.5, %v472_v8  ;;  %v476_v4 = vld [vmem:[%s12293_s30 + $0xa90] sm:$0xff]  ;;  %v413_v10 = vld [vmem:[%s12293_s30 + $0x898] sm:$0xff] }
 0x110   : > { %v2552_v22 = vmul.f32 0.5, %v504_v9  ;;  %v7050_v26 = vpack.c.b8 %v7046_v15, %v7042_v11  ;;  %v7052_v27 = vpack.c.f32.eXmY %v4503_v13, %v4535_v16, 312  ;;  %v4504_v28 = vtrunc.f32 %v2456_v18  ;;  %v508_v5 = vld [vmem:[%s12293_s30 + $0xb90] sm:$0xff] }
 0x111   : > { %v2457_v29 = vmul.f32 0.5, %v409_v14  ;;  %v7056_v31 = vpack.c.f32.eXmY %v4567_v17, %v4599_v19, 312  ;;  %v4536_v32 = vtrunc.f32 %v2488_v20  ;;  %v4568_v33 = vtrunc.f32 %v2520_v21  ;;  %v445_v19 = vld [vmem:[%s12293_s30 + $0x998] sm:$0xff] }
 0x112   : > { %v4600_v34 = vtrunc.f32 %v2552_v22  ;;  %11478 = vst [vmem:[%s12322_s25 + $0x260] sm:$0xff] %v7050_v26  ;;  %v2489_v36 = vmul.f32 0.5, %v441_v23  ;;  %v2521_v37 = vmul.f32 0.5, %v473_v24  ;;  %v2553_v38 = vmul.f32 0.5, %v505_v25  ;;  %v477_v20 = vld [vmem:[%s12293_s30 + $0xa98] sm:$0xff]  ;;  %v414_v26 = vld [vmem:[%s12293_s30 + $0x8a0] sm:$0xff] }
 0x113   : > { %v4505_v39 = vtrunc.f32 %v2457_v29  ;;  %v7060_v42 = vpack.c.b8 %v7056_v31, %v7052_v27  ;;  %v7062_v43 = vpack.c.f32.eXmY %v4504_v28, %v4536_v32, 312  ;;  %v2458_v45 = vmul.f32 0.5, %v410_v30  ;;  %v509_v21 = vld [vmem:[%s12293_s30 + $0xb98] sm:$0xff]  ;;  %v446_v31 = vld [vmem:[%s12293_s30 + $0x9a0] sm:$0xff] }
 0x114   : > { %v7066_v44 = vpack.c.f32.eXmY %v4568_v33, %v4600_v34, 312  ;;  %v4537_v47 = vtrunc.f32 %v2489_v36  ;;  %v4569_v48 = vtrunc.f32 %v2521_v37  ;;  %v4601_v49 = vtrunc.f32 %v2553_v38  ;;  %v478_v36 = vld [vmem:[%s12293_s30 + $0xaa0] sm:$0xff] }
 0x115   : > { %v2490_v50 = vmul.f32 0.5, %v442_v35  ;;  %11479 = vst [vmem:[%s12322_s25 + $0x268] sm:$0xff] %v7060_v42  ;;  %v2522_v54 = vmul.f32 0.5, %v474_v40  ;;  %v2554_v55 = vmul.f32 0.5, %v506_v41  ;;  %v4506_v56 = vtrunc.f32 %v2458_v45  ;;  %v510_v37 = vld [vmem:[%s12293_s30 + $0xba0] sm:$0xff]  ;;  %v415_v42 = vld [vmem:[%s12293_s30 + $0x8a8] sm:$0xff] }
 0x116   : > { %v7070_v53 = vpack.c.b8 %v7066_v44, %v7062_v43  ;;  %v7072_v58 = vpack.c.f32.eXmY %v4505_v39, %v4537_v47, 312  ;;  %v7076_v59 = vpack.c.f32.eXmY %v4569_v48, %v4601_v49, 312  ;;  %v2459_v61 = vmul.f32 0.5, %v411_v46  ;;  %v447_v47 = vld [vmem:[%s12293_s30 + $0x9a8] sm:$0xff] }
 0x117   : > { %v4538_v60 = vtrunc.f32 %v2490_v50  ;;  %v4570_v63 = vtrunc.f32 %v2522_v54  ;;  %v4602_v0 = vtrunc.f32 %v2554_v55  ;;  %v2491_v1 = vmul.f32 0.5, %v443_v51  ;;  %v479_v48 = vld [vmem:[%s12293_s30 + $0xaa8] sm:$0xff] }
 0x118   : > { %11480 = vst [vmem:[%s12322_s25 + $0x270] sm:$0xff] %v7070_v53  ;;  %v2523_v2 = vmul.f32 0.5, %v475_v52  ;;  %v7080_v6 = vpack.c.b8 %v7076_v59, %v7072_v58  ;;  %v2555_v8 = vmul.f32 0.5, %v507_v57  ;;  %v4507_v9 = vtrunc.f32 %v2459_v61  ;;  %v511_v53 = vld [vmem:[%s12293_s30 + $0xba8] sm:$0xff]  ;;  %v416_v58 = vld [vmem:[%s12293_s30 + $0x8b0] sm:$0xff] }
 0x119   : > { %v7082_v7 = vpack.c.f32.eXmY %v4506_v56, %v4538_v60, 312  ;;  %v7086_v11 = vpack.c.f32.eXmY %v4570_v63, %v4602_v0, 312  ;;  %v4539_v12 = vtrunc.f32 %v2491_v1  ;;  %v2460_v14 = vmul.f32 0.5, %v412_v62  ;;  %v448_v63 = vld [vmem:[%s12293_s30 + $0x9b0] sm:$0xff] }
 0x11a   : > { %v4571_v13 = vtrunc.f32 %v2523_v2  ;;  %11481 = vst [vmem:[%s12322_s25 + $0x278] sm:$0xff] %v7080_v6  ;;  %v4603_v15 = vtrunc.f32 %v2555_v8  ;;  %v2492_v16 = vmul.f32 0.5, %v444_v3  ;;  %v2524_v17 = vmul.f32 0.5, %v476_v4  ;;  %v480_v0 = vld [vmem:[%s12293_s30 + $0xab0] sm:$0xff]  ;;  %v417_v6 = vld [vmem:[%s12293_s30 + $0x8b8] sm:$0xff] }
 0x11b   : > { %v2556_v18 = vmul.f32 0.5, %v508_v5  ;;  %v7090_v22 = vpack.c.b8 %v7086_v11, %v7082_v7  ;;  %v7092_v23 = vpack.c.f32.eXmY %v4507_v9, %v4539_v12, 312  ;;  %v4508_v24 = vtrunc.f32 %v2460_v14  ;;  %v512_v1 = vld [vmem:[%s12293_s30 + $0xbb0] sm:$0xff] }
 0x11c   : > { %v2461_v25 = vmul.f32 0.5, %v413_v10  ;;  %v7096_v27 = vpack.c.f32.eXmY %v4571_v13, %v4603_v15, 312  ;;  %v4540_v28 = vtrunc.f32 %v2492_v16  ;;  %v4572_v29 = vtrunc.f32 %v2524_v17  ;;  %v449_v15 = vld [vmem:[%s12293_s30 + $0x9b8] sm:$0xff] }
 0x11d   : > { %v4604_v30 = vtrunc.f32 %v2556_v18  ;;  %11482 = vst [vmem:[%s12322_s25 + $0x280] sm:$0xff] %v7090_v22  ;;  %v2493_v32 = vmul.f32 0.5, %v445_v19  ;;  %v2525_v33 = vmul.f32 0.5, %v477_v20  ;;  %v2557_v34 = vmul.f32 0.5, %v509_v21  ;;  %v481_v16 = vld [vmem:[%s12293_s30 + $0xab8] sm:$0xff]  ;;  %v418_v22 = vld [vmem:[%s12293_s30 + $0x8c0] sm:$0xff] }
 0x11e   : > { %v4509_v35 = vtrunc.f32 %v2461_v25  ;;  %v7100_v38 = vpack.c.b8 %v7096_v27, %v7092_v23  ;;  %v7102_v39 = vpack.c.f32.eXmY %v4508_v24, %v4540_v28, 312  ;;  %v2462_v41 = vmul.f32 0.5, %v414_v26  ;;  %v513_v17 = vld [vmem:[%s12293_s30 + $0xbb8] sm:$0xff]  ;;  %v450_v27 = vld [vmem:[%s12293_s30 + $0x9c0] sm:$0xff] }
 0x11f   : > { %v7106_v40 = vpack.c.f32.eXmY %v4572_v29, %v4604_v30, 312  ;;  %v4541_v43 = vtrunc.f32 %v2493_v32  ;;  %v4573_v44 = vtrunc.f32 %v2525_v33  ;;  %v4605_v45 = vtrunc.f32 %v2557_v34  ;;  %v482_v32 = vld [vmem:[%s12293_s30 + $0xac0] sm:$0xff] }
 0x120   : > { %v2494_v46 = vmul.f32 0.5, %v446_v31  ;;  %11483 = vst [vmem:[%s12322_s25 + $0x288] sm:$0xff] %v7100_v38  ;;  %v2526_v50 = vmul.f32 0.5, %v478_v36  ;;  %v2558_v51 = vmul.f32 0.5, %v510_v37  ;;  %v4510_v52 = vtrunc.f32 %v2462_v41  ;;  %v514_v33 = vld [vmem:[%s12293_s30 + $0xbc0] sm:$0xff]  ;;  %v419_v38 = vld [vmem:[%s12293_s30 + $0x8c8] sm:$0xff] }
 0x121   : > { %v7110_v49 = vpack.c.b8 %v7106_v40, %v7102_v39  ;;  %v7112_v54 = vpack.c.f32.eXmY %v4509_v35, %v4541_v43, 312  ;;  %v7116_v55 = vpack.c.f32.eXmY %v4573_v44, %v4605_v45, 312  ;;  %v2463_v57 = vmul.f32 0.5, %v415_v42  ;;  %v451_v43 = vld [vmem:[%s12293_s30 + $0x9c8] sm:$0xff] }
 0x122   : > { %v4542_v56 = vtrunc.f32 %v2494_v46  ;;  %v4574_v59 = vtrunc.f32 %v2526_v50  ;;  %v4606_v60 = vtrunc.f32 %v2558_v51  ;;  %v2495_v61 = vmul.f32 0.5, %v447_v47  ;;  %v483_v44 = vld [vmem:[%s12293_s30 + $0xac8] sm:$0xff] }
 0x123   : > { %11484 = vst [vmem:[%s12322_s25 + $0x290] sm:$0xff] %v7110_v49  ;;  %v2527_v62 = vmul.f32 0.5, %v479_v48  ;;  %v7120_v2 = vpack.c.b8 %v7116_v55, %v7112_v54  ;;  %v2559_v4 = vmul.f32 0.5, %v511_v53  ;;  %v4511_v5 = vtrunc.f32 %v2463_v57  ;;  %v515_v49 = vld [vmem:[%s12293_s30 + $0xbc8] sm:$0xff]  ;;  %v420_v54 = vld [vmem:[%s12293_s30 + $0x8d0] sm:$0xff] }
 0x124   : > { %v7122_v3 = vpack.c.f32.eXmY %v4510_v52, %v4542_v56, 312  ;;  %v7126_v7 = vpack.c.f32.eXmY %v4574_v59, %v4606_v60, 312  ;;  %v4543_v8 = vtrunc.f32 %v2495_v61  ;;  %v2464_v10 = vmul.f32 0.5, %v416_v58  ;;  %v452_v59 = vld [vmem:[%s12293_s30 + $0x9d0] sm:$0xff] }
 0x125   : > { %v4575_v9 = vtrunc.f32 %v2527_v62  ;;  %11485 = vst [vmem:[%s12322_s25 + $0x298] sm:$0xff] %v7120_v2  ;;  %v4607_v11 = vtrunc.f32 %v2559_v4  ;;  %v2496_v12 = vmul.f32 0.5, %v448_v63  ;;  %v2528_v13 = vmul.f32 0.5, %v480_v0  ;;  %v484_v60 = vld [vmem:[%s12293_s30 + $0xad0] sm:$0xff]  ;;  %v421_v2 = vld [vmem:[%s12293_s30 + $0x8d8] sm:$0xff] }
 0x126   : > { %v2560_v14 = vmul.f32 0.5, %v512_v1  ;;  %v7130_v18 = vpack.c.b8 %v7126_v7, %v7122_v3  ;;  %v7132_v19 = vpack.c.f32.eXmY %v4511_v5, %v4543_v8, 312  ;;  %v4512_v20 = vtrunc.f32 %v2464_v10  ;;  %v516_v61 = vld [vmem:[%s12293_s30 + $0xbd0] sm:$0xff] }
 0x127   : > { %v2465_v21 = vmul.f32 0.5, %v417_v6  ;;  %v7136_v23 = vpack.c.f32.eXmY %v4575_v9, %v4607_v11, 312  ;;  %v4544_v24 = vtrunc.f32 %v2496_v12  ;;  %v4576_v25 = vtrunc.f32 %v2528_v13  ;;  %v453_v11 = vld [vmem:[%s12293_s30 + $0x9d8] sm:$0xff] }
 0x128   : > { %v4608_v26 = vtrunc.f32 %v2560_v14  ;;  %11486 = vst [vmem:[%s12322_s25 + $0x2a0] sm:$0xff] %v7130_v18  ;;  %v2497_v28 = vmul.f32 0.5, %v449_v15  ;;  %v2529_v29 = vmul.f32 0.5, %v481_v16  ;;  %v2561_v30 = vmul.f32 0.5, %v513_v17  ;;  %v485_v12 = vld [vmem:[%s12293_s30 + $0xad8] sm:$0xff]  ;;  %v422_v18 = vld [vmem:[%s12293_s30 + $0x8e0] sm:$0xff] }
 0x129   : > { %v4513_v31 = vtrunc.f32 %v2465_v21  ;;  %v7140_v34 = vpack.c.b8 %v7136_v23, %v7132_v19  ;;  %v7142_v35 = vpack.c.f32.eXmY %v4512_v20, %v4544_v24, 312  ;;  %v2466_v37 = vmul.f32 0.5, %v418_v22  ;;  %v517_v13 = vld [vmem:[%s12293_s30 + $0xbd8] sm:$0xff]  ;;  %v454_v23 = vld [vmem:[%s12293_s30 + $0x9e0] sm:$0xff] }
 0x12a   : > { %v7146_v36 = vpack.c.f32.eXmY %v4576_v25, %v4608_v26, 312  ;;  %v4545_v39 = vtrunc.f32 %v2497_v28  ;;  %v4577_v40 = vtrunc.f32 %v2529_v29  ;;  %v4609_v41 = vtrunc.f32 %v2561_v30  ;;  %v486_v28 = vld [vmem:[%s12293_s30 + $0xae0] sm:$0xff] }
 0x12b   : > { %v2498_v42 = vmul.f32 0.5, %v450_v27  ;;  %11487 = vst [vmem:[%s12322_s25 + $0x2a8] sm:$0xff] %v7140_v34  ;;  %v2530_v46 = vmul.f32 0.5, %v482_v32  ;;  %v2562_v47 = vmul.f32 0.5, %v514_v33  ;;  %v4514_v48 = vtrunc.f32 %v2466_v37  ;;  %v518_v29 = vld [vmem:[%s12293_s30 + $0xbe0] sm:$0xff]  ;;  %v423_v34 = vld [vmem:[%s12293_s30 + $0x8e8] sm:$0xff] }
 0x12c   : > { %v7150_v45 = vpack.c.b8 %v7146_v36, %v7142_v35  ;;  %v7152_v50 = vpack.c.f32.eXmY %v4513_v31, %v4545_v39, 312  ;;  %v7156_v51 = vpack.c.f32.eXmY %v4577_v40, %v4609_v41, 312  ;;  %v2467_v53 = vmul.f32 0.5, %v419_v38  ;;  %v455_v39 = vld [vmem:[%s12293_s30 + $0x9e8] sm:$0xff] }
 0x12d   : > { %v4546_v52 = vtrunc.f32 %v2498_v42  ;;  %v4578_v55 = vtrunc.f32 %v2530_v46  ;;  %v4610_v56 = vtrunc.f32 %v2562_v47  ;;  %v2499_v57 = vmul.f32 0.5, %v451_v43  ;;  %v487_v40 = vld [vmem:[%s12293_s30 + $0xae8] sm:$0xff] }
 0x12e   : > { %11488 = vst [vmem:[%s12322_s25 + $0x2b0] sm:$0xff] %v7150_v45  ;;  %v2531_v58 = vmul.f32 0.5, %v483_v44  ;;  %v7160_v62 = vpack.c.b8 %v7156_v51, %v7152_v50  ;;  %v2563_v0 = vmul.f32 0.5, %v515_v49  ;;  %v4515_v1 = vtrunc.f32 %v2467_v53  ;;  %v519_v45 = vld [vmem:[%s12293_s30 + $0xbe8] sm:$0xff]  ;;  %v424_v50 = vld [vmem:[%s12293_s30 + $0x8f0] sm:$0xff] }
 0x12f   : > { %v7162_v63 = vpack.c.f32.eXmY %v4514_v48, %v4546_v52, 312  ;;  %v7166_v3 = vpack.c.f32.eXmY %v4578_v55, %v4610_v56, 312  ;;  %v4547_v4 = vtrunc.f32 %v2499_v57  ;;  %v2468_v6 = vmul.f32 0.5, %v420_v54  ;;  %v456_v55 = vld [vmem:[%s12293_s30 + $0x9f0] sm:$0xff] }
 0x130   : > { %v4579_v5 = vtrunc.f32 %v2531_v58  ;;  %11489 = vst [vmem:[%s12322_s25 + $0x2b8] sm:$0xff] %v7160_v62  ;;  %v4611_v7 = vtrunc.f32 %v2563_v0  ;;  %v2500_v8 = vmul.f32 0.5, %v452_v59  ;;  %v2532_v9 = vmul.f32 0.5, %v484_v60  ;;  %v488_v56 = vld [vmem:[%s12293_s30 + $0xaf0] sm:$0xff]  ;;  %v425_v62 = vld [vmem:[%s12293_s30 + $0x8f8] sm:$0xff] }
 0x131   : > { %v2564_v10 = vmul.f32 0.5, %v516_v61  ;;  %v7170_v14 = vpack.c.b8 %v7166_v3, %v7162_v63  ;;  %v7172_v15 = vpack.c.f32.eXmY %v4515_v1, %v4547_v4, 312  ;;  %v4516_v16 = vtrunc.f32 %v2468_v6  ;;  %v520_v57 = vld [vmem:[%s12293_s30 + $0xbf0] sm:$0xff] }
 0x132   : > { %v2469_v17 = vmul.f32 0.5, %v421_v2  ;;  %v7176_v19 = vpack.c.f32.eXmY %v4579_v5, %v4611_v7, 312  ;;  %v4548_v20 = vtrunc.f32 %v2500_v8  ;;  %v4580_v21 = vtrunc.f32 %v2532_v9  ;;  %v457_v7 = vld [vmem:[%s12293_s30 + $0x9f8] sm:$0xff] }
 0x133   : > { %v4612_v22 = vtrunc.f32 %v2564_v10  ;;  %11490 = vst [vmem:[%s12322_s25 + $0x2c0] sm:$0xff] %v7170_v14  ;;  %v2501_v24 = vmul.f32 0.5, %v453_v11  ;;  %v2533_v25 = vmul.f32 0.5, %v485_v12  ;;  %v2565_v26 = vmul.f32 0.5, %v517_v13  ;;  %v489_v8 = vld [vmem:[%s12293_s30 + $0xaf8] sm:$0xff]  ;;  %v522_v14 = vld [vmem:[%s12293_s30 + $0xc00] sm:$0xff] }
 0x134   : > { %v4517_v27 = vtrunc.f32 %v2469_v17  ;;  %v7180_v30 = vpack.c.b8 %v7176_v19, %v7172_v15  ;;  %v7182_v31 = vpack.c.f32.eXmY %v4516_v16, %v4548_v20, 312  ;;  %v2470_v33 = vmul.f32 0.5, %v422_v18  ;;  %v521_v9 = vld [vmem:[%s12293_s30 + $0xbf8] sm:$0xff]  ;;  %v554_v19 = vld [vmem:[%s12293_s30 + $0xd00] sm:$0xff] }
 0x135   : > { %v7186_v32 = vpack.c.f32.eXmY %v4580_v21, %v4612_v22, 312  ;;  %v4549_v35 = vtrunc.f32 %v2501_v24  ;;  %v4581_v36 = vtrunc.f32 %v2533_v25  ;;  %v4613_v37 = vtrunc.f32 %v2565_v26  ;;  %v586_v24 = vld [vmem:[%s12293_s30 + $0xe00] sm:$0xff] }
 0x136   : > { %v2502_v38 = vmul.f32 0.5, %v454_v23  ;;  %11491 = vst [vmem:[%s12322_s25 + $0x2c8] sm:$0xff] %v7180_v30  ;;  %v2534_v42 = vmul.f32 0.5, %v486_v28  ;;  %v2566_v43 = vmul.f32 0.5, %v518_v29  ;;  %v4518_v44 = vtrunc.f32 %v2470_v33  ;;  %v618_v25 = vld [vmem:[%s12293_s30 + $0xf00] sm:$0xff]  ;;  %v523_v30 = vld [vmem:[%s12293_s30 + $0xc08] sm:$0xff] }
 0x137   : > { %v7190_v41 = vpack.c.b8 %v7186_v32, %v7182_v31  ;;  %v7192_v46 = vpack.c.f32.eXmY %v4517_v27, %v4549_v35, 312  ;;  %v7196_v47 = vpack.c.f32.eXmY %v4581_v36, %v4613_v37, 312  ;;  %v2471_v49 = vmul.f32 0.5, %v423_v34  ;;  %v555_v35 = vld [vmem:[%s12293_s30 + $0xd08] sm:$0xff] }
 0x138   : > { %v4550_v48 = vtrunc.f32 %v2502_v38  ;;  %v4582_v51 = vtrunc.f32 %v2534_v42  ;;  %v4614_v52 = vtrunc.f32 %v2566_v43  ;;  %v2503_v53 = vmul.f32 0.5, %v455_v39  ;;  %v587_v36 = vld [vmem:[%s12293_s30 + $0xe08] sm:$0xff] }
 0x139   : > { %11492 = vst [vmem:[%s12322_s25 + $0x2d0] sm:$0xff] %v7190_v41  ;;  %v2535_v54 = vmul.f32 0.5, %v487_v40  ;;  %v7200_v58 = vpack.c.b8 %v7196_v47, %v7192_v46  ;;  %v2567_v60 = vmul.f32 0.5, %v519_v45  ;;  %v4519_v61 = vtrunc.f32 %v2471_v49  ;;  %v619_v41 = vld [vmem:[%s12293_s30 + $0xf08] sm:$0xff]  ;;  %v524_v46 = vld [vmem:[%s12293_s30 + $0xc10] sm:$0xff] }
 0x13a   : > { %v7202_v59 = vpack.c.f32.eXmY %v4518_v44, %v4550_v48, 312  ;;  %v7206_v63 = vpack.c.f32.eXmY %v4582_v51, %v4614_v52, 312  ;;  %v4551_v0 = vtrunc.f32 %v2503_v53  ;;  %v2472_v2 = vmul.f32 0.5, %v424_v50  ;;  %v556_v51 = vld [vmem:[%s12293_s30 + $0xd10] sm:$0xff] }
 0x13b   : > { %v4583_v1 = vtrunc.f32 %v2535_v54  ;;  %11493 = vst [vmem:[%s12322_s25 + $0x2d8] sm:$0xff] %v7200_v58  ;;  %v4615_v3 = vtrunc.f32 %v2567_v60  ;;  %v2504_v4 = vmul.f32 0.5, %v456_v55  ;;  %v2536_v5 = vmul.f32 0.5, %v488_v56  ;;  %v588_v52 = vld [vmem:[%s12293_s30 + $0xe10] sm:$0xff]  ;;  %v525_v58 = vld [vmem:[%s12293_s30 + $0xc18] sm:$0xff] }
 0x13c   : > { %v2568_v6 = vmul.f32 0.5, %v520_v57  ;;  %v7210_v10 = vpack.c.b8 %v7206_v63, %v7202_v59  ;;  %v7212_v11 = vpack.c.f32.eXmY %v4519_v61, %v4551_v0, 312  ;;  %v4520_v12 = vtrunc.f32 %v2472_v2  ;;  %v620_v53 = vld [vmem:[%s12293_s30 + $0xf10] sm:$0xff] }
 0x13d   : > { %v2473_v13 = vmul.f32 0.5, %v425_v62  ;;  %v7216_v15 = vpack.c.f32.eXmY %v4583_v1, %v4615_v3, 312  ;;  %v4552_v16 = vtrunc.f32 %v2504_v4  ;;  %v4584_v17 = vtrunc.f32 %v2536_v5  ;;  %v557_v3 = vld [vmem:[%s12293_s30 + $0xd18] sm:$0xff] }
 0x13e   : > { %v4616_v18 = vtrunc.f32 %v2568_v6  ;;  %11494 = vst [vmem:[%s12322_s25 + $0x2e0] sm:$0xff] %v7210_v10  ;;  %v2505_v20 = vmul.f32 0.5, %v457_v7  ;;  %v2537_v21 = vmul.f32 0.5, %v489_v8  ;;  %v2569_v22 = vmul.f32 0.5, %v521_v9  ;;  %v589_v4 = vld [vmem:[%s12293_s30 + $0xe18] sm:$0xff]  ;;  %v526_v10 = vld [vmem:[%s12293_s30 + $0xc20] sm:$0xff] }
 0x13f   : > { %v4521_v23 = vtrunc.f32 %v2473_v13  ;;  %v7220_v26 = vpack.c.b8 %v7216_v15, %v7212_v11  ;;  %v7222_v27 = vpack.c.f32.eXmY %v4520_v12, %v4552_v16, 312  ;;  %v2570_v29 = vmul.f32 0.5, %v522_v14  ;;  %v621_v5 = vld [vmem:[%s12293_s30 + $0xf18] sm:$0xff]  ;;  %v558_v15 = vld [vmem:[%s12293_s30 + $0xd20] sm:$0xff] }
 0x140   : > { %v7226_v28 = vpack.c.f32.eXmY %v4584_v17, %v4616_v18, 312  ;;  %v4553_v31 = vtrunc.f32 %v2505_v20  ;;  %v4585_v32 = vtrunc.f32 %v2537_v21  ;;  %v4617_v33 = vtrunc.f32 %v2569_v22  ;;  %v590_v20 = vld [vmem:[%s12293_s30 + $0xe20] sm:$0xff] }
 0x141   : > { %v2602_v34 = vmul.f32 0.5, %v554_v19  ;;  %11495 = vst [vmem:[%s12322_s25 + $0x2e8] sm:$0xff] %v7220_v26  ;;  %v2634_v38 = vmul.f32 0.5, %v586_v24  ;;  %v2666_v39 = vmul.f32 0.5, %v618_v25  ;;  %v4618_v40 = vtrunc.f32 %v2570_v29  ;;  %v622_v21 = vld [vmem:[%s12293_s30 + $0xf20] sm:$0xff]  ;;  %v527_v26 = vld [vmem:[%s12293_s30 + $0xc28] sm:$0xff] }
 0x142   : > { %v7230_v37 = vpack.c.b8 %v7226_v28, %v7222_v27  ;;  %v7232_v42 = vpack.c.f32.eXmY %v4521_v23, %v4553_v31, 312  ;;  %v7236_v43 = vpack.c.f32.eXmY %v4585_v32, %v4617_v33, 312  ;;  %v2571_v45 = vmul.f32 0.5, %v523_v30  ;;  %v559_v31 = vld [vmem:[%s12293_s30 + $0xd28] sm:$0xff] }
 0x143   : > { %v4650_v44 = vtrunc.f32 %v2602_v34  ;;  %v4682_v47 = vtrunc.f32 %v2634_v38  ;;  %v4714_v48 = vtrunc.f32 %v2666_v39  ;;  %v2603_v49 = vmul.f32 0.5, %v555_v35  ;;  %v591_v32 = vld [vmem:[%s12293_s30 + $0xe28] sm:$0xff] }
 0x144   : > { %11496 = vst [vmem:[%s12322_s25 + $0x2f0] sm:$0xff] %v7230_v37  ;;  %v2635_v50 = vmul.f32 0.5, %v587_v36  ;;  %v7240_v54 = vpack.c.b8 %v7236_v43, %v7232_v42  ;;  %v2667_v56 = vmul.f32 0.5, %v619_v41  ;;  %v4619_v57 = vtrunc.f32 %v2571_v45  ;;  %v623_v37 = vld [vmem:[%s12293_s30 + $0xf28] sm:$0xff]  ;;  %v528_v42 = vld [vmem:[%s12293_s30 + $0xc30] sm:$0xff] }
 0x145   : > { %v7242_v55 = vpack.c.f32.eXmY %v4618_v40, %v4650_v44, 312  ;;  %v7246_v59 = vpack.c.f32.eXmY %v4682_v47, %v4714_v48, 312  ;;  %v4651_v60 = vtrunc.f32 %v2603_v49  ;;  %v2572_v62 = vmul.f32 0.5, %v524_v46  ;;  %v560_v47 = vld [vmem:[%s12293_s30 + $0xd30] sm:$0xff] }
 0x146   : > { %v4683_v61 = vtrunc.f32 %v2635_v50  ;;  %11497 = vst [vmem:[%s12322_s25 + $0x2f8] sm:$0xff] %v7240_v54  ;;  %v4715_v63 = vtrunc.f32 %v2667_v56  ;;  %v2604_v0 = vmul.f32 0.5, %v556_v51  ;;  %v2636_v1 = vmul.f32 0.5, %v588_v52  ;;  %v592_v48 = vld [vmem:[%s12293_s30 + $0xe30] sm:$0xff]  ;;  %v529_v54 = vld [vmem:[%s12293_s30 + $0xc38] sm:$0xff] }
 0x147   : > { %v2668_v2 = vmul.f32 0.5, %v620_v53  ;;  %v7250_v6 = vpack.c.b8 %v7246_v59, %v7242_v55  ;;  %v7252_v7 = vpack.c.f32.eXmY %v4619_v57, %v4651_v60, 312  ;;  %v4620_v8 = vtrunc.f32 %v2572_v62  ;;  %v624_v49 = vld [vmem:[%s12293_s30 + $0xf30] sm:$0xff] }
 0x148   : > { %v2573_v9 = vmul.f32 0.5, %v525_v58  ;;  %v7256_v11 = vpack.c.f32.eXmY %v4683_v61, %v4715_v63, 312  ;;  %v4652_v12 = vtrunc.f32 %v2604_v0  ;;  %v4684_v13 = vtrunc.f32 %v2636_v1  ;;  %v561_v63 = vld [vmem:[%s12293_s30 + $0xd38] sm:$0xff] }
 0x149   : > { %v4716_v14 = vtrunc.f32 %v2668_v2  ;;  %11498 = vst [vmem:[%s12322_s25 + $0x300] sm:$0xff] %v7250_v6  ;;  %v2605_v16 = vmul.f32 0.5, %v557_v3  ;;  %v2637_v17 = vmul.f32 0.5, %v589_v4  ;;  %v2669_v18 = vmul.f32 0.5, %v621_v5  ;;  %v593_v0 = vld [vmem:[%s12293_s30 + $0xe38] sm:$0xff]  ;;  %v530_v6 = vld [vmem:[%s12293_s30 + $0xc40] sm:$0xff] }
 0x14a   : > { %v4621_v19 = vtrunc.f32 %v2573_v9  ;;  %v7260_v22 = vpack.c.b8 %v7256_v11, %v7252_v7  ;;  %v7262_v23 = vpack.c.f32.eXmY %v4620_v8, %v4652_v12, 312  ;;  %v2574_v25 = vmul.f32 0.5, %v526_v10  ;;  %v625_v1 = vld [vmem:[%s12293_s30 + $0xf38] sm:$0xff]  ;;  %v562_v11 = vld [vmem:[%s12293_s30 + $0xd40] sm:$0xff] }
 0x14b   : > { %v7266_v24 = vpack.c.f32.eXmY %v4684_v13, %v4716_v14, 312  ;;  %v4653_v27 = vtrunc.f32 %v2605_v16  ;;  %v4685_v28 = vtrunc.f32 %v2637_v17  ;;  %v4717_v29 = vtrunc.f32 %v2669_v18  ;;  %v594_v16 = vld [vmem:[%s12293_s30 + $0xe40] sm:$0xff] }
 0x14c   : > { %v2606_v30 = vmul.f32 0.5, %v558_v15  ;;  %11499 = vst [vmem:[%s12322_s25 + $0x308] sm:$0xff] %v7260_v22  ;;  %v2638_v34 = vmul.f32 0.5, %v590_v20  ;;  %v2670_v35 = vmul.f32 0.5, %v622_v21  ;;  %v4622_v36 = vtrunc.f32 %v2574_v25  ;;  %v626_v17 = vld [vmem:[%s12293_s30 + $0xf40] sm:$0xff]  ;;  %v531_v22 = vld [vmem:[%s12293_s30 + $0xc48] sm:$0xff] }
 0x14d   : > { %v7270_v33 = vpack.c.b8 %v7266_v24, %v7262_v23  ;;  %v7272_v38 = vpack.c.f32.eXmY %v4621_v19, %v4653_v27, 312  ;;  %v7276_v39 = vpack.c.f32.eXmY %v4685_v28, %v4717_v29, 312  ;;  %v2575_v41 = vmul.f32 0.5, %v527_v26  ;;  %v563_v27 = vld [vmem:[%s12293_s30 + $0xd48] sm:$0xff] }
 0x14e   : > { %v4654_v40 = vtrunc.f32 %v2606_v30  ;;  %v4686_v43 = vtrunc.f32 %v2638_v34  ;;  %v4718_v44 = vtrunc.f32 %v2670_v35  ;;  %v2607_v45 = vmul.f32 0.5, %v559_v31  ;;  %v595_v28 = vld [vmem:[%s12293_s30 + $0xe48] sm:$0xff] }
 0x14f   : > { %11500 = vst [vmem:[%s12322_s25 + $0x310] sm:$0xff] %v7270_v33  ;;  %v2639_v46 = vmul.f32 0.5, %v591_v32  ;;  %v7280_v50 = vpack.c.b8 %v7276_v39, %v7272_v38  ;;  %v2671_v52 = vmul.f32 0.5, %v623_v37  ;;  %v4623_v53 = vtrunc.f32 %v2575_v41  ;;  %v627_v33 = vld [vmem:[%s12293_s30 + $0xf48] sm:$0xff]  ;;  %v532_v38 = vld [vmem:[%s12293_s30 + $0xc50] sm:$0xff] }
 0x150   : > { %v7282_v51 = vpack.c.f32.eXmY %v4622_v36, %v4654_v40, 312  ;;  %v7286_v55 = vpack.c.f32.eXmY %v4686_v43, %v4718_v44, 312  ;;  %v4655_v56 = vtrunc.f32 %v2607_v45  ;;  %v2576_v58 = vmul.f32 0.5, %v528_v42  ;;  %v564_v43 = vld [vmem:[%s12293_s30 + $0xd50] sm:$0xff] }
 0x151   : > { %v4687_v57 = vtrunc.f32 %v2639_v46  ;;  %11501 = vst [vmem:[%s12322_s25 + $0x318] sm:$0xff] %v7280_v50  ;;  %v4719_v59 = vtrunc.f32 %v2671_v52  ;;  %v2608_v60 = vmul.f32 0.5, %v560_v47  ;;  %v2640_v61 = vmul.f32 0.5, %v592_v48  ;;  %v596_v44 = vld [vmem:[%s12293_s30 + $0xe50] sm:$0xff]  ;;  %v533_v50 = vld [vmem:[%s12293_s30 + $0xc58] sm:$0xff] }
 0x152   : > { %v2672_v62 = vmul.f32 0.5, %v624_v49  ;;  %v7290_v2 = vpack.c.b8 %v7286_v55, %v7282_v51  ;;  %v7292_v3 = vpack.c.f32.eXmY %v4623_v53, %v4655_v56, 312  ;;  %v4624_v4 = vtrunc.f32 %v2576_v58  ;;  %v628_v45 = vld [vmem:[%s12293_s30 + $0xf50] sm:$0xff] }
 0x153   : > { %v2577_v5 = vmul.f32 0.5, %v529_v54  ;;  %v7296_v7 = vpack.c.f32.eXmY %v4687_v57, %v4719_v59, 312  ;;  %v4656_v8 = vtrunc.f32 %v2608_v60  ;;  %v4688_v9 = vtrunc.f32 %v2640_v61  ;;  %v565_v59 = vld [vmem:[%s12293_s30 + $0xd58] sm:$0xff] }
 0x154   : > { %v4720_v10 = vtrunc.f32 %v2672_v62  ;;  %11502 = vst [vmem:[%s12322_s25 + $0x320] sm:$0xff] %v7290_v2  ;;  %v2609_v12 = vmul.f32 0.5, %v561_v63  ;;  %v2641_v13 = vmul.f32 0.5, %v593_v0  ;;  %v2673_v14 = vmul.f32 0.5, %v625_v1  ;;  %v597_v60 = vld [vmem:[%s12293_s30 + $0xe58] sm:$0xff]  ;;  %v534_v2 = vld [vmem:[%s12293_s30 + $0xc60] sm:$0xff] }
 0x155   : > { %v4625_v15 = vtrunc.f32 %v2577_v5  ;;  %v7300_v18 = vpack.c.b8 %v7296_v7, %v7292_v3  ;;  %v7302_v19 = vpack.c.f32.eXmY %v4624_v4, %v4656_v8, 312  ;;  %v2578_v21 = vmul.f32 0.5, %v530_v6  ;;  %v629_v61 = vld [vmem:[%s12293_s30 + $0xf58] sm:$0xff]  ;;  %v566_v7 = vld [vmem:[%s12293_s30 + $0xd60] sm:$0xff] }
 0x156   : > { %v7306_v20 = vpack.c.f32.eXmY %v4688_v9, %v4720_v10, 312  ;;  %v4657_v23 = vtrunc.f32 %v2609_v12  ;;  %v4689_v24 = vtrunc.f32 %v2641_v13  ;;  %v4721_v25 = vtrunc.f32 %v2673_v14  ;;  %v598_v12 = vld [vmem:[%s12293_s30 + $0xe60] sm:$0xff] }
 0x157   : > { %v2610_v26 = vmul.f32 0.5, %v562_v11  ;;  %11503 = vst [vmem:[%s12322_s25 + $0x328] sm:$0xff] %v7300_v18  ;;  %v2642_v30 = vmul.f32 0.5, %v594_v16  ;;  %v2674_v31 = vmul.f32 0.5, %v626_v17  ;;  %v4626_v32 = vtrunc.f32 %v2578_v21  ;;  %v630_v13 = vld [vmem:[%s12293_s30 + $0xf60] sm:$0xff]  ;;  %v535_v18 = vld [vmem:[%s12293_s30 + $0xc68] sm:$0xff] }
 0x158   : > { %v7310_v29 = vpack.c.b8 %v7306_v20, %v7302_v19  ;;  %v7312_v34 = vpack.c.f32.eXmY %v4625_v15, %v4657_v23, 312  ;;  %v7316_v35 = vpack.c.f32.eXmY %v4689_v24, %v4721_v25, 312  ;;  %v2579_v37 = vmul.f32 0.5, %v531_v22  ;;  %v567_v23 = vld [vmem:[%s12293_s30 + $0xd68] sm:$0xff] }
 0x159   : > { %v4658_v36 = vtrunc.f32 %v2610_v26  ;;  %v4690_v39 = vtrunc.f32 %v2642_v30  ;;  %v4722_v40 = vtrunc.f32 %v2674_v31  ;;  %v2611_v41 = vmul.f32 0.5, %v563_v27  ;;  %v599_v24 = vld [vmem:[%s12293_s30 + $0xe68] sm:$0xff] }
 0x15a   : > { %11504 = vst [vmem:[%s12322_s25 + $0x330] sm:$0xff] %v7310_v29  ;;  %v2643_v42 = vmul.f32 0.5, %v595_v28  ;;  %v7320_v46 = vpack.c.b8 %v7316_v35, %v7312_v34  ;;  %v2675_v48 = vmul.f32 0.5, %v627_v33  ;;  %v4627_v49 = vtrunc.f32 %v2579_v37  ;;  %v631_v29 = vld [vmem:[%s12293_s30 + $0xf68] sm:$0xff]  ;;  %v536_v34 = vld [vmem:[%s12293_s30 + $0xc70] sm:$0xff] }
 0x15b   : > { %v7322_v47 = vpack.c.f32.eXmY %v4626_v32, %v4658_v36, 312  ;;  %v7326_v51 = vpack.c.f32.eXmY %v4690_v39, %v4722_v40, 312  ;;  %v4659_v52 = vtrunc.f32 %v2611_v41  ;;  %v2580_v54 = vmul.f32 0.5, %v532_v38  ;;  %v568_v39 = vld [vmem:[%s12293_s30 + $0xd70] sm:$0xff] }
 0x15c   : > { %v4691_v53 = vtrunc.f32 %v2643_v42  ;;  %11505 = vst [vmem:[%s12322_s25 + $0x338] sm:$0xff] %v7320_v46  ;;  %v4723_v55 = vtrunc.f32 %v2675_v48  ;;  %v2612_v56 = vmul.f32 0.5, %v564_v43  ;;  %v2644_v57 = vmul.f32 0.5, %v596_v44  ;;  %v600_v40 = vld [vmem:[%s12293_s30 + $0xe70] sm:$0xff]  ;;  %v537_v46 = vld [vmem:[%s12293_s30 + $0xc78] sm:$0xff] }
 0x15d   : > { %v2676_v58 = vmul.f32 0.5, %v628_v45  ;;  %v7330_v62 = vpack.c.b8 %v7326_v51, %v7322_v47  ;;  %v7332_v63 = vpack.c.f32.eXmY %v4627_v49, %v4659_v52, 312  ;;  %v4628_v0 = vtrunc.f32 %v2580_v54  ;;  %v632_v41 = vld [vmem:[%s12293_s30 + $0xf70] sm:$0xff] }
 0x15e   : > { %v2581_v1 = vmul.f32 0.5, %v533_v50  ;;  %v7336_v3 = vpack.c.f32.eXmY %v4691_v53, %v4723_v55, 312  ;;  %v4660_v4 = vtrunc.f32 %v2612_v56  ;;  %v4692_v5 = vtrunc.f32 %v2644_v57  ;;  %v569_v55 = vld [vmem:[%s12293_s30 + $0xd78] sm:$0xff] }
 0x15f   : > { %v4724_v6 = vtrunc.f32 %v2676_v58  ;;  %11506 = vst [vmem:[%s12322_s25 + $0x340] sm:$0xff] %v7330_v62  ;;  %v2613_v8 = vmul.f32 0.5, %v565_v59  ;;  %v2645_v9 = vmul.f32 0.5, %v597_v60  ;;  %v2677_v10 = vmul.f32 0.5, %v629_v61  ;;  %v601_v56 = vld [vmem:[%s12293_s30 + $0xe78] sm:$0xff]  ;;  %v538_v62 = vld [vmem:[%s12293_s30 + $0xc80] sm:$0xff] }
 0x160   : > { %v4629_v11 = vtrunc.f32 %v2581_v1  ;;  %v7340_v14 = vpack.c.b8 %v7336_v3, %v7332_v63  ;;  %v7342_v15 = vpack.c.f32.eXmY %v4628_v0, %v4660_v4, 312  ;;  %v2582_v17 = vmul.f32 0.5, %v534_v2  ;;  %v633_v57 = vld [vmem:[%s12293_s30 + $0xf78] sm:$0xff]  ;;  %v570_v3 = vld [vmem:[%s12293_s30 + $0xd80] sm:$0xff] }
 0x161   : > { %v7346_v16 = vpack.c.f32.eXmY %v4692_v5, %v4724_v6, 312  ;;  %v4661_v19 = vtrunc.f32 %v2613_v8  ;;  %v4693_v20 = vtrunc.f32 %v2645_v9  ;;  %v4725_v21 = vtrunc.f32 %v2677_v10  ;;  %v602_v8 = vld [vmem:[%s12293_s30 + $0xe80] sm:$0xff] }
 0x162   : > { %v2614_v22 = vmul.f32 0.5, %v566_v7  ;;  %11507 = vst [vmem:[%s12322_s25 + $0x348] sm:$0xff] %v7340_v14  ;;  %v2646_v26 = vmul.f32 0.5, %v598_v12  ;;  %v2678_v27 = vmul.f32 0.5, %v630_v13  ;;  %v4630_v28 = vtrunc.f32 %v2582_v17  ;;  %v634_v9 = vld [vmem:[%s12293_s30 + $0xf80] sm:$0xff]  ;;  %v539_v14 = vld [vmem:[%s12293_s30 + $0xc88] sm:$0xff] }
 0x163   : > { %v7350_v25 = vpack.c.b8 %v7346_v16, %v7342_v15  ;;  %v7352_v30 = vpack.c.f32.eXmY %v4629_v11, %v4661_v19, 312  ;;  %v7356_v31 = vpack.c.f32.eXmY %v4693_v20, %v4725_v21, 312  ;;  %v2583_v33 = vmul.f32 0.5, %v535_v18  ;;  %v571_v19 = vld [vmem:[%s12293_s30 + $0xd88] sm:$0xff] }
 0x164   : > { %v4662_v32 = vtrunc.f32 %v2614_v22  ;;  %v4694_v35 = vtrunc.f32 %v2646_v26  ;;  %v4726_v36 = vtrunc.f32 %v2678_v27  ;;  %v2615_v37 = vmul.f32 0.5, %v567_v23  ;;  %v603_v20 = vld [vmem:[%s12293_s30 + $0xe88] sm:$0xff] }
 0x165   : > { %11508 = vst [vmem:[%s12322_s25 + $0x350] sm:$0xff] %v7350_v25  ;;  %v2647_v38 = vmul.f32 0.5, %v599_v24  ;;  %v7360_v42 = vpack.c.b8 %v7356_v31, %v7352_v30  ;;  %v2679_v44 = vmul.f32 0.5, %v631_v29  ;;  %v4631_v45 = vtrunc.f32 %v2583_v33  ;;  %v635_v25 = vld [vmem:[%s12293_s30 + $0xf88] sm:$0xff]  ;;  %v540_v30 = vld [vmem:[%s12293_s30 + $0xc90] sm:$0xff] }
 0x166   : > { %v7362_v43 = vpack.c.f32.eXmY %v4630_v28, %v4662_v32, 312  ;;  %v7366_v47 = vpack.c.f32.eXmY %v4694_v35, %v4726_v36, 312  ;;  %v4663_v48 = vtrunc.f32 %v2615_v37  ;;  %v2584_v50 = vmul.f32 0.5, %v536_v34  ;;  %v572_v35 = vld [vmem:[%s12293_s30 + $0xd90] sm:$0xff] }
 0x167   : > { %v4695_v49 = vtrunc.f32 %v2647_v38  ;;  %11509 = vst [vmem:[%s12322_s25 + $0x358] sm:$0xff] %v7360_v42  ;;  %v4727_v51 = vtrunc.f32 %v2679_v44  ;;  %v2616_v52 = vmul.f32 0.5, %v568_v39  ;;  %v2648_v53 = vmul.f32 0.5, %v600_v40  ;;  %v604_v36 = vld [vmem:[%s12293_s30 + $0xe90] sm:$0xff]  ;;  %v541_v42 = vld [vmem:[%s12293_s30 + $0xc98] sm:$0xff] }
 0x168   : > { %v2680_v54 = vmul.f32 0.5, %v632_v41  ;;  %v7370_v58 = vpack.c.b8 %v7366_v47, %v7362_v43  ;;  %v7372_v59 = vpack.c.f32.eXmY %v4631_v45, %v4663_v48, 312  ;;  %v4632_v60 = vtrunc.f32 %v2584_v50  ;;  %v636_v37 = vld [vmem:[%s12293_s30 + $0xf90] sm:$0xff] }
 0x169   : > { %v2585_v61 = vmul.f32 0.5, %v537_v46  ;;  %v7376_v63 = vpack.c.f32.eXmY %v4695_v49, %v4727_v51, 312  ;;  %v4664_v0 = vtrunc.f32 %v2616_v52  ;;  %v4696_v1 = vtrunc.f32 %v2648_v53  ;;  %v573_v51 = vld [vmem:[%s12293_s30 + $0xd98] sm:$0xff] }
 0x16a   : > { %v4728_v2 = vtrunc.f32 %v2680_v54  ;;  %11510 = vst [vmem:[%s12322_s25 + $0x360] sm:$0xff] %v7370_v58  ;;  %v2617_v4 = vmul.f32 0.5, %v569_v55  ;;  %v2649_v5 = vmul.f32 0.5, %v601_v56  ;;  %v2681_v6 = vmul.f32 0.5, %v633_v57  ;;  %v605_v52 = vld [vmem:[%s12293_s30 + $0xe98] sm:$0xff]  ;;  %v542_v58 = vld [vmem:[%s12293_s30 + $0xca0] sm:$0xff] }
 0x16b   : > { %v4633_v7 = vtrunc.f32 %v2585_v61  ;;  %v7380_v10 = vpack.c.b8 %v7376_v63, %v7372_v59  ;;  %v7382_v11 = vpack.c.f32.eXmY %v4632_v60, %v4664_v0, 312  ;;  %v2586_v13 = vmul.f32 0.5, %v538_v62  ;;  %v637_v53 = vld [vmem:[%s12293_s30 + $0xf98] sm:$0xff]  ;;  %v574_v63 = vld [vmem:[%s12293_s30 + $0xda0] sm:$0xff] }
 0x16c   : > { %v7386_v12 = vpack.c.f32.eXmY %v4696_v1, %v4728_v2, 312  ;;  %v4665_v15 = vtrunc.f32 %v2617_v4  ;;  %v4697_v16 = vtrunc.f32 %v2649_v5  ;;  %v4729_v17 = vtrunc.f32 %v2681_v6  ;;  %v606_v4 = vld [vmem:[%s12293_s30 + $0xea0] sm:$0xff] }
 0x16d   : > { %v2618_v18 = vmul.f32 0.5, %v570_v3  ;;  %11511 = vst [vmem:[%s12322_s25 + $0x368] sm:$0xff] %v7380_v10  ;;  %v2650_v22 = vmul.f32 0.5, %v602_v8  ;;  %v2682_v23 = vmul.f32 0.5, %v634_v9  ;;  %v4634_v24 = vtrunc.f32 %v2586_v13  ;;  %v638_v5 = vld [vmem:[%s12293_s30 + $0xfa0] sm:$0xff]  ;;  %v543_v10 = vld [vmem:[%s12293_s30 + $0xca8] sm:$0xff] }
 0x16e   : > { %v7390_v21 = vpack.c.b8 %v7386_v12, %v7382_v11  ;;  %v7392_v26 = vpack.c.f32.eXmY %v4633_v7, %v4665_v15, 312  ;;  %v7396_v27 = vpack.c.f32.eXmY %v4697_v16, %v4729_v17, 312  ;;  %v2587_v29 = vmul.f32 0.5, %v539_v14  ;;  %v575_v15 = vld [vmem:[%s12293_s30 + $0xda8] sm:$0xff] }
 0x16f   : > { %v4666_v28 = vtrunc.f32 %v2618_v18  ;;  %v4698_v31 = vtrunc.f32 %v2650_v22  ;;  %v4730_v32 = vtrunc.f32 %v2682_v23  ;;  %v2619_v33 = vmul.f32 0.5, %v571_v19  ;;  %v607_v16 = vld [vmem:[%s12293_s30 + $0xea8] sm:$0xff] }
 0x170   : > { %11512 = vst [vmem:[%s12322_s25 + $0x370] sm:$0xff] %v7390_v21  ;;  %v2651_v34 = vmul.f32 0.5, %v603_v20  ;;  %v7400_v38 = vpack.c.b8 %v7396_v27, %v7392_v26  ;;  %v2683_v40 = vmul.f32 0.5, %v635_v25  ;;  %v4635_v41 = vtrunc.f32 %v2587_v29  ;;  %v639_v21 = vld [vmem:[%s12293_s30 + $0xfa8] sm:$0xff]  ;;  %v544_v26 = vld [vmem:[%s12293_s30 + $0xcb0] sm:$0xff] }
 0x171   : > { %v7402_v39 = vpack.c.f32.eXmY %v4634_v24, %v4666_v28, 312  ;;  %v7406_v43 = vpack.c.f32.eXmY %v4698_v31, %v4730_v32, 312  ;;  %v4667_v44 = vtrunc.f32 %v2619_v33  ;;  %v2588_v46 = vmul.f32 0.5, %v540_v30  ;;  %v576_v31 = vld [vmem:[%s12293_s30 + $0xdb0] sm:$0xff] }
 0x172   : > { %v4699_v45 = vtrunc.f32 %v2651_v34  ;;  %11513 = vst [vmem:[%s12322_s25 + $0x378] sm:$0xff] %v7400_v38  ;;  %v4731_v47 = vtrunc.f32 %v2683_v40  ;;  %v2620_v48 = vmul.f32 0.5, %v572_v35  ;;  %v2652_v49 = vmul.f32 0.5, %v604_v36  ;;  %v608_v32 = vld [vmem:[%s12293_s30 + $0xeb0] sm:$0xff]  ;;  %v545_v38 = vld [vmem:[%s12293_s30 + $0xcb8] sm:$0xff] }
 0x173   : > { %v2684_v50 = vmul.f32 0.5, %v636_v37  ;;  %v7410_v54 = vpack.c.b8 %v7406_v43, %v7402_v39  ;;  %v7412_v55 = vpack.c.f32.eXmY %v4635_v41, %v4667_v44, 312  ;;  %v4636_v56 = vtrunc.f32 %v2588_v46  ;;  %v640_v33 = vld [vmem:[%s12293_s30 + $0xfb0] sm:$0xff] }
 0x174   : > { %v2589_v57 = vmul.f32 0.5, %v541_v42  ;;  %v7416_v59 = vpack.c.f32.eXmY %v4699_v45, %v4731_v47, 312  ;;  %v4668_v60 = vtrunc.f32 %v2620_v48  ;;  %v4700_v61 = vtrunc.f32 %v2652_v49  ;;  %v577_v47 = vld [vmem:[%s12293_s30 + $0xdb8] sm:$0xff] }
 0x175   : > { %v4732_v62 = vtrunc.f32 %v2684_v50  ;;  %11514 = vst [vmem:[%s12322_s25 + $0x380] sm:$0xff] %v7410_v54  ;;  %v2621_v0 = vmul.f32 0.5, %v573_v51  ;;  %v2653_v1 = vmul.f32 0.5, %v605_v52  ;;  %v2685_v2 = vmul.f32 0.5, %v637_v53  ;;  %v609_v48 = vld [vmem:[%s12293_s30 + $0xeb8] sm:$0xff]  ;;  %v546_v54 = vld [vmem:[%s12293_s30 + $0xcc0] sm:$0xff] }
 0x176   : > { %v4637_v3 = vtrunc.f32 %v2589_v57  ;;  %v7420_v6 = vpack.c.b8 %v7416_v59, %v7412_v55  ;;  %v7422_v7 = vpack.c.f32.eXmY %v4636_v56, %v4668_v60, 312  ;;  %v2590_v9 = vmul.f32 0.5, %v542_v58  ;;  %v641_v49 = vld [vmem:[%s12293_s30 + $0xfb8] sm:$0xff]  ;;  %v578_v59 = vld [vmem:[%s12293_s30 + $0xdc0] sm:$0xff] }
 0x177   : > { %v7426_v8 = vpack.c.f32.eXmY %v4700_v61, %v4732_v62, 312  ;;  %v4669_v11 = vtrunc.f32 %v2621_v0  ;;  %v4701_v12 = vtrunc.f32 %v2653_v1  ;;  %v4733_v13 = vtrunc.f32 %v2685_v2  ;;  %v610_v0 = vld [vmem:[%s12293_s30 + $0xec0] sm:$0xff] }
 0x178   : > { %v2622_v14 = vmul.f32 0.5, %v574_v63  ;;  %11515 = vst [vmem:[%s12322_s25 + $0x388] sm:$0xff] %v7420_v6  ;;  %v2654_v18 = vmul.f32 0.5, %v606_v4  ;;  %v2686_v19 = vmul.f32 0.5, %v638_v5  ;;  %v4638_v20 = vtrunc.f32 %v2590_v9  ;;  %v642_v1 = vld [vmem:[%s12293_s30 + $0xfc0] sm:$0xff]  ;;  %v547_v6 = vld [vmem:[%s12293_s30 + $0xcc8] sm:$0xff] }
 0x179   : > { %v7430_v17 = vpack.c.b8 %v7426_v8, %v7422_v7  ;;  %v7432_v22 = vpack.c.f32.eXmY %v4637_v3, %v4669_v11, 312  ;;  %v7436_v23 = vpack.c.f32.eXmY %v4701_v12, %v4733_v13, 312  ;;  %v2591_v25 = vmul.f32 0.5, %v543_v10  ;;  %v579_v11 = vld [vmem:[%s12293_s30 + $0xdc8] sm:$0xff] }
 0x17a   : > { %v4670_v24 = vtrunc.f32 %v2622_v14  ;;  %v4702_v27 = vtrunc.f32 %v2654_v18  ;;  %v4734_v28 = vtrunc.f32 %v2686_v19  ;;  %v2623_v29 = vmul.f32 0.5, %v575_v15  ;;  %v611_v12 = vld [vmem:[%s12293_s30 + $0xec8] sm:$0xff] }
 0x17b   : > { %11516 = vst [vmem:[%s12322_s25 + $0x390] sm:$0xff] %v7430_v17  ;;  %v2655_v30 = vmul.f32 0.5, %v607_v16  ;;  %v7440_v34 = vpack.c.b8 %v7436_v23, %v7432_v22  ;;  %v2687_v36 = vmul.f32 0.5, %v639_v21  ;;  %v4639_v37 = vtrunc.f32 %v2591_v25  ;;  %v643_v17 = vld [vmem:[%s12293_s30 + $0xfc8] sm:$0xff]  ;;  %v548_v22 = vld [vmem:[%s12293_s30 + $0xcd0] sm:$0xff] }
 0x17c   : > { %v7442_v35 = vpack.c.f32.eXmY %v4638_v20, %v4670_v24, 312  ;;  %v7446_v39 = vpack.c.f32.eXmY %v4702_v27, %v4734_v28, 312  ;;  %v4671_v40 = vtrunc.f32 %v2623_v29  ;;  %v2592_v42 = vmul.f32 0.5, %v544_v26  ;;  %v580_v27 = vld [vmem:[%s12293_s30 + $0xdd0] sm:$0xff] }
 0x17d   : > { %v4703_v41 = vtrunc.f32 %v2655_v30  ;;  %11517 = vst [vmem:[%s12322_s25 + $0x398] sm:$0xff] %v7440_v34  ;;  %v4735_v43 = vtrunc.f32 %v2687_v36  ;;  %v2624_v44 = vmul.f32 0.5, %v576_v31  ;;  %v2656_v45 = vmul.f32 0.5, %v608_v32  ;;  %v612_v28 = vld [vmem:[%s12293_s30 + $0xed0] sm:$0xff]  ;;  %v549_v34 = vld [vmem:[%s12293_s30 + $0xcd8] sm:$0xff] }
 0x17e   : > { %v2688_v46 = vmul.f32 0.5, %v640_v33  ;;  %v7450_v50 = vpack.c.b8 %v7446_v39, %v7442_v35  ;;  %v7452_v51 = vpack.c.f32.eXmY %v4639_v37, %v4671_v40, 312  ;;  %v4640_v52 = vtrunc.f32 %v2592_v42  ;;  %v644_v29 = vld [vmem:[%s12293_s30 + $0xfd0] sm:$0xff] }
 0x17f   : > { %v2593_v53 = vmul.f32 0.5, %v545_v38  ;;  %v7456_v55 = vpack.c.f32.eXmY %v4703_v41, %v4735_v43, 312  ;;  %v4672_v56 = vtrunc.f32 %v2624_v44  ;;  %v4704_v57 = vtrunc.f32 %v2656_v45  ;;  %v581_v43 = vld [vmem:[%s12293_s30 + $0xdd8] sm:$0xff] }
 0x180   : > { %v4736_v58 = vtrunc.f32 %v2688_v46  ;;  %11518 = vst [vmem:[%s12322_s25 + $0x3a0] sm:$0xff] %v7450_v50  ;;  %v2625_v60 = vmul.f32 0.5, %v577_v47  ;;  %v2657_v61 = vmul.f32 0.5, %v609_v48  ;;  %v2689_v62 = vmul.f32 0.5, %v641_v49  ;;  %v613_v44 = vld [vmem:[%s12293_s30 + $0xed8] sm:$0xff]  ;;  %v550_v50 = vld [vmem:[%s12293_s30 + $0xce0] sm:$0xff] }
 0x181   : > { %v4641_v63 = vtrunc.f32 %v2593_v53  ;;  %v7460_v2 = vpack.c.b8 %v7456_v55, %v7452_v51  ;;  %v7462_v3 = vpack.c.f32.eXmY %v4640_v52, %v4672_v56, 312  ;;  %v2594_v5 = vmul.f32 0.5, %v546_v54  ;;  %v645_v45 = vld [vmem:[%s12293_s30 + $0xfd8] sm:$0xff]  ;;  %v582_v55 = vld [vmem:[%s12293_s30 + $0xde0] sm:$0xff] }
 0x182   : > { %v7466_v4 = vpack.c.f32.eXmY %v4704_v57, %v4736_v58, 312  ;;  %v4673_v7 = vtrunc.f32 %v2625_v60  ;;  %v4705_v8 = vtrunc.f32 %v2657_v61  ;;  %v4737_v9 = vtrunc.f32 %v2689_v62  ;;  %v614_v60 = vld [vmem:[%s12293_s30 + $0xee0] sm:$0xff] }
 0x183   : > { %v2626_v10 = vmul.f32 0.5, %v578_v59  ;;  %11519 = vst [vmem:[%s12322_s25 + $0x3a8] sm:$0xff] %v7460_v2  ;;  %v2658_v14 = vmul.f32 0.5, %v610_v0  ;;  %v2690_v15 = vmul.f32 0.5, %v642_v1  ;;  %v4642_v16 = vtrunc.f32 %v2594_v5  ;;  %v646_v61 = vld [vmem:[%s12293_s30 + $0xfe0] sm:$0xff]  ;;  %v551_v2 = vld [vmem:[%s12293_s30 + $0xce8] sm:$0xff] }
 0x184   : > { %v7470_v13 = vpack.c.b8 %v7466_v4, %v7462_v3  ;;  %v7472_v18 = vpack.c.f32.eXmY %v4641_v63, %v4673_v7, 312  ;;  %v7476_v19 = vpack.c.f32.eXmY %v4705_v8, %v4737_v9, 312  ;;  %v2595_v21 = vmul.f32 0.5, %v547_v6  ;;  %v583_v7 = vld [vmem:[%s12293_s30 + $0xde8] sm:$0xff] }
 0x185   : > { %v4674_v20 = vtrunc.f32 %v2626_v10  ;;  %v4706_v23 = vtrunc.f32 %v2658_v14  ;;  %v4738_v24 = vtrunc.f32 %v2690_v15  ;;  %v2627_v25 = vmul.f32 0.5, %v579_v11  ;;  %v615_v8 = vld [vmem:[%s12293_s30 + $0xee8] sm:$0xff] }
 0x186   : > { %11520 = vst [vmem:[%s12322_s25 + $0x3b0] sm:$0xff] %v7470_v13  ;;  %v2659_v26 = vmul.f32 0.5, %v611_v12  ;;  %v7480_v30 = vpack.c.b8 %v7476_v19, %v7472_v18  ;;  %v2691_v32 = vmul.f32 0.5, %v643_v17  ;;  %v4643_v33 = vtrunc.f32 %v2595_v21  ;;  %v647_v13 = vld [vmem:[%s12293_s30 + $0xfe8] sm:$0xff]  ;;  %v552_v18 = vld [vmem:[%s12293_s30 + $0xcf0] sm:$0xff] }
 0x187   : > { %v7482_v31 = vpack.c.f32.eXmY %v4642_v16, %v4674_v20, 312  ;;  %v7486_v35 = vpack.c.f32.eXmY %v4706_v23, %v4738_v24, 312  ;;  %v4675_v36 = vtrunc.f32 %v2627_v25  ;;  %v2596_v38 = vmul.f32 0.5, %v548_v22  ;;  %v584_v23 = vld [vmem:[%s12293_s30 + $0xdf0] sm:$0xff] }
 0x188   : > { %v4707_v37 = vtrunc.f32 %v2659_v26  ;;  %11521 = vst [vmem:[%s12322_s25 + $0x3b8] sm:$0xff] %v7480_v30  ;;  %v4739_v39 = vtrunc.f32 %v2691_v32  ;;  %v2628_v40 = vmul.f32 0.5, %v580_v27  ;;  %v2660_v41 = vmul.f32 0.5, %v612_v28  ;;  %v616_v24 = vld [vmem:[%s12293_s30 + $0xef0] sm:$0xff]  ;;  %v553_v30 = vld [vmem:[%s12293_s30 + $0xcf8] sm:$0xff] }
 0x189   : > { %v2692_v42 = vmul.f32 0.5, %v644_v29  ;;  %v7490_v46 = vpack.c.b8 %v7486_v35, %v7482_v31  ;;  %v7492_v47 = vpack.c.f32.eXmY %v4643_v33, %v4675_v36, 312  ;;  %v4644_v48 = vtrunc.f32 %v2596_v38  ;;  %v648_v25 = vld [vmem:[%s12293_s30 + $0xff0] sm:$0xff] }
 0x18a   : > { %v2597_v49 = vmul.f32 0.5, %v549_v34  ;;  %v7496_v51 = vpack.c.f32.eXmY %v4707_v37, %v4739_v39, 312  ;;  %v4676_v52 = vtrunc.f32 %v2628_v40  ;;  %v4708_v53 = vtrunc.f32 %v2660_v41  ;;  %v585_v39 = vld [vmem:[%s12293_s30 + $0xdf8] sm:$0xff] }
 0x18b   : > { %v4740_v54 = vtrunc.f32 %v2692_v42  ;;  %11522 = vst [vmem:[%s12322_s25 + $0x3c0] sm:$0xff] %v7490_v46  ;;  %v2629_v56 = vmul.f32 0.5, %v581_v43  ;;  %v2661_v57 = vmul.f32 0.5, %v613_v44  ;;  %v2693_v58 = vmul.f32 0.5, %v645_v45  ;;  %v617_v40 = vld [vmem:[%s12293_s30 + $0xef8] sm:$0xff]  ;;  %v650_v46 = vld [vmem:[%s12293_s30 + $0x1000] sm:$0xff] }
 0x18c   : > { %v4645_v59 = vtrunc.f32 %v2597_v49  ;;  %v7500_v62 = vpack.c.b8 %v7496_v51, %v7492_v47  ;;  %v7502_v63 = vpack.c.f32.eXmY %v4644_v48, %v4676_v52, 312  ;;  %v2598_v1 = vmul.f32 0.5, %v550_v50  ;;  %v649_v41 = vld [vmem:[%s12293_s30 + $0xff8] sm:$0xff]  ;;  %v682_v51 = vld [vmem:[%s12293_s30 + $0x1100] sm:$0xff] }
 0x18d   : > { %v7506_v0 = vpack.c.f32.eXmY %v4708_v53, %v4740_v54, 312  ;;  %v4677_v3 = vtrunc.f32 %v2629_v56  ;;  %v4709_v4 = vtrunc.f32 %v2661_v57  ;;  %v4741_v5 = vtrunc.f32 %v2693_v58  ;;  %v714_v56 = vld [vmem:[%s12293_s30 + $0x1200] sm:$0xff] }
 0x18e   : > { %v2630_v6 = vmul.f32 0.5, %v582_v55  ;;  %11523 = vst [vmem:[%s12322_s25 + $0x3c8] sm:$0xff] %v7500_v62  ;;  %v2662_v10 = vmul.f32 0.5, %v614_v60  ;;  %v2694_v11 = vmul.f32 0.5, %v646_v61  ;;  %v4646_v12 = vtrunc.f32 %v2598_v1  ;;  %v746_v57 = vld [vmem:[%s12293_s30 + $0x1300] sm:$0xff]  ;;  %v651_v62 = vld [vmem:[%s12293_s30 + $0x1008] sm:$0xff] }
 0x18f   : > { %v7510_v9 = vpack.c.b8 %v7506_v0, %v7502_v63  ;;  %v7512_v14 = vpack.c.f32.eXmY %v4645_v59, %v4677_v3, 312  ;;  %v7516_v15 = vpack.c.f32.eXmY %v4709_v4, %v4741_v5, 312  ;;  %v2599_v17 = vmul.f32 0.5, %v551_v2  ;;  %v683_v3 = vld [vmem:[%s12293_s30 + $0x1108] sm:$0xff] }
 0x190   : > { %v4678_v16 = vtrunc.f32 %v2630_v6  ;;  %v4710_v19 = vtrunc.f32 %v2662_v10  ;;  %v4742_v20 = vtrunc.f32 %v2694_v11  ;;  %v2631_v21 = vmul.f32 0.5, %v583_v7  ;;  %v715_v4 = vld [vmem:[%s12293_s30 + $0x1208] sm:$0xff] }
 0x191   : > { %11524 = vst [vmem:[%s12322_s25 + $0x3d0] sm:$0xff] %v7510_v9  ;;  %v2663_v22 = vmul.f32 0.5, %v615_v8  ;;  %v7520_v26 = vpack.c.b8 %v7516_v15, %v7512_v14  ;;  %v2695_v28 = vmul.f32 0.5, %v647_v13  ;;  %v4647_v29 = vtrunc.f32 %v2599_v17  ;;  %v747_v9 = vld [vmem:[%s12293_s30 + $0x1308] sm:$0xff]  ;;  %v652_v14 = vld [vmem:[%s12293_s30 + $0x1010] sm:$0xff] }
 0x192   : > { %v7522_v27 = vpack.c.f32.eXmY %v4646_v12, %v4678_v16, 312  ;;  %v7526_v31 = vpack.c.f32.eXmY %v4710_v19, %v4742_v20, 312  ;;  %v4679_v32 = vtrunc.f32 %v2631_v21  ;;  %v2600_v34 = vmul.f32 0.5, %v552_v18  ;;  %v684_v19 = vld [vmem:[%s12293_s30 + $0x1110] sm:$0xff] }
 0x193   : > { %v4711_v33 = vtrunc.f32 %v2663_v22  ;;  %11525 = vst [vmem:[%s12322_s25 + $0x3d8] sm:$0xff] %v7520_v26  ;;  %v4743_v35 = vtrunc.f32 %v2695_v28  ;;  %v2632_v36 = vmul.f32 0.5, %v584_v23  ;;  %v2664_v37 = vmul.f32 0.5, %v616_v24  ;;  %v716_v20 = vld [vmem:[%s12293_s30 + $0x1210] sm:$0xff]  ;;  %v653_v26 = vld [vmem:[%s12293_s30 + $0x1018] sm:$0xff] }
 0x194   : > { %v2696_v38 = vmul.f32 0.5, %v648_v25  ;;  %v7530_v42 = vpack.c.b8 %v7526_v31, %v7522_v27  ;;  %v7532_v43 = vpack.c.f32.eXmY %v4647_v29, %v4679_v32, 312  ;;  %v4648_v44 = vtrunc.f32 %v2600_v34  ;;  %v748_v21 = vld [vmem:[%s12293_s30 + $0x1310] sm:$0xff] }
 0x195   : > { %v2601_v45 = vmul.f32 0.5, %v553_v30  ;;  %v7536_v47 = vpack.c.f32.eXmY %v4711_v33, %v4743_v35, 312  ;;  %v4680_v48 = vtrunc.f32 %v2632_v36  ;;  %v4712_v49 = vtrunc.f32 %v2664_v37  ;;  %v685_v35 = vld [vmem:[%s12293_s30 + $0x1118] sm:$0xff] }
 0x196   : > { %v4744_v50 = vtrunc.f32 %v2696_v38  ;;  %11526 = vst [vmem:[%s12322_s25 + $0x3e0] sm:$0xff] %v7530_v42  ;;  %v2633_v52 = vmul.f32 0.5, %v585_v39  ;;  %v2665_v53 = vmul.f32 0.5, %v617_v40  ;;  %v2697_v54 = vmul.f32 0.5, %v649_v41  ;;  %v717_v36 = vld [vmem:[%s12293_s30 + $0x1218] sm:$0xff]  ;;  %v654_v42 = vld [vmem:[%s12293_s30 + $0x1020] sm:$0xff] }
 0x197   : > { %v4649_v55 = vtrunc.f32 %v2601_v45  ;;  %v7540_v58 = vpack.c.b8 %v7536_v47, %v7532_v43  ;;  %v7542_v59 = vpack.c.f32.eXmY %v4648_v44, %v4680_v48, 312  ;;  %v2698_v61 = vmul.f32 0.5, %v650_v46  ;;  %v749_v37 = vld [vmem:[%s12293_s30 + $0x1318] sm:$0xff]  ;;  %v686_v47 = vld [vmem:[%s12293_s30 + $0x1120] sm:$0xff] }
 0x198   : > { %v7546_v60 = vpack.c.f32.eXmY %v4712_v49, %v4744_v50, 312  ;;  %v4681_v63 = vtrunc.f32 %v2633_v52  ;;  %v4713_v0 = vtrunc.f32 %v2665_v53  ;;  %v4745_v1 = vtrunc.f32 %v2697_v54  ;;  %v718_v52 = vld [vmem:[%s12293_s30 + $0x1220] sm:$0xff] }
 0x199   : > { %v2730_v2 = vmul.f32 0.5, %v682_v51  ;;  %11527 = vst [vmem:[%s12322_s25 + $0x3e8] sm:$0xff] %v7540_v58  ;;  %v2762_v6 = vmul.f32 0.5, %v714_v56  ;;  %v2794_v7 = vmul.f32 0.5, %v746_v57  ;;  %v4746_v8 = vtrunc.f32 %v2698_v61  ;;  %v750_v53 = vld [vmem:[%s12293_s30 + $0x1320] sm:$0xff]  ;;  %v655_v58 = vld [vmem:[%s12293_s30 + $0x1028] sm:$0xff] }
 0x19a   : > { %v7550_v5 = vpack.c.b8 %v7546_v60, %v7542_v59  ;;  %v7552_v10 = vpack.c.f32.eXmY %v4649_v55, %v4681_v63, 312  ;;  %v7556_v11 = vpack.c.f32.eXmY %v4713_v0, %v4745_v1, 312  ;;  %v2699_v13 = vmul.f32 0.5, %v651_v62  ;;  %v687_v63 = vld [vmem:[%s12293_s30 + $0x1128] sm:$0xff] }
 0x19b   : > { %v4778_v12 = vtrunc.f32 %v2730_v2  ;;  %v4810_v15 = vtrunc.f32 %v2762_v6  ;;  %v4842_v16 = vtrunc.f32 %v2794_v7  ;;  %v2731_v17 = vmul.f32 0.5, %v683_v3  ;;  %v719_v0 = vld [vmem:[%s12293_s30 + $0x1228] sm:$0xff] }
 0x19c   : > { %11528 = vst [vmem:[%s12322_s25 + $0x3f0] sm:$0xff] %v7550_v5  ;;  %v2763_v18 = vmul.f32 0.5, %v715_v4  ;;  %v7560_v22 = vpack.c.b8 %v7556_v11, %v7552_v10  ;;  %v2795_v24 = vmul.f32 0.5, %v747_v9  ;;  %v4747_v25 = vtrunc.f32 %v2699_v13  ;;  %v751_v5 = vld [vmem:[%s12293_s30 + $0x1328] sm:$0xff]  ;;  %v656_v10 = vld [vmem:[%s12293_s30 + $0x1030] sm:$0xff] }
 0x19d   : > { %v7562_v23 = vpack.c.f32.eXmY %v4746_v8, %v4778_v12, 312  ;;  %v7566_v27 = vpack.c.f32.eXmY %v4810_v15, %v4842_v16, 312  ;;  %v4779_v28 = vtrunc.f32 %v2731_v17  ;;  %v2700_v30 = vmul.f32 0.5, %v652_v14  ;;  %v688_v15 = vld [vmem:[%s12293_s30 + $0x1130] sm:$0xff] }
 0x19e   : > { %v4811_v29 = vtrunc.f32 %v2763_v18  ;;  %11529 = vst [vmem:[%s12322_s25 + $0x3f8] sm:$0xff] %v7560_v22  ;;  %v4843_v31 = vtrunc.f32 %v2795_v24  ;;  %v2732_v32 = vmul.f32 0.5, %v684_v19  ;;  %v2764_v33 = vmul.f32 0.5, %v716_v20  ;;  %v720_v16 = vld [vmem:[%s12293_s30 + $0x1230] sm:$0xff]  ;;  %v657_v22 = vld [vmem:[%s12293_s30 + $0x1038] sm:$0xff] }
 0x19f   : > { %v2796_v34 = vmul.f32 0.5, %v748_v21  ;;  %v7570_v38 = vpack.c.b8 %v7566_v27, %v7562_v23  ;;  %v7572_v39 = vpack.c.f32.eXmY %v4747_v25, %v4779_v28, 312  ;;  %v4748_v40 = vtrunc.f32 %v2700_v30  ;;  %v752_v17 = vld [vmem:[%s12293_s30 + $0x1330] sm:$0xff] }
 0x1a0   : > { %v2701_v41 = vmul.f32 0.5, %v653_v26  ;;  %v7576_v43 = vpack.c.f32.eXmY %v4811_v29, %v4843_v31, 312  ;;  %v4780_v44 = vtrunc.f32 %v2732_v32  ;;  %v4812_v45 = vtrunc.f32 %v2764_v33  ;;  %v689_v31 = vld [vmem:[%s12293_s30 + $0x1138] sm:$0xff] }
 0x1a1   : > { %v4844_v46 = vtrunc.f32 %v2796_v34  ;;  %11530 = vst [vmem:[%s12322_s25 + $0x400] sm:$0xff] %v7570_v38  ;;  %v2733_v48 = vmul.f32 0.5, %v685_v35  ;;  %v2765_v49 = vmul.f32 0.5, %v717_v36  ;;  %v2797_v50 = vmul.f32 0.5, %v749_v37  ;;  %v721_v32 = vld [vmem:[%s12293_s30 + $0x1238] sm:$0xff]  ;;  %v658_v38 = vld [vmem:[%s12293_s30 + $0x1040] sm:$0xff] }
 0x1a2   : > { %v4749_v51 = vtrunc.f32 %v2701_v41  ;;  %v7580_v54 = vpack.c.b8 %v7576_v43, %v7572_v39  ;;  %v7582_v55 = vpack.c.f32.eXmY %v4748_v40, %v4780_v44, 312  ;;  %v2702_v57 = vmul.f32 0.5, %v654_v42  ;;  %v753_v33 = vld [vmem:[%s12293_s30 + $0x1338] sm:$0xff]  ;;  %v690_v43 = vld [vmem:[%s12293_s30 + $0x1140] sm:$0xff] }
 0x1a3   : > { %v7586_v56 = vpack.c.f32.eXmY %v4812_v45, %v4844_v46, 312  ;;  %v4781_v59 = vtrunc.f32 %v2733_v48  ;;  %v4813_v60 = vtrunc.f32 %v2765_v49  ;;  %v4845_v61 = vtrunc.f32 %v2797_v50  ;;  %v722_v48 = vld [vmem:[%s12293_s30 + $0x1240] sm:$0xff] }
 0x1a4   : > { %v2734_v62 = vmul.f32 0.5, %v686_v47  ;;  %11531 = vst [vmem:[%s12322_s25 + $0x408] sm:$0xff] %v7580_v54  ;;  %v2766_v2 = vmul.f32 0.5, %v718_v52  ;;  %v2798_v3 = vmul.f32 0.5, %v750_v53  ;;  %v4750_v4 = vtrunc.f32 %v2702_v57  ;;  %v754_v49 = vld [vmem:[%s12293_s30 + $0x1340] sm:$0xff]  ;;  %v659_v54 = vld [vmem:[%s12293_s30 + $0x1048] sm:$0xff] }
 0x1a5   : > { %v7590_v1 = vpack.c.b8 %v7586_v56, %v7582_v55  ;;  %v7592_v6 = vpack.c.f32.eXmY %v4749_v51, %v4781_v59, 312  ;;  %v7596_v7 = vpack.c.f32.eXmY %v4813_v60, %v4845_v61, 312  ;;  %v2703_v9 = vmul.f32 0.5, %v655_v58  ;;  %v691_v59 = vld [vmem:[%s12293_s30 + $0x1148] sm:$0xff] }
 0x1a6   : > { %v4782_v8 = vtrunc.f32 %v2734_v62  ;;  %v4814_v11 = vtrunc.f32 %v2766_v2  ;;  %v4846_v12 = vtrunc.f32 %v2798_v3  ;;  %v2735_v13 = vmul.f32 0.5, %v687_v63  ;;  %v723_v60 = vld [vmem:[%s12293_s30 + $0x1248] sm:$0xff] }
 0x1a7   : > { %11532 = vst [vmem:[%s12322_s25 + $0x410] sm:$0xff] %v7590_v1  ;;  %v2767_v14 = vmul.f32 0.5, %v719_v0  ;;  %v7600_v18 = vpack.c.b8 %v7596_v7, %v7592_v6  ;;  %v2799_v20 = vmul.f32 0.5, %v751_v5  ;;  %v4751_v21 = vtrunc.f32 %v2703_v9  ;;  %v755_v1 = vld [vmem:[%s12293_s30 + $0x1348] sm:$0xff]  ;;  %v660_v6 = vld [vmem:[%s12293_s30 + $0x1050] sm:$0xff] }
 0x1a8   : > { %v7602_v19 = vpack.c.f32.eXmY %v4750_v4, %v4782_v8, 312  ;;  %v7606_v23 = vpack.c.f32.eXmY %v4814_v11, %v4846_v12, 312  ;;  %v4783_v24 = vtrunc.f32 %v2735_v13  ;;  %v2704_v26 = vmul.f32 0.5, %v656_v10  ;;  %v692_v11 = vld [vmem:[%s12293_s30 + $0x1150] sm:$0xff] }
 0x1a9   : > { %v4815_v25 = vtrunc.f32 %v2767_v14  ;;  %11533 = vst [vmem:[%s12322_s25 + $0x418] sm:$0xff] %v7600_v18  ;;  %v4847_v27 = vtrunc.f32 %v2799_v20  ;;  %v2736_v28 = vmul.f32 0.5, %v688_v15  ;;  %v2768_v29 = vmul.f32 0.5, %v720_v16  ;;  %v724_v12 = vld [vmem:[%s12293_s30 + $0x1250] sm:$0xff]  ;;  %v661_v18 = vld [vmem:[%s12293_s30 + $0x1058] sm:$0xff] }
 0x1aa   : > { %v2800_v30 = vmul.f32 0.5, %v752_v17  ;;  %v7610_v34 = vpack.c.b8 %v7606_v23, %v7602_v19  ;;  %v7612_v35 = vpack.c.f32.eXmY %v4751_v21, %v4783_v24, 312  ;;  %v4752_v36 = vtrunc.f32 %v2704_v26  ;;  %v756_v13 = vld [vmem:[%s12293_s30 + $0x1350] sm:$0xff] }
 0x1ab   : > { %v2705_v37 = vmul.f32 0.5, %v657_v22  ;;  %v7616_v39 = vpack.c.f32.eXmY %v4815_v25, %v4847_v27, 312  ;;  %v4784_v40 = vtrunc.f32 %v2736_v28  ;;  %v4816_v41 = vtrunc.f32 %v2768_v29  ;;  %v693_v27 = vld [vmem:[%s12293_s30 + $0x1158] sm:$0xff] }
 0x1ac   : > { %v4848_v42 = vtrunc.f32 %v2800_v30  ;;  %11534 = vst [vmem:[%s12322_s25 + $0x420] sm:$0xff] %v7610_v34  ;;  %v2737_v44 = vmul.f32 0.5, %v689_v31  ;;  %v2769_v45 = vmul.f32 0.5, %v721_v32  ;;  %v2801_v46 = vmul.f32 0.5, %v753_v33  ;;  %v725_v28 = vld [vmem:[%s12293_s30 + $0x1258] sm:$0xff]  ;;  %v662_v34 = vld [vmem:[%s12293_s30 + $0x1060] sm:$0xff] }
 0x1ad   : > { %v4753_v47 = vtrunc.f32 %v2705_v37  ;;  %v7620_v50 = vpack.c.b8 %v7616_v39, %v7612_v35  ;;  %v7622_v51 = vpack.c.f32.eXmY %v4752_v36, %v4784_v40, 312  ;;  %v2706_v53 = vmul.f32 0.5, %v658_v38  ;;  %v757_v29 = vld [vmem:[%s12293_s30 + $0x1358] sm:$0xff]  ;;  %v694_v39 = vld [vmem:[%s12293_s30 + $0x1160] sm:$0xff] }
 0x1ae   : > { %v7626_v52 = vpack.c.f32.eXmY %v4816_v41, %v4848_v42, 312  ;;  %v4785_v55 = vtrunc.f32 %v2737_v44  ;;  %v4817_v56 = vtrunc.f32 %v2769_v45  ;;  %v4849_v57 = vtrunc.f32 %v2801_v46  ;;  %v726_v44 = vld [vmem:[%s12293_s30 + $0x1260] sm:$0xff] }
 0x1af   : > { %v2738_v58 = vmul.f32 0.5, %v690_v43  ;;  %11535 = vst [vmem:[%s12322_s25 + $0x428] sm:$0xff] %v7620_v50  ;;  %v2770_v62 = vmul.f32 0.5, %v722_v48  ;;  %v2802_v63 = vmul.f32 0.5, %v754_v49  ;;  %v4754_v0 = vtrunc.f32 %v2706_v53  ;;  %v758_v45 = vld [vmem:[%s12293_s30 + $0x1360] sm:$0xff]  ;;  %v663_v50 = vld [vmem:[%s12293_s30 + $0x1068] sm:$0xff] }
 0x1b0   : > { %v7630_v61 = vpack.c.b8 %v7626_v52, %v7622_v51  ;;  %v7632_v2 = vpack.c.f32.eXmY %v4753_v47, %v4785_v55, 312  ;;  %v7636_v3 = vpack.c.f32.eXmY %v4817_v56, %v4849_v57, 312  ;;  %v2707_v5 = vmul.f32 0.5, %v659_v54  ;;  %v695_v55 = vld [vmem:[%s12293_s30 + $0x1168] sm:$0xff] }
 0x1b1   : > { %v4786_v4 = vtrunc.f32 %v2738_v58  ;;  %v4818_v7 = vtrunc.f32 %v2770_v62  ;;  %v4850_v8 = vtrunc.f32 %v2802_v63  ;;  %v2739_v9 = vmul.f32 0.5, %v691_v59  ;;  %v727_v56 = vld [vmem:[%s12293_s30 + $0x1268] sm:$0xff] }
 0x1b2   : > { %11536 = vst [vmem:[%s12322_s25 + $0x430] sm:$0xff] %v7630_v61  ;;  %v2771_v10 = vmul.f32 0.5, %v723_v60  ;;  %v7640_v14 = vpack.c.b8 %v7636_v3, %v7632_v2  ;;  %v2803_v16 = vmul.f32 0.5, %v755_v1  ;;  %v4755_v17 = vtrunc.f32 %v2707_v5  ;;  %v759_v61 = vld [vmem:[%s12293_s30 + $0x1368] sm:$0xff]  ;;  %v664_v2 = vld [vmem:[%s12293_s30 + $0x1070] sm:$0xff] }
 0x1b3   : > { %v7642_v15 = vpack.c.f32.eXmY %v4754_v0, %v4786_v4, 312  ;;  %v7646_v19 = vpack.c.f32.eXmY %v4818_v7, %v4850_v8, 312  ;;  %v4787_v20 = vtrunc.f32 %v2739_v9  ;;  %v2708_v22 = vmul.f32 0.5, %v660_v6  ;;  %v696_v7 = vld [vmem:[%s12293_s30 + $0x1170] sm:$0xff] }
 0x1b4   : > { %v4819_v21 = vtrunc.f32 %v2771_v10  ;;  %11537 = vst [vmem:[%s12322_s25 + $0x438] sm:$0xff] %v7640_v14  ;;  %v4851_v23 = vtrunc.f32 %v2803_v16  ;;  %v2740_v24 = vmul.f32 0.5, %v692_v11  ;;  %v2772_v25 = vmul.f32 0.5, %v724_v12  ;;  %v728_v8 = vld [vmem:[%s12293_s30 + $0x1270] sm:$0xff]  ;;  %v665_v14 = vld [vmem:[%s12293_s30 + $0x1078] sm:$0xff] }
 0x1b5   : > { %v2804_v26 = vmul.f32 0.5, %v756_v13  ;;  %v7650_v30 = vpack.c.b8 %v7646_v19, %v7642_v15  ;;  %v7652_v31 = vpack.c.f32.eXmY %v4755_v17, %v4787_v20, 312  ;;  %v4756_v32 = vtrunc.f32 %v2708_v22  ;;  %v760_v9 = vld [vmem:[%s12293_s30 + $0x1370] sm:$0xff] }
 0x1b6   : > { %v2709_v33 = vmul.f32 0.5, %v661_v18  ;;  %v7656_v35 = vpack.c.f32.eXmY %v4819_v21, %v4851_v23, 312  ;;  %v4788_v36 = vtrunc.f32 %v2740_v24  ;;  %v4820_v37 = vtrunc.f32 %v2772_v25  ;;  %v697_v23 = vld [vmem:[%s12293_s30 + $0x1178] sm:$0xff] }
 0x1b7   : > { %v4852_v38 = vtrunc.f32 %v2804_v26  ;;  %11538 = vst [vmem:[%s12322_s25 + $0x440] sm:$0xff] %v7650_v30  ;;  %v2741_v40 = vmul.f32 0.5, %v693_v27  ;;  %v2773_v41 = vmul.f32 0.5, %v725_v28  ;;  %v2805_v42 = vmul.f32 0.5, %v757_v29  ;;  %v729_v24 = vld [vmem:[%s12293_s30 + $0x1278] sm:$0xff]  ;;  %v666_v30 = vld [vmem:[%s12293_s30 + $0x1080] sm:$0xff] }
 0x1b8   : > { %v4757_v43 = vtrunc.f32 %v2709_v33  ;;  %v7660_v46 = vpack.c.b8 %v7656_v35, %v7652_v31  ;;  %v7662_v47 = vpack.c.f32.eXmY %v4756_v32, %v4788_v36, 312  ;;  %v2710_v49 = vmul.f32 0.5, %v662_v34  ;;  %v761_v25 = vld [vmem:[%s12293_s30 + $0x1378] sm:$0xff]  ;;  %v698_v35 = vld [vmem:[%s12293_s30 + $0x1180] sm:$0xff] }
 0x1b9   : > { %v7666_v48 = vpack.c.f32.eXmY %v4820_v37, %v4852_v38, 312  ;;  %v4789_v51 = vtrunc.f32 %v2741_v40  ;;  %v4821_v52 = vtrunc.f32 %v2773_v41  ;;  %v4853_v53 = vtrunc.f32 %v2805_v42  ;;  %v730_v40 = vld [vmem:[%s12293_s30 + $0x1280] sm:$0xff] }
 0x1ba   : > { %v2742_v54 = vmul.f32 0.5, %v694_v39  ;;  %11539 = vst [vmem:[%s12322_s25 + $0x448] sm:$0xff] %v7660_v46  ;;  %v2774_v58 = vmul.f32 0.5, %v726_v44  ;;  %v2806_v59 = vmul.f32 0.5, %v758_v45  ;;  %v4758_v60 = vtrunc.f32 %v2710_v49  ;;  %v762_v41 = vld [vmem:[%s12293_s30 + $0x1380] sm:$0xff]  ;;  %v667_v46 = vld [vmem:[%s12293_s30 + $0x1088] sm:$0xff] }
 0x1bb   : > { %v7670_v57 = vpack.c.b8 %v7666_v48, %v7662_v47  ;;  %v7672_v62 = vpack.c.f32.eXmY %v4757_v43, %v4789_v51, 312  ;;  %v7676_v63 = vpack.c.f32.eXmY %v4821_v52, %v4853_v53, 312  ;;  %v2711_v1 = vmul.f32 0.5, %v663_v50  ;;  %v699_v51 = vld [vmem:[%s12293_s30 + $0x1188] sm:$0xff] }
 0x1bc   : > { %v4790_v0 = vtrunc.f32 %v2742_v54  ;;  %v4822_v3 = vtrunc.f32 %v2774_v58  ;;  %v4854_v4 = vtrunc.f32 %v2806_v59  ;;  %v2743_v5 = vmul.f32 0.5, %v695_v55  ;;  %v731_v52 = vld [vmem:[%s12293_s30 + $0x1288] sm:$0xff] }
 0x1bd   : > { %11540 = vst [vmem:[%s12322_s25 + $0x450] sm:$0xff] %v7670_v57  ;;  %v2775_v6 = vmul.f32 0.5, %v727_v56  ;;  %v7680_v10 = vpack.c.b8 %v7676_v63, %v7672_v62  ;;  %v2807_v12 = vmul.f32 0.5, %v759_v61  ;;  %v4759_v13 = vtrunc.f32 %v2711_v1  ;;  %v763_v57 = vld [vmem:[%s12293_s30 + $0x1388] sm:$0xff]  ;;  %v668_v62 = vld [vmem:[%s12293_s30 + $0x1090] sm:$0xff] }
 0x1be   : > { %v7682_v11 = vpack.c.f32.eXmY %v4758_v60, %v4790_v0, 312  ;;  %v7686_v15 = vpack.c.f32.eXmY %v4822_v3, %v4854_v4, 312  ;;  %v4791_v16 = vtrunc.f32 %v2743_v5  ;;  %v2712_v18 = vmul.f32 0.5, %v664_v2  ;;  %v700_v3 = vld [vmem:[%s12293_s30 + $0x1190] sm:$0xff] }
 0x1bf   : > { %v4823_v17 = vtrunc.f32 %v2775_v6  ;;  %11541 = vst [vmem:[%s12322_s25 + $0x458] sm:$0xff] %v7680_v10  ;;  %v4855_v19 = vtrunc.f32 %v2807_v12  ;;  %v2744_v20 = vmul.f32 0.5, %v696_v7  ;;  %v2776_v21 = vmul.f32 0.5, %v728_v8  ;;  %v732_v4 = vld [vmem:[%s12293_s30 + $0x1290] sm:$0xff]  ;;  %v669_v10 = vld [vmem:[%s12293_s30 + $0x1098] sm:$0xff] }
 0x1c0   : > { %v2808_v22 = vmul.f32 0.5, %v760_v9  ;;  %v7690_v26 = vpack.c.b8 %v7686_v15, %v7682_v11  ;;  %v7692_v27 = vpack.c.f32.eXmY %v4759_v13, %v4791_v16, 312  ;;  %v4760_v28 = vtrunc.f32 %v2712_v18  ;;  %v764_v5 = vld [vmem:[%s12293_s30 + $0x1390] sm:$0xff] }
 0x1c1   : > { %v2713_v29 = vmul.f32 0.5, %v665_v14  ;;  %v7696_v31 = vpack.c.f32.eXmY %v4823_v17, %v4855_v19, 312  ;;  %v4792_v32 = vtrunc.f32 %v2744_v20  ;;  %v4824_v33 = vtrunc.f32 %v2776_v21  ;;  %v701_v19 = vld [vmem:[%s12293_s30 + $0x1198] sm:$0xff] }
 0x1c2   : > { %v4856_v34 = vtrunc.f32 %v2808_v22  ;;  %11542 = vst [vmem:[%s12322_s25 + $0x460] sm:$0xff] %v7690_v26  ;;  %v2745_v36 = vmul.f32 0.5, %v697_v23  ;;  %v2777_v37 = vmul.f32 0.5, %v729_v24  ;;  %v2809_v38 = vmul.f32 0.5, %v761_v25  ;;  %v733_v20 = vld [vmem:[%s12293_s30 + $0x1298] sm:$0xff]  ;;  %v670_v26 = vld [vmem:[%s12293_s30 + $0x10a0] sm:$0xff] }
 0x1c3   : > { %v4761_v39 = vtrunc.f32 %v2713_v29  ;;  %v7700_v42 = vpack.c.b8 %v7696_v31, %v7692_v27  ;;  %v7702_v43 = vpack.c.f32.eXmY %v4760_v28, %v4792_v32, 312  ;;  %v2714_v45 = vmul.f32 0.5, %v666_v30  ;;  %v765_v21 = vld [vmem:[%s12293_s30 + $0x1398] sm:$0xff]  ;;  %v702_v31 = vld [vmem:[%s12293_s30 + $0x11a0] sm:$0xff] }
 0x1c4   : > { %v7706_v44 = vpack.c.f32.eXmY %v4824_v33, %v4856_v34, 312  ;;  %v4793_v47 = vtrunc.f32 %v2745_v36  ;;  %v4825_v48 = vtrunc.f32 %v2777_v37  ;;  %v4857_v49 = vtrunc.f32 %v2809_v38  ;;  %v734_v36 = vld [vmem:[%s12293_s30 + $0x12a0] sm:$0xff] }
 0x1c5   : > { %v2746_v50 = vmul.f32 0.5, %v698_v35  ;;  %11543 = vst [vmem:[%s12322_s25 + $0x468] sm:$0xff] %v7700_v42  ;;  %v2778_v54 = vmul.f32 0.5, %v730_v40  ;;  %v2810_v55 = vmul.f32 0.5, %v762_v41  ;;  %v4762_v56 = vtrunc.f32 %v2714_v45  ;;  %v766_v37 = vld [vmem:[%s12293_s30 + $0x13a0] sm:$0xff]  ;;  %v671_v42 = vld [vmem:[%s12293_s30 + $0x10a8] sm:$0xff] }
 0x1c6   : > { %v7710_v53 = vpack.c.b8 %v7706_v44, %v7702_v43  ;;  %v7712_v58 = vpack.c.f32.eXmY %v4761_v39, %v4793_v47, 312  ;;  %v7716_v59 = vpack.c.f32.eXmY %v4825_v48, %v4857_v49, 312  ;;  %v2715_v61 = vmul.f32 0.5, %v667_v46  ;;  %v703_v47 = vld [vmem:[%s12293_s30 + $0x11a8] sm:$0xff] }
 0x1c7   : > { %v4794_v60 = vtrunc.f32 %v2746_v50  ;;  %v4826_v63 = vtrunc.f32 %v2778_v54  ;;  %v4858_v0 = vtrunc.f32 %v2810_v55  ;;  %v2747_v1 = vmul.f32 0.5, %v699_v51  ;;  %v735_v48 = vld [vmem:[%s12293_s30 + $0x12a8] sm:$0xff] }
 0x1c8   : > { %11544 = vst [vmem:[%s12322_s25 + $0x470] sm:$0xff] %v7710_v53  ;;  %v2779_v2 = vmul.f32 0.5, %v731_v52  ;;  %v7720_v6 = vpack.c.b8 %v7716_v59, %v7712_v58  ;;  %v2811_v8 = vmul.f32 0.5, %v763_v57  ;;  %v4763_v9 = vtrunc.f32 %v2715_v61  ;;  %v767_v53 = vld [vmem:[%s12293_s30 + $0x13a8] sm:$0xff]  ;;  %v672_v58 = vld [vmem:[%s12293_s30 + $0x10b0] sm:$0xff] }
 0x1c9   : > { %v7722_v7 = vpack.c.f32.eXmY %v4762_v56, %v4794_v60, 312  ;;  %v7726_v11 = vpack.c.f32.eXmY %v4826_v63, %v4858_v0, 312  ;;  %v4795_v12 = vtrunc.f32 %v2747_v1  ;;  %v2716_v14 = vmul.f32 0.5, %v668_v62  ;;  %v704_v63 = vld [vmem:[%s12293_s30 + $0x11b0] sm:$0xff] }
 0x1ca   : > { %v4827_v13 = vtrunc.f32 %v2779_v2  ;;  %11545 = vst [vmem:[%s12322_s25 + $0x478] sm:$0xff] %v7720_v6  ;;  %v4859_v15 = vtrunc.f32 %v2811_v8  ;;  %v2748_v16 = vmul.f32 0.5, %v700_v3  ;;  %v2780_v17 = vmul.f32 0.5, %v732_v4  ;;  %v736_v0 = vld [vmem:[%s12293_s30 + $0x12b0] sm:$0xff]  ;;  %v673_v6 = vld [vmem:[%s12293_s30 + $0x10b8] sm:$0xff] }
 0x1cb   : > { %v2812_v18 = vmul.f32 0.5, %v764_v5  ;;  %v7730_v22 = vpack.c.b8 %v7726_v11, %v7722_v7  ;;  %v7732_v23 = vpack.c.f32.eXmY %v4763_v9, %v4795_v12, 312  ;;  %v4764_v24 = vtrunc.f32 %v2716_v14  ;;  %v768_v1 = vld [vmem:[%s12293_s30 + $0x13b0] sm:$0xff] }
 0x1cc   : > { %v2717_v25 = vmul.f32 0.5, %v669_v10  ;;  %v7736_v27 = vpack.c.f32.eXmY %v4827_v13, %v4859_v15, 312  ;;  %v4796_v28 = vtrunc.f32 %v2748_v16  ;;  %v4828_v29 = vtrunc.f32 %v2780_v17  ;;  %v705_v15 = vld [vmem:[%s12293_s30 + $0x11b8] sm:$0xff] }
 0x1cd   : > { %v4860_v30 = vtrunc.f32 %v2812_v18  ;;  %11546 = vst [vmem:[%s12322_s25 + $0x480] sm:$0xff] %v7730_v22  ;;  %v2749_v32 = vmul.f32 0.5, %v701_v19  ;;  %v2781_v33 = vmul.f32 0.5, %v733_v20  ;;  %v2813_v34 = vmul.f32 0.5, %v765_v21  ;;  %v737_v16 = vld [vmem:[%s12293_s30 + $0x12b8] sm:$0xff]  ;;  %v674_v22 = vld [vmem:[%s12293_s30 + $0x10c0] sm:$0xff] }
 0x1ce   : > { %v4765_v35 = vtrunc.f32 %v2717_v25  ;;  %v7740_v38 = vpack.c.b8 %v7736_v27, %v7732_v23  ;;  %v7742_v39 = vpack.c.f32.eXmY %v4764_v24, %v4796_v28, 312  ;;  %v2718_v41 = vmul.f32 0.5, %v670_v26  ;;  %v769_v17 = vld [vmem:[%s12293_s30 + $0x13b8] sm:$0xff]  ;;  %v706_v27 = vld [vmem:[%s12293_s30 + $0x11c0] sm:$0xff] }
 0x1cf   : > { %v7746_v40 = vpack.c.f32.eXmY %v4828_v29, %v4860_v30, 312  ;;  %v4797_v43 = vtrunc.f32 %v2749_v32  ;;  %v4829_v44 = vtrunc.f32 %v2781_v33  ;;  %v4861_v45 = vtrunc.f32 %v2813_v34  ;;  %v738_v32 = vld [vmem:[%s12293_s30 + $0x12c0] sm:$0xff] }
 0x1d0   : > { %v2750_v46 = vmul.f32 0.5, %v702_v31  ;;  %11547 = vst [vmem:[%s12322_s25 + $0x488] sm:$0xff] %v7740_v38  ;;  %v2782_v50 = vmul.f32 0.5, %v734_v36  ;;  %v2814_v51 = vmul.f32 0.5, %v766_v37  ;;  %v4766_v52 = vtrunc.f32 %v2718_v41  ;;  %v770_v33 = vld [vmem:[%s12293_s30 + $0x13c0] sm:$0xff]  ;;  %v675_v38 = vld [vmem:[%s12293_s30 + $0x10c8] sm:$0xff] }
 0x1d1   : > { %v7750_v49 = vpack.c.b8 %v7746_v40, %v7742_v39  ;;  %v7752_v54 = vpack.c.f32.eXmY %v4765_v35, %v4797_v43, 312  ;;  %v7756_v55 = vpack.c.f32.eXmY %v4829_v44, %v4861_v45, 312  ;;  %v2719_v57 = vmul.f32 0.5, %v671_v42  ;;  %v707_v43 = vld [vmem:[%s12293_s30 + $0x11c8] sm:$0xff] }
 0x1d2   : > { %v4798_v56 = vtrunc.f32 %v2750_v46  ;;  %v4830_v59 = vtrunc.f32 %v2782_v50  ;;  %v4862_v60 = vtrunc.f32 %v2814_v51  ;;  %v2751_v61 = vmul.f32 0.5, %v703_v47  ;;  %v739_v44 = vld [vmem:[%s12293_s30 + $0x12c8] sm:$0xff] }
 0x1d3   : > { %11548 = vst [vmem:[%s12322_s25 + $0x490] sm:$0xff] %v7750_v49  ;;  %v2783_v62 = vmul.f32 0.5, %v735_v48  ;;  %v7760_v2 = vpack.c.b8 %v7756_v55, %v7752_v54  ;;  %v2815_v4 = vmul.f32 0.5, %v767_v53  ;;  %v4767_v5 = vtrunc.f32 %v2719_v57  ;;  %v771_v49 = vld [vmem:[%s12293_s30 + $0x13c8] sm:$0xff]  ;;  %v676_v54 = vld [vmem:[%s12293_s30 + $0x10d0] sm:$0xff] }
 0x1d4   : > { %v7762_v3 = vpack.c.f32.eXmY %v4766_v52, %v4798_v56, 312  ;;  %v7766_v7 = vpack.c.f32.eXmY %v4830_v59, %v4862_v60, 312  ;;  %v4799_v8 = vtrunc.f32 %v2751_v61  ;;  %v2720_v10 = vmul.f32 0.5, %v672_v58  ;;  %v708_v59 = vld [vmem:[%s12293_s30 + $0x11d0] sm:$0xff] }
 0x1d5   : > { %v4831_v9 = vtrunc.f32 %v2783_v62  ;;  %11549 = vst [vmem:[%s12322_s25 + $0x498] sm:$0xff] %v7760_v2  ;;  %v4863_v11 = vtrunc.f32 %v2815_v4  ;;  %v2752_v12 = vmul.f32 0.5, %v704_v63  ;;  %v2784_v13 = vmul.f32 0.5, %v736_v0  ;;  %v740_v60 = vld [vmem:[%s12293_s30 + $0x12d0] sm:$0xff]  ;;  %v677_v2 = vld [vmem:[%s12293_s30 + $0x10d8] sm:$0xff] }
 0x1d6   : > { %v2816_v14 = vmul.f32 0.5, %v768_v1  ;;  %v7770_v18 = vpack.c.b8 %v7766_v7, %v7762_v3  ;;  %v7772_v19 = vpack.c.f32.eXmY %v4767_v5, %v4799_v8, 312  ;;  %v4768_v20 = vtrunc.f32 %v2720_v10  ;;  %v772_v61 = vld [vmem:[%s12293_s30 + $0x13d0] sm:$0xff] }
 0x1d7   : > { %v2721_v21 = vmul.f32 0.5, %v673_v6  ;;  %v7776_v23 = vpack.c.f32.eXmY %v4831_v9, %v4863_v11, 312  ;;  %v4800_v24 = vtrunc.f32 %v2752_v12  ;;  %v4832_v25 = vtrunc.f32 %v2784_v13  ;;  %v709_v11 = vld [vmem:[%s12293_s30 + $0x11d8] sm:$0xff] }
 0x1d8   : > { %v4864_v26 = vtrunc.f32 %v2816_v14  ;;  %11550 = vst [vmem:[%s12322_s25 + $0x4a0] sm:$0xff] %v7770_v18  ;;  %v2753_v28 = vmul.f32 0.5, %v705_v15  ;;  %v2785_v29 = vmul.f32 0.5, %v737_v16  ;;  %v2817_v30 = vmul.f32 0.5, %v769_v17  ;;  %v741_v12 = vld [vmem:[%s12293_s30 + $0x12d8] sm:$0xff]  ;;  %v678_v18 = vld [vmem:[%s12293_s30 + $0x10e0] sm:$0xff] }
 0x1d9   : > { %v4769_v31 = vtrunc.f32 %v2721_v21  ;;  %v7780_v34 = vpack.c.b8 %v7776_v23, %v7772_v19  ;;  %v7782_v35 = vpack.c.f32.eXmY %v4768_v20, %v4800_v24, 312  ;;  %v2722_v37 = vmul.f32 0.5, %v674_v22  ;;  %v773_v13 = vld [vmem:[%s12293_s30 + $0x13d8] sm:$0xff]  ;;  %v710_v23 = vld [vmem:[%s12293_s30 + $0x11e0] sm:$0xff] }
 0x1da   : > { %v7786_v36 = vpack.c.f32.eXmY %v4832_v25, %v4864_v26, 312  ;;  %v4801_v39 = vtrunc.f32 %v2753_v28  ;;  %v4833_v40 = vtrunc.f32 %v2785_v29  ;;  %v4865_v41 = vtrunc.f32 %v2817_v30  ;;  %v742_v28 = vld [vmem:[%s12293_s30 + $0x12e0] sm:$0xff] }
 0x1db   : > { %v2754_v42 = vmul.f32 0.5, %v706_v27  ;;  %11551 = vst [vmem:[%s12322_s25 + $0x4a8] sm:$0xff] %v7780_v34  ;;  %v2786_v46 = vmul.f32 0.5, %v738_v32  ;;  %v2818_v47 = vmul.f32 0.5, %v770_v33  ;;  %v4770_v48 = vtrunc.f32 %v2722_v37  ;;  %v774_v29 = vld [vmem:[%s12293_s30 + $0x13e0] sm:$0xff]  ;;  %v679_v34 = vld [vmem:[%s12293_s30 + $0x10e8] sm:$0xff] }
 0x1dc   : > { %v7790_v45 = vpack.c.b8 %v7786_v36, %v7782_v35  ;;  %v7792_v50 = vpack.c.f32.eXmY %v4769_v31, %v4801_v39, 312  ;;  %v7796_v51 = vpack.c.f32.eXmY %v4833_v40, %v4865_v41, 312  ;;  %v2723_v53 = vmul.f32 0.5, %v675_v38  ;;  %v711_v39 = vld [vmem:[%s12293_s30 + $0x11e8] sm:$0xff] }
 0x1dd   : > { %v4802_v52 = vtrunc.f32 %v2754_v42  ;;  %v4834_v55 = vtrunc.f32 %v2786_v46  ;;  %v4866_v56 = vtrunc.f32 %v2818_v47  ;;  %v2755_v57 = vmul.f32 0.5, %v707_v43  ;;  %v743_v40 = vld [vmem:[%s12293_s30 + $0x12e8] sm:$0xff] }
 0x1de   : > { %11552 = vst [vmem:[%s12322_s25 + $0x4b0] sm:$0xff] %v7790_v45  ;;  %v2787_v58 = vmul.f32 0.5, %v739_v44  ;;  %v7800_v62 = vpack.c.b8 %v7796_v51, %v7792_v50  ;;  %v2819_v0 = vmul.f32 0.5, %v771_v49  ;;  %v4771_v1 = vtrunc.f32 %v2723_v53  ;;  %v775_v45 = vld [vmem:[%s12293_s30 + $0x13e8] sm:$0xff]  ;;  %v680_v50 = vld [vmem:[%s12293_s30 + $0x10f0] sm:$0xff] }
 0x1df   : > { %v7802_v63 = vpack.c.f32.eXmY %v4770_v48, %v4802_v52, 312  ;;  %v7806_v3 = vpack.c.f32.eXmY %v4834_v55, %v4866_v56, 312  ;;  %v4803_v4 = vtrunc.f32 %v2755_v57  ;;  %v2724_v6 = vmul.f32 0.5, %v676_v54  ;;  %v712_v55 = vld [vmem:[%s12293_s30 + $0x11f0] sm:$0xff] }
 0x1e0   : > { %v4835_v5 = vtrunc.f32 %v2787_v58  ;;  %11553 = vst [vmem:[%s12322_s25 + $0x4b8] sm:$0xff] %v7800_v62  ;;  %v4867_v7 = vtrunc.f32 %v2819_v0  ;;  %v2756_v8 = vmul.f32 0.5, %v708_v59  ;;  %v2788_v9 = vmul.f32 0.5, %v740_v60  ;;  %v744_v56 = vld [vmem:[%s12293_s30 + $0x12f0] sm:$0xff]  ;;  %v681_v62 = vld [vmem:[%s12293_s30 + $0x10f8] sm:$0xff] }
 0x1e1   : > { %v2820_v10 = vmul.f32 0.5, %v772_v61  ;;  %v7810_v14 = vpack.c.b8 %v7806_v3, %v7802_v63  ;;  %v7812_v15 = vpack.c.f32.eXmY %v4771_v1, %v4803_v4, 312  ;;  %v4772_v16 = vtrunc.f32 %v2724_v6  ;;  %v776_v57 = vld [vmem:[%s12293_s30 + $0x13f0] sm:$0xff] }
 0x1e2   : > { %v2725_v17 = vmul.f32 0.5, %v677_v2  ;;  %v7816_v19 = vpack.c.f32.eXmY %v4835_v5, %v4867_v7, 312  ;;  %v4804_v20 = vtrunc.f32 %v2756_v8  ;;  %v4836_v21 = vtrunc.f32 %v2788_v9  ;;  %v713_v7 = vld [vmem:[%s12293_s30 + $0x11f8] sm:$0xff] }
 0x1e3   : > { %v4868_v22 = vtrunc.f32 %v2820_v10  ;;  %11554 = vst [vmem:[%s12322_s25 + $0x4c0] sm:$0xff] %v7810_v14  ;;  %v2757_v24 = vmul.f32 0.5, %v709_v11  ;;  %v2789_v25 = vmul.f32 0.5, %v741_v12  ;;  %v2821_v26 = vmul.f32 0.5, %v773_v13  ;;  %v745_v8 = vld [vmem:[%s12293_s30 + $0x12f8] sm:$0xff]  ;;  %v778_v14 = vld [vmem:[%s12293_s30 + $0x1400] sm:$0xff] }
 0x1e4   : > { %v4773_v27 = vtrunc.f32 %v2725_v17  ;;  %v7820_v30 = vpack.c.b8 %v7816_v19, %v7812_v15  ;;  %v7822_v31 = vpack.c.f32.eXmY %v4772_v16, %v4804_v20, 312  ;;  %v2726_v33 = vmul.f32 0.5, %v678_v18  ;;  %v777_v9 = vld [vmem:[%s12293_s30 + $0x13f8] sm:$0xff]  ;;  %v810_v19 = vld [vmem:[%s12293_s30 + $0x1500] sm:$0xff] }
 0x1e5   : > { %v7826_v32 = vpack.c.f32.eXmY %v4836_v21, %v4868_v22, 312  ;;  %v4805_v35 = vtrunc.f32 %v2757_v24  ;;  %v4837_v36 = vtrunc.f32 %v2789_v25  ;;  %v4869_v37 = vtrunc.f32 %v2821_v26  ;;  %v842_v24 = vld [vmem:[%s12293_s30 + $0x1600] sm:$0xff] }
 0x1e6   : > { %v2758_v38 = vmul.f32 0.5, %v710_v23  ;;  %11555 = vst [vmem:[%s12322_s25 + $0x4c8] sm:$0xff] %v7820_v30  ;;  %v2790_v42 = vmul.f32 0.5, %v742_v28  ;;  %v2822_v43 = vmul.f32 0.5, %v774_v29  ;;  %v4774_v44 = vtrunc.f32 %v2726_v33  ;;  %v874_v25 = vld [vmem:[%s12293_s30 + $0x1700] sm:$0xff]  ;;  %v779_v30 = vld [vmem:[%s12293_s30 + $0x1408] sm:$0xff] }
 0x1e7   : > { %v7830_v41 = vpack.c.b8 %v7826_v32, %v7822_v31  ;;  %v7832_v46 = vpack.c.f32.eXmY %v4773_v27, %v4805_v35, 312  ;;  %v7836_v47 = vpack.c.f32.eXmY %v4837_v36, %v4869_v37, 312  ;;  %v2727_v49 = vmul.f32 0.5, %v679_v34  ;;  %v811_v35 = vld [vmem:[%s12293_s30 + $0x1508] sm:$0xff] }
 0x1e8   : > { %v4806_v48 = vtrunc.f32 %v2758_v38  ;;  %v4838_v51 = vtrunc.f32 %v2790_v42  ;;  %v4870_v52 = vtrunc.f32 %v2822_v43  ;;  %v2759_v53 = vmul.f32 0.5, %v711_v39  ;;  %v843_v36 = vld [vmem:[%s12293_s30 + $0x1608] sm:$0xff] }
 0x1e9   : > { %11556 = vst [vmem:[%s12322_s25 + $0x4d0] sm:$0xff] %v7830_v41  ;;  %v2791_v54 = vmul.f32 0.5, %v743_v40  ;;  %v7840_v58 = vpack.c.b8 %v7836_v47, %v7832_v46  ;;  %v2823_v60 = vmul.f32 0.5, %v775_v45  ;;  %v4775_v61 = vtrunc.f32 %v2727_v49  ;;  %v875_v41 = vld [vmem:[%s12293_s30 + $0x1708] sm:$0xff]  ;;  %v780_v46 = vld [vmem:[%s12293_s30 + $0x1410] sm:$0xff] }
 0x1ea   : > { %v7842_v59 = vpack.c.f32.eXmY %v4774_v44, %v4806_v48, 312  ;;  %v7846_v63 = vpack.c.f32.eXmY %v4838_v51, %v4870_v52, 312  ;;  %v4807_v0 = vtrunc.f32 %v2759_v53  ;;  %v2728_v2 = vmul.f32 0.5, %v680_v50  ;;  %v812_v51 = vld [vmem:[%s12293_s30 + $0x1510] sm:$0xff] }
 0x1eb   : > { %v4839_v1 = vtrunc.f32 %v2791_v54  ;;  %11557 = vst [vmem:[%s12322_s25 + $0x4d8] sm:$0xff] %v7840_v58  ;;  %v4871_v3 = vtrunc.f32 %v2823_v60  ;;  %v2760_v4 = vmul.f32 0.5, %v712_v55  ;;  %v2792_v5 = vmul.f32 0.5, %v744_v56  ;;  %v844_v52 = vld [vmem:[%s12293_s30 + $0x1610] sm:$0xff]  ;;  %v781_v58 = vld [vmem:[%s12293_s30 + $0x1418] sm:$0xff] }
 0x1ec   : > { %v2824_v6 = vmul.f32 0.5, %v776_v57  ;;  %v7850_v10 = vpack.c.b8 %v7846_v63, %v7842_v59  ;;  %v7852_v11 = vpack.c.f32.eXmY %v4775_v61, %v4807_v0, 312  ;;  %v4776_v12 = vtrunc.f32 %v2728_v2  ;;  %v876_v53 = vld [vmem:[%s12293_s30 + $0x1710] sm:$0xff] }
 0x1ed   : > { %v2729_v13 = vmul.f32 0.5, %v681_v62  ;;  %v7856_v15 = vpack.c.f32.eXmY %v4839_v1, %v4871_v3, 312  ;;  %v4808_v16 = vtrunc.f32 %v2760_v4  ;;  %v4840_v17 = vtrunc.f32 %v2792_v5  ;;  %v813_v3 = vld [vmem:[%s12293_s30 + $0x1518] sm:$0xff] }
 0x1ee   : > { %v4872_v18 = vtrunc.f32 %v2824_v6  ;;  %11558 = vst [vmem:[%s12322_s25 + $0x4e0] sm:$0xff] %v7850_v10  ;;  %v2761_v20 = vmul.f32 0.5, %v713_v7  ;;  %v2793_v21 = vmul.f32 0.5, %v745_v8  ;;  %v2825_v22 = vmul.f32 0.5, %v777_v9  ;;  %v845_v4 = vld [vmem:[%s12293_s30 + $0x1618] sm:$0xff]  ;;  %v782_v10 = vld [vmem:[%s12293_s30 + $0x1420] sm:$0xff] }
 0x1ef   : > { %v4777_v23 = vtrunc.f32 %v2729_v13  ;;  %v7860_v26 = vpack.c.b8 %v7856_v15, %v7852_v11  ;;  %v7862_v27 = vpack.c.f32.eXmY %v4776_v12, %v4808_v16, 312  ;;  %v2826_v29 = vmul.f32 0.5, %v778_v14  ;;  %v877_v5 = vld [vmem:[%s12293_s30 + $0x1718] sm:$0xff]  ;;  %v814_v15 = vld [vmem:[%s12293_s30 + $0x1520] sm:$0xff] }
 0x1f0   : > { %v7866_v28 = vpack.c.f32.eXmY %v4840_v17, %v4872_v18, 312  ;;  %v4809_v31 = vtrunc.f32 %v2761_v20  ;;  %v4841_v32 = vtrunc.f32 %v2793_v21  ;;  %v4873_v33 = vtrunc.f32 %v2825_v22  ;;  %v846_v20 = vld [vmem:[%s12293_s30 + $0x1620] sm:$0xff] }
 0x1f1   : > { %v2858_v34 = vmul.f32 0.5, %v810_v19  ;;  %11559 = vst [vmem:[%s12322_s25 + $0x4e8] sm:$0xff] %v7860_v26  ;;  %v2890_v38 = vmul.f32 0.5, %v842_v24  ;;  %v2922_v39 = vmul.f32 0.5, %v874_v25  ;;  %v4874_v40 = vtrunc.f32 %v2826_v29  ;;  %v878_v21 = vld [vmem:[%s12293_s30 + $0x1720] sm:$0xff]  ;;  %v783_v26 = vld [vmem:[%s12293_s30 + $0x1428] sm:$0xff] }
 0x1f2   : > { %v7870_v37 = vpack.c.b8 %v7866_v28, %v7862_v27  ;;  %v7872_v42 = vpack.c.f32.eXmY %v4777_v23, %v4809_v31, 312  ;;  %v7876_v43 = vpack.c.f32.eXmY %v4841_v32, %v4873_v33, 312  ;;  %v2827_v45 = vmul.f32 0.5, %v779_v30  ;;  %v815_v31 = vld [vmem:[%s12293_s30 + $0x1528] sm:$0xff] }
 0x1f3   : > { %v4906_v44 = vtrunc.f32 %v2858_v34  ;;  %v4938_v47 = vtrunc.f32 %v2890_v38  ;;  %v4970_v48 = vtrunc.f32 %v2922_v39  ;;  %v2859_v49 = vmul.f32 0.5, %v811_v35  ;;  %v847_v32 = vld [vmem:[%s12293_s30 + $0x1628] sm:$0xff] }
 0x1f4   : > { %11560 = vst [vmem:[%s12322_s25 + $0x4f0] sm:$0xff] %v7870_v37  ;;  %v2891_v50 = vmul.f32 0.5, %v843_v36  ;;  %v7880_v54 = vpack.c.b8 %v7876_v43, %v7872_v42  ;;  %v2923_v56 = vmul.f32 0.5, %v875_v41  ;;  %v4875_v57 = vtrunc.f32 %v2827_v45  ;;  %v879_v37 = vld [vmem:[%s12293_s30 + $0x1728] sm:$0xff]  ;;  %v784_v42 = vld [vmem:[%s12293_s30 + $0x1430] sm:$0xff] }
 0x1f5   : > { %v7882_v55 = vpack.c.f32.eXmY %v4874_v40, %v4906_v44, 312  ;;  %v7886_v59 = vpack.c.f32.eXmY %v4938_v47, %v4970_v48, 312  ;;  %v4907_v60 = vtrunc.f32 %v2859_v49  ;;  %v2828_v62 = vmul.f32 0.5, %v780_v46  ;;  %v816_v47 = vld [vmem:[%s12293_s30 + $0x1530] sm:$0xff] }
 0x1f6   : > { %v4939_v61 = vtrunc.f32 %v2891_v50  ;;  %11561 = vst [vmem:[%s12322_s25 + $0x4f8] sm:$0xff] %v7880_v54  ;;  %v4971_v63 = vtrunc.f32 %v2923_v56  ;;  %v2860_v0 = vmul.f32 0.5, %v812_v51  ;;  %v2892_v1 = vmul.f32 0.5, %v844_v52  ;;  %v848_v48 = vld [vmem:[%s12293_s30 + $0x1630] sm:$0xff]  ;;  %v785_v54 = vld [vmem:[%s12293_s30 + $0x1438] sm:$0xff] }
 0x1f7   : > { %v2924_v2 = vmul.f32 0.5, %v876_v53  ;;  %v7890_v6 = vpack.c.b8 %v7886_v59, %v7882_v55  ;;  %v7892_v7 = vpack.c.f32.eXmY %v4875_v57, %v4907_v60, 312  ;;  %v4876_v8 = vtrunc.f32 %v2828_v62  ;;  %v880_v49 = vld [vmem:[%s12293_s30 + $0x1730] sm:$0xff] }
 0x1f8   : > { %v2829_v9 = vmul.f32 0.5, %v781_v58  ;;  %v7896_v11 = vpack.c.f32.eXmY %v4939_v61, %v4971_v63, 312  ;;  %v4908_v12 = vtrunc.f32 %v2860_v0  ;;  %v4940_v13 = vtrunc.f32 %v2892_v1  ;;  %v817_v63 = vld [vmem:[%s12293_s30 + $0x1538] sm:$0xff] }
 0x1f9   : > { %v4972_v14 = vtrunc.f32 %v2924_v2  ;;  %11562 = vst [vmem:[%s12322_s25 + $0x500] sm:$0xff] %v7890_v6  ;;  %v2861_v16 = vmul.f32 0.5, %v813_v3  ;;  %v2893_v17 = vmul.f32 0.5, %v845_v4  ;;  %v2925_v18 = vmul.f32 0.5, %v877_v5  ;;  %v849_v0 = vld [vmem:[%s12293_s30 + $0x1638] sm:$0xff]  ;;  %v786_v6 = vld [vmem:[%s12293_s30 + $0x1440] sm:$0xff] }
 0x1fa   : > { %v4877_v19 = vtrunc.f32 %v2829_v9  ;;  %v7900_v22 = vpack.c.b8 %v7896_v11, %v7892_v7  ;;  %v7902_v23 = vpack.c.f32.eXmY %v4876_v8, %v4908_v12, 312  ;;  %v2830_v25 = vmul.f32 0.5, %v782_v10  ;;  %v881_v1 = vld [vmem:[%s12293_s30 + $0x1738] sm:$0xff]  ;;  %v818_v11 = vld [vmem:[%s12293_s30 + $0x1540] sm:$0xff] }
 0x1fb   : > { %v7906_v24 = vpack.c.f32.eXmY %v4940_v13, %v4972_v14, 312  ;;  %v4909_v27 = vtrunc.f32 %v2861_v16  ;;  %v4941_v28 = vtrunc.f32 %v2893_v17  ;;  %v4973_v29 = vtrunc.f32 %v2925_v18  ;;  %v850_v16 = vld [vmem:[%s12293_s30 + $0x1640] sm:$0xff] }
 0x1fc   : > { %v2862_v30 = vmul.f32 0.5, %v814_v15  ;;  %11563 = vst [vmem:[%s12322_s25 + $0x508] sm:$0xff] %v7900_v22  ;;  %v2894_v34 = vmul.f32 0.5, %v846_v20  ;;  %v2926_v35 = vmul.f32 0.5, %v878_v21  ;;  %v4878_v36 = vtrunc.f32 %v2830_v25  ;;  %v882_v17 = vld [vmem:[%s12293_s30 + $0x1740] sm:$0xff]  ;;  %v787_v22 = vld [vmem:[%s12293_s30 + $0x1448] sm:$0xff] }
 0x1fd   : > { %v7910_v33 = vpack.c.b8 %v7906_v24, %v7902_v23  ;;  %v7912_v38 = vpack.c.f32.eXmY %v4877_v19, %v4909_v27, 312  ;;  %v7916_v39 = vpack.c.f32.eXmY %v4941_v28, %v4973_v29, 312  ;;  %v2831_v41 = vmul.f32 0.5, %v783_v26  ;;  %v819_v27 = vld [vmem:[%s12293_s30 + $0x1548] sm:$0xff] }
 0x1fe   : > { %v4910_v40 = vtrunc.f32 %v2862_v30  ;;  %v4942_v43 = vtrunc.f32 %v2894_v34  ;;  %v4974_v44 = vtrunc.f32 %v2926_v35  ;;  %v2863_v45 = vmul.f32 0.5, %v815_v31  ;;  %v851_v28 = vld [vmem:[%s12293_s30 + $0x1648] sm:$0xff] }
 0x1ff   : > { %11564 = vst [vmem:[%s12322_s25 + $0x510] sm:$0xff] %v7910_v33  ;;  %v2895_v46 = vmul.f32 0.5, %v847_v32  ;;  %v7920_v50 = vpack.c.b8 %v7916_v39, %v7912_v38  ;;  %v2927_v52 = vmul.f32 0.5, %v879_v37  ;;  %v4879_v53 = vtrunc.f32 %v2831_v41  ;;  %v883_v33 = vld [vmem:[%s12293_s30 + $0x1748] sm:$0xff]  ;;  %v788_v38 = vld [vmem:[%s12293_s30 + $0x1450] sm:$0xff] }
 0x200   : > { %v7922_v51 = vpack.c.f32.eXmY %v4878_v36, %v4910_v40, 312  ;;  %v7926_v55 = vpack.c.f32.eXmY %v4942_v43, %v4974_v44, 312  ;;  %v4911_v56 = vtrunc.f32 %v2863_v45  ;;  %v2832_v58 = vmul.f32 0.5, %v784_v42  ;;  %v820_v43 = vld [vmem:[%s12293_s30 + $0x1550] sm:$0xff] }
 0x201   : > { %v4943_v57 = vtrunc.f32 %v2895_v46  ;;  %11565 = vst [vmem:[%s12322_s25 + $0x518] sm:$0xff] %v7920_v50  ;;  %v4975_v59 = vtrunc.f32 %v2927_v52  ;;  %v2864_v60 = vmul.f32 0.5, %v816_v47  ;;  %v2896_v61 = vmul.f32 0.5, %v848_v48  ;;  %v852_v44 = vld [vmem:[%s12293_s30 + $0x1650] sm:$0xff]  ;;  %v789_v50 = vld [vmem:[%s12293_s30 + $0x1458] sm:$0xff] }
 0x202   : > { %v2928_v62 = vmul.f32 0.5, %v880_v49  ;;  %v7930_v2 = vpack.c.b8 %v7926_v55, %v7922_v51  ;;  %v7932_v3 = vpack.c.f32.eXmY %v4879_v53, %v4911_v56, 312  ;;  %v4880_v4 = vtrunc.f32 %v2832_v58  ;;  %v884_v45 = vld [vmem:[%s12293_s30 + $0x1750] sm:$0xff] }
 0x203   : > { %v2833_v5 = vmul.f32 0.5, %v785_v54  ;;  %v7936_v7 = vpack.c.f32.eXmY %v4943_v57, %v4975_v59, 312  ;;  %v4912_v8 = vtrunc.f32 %v2864_v60  ;;  %v4944_v9 = vtrunc.f32 %v2896_v61  ;;  %v821_v59 = vld [vmem:[%s12293_s30 + $0x1558] sm:$0xff] }
 0x204   : > { %v4976_v10 = vtrunc.f32 %v2928_v62  ;;  %11566 = vst [vmem:[%s12322_s25 + $0x520] sm:$0xff] %v7930_v2  ;;  %v2865_v12 = vmul.f32 0.5, %v817_v63  ;;  %v2897_v13 = vmul.f32 0.5, %v849_v0  ;;  %v2929_v14 = vmul.f32 0.5, %v881_v1  ;;  %v853_v60 = vld [vmem:[%s12293_s30 + $0x1658] sm:$0xff]  ;;  %v790_v2 = vld [vmem:[%s12293_s30 + $0x1460] sm:$0xff] }
 0x205   : > { %v4881_v15 = vtrunc.f32 %v2833_v5  ;;  %v7940_v18 = vpack.c.b8 %v7936_v7, %v7932_v3  ;;  %v7942_v19 = vpack.c.f32.eXmY %v4880_v4, %v4912_v8, 312  ;;  %v2834_v21 = vmul.f32 0.5, %v786_v6  ;;  %v885_v61 = vld [vmem:[%s12293_s30 + $0x1758] sm:$0xff]  ;;  %v822_v7 = vld [vmem:[%s12293_s30 + $0x1560] sm:$0xff] }
 0x206   : > { %v7946_v20 = vpack.c.f32.eXmY %v4944_v9, %v4976_v10, 312  ;;  %v4913_v23 = vtrunc.f32 %v2865_v12  ;;  %v4945_v24 = vtrunc.f32 %v2897_v13  ;;  %v4977_v25 = vtrunc.f32 %v2929_v14  ;;  %v854_v12 = vld [vmem:[%s12293_s30 + $0x1660] sm:$0xff] }
 0x207   : > { %v2866_v26 = vmul.f32 0.5, %v818_v11  ;;  %11567 = vst [vmem:[%s12322_s25 + $0x528] sm:$0xff] %v7940_v18  ;;  %v2898_v30 = vmul.f32 0.5, %v850_v16  ;;  %v2930_v31 = vmul.f32 0.5, %v882_v17  ;;  %v4882_v32 = vtrunc.f32 %v2834_v21  ;;  %v886_v13 = vld [vmem:[%s12293_s30 + $0x1760] sm:$0xff]  ;;  %v791_v18 = vld [vmem:[%s12293_s30 + $0x1468] sm:$0xff] }
 0x208   : > { %v7950_v29 = vpack.c.b8 %v7946_v20, %v7942_v19  ;;  %v7952_v34 = vpack.c.f32.eXmY %v4881_v15, %v4913_v23, 312  ;;  %v7956_v35 = vpack.c.f32.eXmY %v4945_v24, %v4977_v25, 312  ;;  %v2835_v37 = vmul.f32 0.5, %v787_v22  ;;  %v823_v23 = vld [vmem:[%s12293_s30 + $0x1568] sm:$0xff] }
 0x209   : > { %v4914_v36 = vtrunc.f32 %v2866_v26  ;;  %v4946_v39 = vtrunc.f32 %v2898_v30  ;;  %v4978_v40 = vtrunc.f32 %v2930_v31  ;;  %v2867_v41 = vmul.f32 0.5, %v819_v27  ;;  %v855_v24 = vld [vmem:[%s12293_s30 + $0x1668] sm:$0xff] }
 0x20a   : > { %11568 = vst [vmem:[%s12322_s25 + $0x530] sm:$0xff] %v7950_v29  ;;  %v2899_v42 = vmul.f32 0.5, %v851_v28  ;;  %v7960_v46 = vpack.c.b8 %v7956_v35, %v7952_v34  ;;  %v2931_v48 = vmul.f32 0.5, %v883_v33  ;;  %v4883_v49 = vtrunc.f32 %v2835_v37  ;;  %v887_v29 = vld [vmem:[%s12293_s30 + $0x1768] sm:$0xff]  ;;  %v792_v34 = vld [vmem:[%s12293_s30 + $0x1470] sm:$0xff] }
 0x20b   : > { %v7962_v47 = vpack.c.f32.eXmY %v4882_v32, %v4914_v36, 312  ;;  %v7966_v51 = vpack.c.f32.eXmY %v4946_v39, %v4978_v40, 312  ;;  %v4915_v52 = vtrunc.f32 %v2867_v41  ;;  %v2836_v54 = vmul.f32 0.5, %v788_v38  ;;  %v824_v39 = vld [vmem:[%s12293_s30 + $0x1570] sm:$0xff] }
 0x20c   : > { %v4947_v53 = vtrunc.f32 %v2899_v42  ;;  %11569 = vst [vmem:[%s12322_s25 + $0x538] sm:$0xff] %v7960_v46  ;;  %v4979_v55 = vtrunc.f32 %v2931_v48  ;;  %v2868_v56 = vmul.f32 0.5, %v820_v43  ;;  %v2900_v57 = vmul.f32 0.5, %v852_v44  ;;  %v856_v40 = vld [vmem:[%s12293_s30 + $0x1670] sm:$0xff]  ;;  %v793_v46 = vld [vmem:[%s12293_s30 + $0x1478] sm:$0xff] }
 0x20d   : > { %v2932_v58 = vmul.f32 0.5, %v884_v45  ;;  %v7970_v62 = vpack.c.b8 %v7966_v51, %v7962_v47  ;;  %v7972_v63 = vpack.c.f32.eXmY %v4883_v49, %v4915_v52, 312  ;;  %v4884_v0 = vtrunc.f32 %v2836_v54  ;;  %v888_v41 = vld [vmem:[%s12293_s30 + $0x1770] sm:$0xff] }
 0x20e   : > { %v2837_v1 = vmul.f32 0.5, %v789_v50  ;;  %v7976_v3 = vpack.c.f32.eXmY %v4947_v53, %v4979_v55, 312  ;;  %v4916_v4 = vtrunc.f32 %v2868_v56  ;;  %v4948_v5 = vtrunc.f32 %v2900_v57  ;;  %v825_v55 = vld [vmem:[%s12293_s30 + $0x1578] sm:$0xff] }
 0x20f   : > { %v4980_v6 = vtrunc.f32 %v2932_v58  ;;  %11570 = vst [vmem:[%s12322_s25 + $0x540] sm:$0xff] %v7970_v62  ;;  %v2869_v8 = vmul.f32 0.5, %v821_v59  ;;  %v2901_v9 = vmul.f32 0.5, %v853_v60  ;;  %v2933_v10 = vmul.f32 0.5, %v885_v61  ;;  %v857_v56 = vld [vmem:[%s12293_s30 + $0x1678] sm:$0xff]  ;;  %v794_v62 = vld [vmem:[%s12293_s30 + $0x1480] sm:$0xff] }
 0x210   : > { %v4885_v11 = vtrunc.f32 %v2837_v1  ;;  %v7980_v14 = vpack.c.b8 %v7976_v3, %v7972_v63  ;;  %v7982_v15 = vpack.c.f32.eXmY %v4884_v0, %v4916_v4, 312  ;;  %v2838_v17 = vmul.f32 0.5, %v790_v2  ;;  %v889_v57 = vld [vmem:[%s12293_s30 + $0x1778] sm:$0xff]  ;;  %v826_v3 = vld [vmem:[%s12293_s30 + $0x1580] sm:$0xff] }
 0x211   : > { %v7986_v16 = vpack.c.f32.eXmY %v4948_v5, %v4980_v6, 312  ;;  %v4917_v19 = vtrunc.f32 %v2869_v8  ;;  %v4949_v20 = vtrunc.f32 %v2901_v9  ;;  %v4981_v21 = vtrunc.f32 %v2933_v10  ;;  %v858_v8 = vld [vmem:[%s12293_s30 + $0x1680] sm:$0xff] }
 0x212   : > { %v2870_v22 = vmul.f32 0.5, %v822_v7  ;;  %11571 = vst [vmem:[%s12322_s25 + $0x548] sm:$0xff] %v7980_v14  ;;  %v2902_v26 = vmul.f32 0.5, %v854_v12  ;;  %v2934_v27 = vmul.f32 0.5, %v886_v13  ;;  %v4886_v28 = vtrunc.f32 %v2838_v17  ;;  %v890_v9 = vld [vmem:[%s12293_s30 + $0x1780] sm:$0xff]  ;;  %v795_v14 = vld [vmem:[%s12293_s30 + $0x1488] sm:$0xff] }
 0x213   : > { %v7990_v25 = vpack.c.b8 %v7986_v16, %v7982_v15  ;;  %v7992_v30 = vpack.c.f32.eXmY %v4885_v11, %v4917_v19, 312  ;;  %v7996_v31 = vpack.c.f32.eXmY %v4949_v20, %v4981_v21, 312  ;;  %v2839_v33 = vmul.f32 0.5, %v791_v18  ;;  %v827_v19 = vld [vmem:[%s12293_s30 + $0x1588] sm:$0xff] }
 0x214   : > { %v4918_v32 = vtrunc.f32 %v2870_v22  ;;  %v4950_v35 = vtrunc.f32 %v2902_v26  ;;  %v4982_v36 = vtrunc.f32 %v2934_v27  ;;  %v2871_v37 = vmul.f32 0.5, %v823_v23  ;;  %v859_v20 = vld [vmem:[%s12293_s30 + $0x1688] sm:$0xff] }
 0x215   : > { %11572 = vst [vmem:[%s12322_s25 + $0x550] sm:$0xff] %v7990_v25  ;;  %v2903_v38 = vmul.f32 0.5, %v855_v24  ;;  %v8000_v42 = vpack.c.b8 %v7996_v31, %v7992_v30  ;;  %v2935_v44 = vmul.f32 0.5, %v887_v29  ;;  %v4887_v45 = vtrunc.f32 %v2839_v33  ;;  %v891_v25 = vld [vmem:[%s12293_s30 + $0x1788] sm:$0xff]  ;;  %v796_v30 = vld [vmem:[%s12293_s30 + $0x1490] sm:$0xff] }
 0x216   : > { %v8002_v43 = vpack.c.f32.eXmY %v4886_v28, %v4918_v32, 312  ;;  %v8006_v47 = vpack.c.f32.eXmY %v4950_v35, %v4982_v36, 312  ;;  %v4919_v48 = vtrunc.f32 %v2871_v37  ;;  %v2840_v50 = vmul.f32 0.5, %v792_v34  ;;  %v828_v35 = vld [vmem:[%s12293_s30 + $0x1590] sm:$0xff] }
 0x217   : > { %v4951_v49 = vtrunc.f32 %v2903_v38  ;;  %11573 = vst [vmem:[%s12322_s25 + $0x558] sm:$0xff] %v8000_v42  ;;  %v4983_v51 = vtrunc.f32 %v2935_v44  ;;  %v2872_v52 = vmul.f32 0.5, %v824_v39  ;;  %v2904_v53 = vmul.f32 0.5, %v856_v40  ;;  %v860_v36 = vld [vmem:[%s12293_s30 + $0x1690] sm:$0xff]  ;;  %v797_v42 = vld [vmem:[%s12293_s30 + $0x1498] sm:$0xff] }
 0x218   : > { %v2936_v54 = vmul.f32 0.5, %v888_v41  ;;  %v8010_v58 = vpack.c.b8 %v8006_v47, %v8002_v43  ;;  %v8012_v59 = vpack.c.f32.eXmY %v4887_v45, %v4919_v48, 312  ;;  %v4888_v60 = vtrunc.f32 %v2840_v50  ;;  %v892_v37 = vld [vmem:[%s12293_s30 + $0x1790] sm:$0xff] }
 0x219   : > { %v2841_v61 = vmul.f32 0.5, %v793_v46  ;;  %v8016_v63 = vpack.c.f32.eXmY %v4951_v49, %v4983_v51, 312  ;;  %v4920_v0 = vtrunc.f32 %v2872_v52  ;;  %v4952_v1 = vtrunc.f32 %v2904_v53  ;;  %v829_v51 = vld [vmem:[%s12293_s30 + $0x1598] sm:$0xff] }
 0x21a   : > { %v4984_v2 = vtrunc.f32 %v2936_v54  ;;  %11574 = vst [vmem:[%s12322_s25 + $0x560] sm:$0xff] %v8010_v58  ;;  %v2873_v4 = vmul.f32 0.5, %v825_v55  ;;  %v2905_v5 = vmul.f32 0.5, %v857_v56  ;;  %v2937_v6 = vmul.f32 0.5, %v889_v57  ;;  %v861_v52 = vld [vmem:[%s12293_s30 + $0x1698] sm:$0xff]  ;;  %v798_v58 = vld [vmem:[%s12293_s30 + $0x14a0] sm:$0xff] }
 0x21b   : > { %v4889_v7 = vtrunc.f32 %v2841_v61  ;;  %v8020_v10 = vpack.c.b8 %v8016_v63, %v8012_v59  ;;  %v8022_v11 = vpack.c.f32.eXmY %v4888_v60, %v4920_v0, 312  ;;  %v2842_v13 = vmul.f32 0.5, %v794_v62  ;;  %v893_v53 = vld [vmem:[%s12293_s30 + $0x1798] sm:$0xff]  ;;  %v830_v63 = vld [vmem:[%s12293_s30 + $0x15a0] sm:$0xff] }
 0x21c   : > { %v8026_v12 = vpack.c.f32.eXmY %v4952_v1, %v4984_v2, 312  ;;  %v4921_v15 = vtrunc.f32 %v2873_v4  ;;  %v4953_v16 = vtrunc.f32 %v2905_v5  ;;  %v4985_v17 = vtrunc.f32 %v2937_v6  ;;  %v862_v4 = vld [vmem:[%s12293_s30 + $0x16a0] sm:$0xff] }
 0x21d   : > { %v2874_v18 = vmul.f32 0.5, %v826_v3  ;;  %11575 = vst [vmem:[%s12322_s25 + $0x568] sm:$0xff] %v8020_v10  ;;  %v2906_v22 = vmul.f32 0.5, %v858_v8  ;;  %v2938_v23 = vmul.f32 0.5, %v890_v9  ;;  %v4890_v24 = vtrunc.f32 %v2842_v13  ;;  %v894_v5 = vld [vmem:[%s12293_s30 + $0x17a0] sm:$0xff]  ;;  %v799_v10 = vld [vmem:[%s12293_s30 + $0x14a8] sm:$0xff] }
 0x21e   : > { %v8030_v21 = vpack.c.b8 %v8026_v12, %v8022_v11  ;;  %v8032_v26 = vpack.c.f32.eXmY %v4889_v7, %v4921_v15, 312  ;;  %v8036_v27 = vpack.c.f32.eXmY %v4953_v16, %v4985_v17, 312  ;;  %v2843_v29 = vmul.f32 0.5, %v795_v14  ;;  %v831_v15 = vld [vmem:[%s12293_s30 + $0x15a8] sm:$0xff] }
 0x21f   : > { %v4922_v28 = vtrunc.f32 %v2874_v18  ;;  %v4954_v31 = vtrunc.f32 %v2906_v22  ;;  %v4986_v32 = vtrunc.f32 %v2938_v23  ;;  %v2875_v33 = vmul.f32 0.5, %v827_v19  ;;  %v863_v16 = vld [vmem:[%s12293_s30 + $0x16a8] sm:$0xff] }
 0x220   : > { %11576 = vst [vmem:[%s12322_s25 + $0x570] sm:$0xff] %v8030_v21  ;;  %v2907_v34 = vmul.f32 0.5, %v859_v20  ;;  %v8040_v38 = vpack.c.b8 %v8036_v27, %v8032_v26  ;;  %v2939_v40 = vmul.f32 0.5, %v891_v25  ;;  %v4891_v41 = vtrunc.f32 %v2843_v29  ;;  %v895_v21 = vld [vmem:[%s12293_s30 + $0x17a8] sm:$0xff]  ;;  %v800_v26 = vld [vmem:[%s12293_s30 + $0x14b0] sm:$0xff] }
 0x221   : > { %v8042_v39 = vpack.c.f32.eXmY %v4890_v24, %v4922_v28, 312  ;;  %v8046_v43 = vpack.c.f32.eXmY %v4954_v31, %v4986_v32, 312  ;;  %v4923_v44 = vtrunc.f32 %v2875_v33  ;;  %v2844_v46 = vmul.f32 0.5, %v796_v30  ;;  %v832_v31 = vld [vmem:[%s12293_s30 + $0x15b0] sm:$0xff] }
 0x222   : > { %v4955_v45 = vtrunc.f32 %v2907_v34  ;;  %11577 = vst [vmem:[%s12322_s25 + $0x578] sm:$0xff] %v8040_v38  ;;  %v4987_v47 = vtrunc.f32 %v2939_v40  ;;  %v2876_v48 = vmul.f32 0.5, %v828_v35  ;;  %v2908_v49 = vmul.f32 0.5, %v860_v36  ;;  %v864_v32 = vld [vmem:[%s12293_s30 + $0x16b0] sm:$0xff]  ;;  %v801_v38 = vld [vmem:[%s12293_s30 + $0x14b8] sm:$0xff] }
 0x223   : > { %v2940_v50 = vmul.f32 0.5, %v892_v37  ;;  %v8050_v54 = vpack.c.b8 %v8046_v43, %v8042_v39  ;;  %v8052_v55 = vpack.c.f32.eXmY %v4891_v41, %v4923_v44, 312  ;;  %v4892_v56 = vtrunc.f32 %v2844_v46  ;;  %v896_v33 = vld [vmem:[%s12293_s30 + $0x17b0] sm:$0xff] }
 0x224   : > { %v2845_v57 = vmul.f32 0.5, %v797_v42  ;;  %v8056_v59 = vpack.c.f32.eXmY %v4955_v45, %v4987_v47, 312  ;;  %v4924_v60 = vtrunc.f32 %v2876_v48  ;;  %v4956_v61 = vtrunc.f32 %v2908_v49  ;;  %v833_v47 = vld [vmem:[%s12293_s30 + $0x15b8] sm:$0xff] }
 0x225   : > { %v4988_v62 = vtrunc.f32 %v2940_v50  ;;  %11578 = vst [vmem:[%s12322_s25 + $0x580] sm:$0xff] %v8050_v54  ;;  %v2877_v0 = vmul.f32 0.5, %v829_v51  ;;  %v2909_v1 = vmul.f32 0.5, %v861_v52  ;;  %v2941_v2 = vmul.f32 0.5, %v893_v53  ;;  %v865_v48 = vld [vmem:[%s12293_s30 + $0x16b8] sm:$0xff]  ;;  %v802_v54 = vld [vmem:[%s12293_s30 + $0x14c0] sm:$0xff] }
 0x226   : > { %v4893_v3 = vtrunc.f32 %v2845_v57  ;;  %v8060_v6 = vpack.c.b8 %v8056_v59, %v8052_v55  ;;  %v8062_v7 = vpack.c.f32.eXmY %v4892_v56, %v4924_v60, 312  ;;  %v2846_v9 = vmul.f32 0.5, %v798_v58  ;;  %v897_v49 = vld [vmem:[%s12293_s30 + $0x17b8] sm:$0xff]  ;;  %v834_v59 = vld [vmem:[%s12293_s30 + $0x15c0] sm:$0xff] }
 0x227   : > { %v8066_v8 = vpack.c.f32.eXmY %v4956_v61, %v4988_v62, 312  ;;  %v4925_v11 = vtrunc.f32 %v2877_v0  ;;  %v4957_v12 = vtrunc.f32 %v2909_v1  ;;  %v4989_v13 = vtrunc.f32 %v2941_v2  ;;  %v866_v0 = vld [vmem:[%s12293_s30 + $0x16c0] sm:$0xff] }
 0x228   : > { %v2878_v14 = vmul.f32 0.5, %v830_v63  ;;  %11579 = vst [vmem:[%s12322_s25 + $0x588] sm:$0xff] %v8060_v6  ;;  %v2910_v18 = vmul.f32 0.5, %v862_v4  ;;  %v2942_v19 = vmul.f32 0.5, %v894_v5  ;;  %v4894_v20 = vtrunc.f32 %v2846_v9  ;;  %v898_v1 = vld [vmem:[%s12293_s30 + $0x17c0] sm:$0xff]  ;;  %v803_v6 = vld [vmem:[%s12293_s30 + $0x14c8] sm:$0xff] }
 0x229   : > { %v8070_v17 = vpack.c.b8 %v8066_v8, %v8062_v7  ;;  %v8072_v22 = vpack.c.f32.eXmY %v4893_v3, %v4925_v11, 312  ;;  %v8076_v23 = vpack.c.f32.eXmY %v4957_v12, %v4989_v13, 312  ;;  %v2847_v25 = vmul.f32 0.5, %v799_v10  ;;  %v835_v11 = vld [vmem:[%s12293_s30 + $0x15c8] sm:$0xff] }
 0x22a   : > { %v4926_v24 = vtrunc.f32 %v2878_v14  ;;  %v4958_v27 = vtrunc.f32 %v2910_v18  ;;  %v4990_v28 = vtrunc.f32 %v2942_v19  ;;  %v2879_v29 = vmul.f32 0.5, %v831_v15  ;;  %v867_v12 = vld [vmem:[%s12293_s30 + $0x16c8] sm:$0xff] }
 0x22b   : > { %11580 = vst [vmem:[%s12322_s25 + $0x590] sm:$0xff] %v8070_v17  ;;  %v2911_v30 = vmul.f32 0.5, %v863_v16  ;;  %v8080_v34 = vpack.c.b8 %v8076_v23, %v8072_v22  ;;  %v2943_v36 = vmul.f32 0.5, %v895_v21  ;;  %v4895_v37 = vtrunc.f32 %v2847_v25  ;;  %v899_v17 = vld [vmem:[%s12293_s30 + $0x17c8] sm:$0xff]  ;;  %v804_v22 = vld [vmem:[%s12293_s30 + $0x14d0] sm:$0xff] }
 0x22c   : > { %v8082_v35 = vpack.c.f32.eXmY %v4894_v20, %v4926_v24, 312  ;;  %v8086_v39 = vpack.c.f32.eXmY %v4958_v27, %v4990_v28, 312  ;;  %v4927_v40 = vtrunc.f32 %v2879_v29  ;;  %v2848_v42 = vmul.f32 0.5, %v800_v26  ;;  %v836_v27 = vld [vmem:[%s12293_s30 + $0x15d0] sm:$0xff] }
 0x22d   : > { %v4959_v41 = vtrunc.f32 %v2911_v30  ;;  %11581 = vst [vmem:[%s12322_s25 + $0x598] sm:$0xff] %v8080_v34  ;;  %v4991_v43 = vtrunc.f32 %v2943_v36  ;;  %v2880_v44 = vmul.f32 0.5, %v832_v31  ;;  %v2912_v45 = vmul.f32 0.5, %v864_v32  ;;  %v868_v28 = vld [vmem:[%s12293_s30 + $0x16d0] sm:$0xff]  ;;  %v805_v34 = vld [vmem:[%s12293_s30 + $0x14d8] sm:$0xff] }
 0x22e   : > { %v2944_v46 = vmul.f32 0.5, %v896_v33  ;;  %v8090_v50 = vpack.c.b8 %v8086_v39, %v8082_v35  ;;  %v8092_v51 = vpack.c.f32.eXmY %v4895_v37, %v4927_v40, 312  ;;  %v4896_v52 = vtrunc.f32 %v2848_v42  ;;  %v900_v29 = vld [vmem:[%s12293_s30 + $0x17d0] sm:$0xff] }
 0x22f   : > { %v2849_v53 = vmul.f32 0.5, %v801_v38  ;;  %v8096_v55 = vpack.c.f32.eXmY %v4959_v41, %v4991_v43, 312  ;;  %v4928_v56 = vtrunc.f32 %v2880_v44  ;;  %v4960_v57 = vtrunc.f32 %v2912_v45  ;;  %v837_v43 = vld [vmem:[%s12293_s30 + $0x15d8] sm:$0xff] }
 0x230   : > { %v4992_v58 = vtrunc.f32 %v2944_v46  ;;  %11582 = vst [vmem:[%s12322_s25 + $0x5a0] sm:$0xff] %v8090_v50  ;;  %v2881_v60 = vmul.f32 0.5, %v833_v47  ;;  %v2913_v61 = vmul.f32 0.5, %v865_v48  ;;  %v2945_v62 = vmul.f32 0.5, %v897_v49  ;;  %v869_v44 = vld [vmem:[%s12293_s30 + $0x16d8] sm:$0xff]  ;;  %v806_v50 = vld [vmem:[%s12293_s30 + $0x14e0] sm:$0xff] }
 0x231   : > { %v4897_v63 = vtrunc.f32 %v2849_v53  ;;  %v8100_v2 = vpack.c.b8 %v8096_v55, %v8092_v51  ;;  %v8102_v3 = vpack.c.f32.eXmY %v4896_v52, %v4928_v56, 312  ;;  %v2850_v5 = vmul.f32 0.5, %v802_v54  ;;  %v901_v45 = vld [vmem:[%s12293_s30 + $0x17d8] sm:$0xff]  ;;  %v838_v55 = vld [vmem:[%s12293_s30 + $0x15e0] sm:$0xff] }
 0x232   : > { %v8106_v4 = vpack.c.f32.eXmY %v4960_v57, %v4992_v58, 312  ;;  %v4929_v7 = vtrunc.f32 %v2881_v60  ;;  %v4961_v8 = vtrunc.f32 %v2913_v61  ;;  %v4993_v9 = vtrunc.f32 %v2945_v62  ;;  %v870_v60 = vld [vmem:[%s12293_s30 + $0x16e0] sm:$0xff] }
 0x233   : > { %v2882_v10 = vmul.f32 0.5, %v834_v59  ;;  %11583 = vst [vmem:[%s12322_s25 + $0x5a8] sm:$0xff] %v8100_v2  ;;  %v2914_v14 = vmul.f32 0.5, %v866_v0  ;;  %v2946_v15 = vmul.f32 0.5, %v898_v1  ;;  %v4898_v16 = vtrunc.f32 %v2850_v5  ;;  %v902_v61 = vld [vmem:[%s12293_s30 + $0x17e0] sm:$0xff]  ;;  %v807_v2 = vld [vmem:[%s12293_s30 + $0x14e8] sm:$0xff] }
 0x234   : > { %v8110_v13 = vpack.c.b8 %v8106_v4, %v8102_v3  ;;  %v8112_v18 = vpack.c.f32.eXmY %v4897_v63, %v4929_v7, 312  ;;  %v8116_v19 = vpack.c.f32.eXmY %v4961_v8, %v4993_v9, 312  ;;  %v2851_v21 = vmul.f32 0.5, %v803_v6  ;;  %v839_v7 = vld [vmem:[%s12293_s30 + $0x15e8] sm:$0xff] }
 0x235   : > { %v4930_v20 = vtrunc.f32 %v2882_v10  ;;  %v4962_v23 = vtrunc.f32 %v2914_v14  ;;  %v4994_v24 = vtrunc.f32 %v2946_v15  ;;  %v2883_v25 = vmul.f32 0.5, %v835_v11  ;;  %v871_v8 = vld [vmem:[%s12293_s30 + $0x16e8] sm:$0xff] }
 0x236   : > { %11584 = vst [vmem:[%s12322_s25 + $0x5b0] sm:$0xff] %v8110_v13  ;;  %v2915_v26 = vmul.f32 0.5, %v867_v12  ;;  %v8120_v30 = vpack.c.b8 %v8116_v19, %v8112_v18  ;;  %v2947_v32 = vmul.f32 0.5, %v899_v17  ;;  %v4899_v33 = vtrunc.f32 %v2851_v21  ;;  %v903_v13 = vld [vmem:[%s12293_s30 + $0x17e8] sm:$0xff]  ;;  %v808_v18 = vld [vmem:[%s12293_s30 + $0x14f0] sm:$0xff] }
 0x237   : > { %v8122_v31 = vpack.c.f32.eXmY %v4898_v16, %v4930_v20, 312  ;;  %v8126_v35 = vpack.c.f32.eXmY %v4962_v23, %v4994_v24, 312  ;;  %v4931_v36 = vtrunc.f32 %v2883_v25  ;;  %v2852_v38 = vmul.f32 0.5, %v804_v22  ;;  %v840_v23 = vld [vmem:[%s12293_s30 + $0x15f0] sm:$0xff] }
 0x238   : > { %v4963_v37 = vtrunc.f32 %v2915_v26  ;;  %11585 = vst [vmem:[%s12322_s25 + $0x5b8] sm:$0xff] %v8120_v30  ;;  %v4995_v39 = vtrunc.f32 %v2947_v32  ;;  %v2884_v40 = vmul.f32 0.5, %v836_v27  ;;  %v2916_v41 = vmul.f32 0.5, %v868_v28  ;;  %v872_v24 = vld [vmem:[%s12293_s30 + $0x16f0] sm:$0xff]  ;;  %v809_v30 = vld [vmem:[%s12293_s30 + $0x14f8] sm:$0xff] }
 0x239   : > { %v2948_v42 = vmul.f32 0.5, %v900_v29  ;;  %v8130_v46 = vpack.c.b8 %v8126_v35, %v8122_v31  ;;  %v8132_v47 = vpack.c.f32.eXmY %v4899_v33, %v4931_v36, 312  ;;  %v4900_v48 = vtrunc.f32 %v2852_v38  ;;  %v904_v25 = vld [vmem:[%s12293_s30 + $0x17f0] sm:$0xff] }
 0x23a   : > { %v2853_v49 = vmul.f32 0.5, %v805_v34  ;;  %v8136_v51 = vpack.c.f32.eXmY %v4963_v37, %v4995_v39, 312  ;;  %v4932_v52 = vtrunc.f32 %v2884_v40  ;;  %v4964_v53 = vtrunc.f32 %v2916_v41  ;;  %v841_v39 = vld [vmem:[%s12293_s30 + $0x15f8] sm:$0xff] }
 0x23b   : > { %v4996_v54 = vtrunc.f32 %v2948_v42  ;;  %11586 = vst [vmem:[%s12322_s25 + $0x5c0] sm:$0xff] %v8130_v46  ;;  %v2885_v56 = vmul.f32 0.5, %v837_v43  ;;  %v2917_v57 = vmul.f32 0.5, %v869_v44  ;;  %v2949_v58 = vmul.f32 0.5, %v901_v45  ;;  %v873_v40 = vld [vmem:[%s12293_s30 + $0x16f8] sm:$0xff]  ;;  %v906_v46 = vld [vmem:[%s12293_s30 + $0x1800] sm:$0xff] }
 0x23c   : > { %v4901_v59 = vtrunc.f32 %v2853_v49  ;;  %v8140_v62 = vpack.c.b8 %v8136_v51, %v8132_v47  ;;  %v8142_v63 = vpack.c.f32.eXmY %v4900_v48, %v4932_v52, 312  ;;  %v2854_v1 = vmul.f32 0.5, %v806_v50  ;;  %v905_v41 = vld [vmem:[%s12293_s30 + $0x17f8] sm:$0xff]  ;;  %v938_v51 = vld [vmem:[%s12293_s30 + $0x1900] sm:$0xff] }
 0x23d   : > { %v8146_v0 = vpack.c.f32.eXmY %v4964_v53, %v4996_v54, 312  ;;  %v4933_v3 = vtrunc.f32 %v2885_v56  ;;  %v4965_v4 = vtrunc.f32 %v2917_v57  ;;  %v4997_v5 = vtrunc.f32 %v2949_v58  ;;  %v970_v56 = vld [vmem:[%s12293_s30 + $0x1a00] sm:$0xff] }
 0x23e   : > { %v2886_v6 = vmul.f32 0.5, %v838_v55  ;;  %11587 = vst [vmem:[%s12322_s25 + $0x5c8] sm:$0xff] %v8140_v62  ;;  %v2918_v10 = vmul.f32 0.5, %v870_v60  ;;  %v2950_v11 = vmul.f32 0.5, %v902_v61  ;;  %v4902_v12 = vtrunc.f32 %v2854_v1  ;;  %v1002_v57 = vld [vmem:[%s12293_s30 + $0x1b00] sm:$0xff]  ;;  %v907_v62 = vld [vmem:[%s12293_s30 + $0x1808] sm:$0xff] }
 0x23f   : > { %v8150_v9 = vpack.c.b8 %v8146_v0, %v8142_v63  ;;  %v8152_v14 = vpack.c.f32.eXmY %v4901_v59, %v4933_v3, 312  ;;  %v8156_v15 = vpack.c.f32.eXmY %v4965_v4, %v4997_v5, 312  ;;  %v2855_v17 = vmul.f32 0.5, %v807_v2  ;;  %v939_v3 = vld [vmem:[%s12293_s30 + $0x1908] sm:$0xff] }
 0x240   : > { %v4934_v16 = vtrunc.f32 %v2886_v6  ;;  %v4966_v19 = vtrunc.f32 %v2918_v10  ;;  %v4998_v20 = vtrunc.f32 %v2950_v11  ;;  %v2887_v21 = vmul.f32 0.5, %v839_v7  ;;  %v971_v4 = vld [vmem:[%s12293_s30 + $0x1a08] sm:$0xff] }
 0x241   : > { %11588 = vst [vmem:[%s12322_s25 + $0x5d0] sm:$0xff] %v8150_v9  ;;  %v2919_v22 = vmul.f32 0.5, %v871_v8  ;;  %v8160_v26 = vpack.c.b8 %v8156_v15, %v8152_v14  ;;  %v2951_v28 = vmul.f32 0.5, %v903_v13  ;;  %v4903_v29 = vtrunc.f32 %v2855_v17  ;;  %v1003_v9 = vld [vmem:[%s12293_s30 + $0x1b08] sm:$0xff]  ;;  %v908_v14 = vld [vmem:[%s12293_s30 + $0x1810] sm:$0xff] }
 0x242   : > { %v8162_v27 = vpack.c.f32.eXmY %v4902_v12, %v4934_v16, 312  ;;  %v8166_v31 = vpack.c.f32.eXmY %v4966_v19, %v4998_v20, 312  ;;  %v4935_v32 = vtrunc.f32 %v2887_v21  ;;  %v2856_v34 = vmul.f32 0.5, %v808_v18  ;;  %v940_v19 = vld [vmem:[%s12293_s30 + $0x1910] sm:$0xff] }
 0x243   : > { %v4967_v33 = vtrunc.f32 %v2919_v22  ;;  %11589 = vst [vmem:[%s12322_s25 + $0x5d8] sm:$0xff] %v8160_v26  ;;  %v4999_v35 = vtrunc.f32 %v2951_v28  ;;  %v2888_v36 = vmul.f32 0.5, %v840_v23  ;;  %v2920_v37 = vmul.f32 0.5, %v872_v24  ;;  %v972_v20 = vld [vmem:[%s12293_s30 + $0x1a10] sm:$0xff]  ;;  %v909_v26 = vld [vmem:[%s12293_s30 + $0x1818] sm:$0xff] }
 0x244   : > { %v2952_v38 = vmul.f32 0.5, %v904_v25  ;;  %v8170_v42 = vpack.c.b8 %v8166_v31, %v8162_v27  ;;  %v8172_v43 = vpack.c.f32.eXmY %v4903_v29, %v4935_v32, 312  ;;  %v4904_v44 = vtrunc.f32 %v2856_v34  ;;  %v1004_v21 = vld [vmem:[%s12293_s30 + $0x1b10] sm:$0xff] }
 0x245   : > { %v2857_v45 = vmul.f32 0.5, %v809_v30  ;;  %v8176_v47 = vpack.c.f32.eXmY %v4967_v33, %v4999_v35, 312  ;;  %v4936_v48 = vtrunc.f32 %v2888_v36  ;;  %v4968_v49 = vtrunc.f32 %v2920_v37  ;;  %v941_v35 = vld [vmem:[%s12293_s30 + $0x1918] sm:$0xff] }
 0x246   : > { %v5000_v50 = vtrunc.f32 %v2952_v38  ;;  %11590 = vst [vmem:[%s12322_s25 + $0x5e0] sm:$0xff] %v8170_v42  ;;  %v2889_v52 = vmul.f32 0.5, %v841_v39  ;;  %v2921_v53 = vmul.f32 0.5, %v873_v40  ;;  %v2953_v54 = vmul.f32 0.5, %v905_v41  ;;  %v973_v36 = vld [vmem:[%s12293_s30 + $0x1a18] sm:$0xff]  ;;  %v910_v42 = vld [vmem:[%s12293_s30 + $0x1820] sm:$0xff] }
 0x247   : > { %v4905_v55 = vtrunc.f32 %v2857_v45  ;;  %v8180_v58 = vpack.c.b8 %v8176_v47, %v8172_v43  ;;  %v8182_v59 = vpack.c.f32.eXmY %v4904_v44, %v4936_v48, 312  ;;  %v2954_v61 = vmul.f32 0.5, %v906_v46  ;;  %v1005_v37 = vld [vmem:[%s12293_s30 + $0x1b18] sm:$0xff]  ;;  %v942_v47 = vld [vmem:[%s12293_s30 + $0x1920] sm:$0xff] }
 0x248   : > { %v8186_v60 = vpack.c.f32.eXmY %v4968_v49, %v5000_v50, 312  ;;  %v4937_v63 = vtrunc.f32 %v2889_v52  ;;  %v4969_v0 = vtrunc.f32 %v2921_v53  ;;  %v5001_v1 = vtrunc.f32 %v2953_v54  ;;  %v974_v52 = vld [vmem:[%s12293_s30 + $0x1a20] sm:$0xff] }
 0x249   : > { %v2986_v2 = vmul.f32 0.5, %v938_v51  ;;  %11591 = vst [vmem:[%s12322_s25 + $0x5e8] sm:$0xff] %v8180_v58  ;;  %v3018_v6 = vmul.f32 0.5, %v970_v56  ;;  %v3050_v7 = vmul.f32 0.5, %v1002_v57  ;;  %v5002_v8 = vtrunc.f32 %v2954_v61  ;;  %v1006_v53 = vld [vmem:[%s12293_s30 + $0x1b20] sm:$0xff]  ;;  %v911_v58 = vld [vmem:[%s12293_s30 + $0x1828] sm:$0xff] }
 0x24a   : > { %v8190_v5 = vpack.c.b8 %v8186_v60, %v8182_v59  ;;  %v8192_v10 = vpack.c.f32.eXmY %v4905_v55, %v4937_v63, 312  ;;  %v8196_v11 = vpack.c.f32.eXmY %v4969_v0, %v5001_v1, 312  ;;  %v2955_v13 = vmul.f32 0.5, %v907_v62  ;;  %v943_v63 = vld [vmem:[%s12293_s30 + $0x1928] sm:$0xff] }
 0x24b   : > { %v5034_v12 = vtrunc.f32 %v2986_v2  ;;  %v5066_v15 = vtrunc.f32 %v3018_v6  ;;  %v5098_v16 = vtrunc.f32 %v3050_v7  ;;  %v2987_v17 = vmul.f32 0.5, %v939_v3  ;;  %v975_v0 = vld [vmem:[%s12293_s30 + $0x1a28] sm:$0xff] }
 0x24c   : > { %11592 = vst [vmem:[%s12322_s25 + $0x5f0] sm:$0xff] %v8190_v5  ;;  %v3019_v18 = vmul.f32 0.5, %v971_v4  ;;  %v8200_v22 = vpack.c.b8 %v8196_v11, %v8192_v10  ;;  %v3051_v24 = vmul.f32 0.5, %v1003_v9  ;;  %v5003_v25 = vtrunc.f32 %v2955_v13  ;;  %v1007_v5 = vld [vmem:[%s12293_s30 + $0x1b28] sm:$0xff]  ;;  %v912_v10 = vld [vmem:[%s12293_s30 + $0x1830] sm:$0xff] }
 0x24d   : > { %v8202_v23 = vpack.c.f32.eXmY %v5002_v8, %v5034_v12, 312  ;;  %v8206_v27 = vpack.c.f32.eXmY %v5066_v15, %v5098_v16, 312  ;;  %v5035_v28 = vtrunc.f32 %v2987_v17  ;;  %v2956_v30 = vmul.f32 0.5, %v908_v14  ;;  %v944_v15 = vld [vmem:[%s12293_s30 + $0x1930] sm:$0xff] }
 0x24e   : > { %v5067_v29 = vtrunc.f32 %v3019_v18  ;;  %11593 = vst [vmem:[%s12322_s25 + $0x5f8] sm:$0xff] %v8200_v22  ;;  %v5099_v31 = vtrunc.f32 %v3051_v24  ;;  %v2988_v32 = vmul.f32 0.5, %v940_v19  ;;  %v3020_v33 = vmul.f32 0.5, %v972_v20  ;;  %v976_v16 = vld [vmem:[%s12293_s30 + $0x1a30] sm:$0xff]  ;;  %v913_v22 = vld [vmem:[%s12293_s30 + $0x1838] sm:$0xff] }
 0x24f   : > { %v3052_v34 = vmul.f32 0.5, %v1004_v21  ;;  %v8210_v38 = vpack.c.b8 %v8206_v27, %v8202_v23  ;;  %v8212_v39 = vpack.c.f32.eXmY %v5003_v25, %v5035_v28, 312  ;;  %v5004_v40 = vtrunc.f32 %v2956_v30  ;;  %v1008_v17 = vld [vmem:[%s12293_s30 + $0x1b30] sm:$0xff] }
 0x250   : > { %v2957_v41 = vmul.f32 0.5, %v909_v26  ;;  %v8216_v43 = vpack.c.f32.eXmY %v5067_v29, %v5099_v31, 312  ;;  %v5036_v44 = vtrunc.f32 %v2988_v32  ;;  %v5068_v45 = vtrunc.f32 %v3020_v33  ;;  %v945_v31 = vld [vmem:[%s12293_s30 + $0x1938] sm:$0xff] }
 0x251   : > { %v5100_v46 = vtrunc.f32 %v3052_v34  ;;  %11594 = vst [vmem:[%s12322_s25 + $0x600] sm:$0xff] %v8210_v38  ;;  %v2989_v48 = vmul.f32 0.5, %v941_v35  ;;  %v3021_v49 = vmul.f32 0.5, %v973_v36  ;;  %v3053_v50 = vmul.f32 0.5, %v1005_v37  ;;  %v977_v32 = vld [vmem:[%s12293_s30 + $0x1a38] sm:$0xff]  ;;  %v914_v38 = vld [vmem:[%s12293_s30 + $0x1840] sm:$0xff] }
 0x252   : > { %v5005_v51 = vtrunc.f32 %v2957_v41  ;;  %v8220_v54 = vpack.c.b8 %v8216_v43, %v8212_v39  ;;  %v8222_v55 = vpack.c.f32.eXmY %v5004_v40, %v5036_v44, 312  ;;  %v2958_v57 = vmul.f32 0.5, %v910_v42  ;;  %v1009_v33 = vld [vmem:[%s12293_s30 + $0x1b38] sm:$0xff]  ;;  %v946_v43 = vld [vmem:[%s12293_s30 + $0x1940] sm:$0xff] }
 0x253   : > { %v8226_v56 = vpack.c.f32.eXmY %v5068_v45, %v5100_v46, 312  ;;  %v5037_v59 = vtrunc.f32 %v2989_v48  ;;  %v5069_v60 = vtrunc.f32 %v3021_v49  ;;  %v5101_v61 = vtrunc.f32 %v3053_v50  ;;  %v978_v48 = vld [vmem:[%s12293_s30 + $0x1a40] sm:$0xff] }
 0x254   : > { %v2990_v62 = vmul.f32 0.5, %v942_v47  ;;  %11595 = vst [vmem:[%s12322_s25 + $0x608] sm:$0xff] %v8220_v54  ;;  %v3022_v2 = vmul.f32 0.5, %v974_v52  ;;  %v3054_v3 = vmul.f32 0.5, %v1006_v53  ;;  %v5006_v4 = vtrunc.f32 %v2958_v57  ;;  %v1010_v49 = vld [vmem:[%s12293_s30 + $0x1b40] sm:$0xff]  ;;  %v915_v54 = vld [vmem:[%s12293_s30 + $0x1848] sm:$0xff] }
 0x255   : > { %v8230_v1 = vpack.c.b8 %v8226_v56, %v8222_v55  ;;  %v8232_v6 = vpack.c.f32.eXmY %v5005_v51, %v5037_v59, 312  ;;  %v8236_v7 = vpack.c.f32.eXmY %v5069_v60, %v5101_v61, 312  ;;  %v2959_v9 = vmul.f32 0.5, %v911_v58  ;;  %v947_v59 = vld [vmem:[%s12293_s30 + $0x1948] sm:$0xff] }
 0x256   : > { %v5038_v8 = vtrunc.f32 %v2990_v62  ;;  %v5070_v11 = vtrunc.f32 %v3022_v2  ;;  %v5102_v12 = vtrunc.f32 %v3054_v3  ;;  %v2991_v13 = vmul.f32 0.5, %v943_v63  ;;  %v979_v60 = vld [vmem:[%s12293_s30 + $0x1a48] sm:$0xff] }
 0x257   : > { %11596 = vst [vmem:[%s12322_s25 + $0x610] sm:$0xff] %v8230_v1  ;;  %v3023_v14 = vmul.f32 0.5, %v975_v0  ;;  %v8240_v18 = vpack.c.b8 %v8236_v7, %v8232_v6  ;;  %v3055_v20 = vmul.f32 0.5, %v1007_v5  ;;  %v5007_v21 = vtrunc.f32 %v2959_v9  ;;  %v1011_v1 = vld [vmem:[%s12293_s30 + $0x1b48] sm:$0xff]  ;;  %v916_v6 = vld [vmem:[%s12293_s30 + $0x1850] sm:$0xff] }
 0x258   : > { %v8242_v19 = vpack.c.f32.eXmY %v5006_v4, %v5038_v8, 312  ;;  %v8246_v23 = vpack.c.f32.eXmY %v5070_v11, %v5102_v12, 312  ;;  %v5039_v24 = vtrunc.f32 %v2991_v13  ;;  %v2960_v26 = vmul.f32 0.5, %v912_v10  ;;  %v948_v11 = vld [vmem:[%s12293_s30 + $0x1950] sm:$0xff] }
 0x259   : > { %v5071_v25 = vtrunc.f32 %v3023_v14  ;;  %11597 = vst [vmem:[%s12322_s25 + $0x618] sm:$0xff] %v8240_v18  ;;  %v5103_v27 = vtrunc.f32 %v3055_v20  ;;  %v2992_v28 = vmul.f32 0.5, %v944_v15  ;;  %v3024_v29 = vmul.f32 0.5, %v976_v16  ;;  %v980_v12 = vld [vmem:[%s12293_s30 + $0x1a50] sm:$0xff]  ;;  %v917_v18 = vld [vmem:[%s12293_s30 + $0x1858] sm:$0xff] }
 0x25a   : > { %v3056_v30 = vmul.f32 0.5, %v1008_v17  ;;  %v8250_v34 = vpack.c.b8 %v8246_v23, %v8242_v19  ;;  %v8252_v35 = vpack.c.f32.eXmY %v5007_v21, %v5039_v24, 312  ;;  %v5008_v36 = vtrunc.f32 %v2960_v26  ;;  %v1012_v13 = vld [vmem:[%s12293_s30 + $0x1b50] sm:$0xff] }
 0x25b   : > { %v2961_v37 = vmul.f32 0.5, %v913_v22  ;;  %v8256_v39 = vpack.c.f32.eXmY %v5071_v25, %v5103_v27, 312  ;;  %v5040_v40 = vtrunc.f32 %v2992_v28  ;;  %v5072_v41 = vtrunc.f32 %v3024_v29  ;;  %v949_v27 = vld [vmem:[%s12293_s30 + $0x1958] sm:$0xff] }
 0x25c   : > { %v5104_v42 = vtrunc.f32 %v3056_v30  ;;  %11598 = vst [vmem:[%s12322_s25 + $0x620] sm:$0xff] %v8250_v34  ;;  %v2993_v44 = vmul.f32 0.5, %v945_v31  ;;  %v3025_v45 = vmul.f32 0.5, %v977_v32  ;;  %v3057_v46 = vmul.f32 0.5, %v1009_v33  ;;  %v981_v28 = vld [vmem:[%s12293_s30 + $0x1a58] sm:$0xff]  ;;  %v918_v34 = vld [vmem:[%s12293_s30 + $0x1860] sm:$0xff] }
 0x25d   : > { %v5009_v47 = vtrunc.f32 %v2961_v37  ;;  %v8260_v50 = vpack.c.b8 %v8256_v39, %v8252_v35  ;;  %v8262_v51 = vpack.c.f32.eXmY %v5008_v36, %v5040_v40, 312  ;;  %v2962_v53 = vmul.f32 0.5, %v914_v38  ;;  %v1013_v29 = vld [vmem:[%s12293_s30 + $0x1b58] sm:$0xff]  ;;  %v950_v39 = vld [vmem:[%s12293_s30 + $0x1960] sm:$0xff] }
 0x25e   : > { %v8266_v52 = vpack.c.f32.eXmY %v5072_v41, %v5104_v42, 312  ;;  %v5041_v55 = vtrunc.f32 %v2993_v44  ;;  %v5073_v56 = vtrunc.f32 %v3025_v45  ;;  %v5105_v57 = vtrunc.f32 %v3057_v46  ;;  %v982_v44 = vld [vmem:[%s12293_s30 + $0x1a60] sm:$0xff] }
 0x25f   : > { %v2994_v58 = vmul.f32 0.5, %v946_v43  ;;  %11599 = vst [vmem:[%s12322_s25 + $0x628] sm:$0xff] %v8260_v50  ;;  %v3026_v62 = vmul.f32 0.5, %v978_v48  ;;  %v3058_v63 = vmul.f32 0.5, %v1010_v49  ;;  %v5010_v0 = vtrunc.f32 %v2962_v53  ;;  %v1014_v45 = vld [vmem:[%s12293_s30 + $0x1b60] sm:$0xff]  ;;  %v919_v50 = vld [vmem:[%s12293_s30 + $0x1868] sm:$0xff] }
 0x260   : > { %v8270_v61 = vpack.c.b8 %v8266_v52, %v8262_v51  ;;  %v8272_v2 = vpack.c.f32.eXmY %v5009_v47, %v5041_v55, 312  ;;  %v8276_v3 = vpack.c.f32.eXmY %v5073_v56, %v5105_v57, 312  ;;  %v2963_v5 = vmul.f32 0.5, %v915_v54  ;;  %v951_v55 = vld [vmem:[%s12293_s30 + $0x1968] sm:$0xff] }
 0x261   : > { %v5042_v4 = vtrunc.f32 %v2994_v58  ;;  %v5074_v7 = vtrunc.f32 %v3026_v62  ;;  %v5106_v8 = vtrunc.f32 %v3058_v63  ;;  %v2995_v9 = vmul.f32 0.5, %v947_v59  ;;  %v983_v56 = vld [vmem:[%s12293_s30 + $0x1a68] sm:$0xff] }
 0x262   : > { %11600 = vst [vmem:[%s12322_s25 + $0x630] sm:$0xff] %v8270_v61  ;;  %v3027_v10 = vmul.f32 0.5, %v979_v60  ;;  %v8280_v14 = vpack.c.b8 %v8276_v3, %v8272_v2  ;;  %v3059_v16 = vmul.f32 0.5, %v1011_v1  ;;  %v5011_v17 = vtrunc.f32 %v2963_v5  ;;  %v1015_v61 = vld [vmem:[%s12293_s30 + $0x1b68] sm:$0xff]  ;;  %v920_v2 = vld [vmem:[%s12293_s30 + $0x1870] sm:$0xff] }
 0x263   : > { %v8282_v15 = vpack.c.f32.eXmY %v5010_v0, %v5042_v4, 312  ;;  %v8286_v19 = vpack.c.f32.eXmY %v5074_v7, %v5106_v8, 312  ;;  %v5043_v20 = vtrunc.f32 %v2995_v9  ;;  %v2964_v22 = vmul.f32 0.5, %v916_v6  ;;  %v952_v7 = vld [vmem:[%s12293_s30 + $0x1970] sm:$0xff] }
 0x264   : > { %v5075_v21 = vtrunc.f32 %v3027_v10  ;;  %11601 = vst [vmem:[%s12322_s25 + $0x638] sm:$0xff] %v8280_v14  ;;  %v5107_v23 = vtrunc.f32 %v3059_v16  ;;  %v2996_v24 = vmul.f32 0.5, %v948_v11  ;;  %v3028_v25 = vmul.f32 0.5, %v980_v12  ;;  %v984_v8 = vld [vmem:[%s12293_s30 + $0x1a70] sm:$0xff]  ;;  %v921_v14 = vld [vmem:[%s12293_s30 + $0x1878] sm:$0xff] }
 0x265   : > { %v3060_v26 = vmul.f32 0.5, %v1012_v13  ;;  %v8290_v30 = vpack.c.b8 %v8286_v19, %v8282_v15  ;;  %v8292_v31 = vpack.c.f32.eXmY %v5011_v17, %v5043_v20, 312  ;;  %v5012_v32 = vtrunc.f32 %v2964_v22  ;;  %v1016_v9 = vld [vmem:[%s12293_s30 + $0x1b70] sm:$0xff] }
 0x266   : > { %v2965_v33 = vmul.f32 0.5, %v917_v18  ;;  %v8296_v35 = vpack.c.f32.eXmY %v5075_v21, %v5107_v23, 312  ;;  %v5044_v36 = vtrunc.f32 %v2996_v24  ;;  %v5076_v37 = vtrunc.f32 %v3028_v25  ;;  %v953_v23 = vld [vmem:[%s12293_s30 + $0x1978] sm:$0xff] }
 0x267   : > { %v5108_v38 = vtrunc.f32 %v3060_v26  ;;  %11602 = vst [vmem:[%s12322_s25 + $0x640] sm:$0xff] %v8290_v30  ;;  %v2997_v40 = vmul.f32 0.5, %v949_v27  ;;  %v3029_v41 = vmul.f32 0.5, %v981_v28  ;;  %v3061_v42 = vmul.f32 0.5, %v1013_v29  ;;  %v985_v24 = vld [vmem:[%s12293_s30 + $0x1a78] sm:$0xff]  ;;  %v922_v30 = vld [vmem:[%s12293_s30 + $0x1880] sm:$0xff] }
 0x268   : > { %v5013_v43 = vtrunc.f32 %v2965_v33  ;;  %v8300_v46 = vpack.c.b8 %v8296_v35, %v8292_v31  ;;  %v8302_v47 = vpack.c.f32.eXmY %v5012_v32, %v5044_v36, 312  ;;  %v2966_v49 = vmul.f32 0.5, %v918_v34  ;;  %v1017_v25 = vld [vmem:[%s12293_s30 + $0x1b78] sm:$0xff]  ;;  %v954_v35 = vld [vmem:[%s12293_s30 + $0x1980] sm:$0xff] }
 0x269   : > { %v8306_v48 = vpack.c.f32.eXmY %v5076_v37, %v5108_v38, 312  ;;  %v5045_v51 = vtrunc.f32 %v2997_v40  ;;  %v5077_v52 = vtrunc.f32 %v3029_v41  ;;  %v5109_v53 = vtrunc.f32 %v3061_v42  ;;  %v986_v40 = vld [vmem:[%s12293_s30 + $0x1a80] sm:$0xff] }
 0x26a   : > { %v2998_v54 = vmul.f32 0.5, %v950_v39  ;;  %11603 = vst [vmem:[%s12322_s25 + $0x648] sm:$0xff] %v8300_v46  ;;  %v3030_v58 = vmul.f32 0.5, %v982_v44  ;;  %v3062_v59 = vmul.f32 0.5, %v1014_v45  ;;  %v5014_v60 = vtrunc.f32 %v2966_v49  ;;  %v1018_v41 = vld [vmem:[%s12293_s30 + $0x1b80] sm:$0xff]  ;;  %v923_v46 = vld [vmem:[%s12293_s30 + $0x1888] sm:$0xff] }
 0x26b   : > { %v8310_v57 = vpack.c.b8 %v8306_v48, %v8302_v47  ;;  %v8312_v62 = vpack.c.f32.eXmY %v5013_v43, %v5045_v51, 312  ;;  %v8316_v63 = vpack.c.f32.eXmY %v5077_v52, %v5109_v53, 312  ;;  %v2967_v1 = vmul.f32 0.5, %v919_v50  ;;  %v955_v51 = vld [vmem:[%s12293_s30 + $0x1988] sm:$0xff] }
 0x26c   : > { %v5046_v0 = vtrunc.f32 %v2998_v54  ;;  %v5078_v3 = vtrunc.f32 %v3030_v58  ;;  %v5110_v4 = vtrunc.f32 %v3062_v59  ;;  %v2999_v5 = vmul.f32 0.5, %v951_v55  ;;  %v987_v52 = vld [vmem:[%s12293_s30 + $0x1a88] sm:$0xff] }
 0x26d   : > { %11604 = vst [vmem:[%s12322_s25 + $0x650] sm:$0xff] %v8310_v57  ;;  %v3031_v6 = vmul.f32 0.5, %v983_v56  ;;  %v8320_v10 = vpack.c.b8 %v8316_v63, %v8312_v62  ;;  %v3063_v12 = vmul.f32 0.5, %v1015_v61  ;;  %v5015_v13 = vtrunc.f32 %v2967_v1  ;;  %v1019_v57 = vld [vmem:[%s12293_s30 + $0x1b88] sm:$0xff]  ;;  %v924_v62 = vld [vmem:[%s12293_s30 + $0x1890] sm:$0xff] }
 0x26e   : > { %v8322_v11 = vpack.c.f32.eXmY %v5014_v60, %v5046_v0, 312  ;;  %v8326_v15 = vpack.c.f32.eXmY %v5078_v3, %v5110_v4, 312  ;;  %v5047_v16 = vtrunc.f32 %v2999_v5  ;;  %v2968_v18 = vmul.f32 0.5, %v920_v2  ;;  %v956_v3 = vld [vmem:[%s12293_s30 + $0x1990] sm:$0xff] }
 0x26f   : > { %v5079_v17 = vtrunc.f32 %v3031_v6  ;;  %11605 = vst [vmem:[%s12322_s25 + $0x658] sm:$0xff] %v8320_v10  ;;  %v5111_v19 = vtrunc.f32 %v3063_v12  ;;  %v3000_v20 = vmul.f32 0.5, %v952_v7  ;;  %v3032_v21 = vmul.f32 0.5, %v984_v8  ;;  %v988_v4 = vld [vmem:[%s12293_s30 + $0x1a90] sm:$0xff]  ;;  %v925_v10 = vld [vmem:[%s12293_s30 + $0x1898] sm:$0xff] }
 0x270   : > { %v3064_v22 = vmul.f32 0.5, %v1016_v9  ;;  %v8330_v26 = vpack.c.b8 %v8326_v15, %v8322_v11  ;;  %v8332_v27 = vpack.c.f32.eXmY %v5015_v13, %v5047_v16, 312  ;;  %v5016_v28 = vtrunc.f32 %v2968_v18  ;;  %v1020_v5 = vld [vmem:[%s12293_s30 + $0x1b90] sm:$0xff] }
 0x271   : > { %v2969_v29 = vmul.f32 0.5, %v921_v14  ;;  %v8336_v31 = vpack.c.f32.eXmY %v5079_v17, %v5111_v19, 312  ;;  %v5048_v32 = vtrunc.f32 %v3000_v20  ;;  %v5080_v33 = vtrunc.f32 %v3032_v21  ;;  %v957_v19 = vld [vmem:[%s12293_s30 + $0x1998] sm:$0xff] }
 0x272   : > { %v5112_v34 = vtrunc.f32 %v3064_v22  ;;  %11606 = vst [vmem:[%s12322_s25 + $0x660] sm:$0xff] %v8330_v26  ;;  %v3001_v36 = vmul.f32 0.5, %v953_v23  ;;  %v3033_v37 = vmul.f32 0.5, %v985_v24  ;;  %v3065_v38 = vmul.f32 0.5, %v1017_v25  ;;  %v989_v20 = vld [vmem:[%s12293_s30 + $0x1a98] sm:$0xff]  ;;  %v926_v26 = vld [vmem:[%s12293_s30 + $0x18a0] sm:$0xff] }
 0x273   : > { %v5017_v39 = vtrunc.f32 %v2969_v29  ;;  %v8340_v42 = vpack.c.b8 %v8336_v31, %v8332_v27  ;;  %v8342_v43 = vpack.c.f32.eXmY %v5016_v28, %v5048_v32, 312  ;;  %v2970_v45 = vmul.f32 0.5, %v922_v30  ;;  %v1021_v21 = vld [vmem:[%s12293_s30 + $0x1b98] sm:$0xff]  ;;  %v958_v31 = vld [vmem:[%s12293_s30 + $0x19a0] sm:$0xff] }
 0x274   : > { %v8346_v44 = vpack.c.f32.eXmY %v5080_v33, %v5112_v34, 312  ;;  %v5049_v47 = vtrunc.f32 %v3001_v36  ;;  %v5081_v48 = vtrunc.f32 %v3033_v37  ;;  %v5113_v49 = vtrunc.f32 %v3065_v38  ;;  %v990_v36 = vld [vmem:[%s12293_s30 + $0x1aa0] sm:$0xff] }
 0x275   : > { %v3002_v50 = vmul.f32 0.5, %v954_v35  ;;  %11607 = vst [vmem:[%s12322_s25 + $0x668] sm:$0xff] %v8340_v42  ;;  %v3034_v54 = vmul.f32 0.5, %v986_v40  ;;  %v3066_v55 = vmul.f32 0.5, %v1018_v41  ;;  %v5018_v56 = vtrunc.f32 %v2970_v45  ;;  %v1022_v37 = vld [vmem:[%s12293_s30 + $0x1ba0] sm:$0xff]  ;;  %v927_v42 = vld [vmem:[%s12293_s30 + $0x18a8] sm:$0xff] }
 0x276   : > { %v8350_v53 = vpack.c.b8 %v8346_v44, %v8342_v43  ;;  %v8352_v58 = vpack.c.f32.eXmY %v5017_v39, %v5049_v47, 312  ;;  %v8356_v59 = vpack.c.f32.eXmY %v5081_v48, %v5113_v49, 312  ;;  %v2971_v61 = vmul.f32 0.5, %v923_v46  ;;  %v959_v47 = vld [vmem:[%s12293_s30 + $0x19a8] sm:$0xff] }
 0x277   : > { %v5050_v60 = vtrunc.f32 %v3002_v50  ;;  %v5082_v63 = vtrunc.f32 %v3034_v54  ;;  %v5114_v0 = vtrunc.f32 %v3066_v55  ;;  %v3003_v1 = vmul.f32 0.5, %v955_v51  ;;  %v991_v48 = vld [vmem:[%s12293_s30 + $0x1aa8] sm:$0xff] }
 0x278   : > { %11608 = vst [vmem:[%s12322_s25 + $0x670] sm:$0xff] %v8350_v53  ;;  %v3035_v2 = vmul.f32 0.5, %v987_v52  ;;  %v8360_v6 = vpack.c.b8 %v8356_v59, %v8352_v58  ;;  %v3067_v8 = vmul.f32 0.5, %v1019_v57  ;;  %v5019_v9 = vtrunc.f32 %v2971_v61  ;;  %v1023_v53 = vld [vmem:[%s12293_s30 + $0x1ba8] sm:$0xff]  ;;  %v928_v58 = vld [vmem:[%s12293_s30 + $0x18b0] sm:$0xff] }
 0x279   : > { %v8362_v7 = vpack.c.f32.eXmY %v5018_v56, %v5050_v60, 312  ;;  %v8366_v11 = vpack.c.f32.eXmY %v5082_v63, %v5114_v0, 312  ;;  %v5051_v12 = vtrunc.f32 %v3003_v1  ;;  %v2972_v14 = vmul.f32 0.5, %v924_v62  ;;  %v960_v63 = vld [vmem:[%s12293_s30 + $0x19b0] sm:$0xff] }
 0x27a   : > { %v5083_v13 = vtrunc.f32 %v3035_v2  ;;  %11609 = vst [vmem:[%s12322_s25 + $0x678] sm:$0xff] %v8360_v6  ;;  %v5115_v15 = vtrunc.f32 %v3067_v8  ;;  %v3004_v16 = vmul.f32 0.5, %v956_v3  ;;  %v3036_v17 = vmul.f32 0.5, %v988_v4  ;;  %v992_v0 = vld [vmem:[%s12293_s30 + $0x1ab0] sm:$0xff]  ;;  %v929_v6 = vld [vmem:[%s12293_s30 + $0x18b8] sm:$0xff] }
 0x27b   : > { %v3068_v18 = vmul.f32 0.5, %v1020_v5  ;;  %v8370_v22 = vpack.c.b8 %v8366_v11, %v8362_v7  ;;  %v8372_v23 = vpack.c.f32.eXmY %v5019_v9, %v5051_v12, 312  ;;  %v5020_v24 = vtrunc.f32 %v2972_v14  ;;  %v1024_v1 = vld [vmem:[%s12293_s30 + $0x1bb0] sm:$0xff] }
 0x27c   : > { %v2973_v25 = vmul.f32 0.5, %v925_v10  ;;  %v8376_v27 = vpack.c.f32.eXmY %v5083_v13, %v5115_v15, 312  ;;  %v5052_v28 = vtrunc.f32 %v3004_v16  ;;  %v5084_v29 = vtrunc.f32 %v3036_v17  ;;  %v961_v15 = vld [vmem:[%s12293_s30 + $0x19b8] sm:$0xff] }
 0x27d   : > { %v5116_v30 = vtrunc.f32 %v3068_v18  ;;  %11610 = vst [vmem:[%s12322_s25 + $0x680] sm:$0xff] %v8370_v22  ;;  %v3005_v32 = vmul.f32 0.5, %v957_v19  ;;  %v3037_v33 = vmul.f32 0.5, %v989_v20  ;;  %v3069_v34 = vmul.f32 0.5, %v1021_v21  ;;  %v993_v16 = vld [vmem:[%s12293_s30 + $0x1ab8] sm:$0xff]  ;;  %v930_v22 = vld [vmem:[%s12293_s30 + $0x18c0] sm:$0xff] }
 0x27e   : > { %v5021_v35 = vtrunc.f32 %v2973_v25  ;;  %v8380_v38 = vpack.c.b8 %v8376_v27, %v8372_v23  ;;  %v8382_v39 = vpack.c.f32.eXmY %v5020_v24, %v5052_v28, 312  ;;  %v2974_v41 = vmul.f32 0.5, %v926_v26  ;;  %v1025_v17 = vld [vmem:[%s12293_s30 + $0x1bb8] sm:$0xff]  ;;  %v962_v27 = vld [vmem:[%s12293_s30 + $0x19c0] sm:$0xff] }
 0x27f   : > { %v8386_v40 = vpack.c.f32.eXmY %v5084_v29, %v5116_v30, 312  ;;  %v5053_v43 = vtrunc.f32 %v3005_v32  ;;  %v5085_v44 = vtrunc.f32 %v3037_v33  ;;  %v5117_v45 = vtrunc.f32 %v3069_v34  ;;  %v994_v32 = vld [vmem:[%s12293_s30 + $0x1ac0] sm:$0xff] }
 0x280   : > { %v3006_v46 = vmul.f32 0.5, %v958_v31  ;;  %11611 = vst [vmem:[%s12322_s25 + $0x688] sm:$0xff] %v8380_v38  ;;  %v3038_v50 = vmul.f32 0.5, %v990_v36  ;;  %v3070_v51 = vmul.f32 0.5, %v1022_v37  ;;  %v5022_v52 = vtrunc.f32 %v2974_v41  ;;  %v1026_v33 = vld [vmem:[%s12293_s30 + $0x1bc0] sm:$0xff]  ;;  %v931_v38 = vld [vmem:[%s12293_s30 + $0x18c8] sm:$0xff] }
 0x281   : > { %v8390_v49 = vpack.c.b8 %v8386_v40, %v8382_v39  ;;  %v8392_v54 = vpack.c.f32.eXmY %v5021_v35, %v5053_v43, 312  ;;  %v8396_v55 = vpack.c.f32.eXmY %v5085_v44, %v5117_v45, 312  ;;  %v2975_v57 = vmul.f32 0.5, %v927_v42  ;;  %v963_v43 = vld [vmem:[%s12293_s30 + $0x19c8] sm:$0xff] }
 0x282   : > { %v5054_v56 = vtrunc.f32 %v3006_v46  ;;  %v5086_v59 = vtrunc.f32 %v3038_v50  ;;  %v5118_v60 = vtrunc.f32 %v3070_v51  ;;  %v3007_v61 = vmul.f32 0.5, %v959_v47  ;;  %v995_v44 = vld [vmem:[%s12293_s30 + $0x1ac8] sm:$0xff] }
 0x283   : > { %11612 = vst [vmem:[%s12322_s25 + $0x690] sm:$0xff] %v8390_v49  ;;  %v3039_v62 = vmul.f32 0.5, %v991_v48  ;;  %v8400_v2 = vpack.c.b8 %v8396_v55, %v8392_v54  ;;  %v3071_v4 = vmul.f32 0.5, %v1023_v53  ;;  %v5023_v5 = vtrunc.f32 %v2975_v57  ;;  %v1027_v49 = vld [vmem:[%s12293_s30 + $0x1bc8] sm:$0xff]  ;;  %v932_v54 = vld [vmem:[%s12293_s30 + $0x18d0] sm:$0xff] }
 0x284   : > { %v8402_v3 = vpack.c.f32.eXmY %v5022_v52, %v5054_v56, 312  ;;  %v8406_v7 = vpack.c.f32.eXmY %v5086_v59, %v5118_v60, 312  ;;  %v5055_v8 = vtrunc.f32 %v3007_v61  ;;  %v2976_v10 = vmul.f32 0.5, %v928_v58  ;;  %v964_v59 = vld [vmem:[%s12293_s30 + $0x19d0] sm:$0xff] }
 0x285   : > { %v5087_v9 = vtrunc.f32 %v3039_v62  ;;  %11613 = vst [vmem:[%s12322_s25 + $0x698] sm:$0xff] %v8400_v2  ;;  %v5119_v11 = vtrunc.f32 %v3071_v4  ;;  %v3008_v12 = vmul.f32 0.5, %v960_v63  ;;  %v3040_v13 = vmul.f32 0.5, %v992_v0  ;;  %v996_v60 = vld [vmem:[%s12293_s30 + $0x1ad0] sm:$0xff]  ;;  %v933_v2 = vld [vmem:[%s12293_s30 + $0x18d8] sm:$0xff] }
 0x286   : > { %v3072_v14 = vmul.f32 0.5, %v1024_v1  ;;  %v8410_v18 = vpack.c.b8 %v8406_v7, %v8402_v3  ;;  %v8412_v19 = vpack.c.f32.eXmY %v5023_v5, %v5055_v8, 312  ;;  %v5024_v20 = vtrunc.f32 %v2976_v10  ;;  %v1028_v61 = vld [vmem:[%s12293_s30 + $0x1bd0] sm:$0xff] }
 0x287   : > { %v2977_v21 = vmul.f32 0.5, %v929_v6  ;;  %v8416_v23 = vpack.c.f32.eXmY %v5087_v9, %v5119_v11, 312  ;;  %v5056_v24 = vtrunc.f32 %v3008_v12  ;;  %v5088_v25 = vtrunc.f32 %v3040_v13  ;;  %v965_v11 = vld [vmem:[%s12293_s30 + $0x19d8] sm:$0xff] }
 0x288   : > { %v5120_v26 = vtrunc.f32 %v3072_v14  ;;  %11614 = vst [vmem:[%s12322_s25 + $0x6a0] sm:$0xff] %v8410_v18  ;;  %v3009_v28 = vmul.f32 0.5, %v961_v15  ;;  %v3041_v29 = vmul.f32 0.5, %v993_v16  ;;  %v3073_v30 = vmul.f32 0.5, %v1025_v17  ;;  %v997_v12 = vld [vmem:[%s12293_s30 + $0x1ad8] sm:$0xff]  ;;  %v934_v18 = vld [vmem:[%s12293_s30 + $0x18e0] sm:$0xff] }
 0x289   : > { %v5025_v31 = vtrunc.f32 %v2977_v21  ;;  %v8420_v34 = vpack.c.b8 %v8416_v23, %v8412_v19  ;;  %v8422_v35 = vpack.c.f32.eXmY %v5024_v20, %v5056_v24, 312  ;;  %v2978_v37 = vmul.f32 0.5, %v930_v22  ;;  %v1029_v13 = vld [vmem:[%s12293_s30 + $0x1bd8] sm:$0xff]  ;;  %v966_v23 = vld [vmem:[%s12293_s30 + $0x19e0] sm:$0xff] }
 0x28a   : > { %v8426_v36 = vpack.c.f32.eXmY %v5088_v25, %v5120_v26, 312  ;;  %v5057_v39 = vtrunc.f32 %v3009_v28  ;;  %v5089_v40 = vtrunc.f32 %v3041_v29  ;;  %v5121_v41 = vtrunc.f32 %v3073_v30  ;;  %v998_v28 = vld [vmem:[%s12293_s30 + $0x1ae0] sm:$0xff] }
 0x28b   : > { %v3010_v42 = vmul.f32 0.5, %v962_v27  ;;  %11615 = vst [vmem:[%s12322_s25 + $0x6a8] sm:$0xff] %v8420_v34  ;;  %v3042_v46 = vmul.f32 0.5, %v994_v32  ;;  %v3074_v47 = vmul.f32 0.5, %v1026_v33  ;;  %v5026_v48 = vtrunc.f32 %v2978_v37  ;;  %v1030_v29 = vld [vmem:[%s12293_s30 + $0x1be0] sm:$0xff]  ;;  %v935_v34 = vld [vmem:[%s12293_s30 + $0x18e8] sm:$0xff] }
 0x28c   : > { %v8430_v45 = vpack.c.b8 %v8426_v36, %v8422_v35  ;;  %v8432_v50 = vpack.c.f32.eXmY %v5025_v31, %v5057_v39, 312  ;;  %v8436_v51 = vpack.c.f32.eXmY %v5089_v40, %v5121_v41, 312  ;;  %v2979_v53 = vmul.f32 0.5, %v931_v38  ;;  %v967_v39 = vld [vmem:[%s12293_s30 + $0x19e8] sm:$0xff] }
 0x28d   : > { %v5058_v52 = vtrunc.f32 %v3010_v42  ;;  %v5090_v55 = vtrunc.f32 %v3042_v46  ;;  %v5122_v56 = vtrunc.f32 %v3074_v47  ;;  %v3011_v57 = vmul.f32 0.5, %v963_v43  ;;  %v999_v40 = vld [vmem:[%s12293_s30 + $0x1ae8] sm:$0xff] }
 0x28e   : > { %11616 = vst [vmem:[%s12322_s25 + $0x6b0] sm:$0xff] %v8430_v45  ;;  %v3043_v58 = vmul.f32 0.5, %v995_v44  ;;  %v8440_v62 = vpack.c.b8 %v8436_v51, %v8432_v50  ;;  %v3075_v0 = vmul.f32 0.5, %v1027_v49  ;;  %v5027_v1 = vtrunc.f32 %v2979_v53  ;;  %v1031_v45 = vld [vmem:[%s12293_s30 + $0x1be8] sm:$0xff]  ;;  %v936_v50 = vld [vmem:[%s12293_s30 + $0x18f0] sm:$0xff] }
 0x28f   : > { %v8442_v63 = vpack.c.f32.eXmY %v5026_v48, %v5058_v52, 312  ;;  %v8446_v3 = vpack.c.f32.eXmY %v5090_v55, %v5122_v56, 312  ;;  %v5059_v4 = vtrunc.f32 %v3011_v57  ;;  %v2980_v6 = vmul.f32 0.5, %v932_v54  ;;  %v968_v55 = vld [vmem:[%s12293_s30 + $0x19f0] sm:$0xff] }
 0x290   : > { %v5091_v5 = vtrunc.f32 %v3043_v58  ;;  %11617 = vst [vmem:[%s12322_s25 + $0x6b8] sm:$0xff] %v8440_v62  ;;  %v5123_v7 = vtrunc.f32 %v3075_v0  ;;  %v3012_v8 = vmul.f32 0.5, %v964_v59  ;;  %v3044_v9 = vmul.f32 0.5, %v996_v60  ;;  %v1000_v56 = vld [vmem:[%s12293_s30 + $0x1af0] sm:$0xff]  ;;  %v937_v62 = vld [vmem:[%s12293_s30 + $0x18f8] sm:$0xff] }
 0x291   : > { %v3076_v10 = vmul.f32 0.5, %v1028_v61  ;;  %v8450_v14 = vpack.c.b8 %v8446_v3, %v8442_v63  ;;  %v8452_v15 = vpack.c.f32.eXmY %v5027_v1, %v5059_v4, 312  ;;  %v5028_v16 = vtrunc.f32 %v2980_v6  ;;  %v1032_v57 = vld [vmem:[%s12293_s30 + $0x1bf0] sm:$0xff] }
 0x292   : > { %v2981_v17 = vmul.f32 0.5, %v933_v2  ;;  %v8456_v19 = vpack.c.f32.eXmY %v5091_v5, %v5123_v7, 312  ;;  %v5060_v20 = vtrunc.f32 %v3012_v8  ;;  %v5092_v21 = vtrunc.f32 %v3044_v9  ;;  %v969_v7 = vld [vmem:[%s12293_s30 + $0x19f8] sm:$0xff] }
 0x293   : > { %v5124_v22 = vtrunc.f32 %v3076_v10  ;;  %11618 = vst [vmem:[%s12322_s25 + $0x6c0] sm:$0xff] %v8450_v14  ;;  %v3013_v24 = vmul.f32 0.5, %v965_v11  ;;  %v3045_v25 = vmul.f32 0.5, %v997_v12  ;;  %v3077_v26 = vmul.f32 0.5, %v1029_v13  ;;  %v1001_v8 = vld [vmem:[%s12293_s30 + $0x1af8] sm:$0xff]  ;;  %v1034_v14 = vld [vmem:[%s12293_s30 + $0x1c00] sm:$0xff] }
 0x294   : > { %v5029_v27 = vtrunc.f32 %v2981_v17  ;;  %v8460_v30 = vpack.c.b8 %v8456_v19, %v8452_v15  ;;  %v8462_v31 = vpack.c.f32.eXmY %v5028_v16, %v5060_v20, 312  ;;  %v2982_v33 = vmul.f32 0.5, %v934_v18  ;;  %v1033_v9 = vld [vmem:[%s12293_s30 + $0x1bf8] sm:$0xff]  ;;  %v1066_v19 = vld [vmem:[%s12293_s30 + $0x1d00] sm:$0xff] }
 0x295   : > { %v8466_v32 = vpack.c.f32.eXmY %v5092_v21, %v5124_v22, 312  ;;  %v5061_v35 = vtrunc.f32 %v3013_v24  ;;  %v5093_v36 = vtrunc.f32 %v3045_v25  ;;  %v5125_v37 = vtrunc.f32 %v3077_v26  ;;  %v1098_v24 = vld [vmem:[%s12293_s30 + $0x1e00] sm:$0xff] }
 0x296   : > { %v3014_v38 = vmul.f32 0.5, %v966_v23  ;;  %11619 = vst [vmem:[%s12322_s25 + $0x6c8] sm:$0xff] %v8460_v30  ;;  %v3046_v42 = vmul.f32 0.5, %v998_v28  ;;  %v3078_v43 = vmul.f32 0.5, %v1030_v29  ;;  %v5030_v44 = vtrunc.f32 %v2982_v33  ;;  %v1130_v25 = vld [vmem:[%s12293_s30 + $0x1f00] sm:$0xff]  ;;  %v1035_v30 = vld [vmem:[%s12293_s30 + $0x1c08] sm:$0xff] }
 0x297   : > { %v8470_v41 = vpack.c.b8 %v8466_v32, %v8462_v31  ;;  %v8472_v46 = vpack.c.f32.eXmY %v5029_v27, %v5061_v35, 312  ;;  %v8476_v47 = vpack.c.f32.eXmY %v5093_v36, %v5125_v37, 312  ;;  %v2983_v49 = vmul.f32 0.5, %v935_v34  ;;  %v1067_v35 = vld [vmem:[%s12293_s30 + $0x1d08] sm:$0xff] }
 0x298   : > { %v5062_v48 = vtrunc.f32 %v3014_v38  ;;  %v5094_v51 = vtrunc.f32 %v3046_v42  ;;  %v5126_v52 = vtrunc.f32 %v3078_v43  ;;  %v3015_v53 = vmul.f32 0.5, %v967_v39  ;;  %v1099_v36 = vld [vmem:[%s12293_s30 + $0x1e08] sm:$0xff] }
 0x299   : > { %11620 = vst [vmem:[%s12322_s25 + $0x6d0] sm:$0xff] %v8470_v41  ;;  %v3047_v54 = vmul.f32 0.5, %v999_v40  ;;  %v8480_v58 = vpack.c.b8 %v8476_v47, %v8472_v46  ;;  %v3079_v60 = vmul.f32 0.5, %v1031_v45  ;;  %v5031_v61 = vtrunc.f32 %v2983_v49  ;;  %v1131_v41 = vld [vmem:[%s12293_s30 + $0x1f08] sm:$0xff]  ;;  %v1036_v46 = vld [vmem:[%s12293_s30 + $0x1c10] sm:$0xff] }
 0x29a   : > { %v8482_v59 = vpack.c.f32.eXmY %v5030_v44, %v5062_v48, 312  ;;  %v8486_v63 = vpack.c.f32.eXmY %v5094_v51, %v5126_v52, 312  ;;  %v5063_v0 = vtrunc.f32 %v3015_v53  ;;  %v2984_v2 = vmul.f32 0.5, %v936_v50  ;;  %v1068_v51 = vld [vmem:[%s12293_s30 + $0x1d10] sm:$0xff] }
 0x29b   : > { %v5095_v1 = vtrunc.f32 %v3047_v54  ;;  %11621 = vst [vmem:[%s12322_s25 + $0x6d8] sm:$0xff] %v8480_v58  ;;  %v5127_v3 = vtrunc.f32 %v3079_v60  ;;  %v3016_v4 = vmul.f32 0.5, %v968_v55  ;;  %v3048_v5 = vmul.f32 0.5, %v1000_v56  ;;  %v1100_v52 = vld [vmem:[%s12293_s30 + $0x1e10] sm:$0xff]  ;;  %v1037_v58 = vld [vmem:[%s12293_s30 + $0x1c18] sm:$0xff] }
 0x29c   : > { %v3080_v6 = vmul.f32 0.5, %v1032_v57  ;;  %v8490_v10 = vpack.c.b8 %v8486_v63, %v8482_v59  ;;  %v8492_v11 = vpack.c.f32.eXmY %v5031_v61, %v5063_v0, 312  ;;  %v5032_v12 = vtrunc.f32 %v2984_v2  ;;  %v1132_v53 = vld [vmem:[%s12293_s30 + $0x1f10] sm:$0xff] }
 0x29d   : > { %v2985_v13 = vmul.f32 0.5, %v937_v62  ;;  %v8496_v15 = vpack.c.f32.eXmY %v5095_v1, %v5127_v3, 312  ;;  %v5064_v16 = vtrunc.f32 %v3016_v4  ;;  %v5096_v17 = vtrunc.f32 %v3048_v5  ;;  %v1069_v3 = vld [vmem:[%s12293_s30 + $0x1d18] sm:$0xff] }
 0x29e   : > { %v5128_v18 = vtrunc.f32 %v3080_v6  ;;  %11622 = vst [vmem:[%s12322_s25 + $0x6e0] sm:$0xff] %v8490_v10  ;;  %v3017_v20 = vmul.f32 0.5, %v969_v7  ;;  %v3049_v21 = vmul.f32 0.5, %v1001_v8  ;;  %v3081_v22 = vmul.f32 0.5, %v1033_v9  ;;  %v1101_v4 = vld [vmem:[%s12293_s30 + $0x1e18] sm:$0xff]  ;;  %v1038_v10 = vld [vmem:[%s12293_s30 + $0x1c20] sm:$0xff] }
 0x29f   : > { %v5033_v23 = vtrunc.f32 %v2985_v13  ;;  %v8500_v26 = vpack.c.b8 %v8496_v15, %v8492_v11  ;;  %v8502_v27 = vpack.c.f32.eXmY %v5032_v12, %v5064_v16, 312  ;;  %v3082_v29 = vmul.f32 0.5, %v1034_v14  ;;  %v1133_v5 = vld [vmem:[%s12293_s30 + $0x1f18] sm:$0xff]  ;;  %v1070_v15 = vld [vmem:[%s12293_s30 + $0x1d20] sm:$0xff] }
 0x2a0   : > { %v8506_v28 = vpack.c.f32.eXmY %v5096_v17, %v5128_v18, 312  ;;  %v5065_v31 = vtrunc.f32 %v3017_v20  ;;  %v5097_v32 = vtrunc.f32 %v3049_v21  ;;  %v5129_v33 = vtrunc.f32 %v3081_v22  ;;  %v1102_v20 = vld [vmem:[%s12293_s30 + $0x1e20] sm:$0xff] }
 0x2a1   : > { %v3114_v34 = vmul.f32 0.5, %v1066_v19  ;;  %11623 = vst [vmem:[%s12322_s25 + $0x6e8] sm:$0xff] %v8500_v26  ;;  %v3146_v38 = vmul.f32 0.5, %v1098_v24  ;;  %v3178_v39 = vmul.f32 0.5, %v1130_v25  ;;  %v5130_v40 = vtrunc.f32 %v3082_v29  ;;  %v1134_v21 = vld [vmem:[%s12293_s30 + $0x1f20] sm:$0xff]  ;;  %v1039_v26 = vld [vmem:[%s12293_s30 + $0x1c28] sm:$0xff] }
 0x2a2   : > { %v8510_v37 = vpack.c.b8 %v8506_v28, %v8502_v27  ;;  %v8512_v42 = vpack.c.f32.eXmY %v5033_v23, %v5065_v31, 312  ;;  %v8516_v43 = vpack.c.f32.eXmY %v5097_v32, %v5129_v33, 312  ;;  %v3083_v45 = vmul.f32 0.5, %v1035_v30  ;;  %v1071_v31 = vld [vmem:[%s12293_s30 + $0x1d28] sm:$0xff] }
 0x2a3   : > { %v5162_v44 = vtrunc.f32 %v3114_v34  ;;  %v5194_v47 = vtrunc.f32 %v3146_v38  ;;  %v5226_v48 = vtrunc.f32 %v3178_v39  ;;  %v3115_v49 = vmul.f32 0.5, %v1067_v35  ;;  %v1103_v32 = vld [vmem:[%s12293_s30 + $0x1e28] sm:$0xff] }
 0x2a4   : > { %11624 = vst [vmem:[%s12322_s25 + $0x6f0] sm:$0xff] %v8510_v37  ;;  %v3147_v50 = vmul.f32 0.5, %v1099_v36  ;;  %v8520_v54 = vpack.c.b8 %v8516_v43, %v8512_v42  ;;  %v3179_v56 = vmul.f32 0.5, %v1131_v41  ;;  %v5131_v57 = vtrunc.f32 %v3083_v45  ;;  %v1135_v37 = vld [vmem:[%s12293_s30 + $0x1f28] sm:$0xff]  ;;  %v1040_v42 = vld [vmem:[%s12293_s30 + $0x1c30] sm:$0xff] }
 0x2a5   : > { %v8522_v55 = vpack.c.f32.eXmY %v5130_v40, %v5162_v44, 312  ;;  %v8526_v59 = vpack.c.f32.eXmY %v5194_v47, %v5226_v48, 312  ;;  %v5163_v60 = vtrunc.f32 %v3115_v49  ;;  %v3084_v62 = vmul.f32 0.5, %v1036_v46  ;;  %v1072_v47 = vld [vmem:[%s12293_s30 + $0x1d30] sm:$0xff] }
 0x2a6   : > { %v5195_v61 = vtrunc.f32 %v3147_v50  ;;  %11625 = vst [vmem:[%s12322_s25 + $0x6f8] sm:$0xff] %v8520_v54  ;;  %v5227_v63 = vtrunc.f32 %v3179_v56  ;;  %v3116_v0 = vmul.f32 0.5, %v1068_v51  ;;  %v3148_v1 = vmul.f32 0.5, %v1100_v52  ;;  %v1104_v48 = vld [vmem:[%s12293_s30 + $0x1e30] sm:$0xff]  ;;  %v1041_v54 = vld [vmem:[%s12293_s30 + $0x1c38] sm:$0xff] }
 0x2a7   : > { %v3180_v2 = vmul.f32 0.5, %v1132_v53  ;;  %v8530_v6 = vpack.c.b8 %v8526_v59, %v8522_v55  ;;  %v8532_v7 = vpack.c.f32.eXmY %v5131_v57, %v5163_v60, 312  ;;  %v5132_v8 = vtrunc.f32 %v3084_v62  ;;  %v1136_v49 = vld [vmem:[%s12293_s30 + $0x1f30] sm:$0xff] }
 0x2a8   : > { %v3085_v9 = vmul.f32 0.5, %v1037_v58  ;;  %v8536_v11 = vpack.c.f32.eXmY %v5195_v61, %v5227_v63, 312  ;;  %v5164_v12 = vtrunc.f32 %v3116_v0  ;;  %v5196_v13 = vtrunc.f32 %v3148_v1  ;;  %v1073_v63 = vld [vmem:[%s12293_s30 + $0x1d38] sm:$0xff] }
 0x2a9   : > { %v5228_v14 = vtrunc.f32 %v3180_v2  ;;  %11626 = vst [vmem:[%s12322_s25 + $0x700] sm:$0xff] %v8530_v6  ;;  %v3117_v16 = vmul.f32 0.5, %v1069_v3  ;;  %v3149_v17 = vmul.f32 0.5, %v1101_v4  ;;  %v3181_v18 = vmul.f32 0.5, %v1133_v5  ;;  %v1105_v0 = vld [vmem:[%s12293_s30 + $0x1e38] sm:$0xff]  ;;  %v1042_v6 = vld [vmem:[%s12293_s30 + $0x1c40] sm:$0xff] }
 0x2aa   : > { %v5133_v19 = vtrunc.f32 %v3085_v9  ;;  %v8540_v22 = vpack.c.b8 %v8536_v11, %v8532_v7  ;;  %v8542_v23 = vpack.c.f32.eXmY %v5132_v8, %v5164_v12, 312  ;;  %v3086_v25 = vmul.f32 0.5, %v1038_v10  ;;  %v1137_v1 = vld [vmem:[%s12293_s30 + $0x1f38] sm:$0xff]  ;;  %v1074_v11 = vld [vmem:[%s12293_s30 + $0x1d40] sm:$0xff] }
 0x2ab   : > { %v8546_v24 = vpack.c.f32.eXmY %v5196_v13, %v5228_v14, 312  ;;  %v5165_v27 = vtrunc.f32 %v3117_v16  ;;  %v5197_v28 = vtrunc.f32 %v3149_v17  ;;  %v5229_v29 = vtrunc.f32 %v3181_v18  ;;  %v1106_v16 = vld [vmem:[%s12293_s30 + $0x1e40] sm:$0xff] }
 0x2ac   : > { %v3118_v30 = vmul.f32 0.5, %v1070_v15  ;;  %11627 = vst [vmem:[%s12322_s25 + $0x708] sm:$0xff] %v8540_v22  ;;  %v3150_v34 = vmul.f32 0.5, %v1102_v20  ;;  %v3182_v35 = vmul.f32 0.5, %v1134_v21  ;;  %v5134_v36 = vtrunc.f32 %v3086_v25  ;;  %v1138_v17 = vld [vmem:[%s12293_s30 + $0x1f40] sm:$0xff]  ;;  %v1043_v22 = vld [vmem:[%s12293_s30 + $0x1c48] sm:$0xff] }
 0x2ad   : > { %v8550_v33 = vpack.c.b8 %v8546_v24, %v8542_v23  ;;  %v8552_v38 = vpack.c.f32.eXmY %v5133_v19, %v5165_v27, 312  ;;  %v8556_v39 = vpack.c.f32.eXmY %v5197_v28, %v5229_v29, 312  ;;  %v3087_v41 = vmul.f32 0.5, %v1039_v26  ;;  %v1075_v27 = vld [vmem:[%s12293_s30 + $0x1d48] sm:$0xff] }
 0x2ae   : > { %v5166_v40 = vtrunc.f32 %v3118_v30  ;;  %v5198_v43 = vtrunc.f32 %v3150_v34  ;;  %v5230_v44 = vtrunc.f32 %v3182_v35  ;;  %v3119_v45 = vmul.f32 0.5, %v1071_v31  ;;  %v1107_v28 = vld [vmem:[%s12293_s30 + $0x1e48] sm:$0xff] }
 0x2af   : > { %11628 = vst [vmem:[%s12322_s25 + $0x710] sm:$0xff] %v8550_v33  ;;  %v3151_v46 = vmul.f32 0.5, %v1103_v32  ;;  %v8560_v50 = vpack.c.b8 %v8556_v39, %v8552_v38  ;;  %v3183_v52 = vmul.f32 0.5, %v1135_v37  ;;  %v5135_v53 = vtrunc.f32 %v3087_v41  ;;  %v1139_v33 = vld [vmem:[%s12293_s30 + $0x1f48] sm:$0xff]  ;;  %v1044_v38 = vld [vmem:[%s12293_s30 + $0x1c50] sm:$0xff] }
 0x2b0   : > { %v8562_v51 = vpack.c.f32.eXmY %v5134_v36, %v5166_v40, 312  ;;  %v8566_v55 = vpack.c.f32.eXmY %v5198_v43, %v5230_v44, 312  ;;  %v5167_v56 = vtrunc.f32 %v3119_v45  ;;  %v3088_v58 = vmul.f32 0.5, %v1040_v42  ;;  %v1076_v43 = vld [vmem:[%s12293_s30 + $0x1d50] sm:$0xff] }
 0x2b1   : > { %v5199_v57 = vtrunc.f32 %v3151_v46  ;;  %11629 = vst [vmem:[%s12322_s25 + $0x718] sm:$0xff] %v8560_v50  ;;  %v5231_v59 = vtrunc.f32 %v3183_v52  ;;  %v3120_v60 = vmul.f32 0.5, %v1072_v47  ;;  %v3152_v61 = vmul.f32 0.5, %v1104_v48  ;;  %v1108_v44 = vld [vmem:[%s12293_s30 + $0x1e50] sm:$0xff]  ;;  %v1045_v50 = vld [vmem:[%s12293_s30 + $0x1c58] sm:$0xff] }
 0x2b2   : > { %v3184_v62 = vmul.f32 0.5, %v1136_v49  ;;  %v8570_v2 = vpack.c.b8 %v8566_v55, %v8562_v51  ;;  %v8572_v3 = vpack.c.f32.eXmY %v5135_v53, %v5167_v56, 312  ;;  %v5136_v4 = vtrunc.f32 %v3088_v58  ;;  %v1140_v45 = vld [vmem:[%s12293_s30 + $0x1f50] sm:$0xff] }
 0x2b3   : > { %v3089_v5 = vmul.f32 0.5, %v1041_v54  ;;  %v8576_v7 = vpack.c.f32.eXmY %v5199_v57, %v5231_v59, 312  ;;  %v5168_v8 = vtrunc.f32 %v3120_v60  ;;  %v5200_v9 = vtrunc.f32 %v3152_v61  ;;  %v1077_v59 = vld [vmem:[%s12293_s30 + $0x1d58] sm:$0xff] }
 0x2b4   : > { %v5232_v10 = vtrunc.f32 %v3184_v62  ;;  %11630 = vst [vmem:[%s12322_s25 + $0x720] sm:$0xff] %v8570_v2  ;;  %v3121_v12 = vmul.f32 0.5, %v1073_v63  ;;  %v3153_v13 = vmul.f32 0.5, %v1105_v0  ;;  %v3185_v14 = vmul.f32 0.5, %v1137_v1  ;;  %v1109_v60 = vld [vmem:[%s12293_s30 + $0x1e58] sm:$0xff]  ;;  %v1046_v2 = vld [vmem:[%s12293_s30 + $0x1c60] sm:$0xff] }
 0x2b5   : > { %v5137_v15 = vtrunc.f32 %v3089_v5  ;;  %v8580_v18 = vpack.c.b8 %v8576_v7, %v8572_v3  ;;  %v8582_v19 = vpack.c.f32.eXmY %v5136_v4, %v5168_v8, 312  ;;  %v3090_v21 = vmul.f32 0.5, %v1042_v6  ;;  %v1141_v61 = vld [vmem:[%s12293_s30 + $0x1f58] sm:$0xff]  ;;  %v1078_v7 = vld [vmem:[%s12293_s30 + $0x1d60] sm:$0xff] }
 0x2b6   : > { %v8586_v20 = vpack.c.f32.eXmY %v5200_v9, %v5232_v10, 312  ;;  %v5169_v23 = vtrunc.f32 %v3121_v12  ;;  %v5201_v24 = vtrunc.f32 %v3153_v13  ;;  %v5233_v25 = vtrunc.f32 %v3185_v14  ;;  %v1110_v12 = vld [vmem:[%s12293_s30 + $0x1e60] sm:$0xff] }
 0x2b7   : > { %v3122_v26 = vmul.f32 0.5, %v1074_v11  ;;  %11631 = vst [vmem:[%s12322_s25 + $0x728] sm:$0xff] %v8580_v18  ;;  %v3154_v30 = vmul.f32 0.5, %v1106_v16  ;;  %v3186_v31 = vmul.f32 0.5, %v1138_v17  ;;  %v5138_v32 = vtrunc.f32 %v3090_v21  ;;  %v1142_v13 = vld [vmem:[%s12293_s30 + $0x1f60] sm:$0xff]  ;;  %v1047_v18 = vld [vmem:[%s12293_s30 + $0x1c68] sm:$0xff] }
 0x2b8   : > { %v8590_v29 = vpack.c.b8 %v8586_v20, %v8582_v19  ;;  %v8592_v34 = vpack.c.f32.eXmY %v5137_v15, %v5169_v23, 312  ;;  %v8596_v35 = vpack.c.f32.eXmY %v5201_v24, %v5233_v25, 312  ;;  %v3091_v37 = vmul.f32 0.5, %v1043_v22  ;;  %v1079_v23 = vld [vmem:[%s12293_s30 + $0x1d68] sm:$0xff] }
 0x2b9   : > { %v5170_v36 = vtrunc.f32 %v3122_v26  ;;  %v5202_v39 = vtrunc.f32 %v3154_v30  ;;  %v5234_v40 = vtrunc.f32 %v3186_v31  ;;  %v3123_v41 = vmul.f32 0.5, %v1075_v27  ;;  %v1111_v24 = vld [vmem:[%s12293_s30 + $0x1e68] sm:$0xff] }
 0x2ba   : > { %11632 = vst [vmem:[%s12322_s25 + $0x730] sm:$0xff] %v8590_v29  ;;  %v3155_v42 = vmul.f32 0.5, %v1107_v28  ;;  %v8600_v46 = vpack.c.b8 %v8596_v35, %v8592_v34  ;;  %v3187_v48 = vmul.f32 0.5, %v1139_v33  ;;  %v5139_v49 = vtrunc.f32 %v3091_v37  ;;  %v1143_v29 = vld [vmem:[%s12293_s30 + $0x1f68] sm:$0xff]  ;;  %v1048_v34 = vld [vmem:[%s12293_s30 + $0x1c70] sm:$0xff] }
 0x2bb   : > { %v8602_v47 = vpack.c.f32.eXmY %v5138_v32, %v5170_v36, 312  ;;  %v8606_v51 = vpack.c.f32.eXmY %v5202_v39, %v5234_v40, 312  ;;  %v5171_v52 = vtrunc.f32 %v3123_v41  ;;  %v3092_v54 = vmul.f32 0.5, %v1044_v38  ;;  %v1080_v39 = vld [vmem:[%s12293_s30 + $0x1d70] sm:$0xff] }
 0x2bc   : > { %v5203_v53 = vtrunc.f32 %v3155_v42  ;;  %11633 = vst [vmem:[%s12322_s25 + $0x738] sm:$0xff] %v8600_v46  ;;  %v5235_v55 = vtrunc.f32 %v3187_v48  ;;  %v3124_v56 = vmul.f32 0.5, %v1076_v43  ;;  %v3156_v57 = vmul.f32 0.5, %v1108_v44  ;;  %v1112_v40 = vld [vmem:[%s12293_s30 + $0x1e70] sm:$0xff]  ;;  %v1049_v46 = vld [vmem:[%s12293_s30 + $0x1c78] sm:$0xff] }
 0x2bd   : > { %v3188_v58 = vmul.f32 0.5, %v1140_v45  ;;  %v8610_v62 = vpack.c.b8 %v8606_v51, %v8602_v47  ;;  %v8612_v63 = vpack.c.f32.eXmY %v5139_v49, %v5171_v52, 312  ;;  %v5140_v0 = vtrunc.f32 %v3092_v54  ;;  %v1144_v41 = vld [vmem:[%s12293_s30 + $0x1f70] sm:$0xff] }
 0x2be   : > { %v3093_v1 = vmul.f32 0.5, %v1045_v50  ;;  %v8616_v3 = vpack.c.f32.eXmY %v5203_v53, %v5235_v55, 312  ;;  %v5172_v4 = vtrunc.f32 %v3124_v56  ;;  %v5204_v5 = vtrunc.f32 %v3156_v57  ;;  %v1081_v55 = vld [vmem:[%s12293_s30 + $0x1d78] sm:$0xff] }
 0x2bf   : > { %v5236_v6 = vtrunc.f32 %v3188_v58  ;;  %11634 = vst [vmem:[%s12322_s25 + $0x740] sm:$0xff] %v8610_v62  ;;  %v3125_v8 = vmul.f32 0.5, %v1077_v59  ;;  %v3157_v9 = vmul.f32 0.5, %v1109_v60  ;;  %v3189_v10 = vmul.f32 0.5, %v1141_v61  ;;  %v1113_v56 = vld [vmem:[%s12293_s30 + $0x1e78] sm:$0xff]  ;;  %v1050_v62 = vld [vmem:[%s12293_s30 + $0x1c80] sm:$0xff] }
 0x2c0   : > { %v5141_v11 = vtrunc.f32 %v3093_v1  ;;  %v8620_v14 = vpack.c.b8 %v8616_v3, %v8612_v63  ;;  %v8622_v15 = vpack.c.f32.eXmY %v5140_v0, %v5172_v4, 312  ;;  %v3094_v17 = vmul.f32 0.5, %v1046_v2  ;;  %v1145_v57 = vld [vmem:[%s12293_s30 + $0x1f78] sm:$0xff]  ;;  %v1082_v3 = vld [vmem:[%s12293_s30 + $0x1d80] sm:$0xff] }
 0x2c1   : > { %v8626_v16 = vpack.c.f32.eXmY %v5204_v5, %v5236_v6, 312  ;;  %v5173_v19 = vtrunc.f32 %v3125_v8  ;;  %v5205_v20 = vtrunc.f32 %v3157_v9  ;;  %v5237_v21 = vtrunc.f32 %v3189_v10  ;;  %v1114_v8 = vld [vmem:[%s12293_s30 + $0x1e80] sm:$0xff] }
 0x2c2   : > { %v3126_v22 = vmul.f32 0.5, %v1078_v7  ;;  %11635 = vst [vmem:[%s12322_s25 + $0x748] sm:$0xff] %v8620_v14  ;;  %v3158_v26 = vmul.f32 0.5, %v1110_v12  ;;  %v3190_v27 = vmul.f32 0.5, %v1142_v13  ;;  %v5142_v28 = vtrunc.f32 %v3094_v17  ;;  %v1146_v9 = vld [vmem:[%s12293_s30 + $0x1f80] sm:$0xff]  ;;  %v1051_v14 = vld [vmem:[%s12293_s30 + $0x1c88] sm:$0xff] }
 0x2c3   : > { %v8630_v25 = vpack.c.b8 %v8626_v16, %v8622_v15  ;;  %v8632_v30 = vpack.c.f32.eXmY %v5141_v11, %v5173_v19, 312  ;;  %v8636_v31 = vpack.c.f32.eXmY %v5205_v20, %v5237_v21, 312  ;;  %v3095_v33 = vmul.f32 0.5, %v1047_v18  ;;  %v1083_v19 = vld [vmem:[%s12293_s30 + $0x1d88] sm:$0xff] }
 0x2c4   : > { %v5174_v32 = vtrunc.f32 %v3126_v22  ;;  %v5206_v35 = vtrunc.f32 %v3158_v26  ;;  %v5238_v36 = vtrunc.f32 %v3190_v27  ;;  %v3127_v37 = vmul.f32 0.5, %v1079_v23  ;;  %v1115_v20 = vld [vmem:[%s12293_s30 + $0x1e88] sm:$0xff] }
 0x2c5   : > { %11636 = vst [vmem:[%s12322_s25 + $0x750] sm:$0xff] %v8630_v25  ;;  %v3159_v38 = vmul.f32 0.5, %v1111_v24  ;;  %v8640_v42 = vpack.c.b8 %v8636_v31, %v8632_v30  ;;  %v3191_v44 = vmul.f32 0.5, %v1143_v29  ;;  %v5143_v45 = vtrunc.f32 %v3095_v33  ;;  %v1147_v25 = vld [vmem:[%s12293_s30 + $0x1f88] sm:$0xff]  ;;  %v1052_v30 = vld [vmem:[%s12293_s30 + $0x1c90] sm:$0xff] }
 0x2c6   : > { %v8642_v43 = vpack.c.f32.eXmY %v5142_v28, %v5174_v32, 312  ;;  %v8646_v47 = vpack.c.f32.eXmY %v5206_v35, %v5238_v36, 312  ;;  %v5175_v48 = vtrunc.f32 %v3127_v37  ;;  %v3096_v50 = vmul.f32 0.5, %v1048_v34  ;;  %v1084_v35 = vld [vmem:[%s12293_s30 + $0x1d90] sm:$0xff] }
 0x2c7   : > { %v5207_v49 = vtrunc.f32 %v3159_v38  ;;  %11637 = vst [vmem:[%s12322_s25 + $0x758] sm:$0xff] %v8640_v42  ;;  %v5239_v51 = vtrunc.f32 %v3191_v44  ;;  %v3128_v52 = vmul.f32 0.5, %v1080_v39  ;;  %v3160_v53 = vmul.f32 0.5, %v1112_v40  ;;  %v1116_v36 = vld [vmem:[%s12293_s30 + $0x1e90] sm:$0xff]  ;;  %v1053_v42 = vld [vmem:[%s12293_s30 + $0x1c98] sm:$0xff] }
 0x2c8   : > { %v3192_v54 = vmul.f32 0.5, %v1144_v41  ;;  %v8650_v58 = vpack.c.b8 %v8646_v47, %v8642_v43  ;;  %v8652_v59 = vpack.c.f32.eXmY %v5143_v45, %v5175_v48, 312  ;;  %v5144_v60 = vtrunc.f32 %v3096_v50  ;;  %v1148_v37 = vld [vmem:[%s12293_s30 + $0x1f90] sm:$0xff] }
 0x2c9   : > { %v3097_v61 = vmul.f32 0.5, %v1049_v46  ;;  %v8656_v63 = vpack.c.f32.eXmY %v5207_v49, %v5239_v51, 312  ;;  %v5176_v0 = vtrunc.f32 %v3128_v52  ;;  %v5208_v1 = vtrunc.f32 %v3160_v53  ;;  %v1085_v51 = vld [vmem:[%s12293_s30 + $0x1d98] sm:$0xff] }
 0x2ca   : > { %v5240_v2 = vtrunc.f32 %v3192_v54  ;;  %11638 = vst [vmem:[%s12322_s25 + $0x760] sm:$0xff] %v8650_v58  ;;  %v3129_v4 = vmul.f32 0.5, %v1081_v55  ;;  %v3161_v5 = vmul.f32 0.5, %v1113_v56  ;;  %v3193_v6 = vmul.f32 0.5, %v1145_v57  ;;  %v1117_v52 = vld [vmem:[%s12293_s30 + $0x1e98] sm:$0xff]  ;;  %v1054_v58 = vld [vmem:[%s12293_s30 + $0x1ca0] sm:$0xff] }
 0x2cb   : > { %v5145_v7 = vtrunc.f32 %v3097_v61  ;;  %v8660_v10 = vpack.c.b8 %v8656_v63, %v8652_v59  ;;  %v8662_v11 = vpack.c.f32.eXmY %v5144_v60, %v5176_v0, 312  ;;  %v3098_v13 = vmul.f32 0.5, %v1050_v62  ;;  %v1149_v53 = vld [vmem:[%s12293_s30 + $0x1f98] sm:$0xff]  ;;  %v1086_v63 = vld [vmem:[%s12293_s30 + $0x1da0] sm:$0xff] }
 0x2cc   : > { %v8666_v12 = vpack.c.f32.eXmY %v5208_v1, %v5240_v2, 312  ;;  %v5177_v15 = vtrunc.f32 %v3129_v4  ;;  %v5209_v16 = vtrunc.f32 %v3161_v5  ;;  %v5241_v17 = vtrunc.f32 %v3193_v6  ;;  %v1118_v4 = vld [vmem:[%s12293_s30 + $0x1ea0] sm:$0xff] }
 0x2cd   : > { %v3130_v18 = vmul.f32 0.5, %v1082_v3  ;;  %11639 = vst [vmem:[%s12322_s25 + $0x768] sm:$0xff] %v8660_v10  ;;  %v3162_v22 = vmul.f32 0.5, %v1114_v8  ;;  %v3194_v23 = vmul.f32 0.5, %v1146_v9  ;;  %v5146_v24 = vtrunc.f32 %v3098_v13  ;;  %v1150_v5 = vld [vmem:[%s12293_s30 + $0x1fa0] sm:$0xff]  ;;  %v1055_v10 = vld [vmem:[%s12293_s30 + $0x1ca8] sm:$0xff] }
 0x2ce   : > { %v8670_v21 = vpack.c.b8 %v8666_v12, %v8662_v11  ;;  %v8672_v26 = vpack.c.f32.eXmY %v5145_v7, %v5177_v15, 312  ;;  %v8676_v27 = vpack.c.f32.eXmY %v5209_v16, %v5241_v17, 312  ;;  %v3099_v29 = vmul.f32 0.5, %v1051_v14  ;;  %v1087_v15 = vld [vmem:[%s12293_s30 + $0x1da8] sm:$0xff] }
 0x2cf   : > { %v5178_v28 = vtrunc.f32 %v3130_v18  ;;  %v5210_v31 = vtrunc.f32 %v3162_v22  ;;  %v5242_v32 = vtrunc.f32 %v3194_v23  ;;  %v3131_v33 = vmul.f32 0.5, %v1083_v19  ;;  %v1119_v16 = vld [vmem:[%s12293_s30 + $0x1ea8] sm:$0xff] }
 0x2d0   : > { %11640 = vst [vmem:[%s12322_s25 + $0x770] sm:$0xff] %v8670_v21  ;;  %v3163_v34 = vmul.f32 0.5, %v1115_v20  ;;  %v8680_v38 = vpack.c.b8 %v8676_v27, %v8672_v26  ;;  %v3195_v40 = vmul.f32 0.5, %v1147_v25  ;;  %v5147_v41 = vtrunc.f32 %v3099_v29  ;;  %v1151_v21 = vld [vmem:[%s12293_s30 + $0x1fa8] sm:$0xff]  ;;  %v1056_v26 = vld [vmem:[%s12293_s30 + $0x1cb0] sm:$0xff] }
 0x2d1   : > { %v8682_v39 = vpack.c.f32.eXmY %v5146_v24, %v5178_v28, 312  ;;  %v8686_v43 = vpack.c.f32.eXmY %v5210_v31, %v5242_v32, 312  ;;  %v5179_v44 = vtrunc.f32 %v3131_v33  ;;  %v3100_v46 = vmul.f32 0.5, %v1052_v30  ;;  %v1088_v31 = vld [vmem:[%s12293_s30 + $0x1db0] sm:$0xff] }
 0x2d2   : > { %v5211_v45 = vtrunc.f32 %v3163_v34  ;;  %11641 = vst [vmem:[%s12322_s25 + $0x778] sm:$0xff] %v8680_v38  ;;  %v5243_v47 = vtrunc.f32 %v3195_v40  ;;  %v3132_v48 = vmul.f32 0.5, %v1084_v35  ;;  %v3164_v49 = vmul.f32 0.5, %v1116_v36  ;;  %v1120_v32 = vld [vmem:[%s12293_s30 + $0x1eb0] sm:$0xff]  ;;  %v1057_v38 = vld [vmem:[%s12293_s30 + $0x1cb8] sm:$0xff] }
 0x2d3   : > { %v3196_v50 = vmul.f32 0.5, %v1148_v37  ;;  %v8690_v54 = vpack.c.b8 %v8686_v43, %v8682_v39  ;;  %v8692_v55 = vpack.c.f32.eXmY %v5147_v41, %v5179_v44, 312  ;;  %v5148_v56 = vtrunc.f32 %v3100_v46  ;;  %v1152_v33 = vld [vmem:[%s12293_s30 + $0x1fb0] sm:$0xff] }
 0x2d4   : > { %v3101_v57 = vmul.f32 0.5, %v1053_v42  ;;  %v8696_v59 = vpack.c.f32.eXmY %v5211_v45, %v5243_v47, 312  ;;  %v5180_v60 = vtrunc.f32 %v3132_v48  ;;  %v5212_v61 = vtrunc.f32 %v3164_v49  ;;  %v1089_v47 = vld [vmem:[%s12293_s30 + $0x1db8] sm:$0xff] }
 0x2d5   : > { %v5244_v62 = vtrunc.f32 %v3196_v50  ;;  %11642 = vst [vmem:[%s12322_s25 + $0x780] sm:$0xff] %v8690_v54  ;;  %v3133_v0 = vmul.f32 0.5, %v1085_v51  ;;  %v3165_v1 = vmul.f32 0.5, %v1117_v52  ;;  %v3197_v2 = vmul.f32 0.5, %v1149_v53  ;;  %v1121_v48 = vld [vmem:[%s12293_s30 + $0x1eb8] sm:$0xff]  ;;  %v1058_v54 = vld [vmem:[%s12293_s30 + $0x1cc0] sm:$0xff] }
 0x2d6   : > { %v5149_v3 = vtrunc.f32 %v3101_v57  ;;  %v8700_v6 = vpack.c.b8 %v8696_v59, %v8692_v55  ;;  %v8702_v7 = vpack.c.f32.eXmY %v5148_v56, %v5180_v60, 312  ;;  %v3102_v9 = vmul.f32 0.5, %v1054_v58  ;;  %v1153_v49 = vld [vmem:[%s12293_s30 + $0x1fb8] sm:$0xff]  ;;  %v1090_v59 = vld [vmem:[%s12293_s30 + $0x1dc0] sm:$0xff] }
 0x2d7   : > { %v8706_v8 = vpack.c.f32.eXmY %v5212_v61, %v5244_v62, 312  ;;  %v5181_v11 = vtrunc.f32 %v3133_v0  ;;  %v5213_v12 = vtrunc.f32 %v3165_v1  ;;  %v5245_v13 = vtrunc.f32 %v3197_v2  ;;  %v1122_v0 = vld [vmem:[%s12293_s30 + $0x1ec0] sm:$0xff] }
 0x2d8   : > { %v3134_v14 = vmul.f32 0.5, %v1086_v63  ;;  %11643 = vst [vmem:[%s12322_s25 + $0x788] sm:$0xff] %v8700_v6  ;;  %v3166_v18 = vmul.f32 0.5, %v1118_v4  ;;  %v3198_v19 = vmul.f32 0.5, %v1150_v5  ;;  %v5150_v20 = vtrunc.f32 %v3102_v9  ;;  %v1154_v1 = vld [vmem:[%s12293_s30 + $0x1fc0] sm:$0xff]  ;;  %v1059_v6 = vld [vmem:[%s12293_s30 + $0x1cc8] sm:$0xff] }
 0x2d9   : > { %v8710_v17 = vpack.c.b8 %v8706_v8, %v8702_v7  ;;  %v8712_v22 = vpack.c.f32.eXmY %v5149_v3, %v5181_v11, 312  ;;  %v8716_v23 = vpack.c.f32.eXmY %v5213_v12, %v5245_v13, 312  ;;  %v3103_v25 = vmul.f32 0.5, %v1055_v10  ;;  %v1091_v11 = vld [vmem:[%s12293_s30 + $0x1dc8] sm:$0xff] }
 0x2da   : > { %v5182_v24 = vtrunc.f32 %v3134_v14  ;;  %v5214_v27 = vtrunc.f32 %v3166_v18  ;;  %v5246_v28 = vtrunc.f32 %v3198_v19  ;;  %v3135_v29 = vmul.f32 0.5, %v1087_v15  ;;  %v1123_v12 = vld [vmem:[%s12293_s30 + $0x1ec8] sm:$0xff] }
 0x2db   : > { %11644 = vst [vmem:[%s12322_s25 + $0x790] sm:$0xff] %v8710_v17  ;;  %v3167_v30 = vmul.f32 0.5, %v1119_v16  ;;  %v8720_v34 = vpack.c.b8 %v8716_v23, %v8712_v22  ;;  %v3199_v36 = vmul.f32 0.5, %v1151_v21  ;;  %v5151_v37 = vtrunc.f32 %v3103_v25  ;;  %v1155_v17 = vld [vmem:[%s12293_s30 + $0x1fc8] sm:$0xff]  ;;  %v1060_v22 = vld [vmem:[%s12293_s30 + $0x1cd0] sm:$0xff] }
 0x2dc   : > { %v8722_v35 = vpack.c.f32.eXmY %v5150_v20, %v5182_v24, 312  ;;  %v8726_v39 = vpack.c.f32.eXmY %v5214_v27, %v5246_v28, 312  ;;  %v5183_v40 = vtrunc.f32 %v3135_v29  ;;  %v3104_v42 = vmul.f32 0.5, %v1056_v26  ;;  %v1092_v27 = vld [vmem:[%s12293_s30 + $0x1dd0] sm:$0xff] }
 0x2dd   : > { %v5215_v41 = vtrunc.f32 %v3167_v30  ;;  %11645 = vst [vmem:[%s12322_s25 + $0x798] sm:$0xff] %v8720_v34  ;;  %v5247_v43 = vtrunc.f32 %v3199_v36  ;;  %v3136_v44 = vmul.f32 0.5, %v1088_v31  ;;  %v3168_v45 = vmul.f32 0.5, %v1120_v32  ;;  %v1124_v28 = vld [vmem:[%s12293_s30 + $0x1ed0] sm:$0xff]  ;;  %v1061_v34 = vld [vmem:[%s12293_s30 + $0x1cd8] sm:$0xff] }
 0x2de   : > { %v3200_v46 = vmul.f32 0.5, %v1152_v33  ;;  %v8730_v50 = vpack.c.b8 %v8726_v39, %v8722_v35  ;;  %v8732_v51 = vpack.c.f32.eXmY %v5151_v37, %v5183_v40, 312  ;;  %v5152_v52 = vtrunc.f32 %v3104_v42  ;;  %v1156_v29 = vld [vmem:[%s12293_s30 + $0x1fd0] sm:$0xff] }
 0x2df   : > { %v3105_v53 = vmul.f32 0.5, %v1057_v38  ;;  %v8736_v55 = vpack.c.f32.eXmY %v5215_v41, %v5247_v43, 312  ;;  %v5184_v56 = vtrunc.f32 %v3136_v44  ;;  %v5216_v57 = vtrunc.f32 %v3168_v45  ;;  %v1093_v43 = vld [vmem:[%s12293_s30 + $0x1dd8] sm:$0xff] }
 0x2e0   : > { %v5248_v58 = vtrunc.f32 %v3200_v46  ;;  %11646 = vst [vmem:[%s12322_s25 + $0x7a0] sm:$0xff] %v8730_v50  ;;  %v3137_v60 = vmul.f32 0.5, %v1089_v47  ;;  %v3169_v61 = vmul.f32 0.5, %v1121_v48  ;;  %v3201_v62 = vmul.f32 0.5, %v1153_v49  ;;  %v1125_v44 = vld [vmem:[%s12293_s30 + $0x1ed8] sm:$0xff]  ;;  %v1062_v50 = vld [vmem:[%s12293_s30 + $0x1ce0] sm:$0xff] }
 0x2e1   : > { %v5153_v63 = vtrunc.f32 %v3105_v53  ;;  %v8740_v2 = vpack.c.b8 %v8736_v55, %v8732_v51  ;;  %v8742_v3 = vpack.c.f32.eXmY %v5152_v52, %v5184_v56, 312  ;;  %v3106_v5 = vmul.f32 0.5, %v1058_v54  ;;  %v1157_v45 = vld [vmem:[%s12293_s30 + $0x1fd8] sm:$0xff]  ;;  %v1094_v55 = vld [vmem:[%s12293_s30 + $0x1de0] sm:$0xff] }
 0x2e2   : > { %v8746_v4 = vpack.c.f32.eXmY %v5216_v57, %v5248_v58, 312  ;;  %v5185_v7 = vtrunc.f32 %v3137_v60  ;;  %v5217_v8 = vtrunc.f32 %v3169_v61  ;;  %v5249_v9 = vtrunc.f32 %v3201_v62  ;;  %v1126_v60 = vld [vmem:[%s12293_s30 + $0x1ee0] sm:$0xff] }
 0x2e3   : > { %v3138_v10 = vmul.f32 0.5, %v1090_v59  ;;  %11647 = vst [vmem:[%s12322_s25 + $0x7a8] sm:$0xff] %v8740_v2  ;;  %v3170_v14 = vmul.f32 0.5, %v1122_v0  ;;  %v3202_v15 = vmul.f32 0.5, %v1154_v1  ;;  %v5154_v16 = vtrunc.f32 %v3106_v5  ;;  %v1158_v61 = vld [vmem:[%s12293_s30 + $0x1fe0] sm:$0xff]  ;;  %v1063_v2 = vld [vmem:[%s12293_s30 + $0x1ce8] sm:$0xff] }
 0x2e4   : > { %v8750_v13 = vpack.c.b8 %v8746_v4, %v8742_v3  ;;  %v8752_v18 = vpack.c.f32.eXmY %v5153_v63, %v5185_v7, 312  ;;  %v8756_v19 = vpack.c.f32.eXmY %v5217_v8, %v5249_v9, 312  ;;  %v3107_v21 = vmul.f32 0.5, %v1059_v6  ;;  %v1095_v7 = vld [vmem:[%s12293_s30 + $0x1de8] sm:$0xff] }
 0x2e5   : > { %v5186_v20 = vtrunc.f32 %v3138_v10  ;;  %v5218_v23 = vtrunc.f32 %v3170_v14  ;;  %v5250_v24 = vtrunc.f32 %v3202_v15  ;;  %v3139_v25 = vmul.f32 0.5, %v1091_v11  ;;  %v1127_v8 = vld [vmem:[%s12293_s30 + $0x1ee8] sm:$0xff] }
 0x2e6   : > { %11648 = vst [vmem:[%s12322_s25 + $0x7b0] sm:$0xff] %v8750_v13  ;;  %v3171_v26 = vmul.f32 0.5, %v1123_v12  ;;  %v8760_v30 = vpack.c.b8 %v8756_v19, %v8752_v18  ;;  %v3203_v32 = vmul.f32 0.5, %v1155_v17  ;;  %v5155_v33 = vtrunc.f32 %v3107_v21  ;;  %v1159_v13 = vld [vmem:[%s12293_s30 + $0x1fe8] sm:$0xff]  ;;  %v1064_v18 = vld [vmem:[%s12293_s30 + $0x1cf0] sm:$0xff] }
 0x2e7   : > { %v8762_v31 = vpack.c.f32.eXmY %v5154_v16, %v5186_v20, 312  ;;  %v8766_v35 = vpack.c.f32.eXmY %v5218_v23, %v5250_v24, 312  ;;  %v5187_v36 = vtrunc.f32 %v3139_v25  ;;  %v3108_v38 = vmul.f32 0.5, %v1060_v22  ;;  %v1096_v23 = vld [vmem:[%s12293_s30 + $0x1df0] sm:$0xff] }
 0x2e8   : > { %v5219_v37 = vtrunc.f32 %v3171_v26  ;;  %11649 = vst [vmem:[%s12322_s25 + $0x7b8] sm:$0xff] %v8760_v30  ;;  %v5251_v39 = vtrunc.f32 %v3203_v32  ;;  %v3140_v40 = vmul.f32 0.5, %v1092_v27  ;;  %v3172_v41 = vmul.f32 0.5, %v1124_v28  ;;  %v1128_v24 = vld [vmem:[%s12293_s30 + $0x1ef0] sm:$0xff]  ;;  %v1065_v30 = vld [vmem:[%s12293_s30 + $0x1cf8] sm:$0xff] }
 0x2e9   : > { %v3204_v42 = vmul.f32 0.5, %v1156_v29  ;;  %v8770_v46 = vpack.c.b8 %v8766_v35, %v8762_v31  ;;  %v8772_v47 = vpack.c.f32.eXmY %v5155_v33, %v5187_v36, 312  ;;  %v5156_v48 = vtrunc.f32 %v3108_v38  ;;  %v1160_v25 = vld [vmem:[%s12293_s30 + $0x1ff0] sm:$0xff] }
 0x2ea   : > { %v3109_v49 = vmul.f32 0.5, %v1061_v34  ;;  %v8776_v51 = vpack.c.f32.eXmY %v5219_v37, %v5251_v39, 312  ;;  %v5188_v52 = vtrunc.f32 %v3140_v40  ;;  %v5220_v53 = vtrunc.f32 %v3172_v41  ;;  %v1097_v39 = vld [vmem:[%s12293_s30 + $0x1df8] sm:$0xff] }
 0x2eb   : > { %v5252_v54 = vtrunc.f32 %v3204_v42  ;;  %11650 = vst [vmem:[%s12322_s25 + $0x7c0] sm:$0xff] %v8770_v46  ;;  %v3141_v56 = vmul.f32 0.5, %v1093_v43  ;;  %v3173_v57 = vmul.f32 0.5, %v1125_v44  ;;  %v3205_v58 = vmul.f32 0.5, %v1157_v45  ;;  %v1129_v40 = vld [vmem:[%s12293_s30 + $0x1ef8] sm:$0xff]  ;;  %v1162_v46 = vld [vmem:[%s12293_s30 + $0x2000] sm:$0xff] }
 0x2ec   : > { %v5157_v59 = vtrunc.f32 %v3109_v49  ;;  %v8780_v62 = vpack.c.b8 %v8776_v51, %v8772_v47  ;;  %v8782_v63 = vpack.c.f32.eXmY %v5156_v48, %v5188_v52, 312  ;;  %v3110_v1 = vmul.f32 0.5, %v1062_v50  ;;  %v1161_v41 = vld [vmem:[%s12293_s30 + $0x1ff8] sm:$0xff]  ;;  %v1194_v51 = vld [vmem:[%s12293_s30 + $0x2100] sm:$0xff] }
 0x2ed   : > { %v8786_v0 = vpack.c.f32.eXmY %v5220_v53, %v5252_v54, 312  ;;  %v5189_v3 = vtrunc.f32 %v3141_v56  ;;  %v5221_v4 = vtrunc.f32 %v3173_v57  ;;  %v5253_v5 = vtrunc.f32 %v3205_v58  ;;  %v1226_v56 = vld [vmem:[%s12293_s30 + $0x2200] sm:$0xff] }
 0x2ee   : > { %v3142_v6 = vmul.f32 0.5, %v1094_v55  ;;  %11651 = vst [vmem:[%s12322_s25 + $0x7c8] sm:$0xff] %v8780_v62  ;;  %v3174_v10 = vmul.f32 0.5, %v1126_v60  ;;  %v3206_v11 = vmul.f32 0.5, %v1158_v61  ;;  %v5158_v12 = vtrunc.f32 %v3110_v1  ;;  %v1258_v57 = vld [vmem:[%s12293_s30 + $0x2300] sm:$0xff]  ;;  %v1163_v62 = vld [vmem:[%s12293_s30 + $0x2008] sm:$0xff] }
 0x2ef   : > { %v8790_v9 = vpack.c.b8 %v8786_v0, %v8782_v63  ;;  %v8792_v14 = vpack.c.f32.eXmY %v5157_v59, %v5189_v3, 312  ;;  %v8796_v15 = vpack.c.f32.eXmY %v5221_v4, %v5253_v5, 312  ;;  %v3111_v17 = vmul.f32 0.5, %v1063_v2  ;;  %v1195_v3 = vld [vmem:[%s12293_s30 + $0x2108] sm:$0xff] }
 0x2f0   : > { %v5190_v16 = vtrunc.f32 %v3142_v6  ;;  %v5222_v19 = vtrunc.f32 %v3174_v10  ;;  %v5254_v20 = vtrunc.f32 %v3206_v11  ;;  %v3143_v21 = vmul.f32 0.5, %v1095_v7  ;;  %v1227_v4 = vld [vmem:[%s12293_s30 + $0x2208] sm:$0xff] }
 0x2f1   : > { %11652 = vst [vmem:[%s12322_s25 + $0x7d0] sm:$0xff] %v8790_v9  ;;  %v3175_v22 = vmul.f32 0.5, %v1127_v8  ;;  %v8800_v26 = vpack.c.b8 %v8796_v15, %v8792_v14  ;;  %v3207_v28 = vmul.f32 0.5, %v1159_v13  ;;  %v5159_v29 = vtrunc.f32 %v3111_v17  ;;  %v1259_v9 = vld [vmem:[%s12293_s30 + $0x2308] sm:$0xff]  ;;  %v1164_v14 = vld [vmem:[%s12293_s30 + $0x2010] sm:$0xff] }
 0x2f2   : > { %v8802_v27 = vpack.c.f32.eXmY %v5158_v12, %v5190_v16, 312  ;;  %v8806_v31 = vpack.c.f32.eXmY %v5222_v19, %v5254_v20, 312  ;;  %v5191_v32 = vtrunc.f32 %v3143_v21  ;;  %v3112_v34 = vmul.f32 0.5, %v1064_v18  ;;  %v1196_v19 = vld [vmem:[%s12293_s30 + $0x2110] sm:$0xff] }
 0x2f3   : > { %v5223_v33 = vtrunc.f32 %v3175_v22  ;;  %11653 = vst [vmem:[%s12322_s25 + $0x7d8] sm:$0xff] %v8800_v26  ;;  %v5255_v35 = vtrunc.f32 %v3207_v28  ;;  %v3144_v36 = vmul.f32 0.5, %v1096_v23  ;;  %v3176_v37 = vmul.f32 0.5, %v1128_v24  ;;  %v1228_v20 = vld [vmem:[%s12293_s30 + $0x2210] sm:$0xff]  ;;  %v1165_v26 = vld [vmem:[%s12293_s30 + $0x2018] sm:$0xff] }
 0x2f4   : > { %v3208_v38 = vmul.f32 0.5, %v1160_v25  ;;  %v8810_v42 = vpack.c.b8 %v8806_v31, %v8802_v27  ;;  %v8812_v43 = vpack.c.f32.eXmY %v5159_v29, %v5191_v32, 312  ;;  %v5160_v44 = vtrunc.f32 %v3112_v34  ;;  %v1260_v21 = vld [vmem:[%s12293_s30 + $0x2310] sm:$0xff] }
 0x2f5   : > { %v3113_v45 = vmul.f32 0.5, %v1065_v30  ;;  %v8816_v47 = vpack.c.f32.eXmY %v5223_v33, %v5255_v35, 312  ;;  %v5192_v48 = vtrunc.f32 %v3144_v36  ;;  %v5224_v49 = vtrunc.f32 %v3176_v37  ;;  %v1197_v35 = vld [vmem:[%s12293_s30 + $0x2118] sm:$0xff] }
 0x2f6   : > { %v5256_v50 = vtrunc.f32 %v3208_v38  ;;  %11654 = vst [vmem:[%s12322_s25 + $0x7e0] sm:$0xff] %v8810_v42  ;;  %v3145_v52 = vmul.f32 0.5, %v1097_v39  ;;  %v3177_v53 = vmul.f32 0.5, %v1129_v40  ;;  %v3209_v54 = vmul.f32 0.5, %v1161_v41  ;;  %v1229_v36 = vld [vmem:[%s12293_s30 + $0x2218] sm:$0xff]  ;;  %v1166_v42 = vld [vmem:[%s12293_s30 + $0x2020] sm:$0xff] }
 0x2f7   : > { %v5161_v55 = vtrunc.f32 %v3113_v45  ;;  %v8820_v58 = vpack.c.b8 %v8816_v47, %v8812_v43  ;;  %v8822_v59 = vpack.c.f32.eXmY %v5160_v44, %v5192_v48, 312  ;;  %v3210_v61 = vmul.f32 0.5, %v1162_v46  ;;  %v1261_v37 = vld [vmem:[%s12293_s30 + $0x2318] sm:$0xff]  ;;  %v1198_v47 = vld [vmem:[%s12293_s30 + $0x2120] sm:$0xff] }
 0x2f8   : > { %v8826_v60 = vpack.c.f32.eXmY %v5224_v49, %v5256_v50, 312  ;;  %v5193_v63 = vtrunc.f32 %v3145_v52  ;;  %v5225_v0 = vtrunc.f32 %v3177_v53  ;;  %v5257_v1 = vtrunc.f32 %v3209_v54  ;;  %v1230_v52 = vld [vmem:[%s12293_s30 + $0x2220] sm:$0xff] }
 0x2f9   : > { %v3242_v2 = vmul.f32 0.5, %v1194_v51  ;;  %11655 = vst [vmem:[%s12322_s25 + $0x7e8] sm:$0xff] %v8820_v58  ;;  %v3274_v6 = vmul.f32 0.5, %v1226_v56  ;;  %v3306_v7 = vmul.f32 0.5, %v1258_v57  ;;  %v5258_v8 = vtrunc.f32 %v3210_v61  ;;  %v1262_v53 = vld [vmem:[%s12293_s30 + $0x2320] sm:$0xff]  ;;  %v1167_v58 = vld [vmem:[%s12293_s30 + $0x2028] sm:$0xff] }
 0x2fa   : > { %v8830_v5 = vpack.c.b8 %v8826_v60, %v8822_v59  ;;  %v8832_v10 = vpack.c.f32.eXmY %v5161_v55, %v5193_v63, 312  ;;  %v8836_v11 = vpack.c.f32.eXmY %v5225_v0, %v5257_v1, 312  ;;  %v3211_v13 = vmul.f32 0.5, %v1163_v62  ;;  %v1199_v63 = vld [vmem:[%s12293_s30 + $0x2128] sm:$0xff] }
 0x2fb   : > { %v5290_v12 = vtrunc.f32 %v3242_v2  ;;  %v5322_v15 = vtrunc.f32 %v3274_v6  ;;  %v5354_v16 = vtrunc.f32 %v3306_v7  ;;  %v3243_v17 = vmul.f32 0.5, %v1195_v3  ;;  %v1231_v0 = vld [vmem:[%s12293_s30 + $0x2228] sm:$0xff] }
 0x2fc   : > { %11656 = vst [vmem:[%s12322_s25 + $0x7f0] sm:$0xff] %v8830_v5  ;;  %v3275_v18 = vmul.f32 0.5, %v1227_v4  ;;  %v8840_v22 = vpack.c.b8 %v8836_v11, %v8832_v10  ;;  %v3307_v24 = vmul.f32 0.5, %v1259_v9  ;;  %v5259_v25 = vtrunc.f32 %v3211_v13  ;;  %v1263_v5 = vld [vmem:[%s12293_s30 + $0x2328] sm:$0xff]  ;;  %v1168_v10 = vld [vmem:[%s12293_s30 + $0x2030] sm:$0xff] }
 0x2fd   : > { %v8842_v23 = vpack.c.f32.eXmY %v5258_v8, %v5290_v12, 312  ;;  %v8846_v27 = vpack.c.f32.eXmY %v5322_v15, %v5354_v16, 312  ;;  %v5291_v28 = vtrunc.f32 %v3243_v17  ;;  %v3212_v30 = vmul.f32 0.5, %v1164_v14  ;;  %v1200_v15 = vld [vmem:[%s12293_s30 + $0x2130] sm:$0xff] }
 0x2fe   : > { %v5323_v29 = vtrunc.f32 %v3275_v18  ;;  %11657 = vst [vmem:[%s12322_s25 + $0x7f8] sm:$0xff] %v8840_v22  ;;  %v5355_v31 = vtrunc.f32 %v3307_v24  ;;  %v3244_v32 = vmul.f32 0.5, %v1196_v19  ;;  %v3276_v33 = vmul.f32 0.5, %v1228_v20  ;;  %v1232_v16 = vld [vmem:[%s12293_s30 + $0x2230] sm:$0xff]  ;;  %v1169_v22 = vld [vmem:[%s12293_s30 + $0x2038] sm:$0xff] }
 0x2ff   : > { %v3308_v34 = vmul.f32 0.5, %v1260_v21  ;;  %v8850_v38 = vpack.c.b8 %v8846_v27, %v8842_v23  ;;  %v8852_v39 = vpack.c.f32.eXmY %v5259_v25, %v5291_v28, 312  ;;  %v5260_v40 = vtrunc.f32 %v3212_v30  ;;  %v1264_v17 = vld [vmem:[%s12293_s30 + $0x2330] sm:$0xff] }
 0x300   : > { %v3213_v41 = vmul.f32 0.5, %v1165_v26  ;;  %v8856_v43 = vpack.c.f32.eXmY %v5323_v29, %v5355_v31, 312  ;;  %v5292_v44 = vtrunc.f32 %v3244_v32  ;;  %v5324_v45 = vtrunc.f32 %v3276_v33  ;;  %v1201_v31 = vld [vmem:[%s12293_s30 + $0x2138] sm:$0xff] }
 0x301   : > { %v5356_v46 = vtrunc.f32 %v3308_v34  ;;  %11658 = vst [vmem:[%s12322_s25 + $0x800] sm:$0xff] %v8850_v38  ;;  %v3245_v48 = vmul.f32 0.5, %v1197_v35  ;;  %v3277_v49 = vmul.f32 0.5, %v1229_v36  ;;  %v3309_v50 = vmul.f32 0.5, %v1261_v37  ;;  %v1233_v32 = vld [vmem:[%s12293_s30 + $0x2238] sm:$0xff]  ;;  %v1170_v38 = vld [vmem:[%s12293_s30 + $0x2040] sm:$0xff] }
 0x302   : > { %v5261_v51 = vtrunc.f32 %v3213_v41  ;;  %v8860_v54 = vpack.c.b8 %v8856_v43, %v8852_v39  ;;  %v8862_v55 = vpack.c.f32.eXmY %v5260_v40, %v5292_v44, 312  ;;  %v3214_v57 = vmul.f32 0.5, %v1166_v42  ;;  %v1265_v33 = vld [vmem:[%s12293_s30 + $0x2338] sm:$0xff]  ;;  %v1202_v43 = vld [vmem:[%s12293_s30 + $0x2140] sm:$0xff] }
 0x303   : > { %v8866_v56 = vpack.c.f32.eXmY %v5324_v45, %v5356_v46, 312  ;;  %v5293_v59 = vtrunc.f32 %v3245_v48  ;;  %v5325_v60 = vtrunc.f32 %v3277_v49  ;;  %v5357_v61 = vtrunc.f32 %v3309_v50  ;;  %v1234_v48 = vld [vmem:[%s12293_s30 + $0x2240] sm:$0xff] }
 0x304   : > { %v3246_v62 = vmul.f32 0.5, %v1198_v47  ;;  %11659 = vst [vmem:[%s12322_s25 + $0x808] sm:$0xff] %v8860_v54  ;;  %v3278_v2 = vmul.f32 0.5, %v1230_v52  ;;  %v3310_v3 = vmul.f32 0.5, %v1262_v53  ;;  %v5262_v4 = vtrunc.f32 %v3214_v57  ;;  %v1266_v49 = vld [vmem:[%s12293_s30 + $0x2340] sm:$0xff]  ;;  %v1171_v54 = vld [vmem:[%s12293_s30 + $0x2048] sm:$0xff] }
 0x305   : > { %v8870_v1 = vpack.c.b8 %v8866_v56, %v8862_v55  ;;  %v8872_v6 = vpack.c.f32.eXmY %v5261_v51, %v5293_v59, 312  ;;  %v8876_v7 = vpack.c.f32.eXmY %v5325_v60, %v5357_v61, 312  ;;  %v3215_v9 = vmul.f32 0.5, %v1167_v58  ;;  %v1203_v59 = vld [vmem:[%s12293_s30 + $0x2148] sm:$0xff] }
 0x306   : > { %v5294_v8 = vtrunc.f32 %v3246_v62  ;;  %v5326_v11 = vtrunc.f32 %v3278_v2  ;;  %v5358_v12 = vtrunc.f32 %v3310_v3  ;;  %v3247_v13 = vmul.f32 0.5, %v1199_v63  ;;  %v1235_v60 = vld [vmem:[%s12293_s30 + $0x2248] sm:$0xff] }
 0x307   : > { %11660 = vst [vmem:[%s12322_s25 + $0x810] sm:$0xff] %v8870_v1  ;;  %v3279_v14 = vmul.f32 0.5, %v1231_v0  ;;  %v8880_v18 = vpack.c.b8 %v8876_v7, %v8872_v6  ;;  %v3311_v20 = vmul.f32 0.5, %v1263_v5  ;;  %v5263_v21 = vtrunc.f32 %v3215_v9  ;;  %v1267_v1 = vld [vmem:[%s12293_s30 + $0x2348] sm:$0xff]  ;;  %v1172_v6 = vld [vmem:[%s12293_s30 + $0x2050] sm:$0xff] }
 0x308   : > { %v8882_v19 = vpack.c.f32.eXmY %v5262_v4, %v5294_v8, 312  ;;  %v8886_v23 = vpack.c.f32.eXmY %v5326_v11, %v5358_v12, 312  ;;  %v5295_v24 = vtrunc.f32 %v3247_v13  ;;  %v3216_v26 = vmul.f32 0.5, %v1168_v10  ;;  %v1204_v11 = vld [vmem:[%s12293_s30 + $0x2150] sm:$0xff] }
 0x309   : > { %v5327_v25 = vtrunc.f32 %v3279_v14  ;;  %11661 = vst [vmem:[%s12322_s25 + $0x818] sm:$0xff] %v8880_v18  ;;  %v5359_v27 = vtrunc.f32 %v3311_v20  ;;  %v3248_v28 = vmul.f32 0.5, %v1200_v15  ;;  %v3280_v29 = vmul.f32 0.5, %v1232_v16  ;;  %v1236_v12 = vld [vmem:[%s12293_s30 + $0x2250] sm:$0xff]  ;;  %v1173_v18 = vld [vmem:[%s12293_s30 + $0x2058] sm:$0xff] }
 0x30a   : > { %v3312_v30 = vmul.f32 0.5, %v1264_v17  ;;  %v8890_v34 = vpack.c.b8 %v8886_v23, %v8882_v19  ;;  %v8892_v35 = vpack.c.f32.eXmY %v5263_v21, %v5295_v24, 312  ;;  %v5264_v36 = vtrunc.f32 %v3216_v26  ;;  %v1268_v13 = vld [vmem:[%s12293_s30 + $0x2350] sm:$0xff] }
 0x30b   : > { %v3217_v37 = vmul.f32 0.5, %v1169_v22  ;;  %v8896_v39 = vpack.c.f32.eXmY %v5327_v25, %v5359_v27, 312  ;;  %v5296_v40 = vtrunc.f32 %v3248_v28  ;;  %v5328_v41 = vtrunc.f32 %v3280_v29  ;;  %v1205_v27 = vld [vmem:[%s12293_s30 + $0x2158] sm:$0xff] }
 0x30c   : > { %v5360_v42 = vtrunc.f32 %v3312_v30  ;;  %11662 = vst [vmem:[%s12322_s25 + $0x820] sm:$0xff] %v8890_v34  ;;  %v3249_v44 = vmul.f32 0.5, %v1201_v31  ;;  %v3281_v45 = vmul.f32 0.5, %v1233_v32  ;;  %v3313_v46 = vmul.f32 0.5, %v1265_v33  ;;  %v1237_v28 = vld [vmem:[%s12293_s30 + $0x2258] sm:$0xff]  ;;  %v1174_v34 = vld [vmem:[%s12293_s30 + $0x2060] sm:$0xff] }
 0x30d   : > { %v5265_v47 = vtrunc.f32 %v3217_v37  ;;  %v8900_v50 = vpack.c.b8 %v8896_v39, %v8892_v35  ;;  %v8902_v51 = vpack.c.f32.eXmY %v5264_v36, %v5296_v40, 312  ;;  %v3218_v53 = vmul.f32 0.5, %v1170_v38  ;;  %v1269_v29 = vld [vmem:[%s12293_s30 + $0x2358] sm:$0xff]  ;;  %v1206_v39 = vld [vmem:[%s12293_s30 + $0x2160] sm:$0xff] }
 0x30e   : > { %v8906_v52 = vpack.c.f32.eXmY %v5328_v41, %v5360_v42, 312  ;;  %v5297_v55 = vtrunc.f32 %v3249_v44  ;;  %v5329_v56 = vtrunc.f32 %v3281_v45  ;;  %v5361_v57 = vtrunc.f32 %v3313_v46  ;;  %v1238_v44 = vld [vmem:[%s12293_s30 + $0x2260] sm:$0xff] }
 0x30f   : > { %v3250_v58 = vmul.f32 0.5, %v1202_v43  ;;  %11663 = vst [vmem:[%s12322_s25 + $0x828] sm:$0xff] %v8900_v50  ;;  %v3282_v62 = vmul.f32 0.5, %v1234_v48  ;;  %v3314_v63 = vmul.f32 0.5, %v1266_v49  ;;  %v5266_v0 = vtrunc.f32 %v3218_v53  ;;  %v1270_v45 = vld [vmem:[%s12293_s30 + $0x2360] sm:$0xff]  ;;  %v1175_v50 = vld [vmem:[%s12293_s30 + $0x2068] sm:$0xff] }
 0x310   : > { %v8910_v61 = vpack.c.b8 %v8906_v52, %v8902_v51  ;;  %v8912_v2 = vpack.c.f32.eXmY %v5265_v47, %v5297_v55, 312  ;;  %v8916_v3 = vpack.c.f32.eXmY %v5329_v56, %v5361_v57, 312  ;;  %v3219_v5 = vmul.f32 0.5, %v1171_v54  ;;  %v1207_v55 = vld [vmem:[%s12293_s30 + $0x2168] sm:$0xff] }
 0x311   : > { %v5298_v4 = vtrunc.f32 %v3250_v58  ;;  %v5330_v7 = vtrunc.f32 %v3282_v62  ;;  %v5362_v8 = vtrunc.f32 %v3314_v63  ;;  %v3251_v9 = vmul.f32 0.5, %v1203_v59  ;;  %v1239_v56 = vld [vmem:[%s12293_s30 + $0x2268] sm:$0xff] }
 0x312   : > { %11664 = vst [vmem:[%s12322_s25 + $0x830] sm:$0xff] %v8910_v61  ;;  %v3283_v10 = vmul.f32 0.5, %v1235_v60  ;;  %v8920_v14 = vpack.c.b8 %v8916_v3, %v8912_v2  ;;  %v3315_v16 = vmul.f32 0.5, %v1267_v1  ;;  %v5267_v17 = vtrunc.f32 %v3219_v5  ;;  %v1271_v61 = vld [vmem:[%s12293_s30 + $0x2368] sm:$0xff]  ;;  %v1176_v2 = vld [vmem:[%s12293_s30 + $0x2070] sm:$0xff] }
 0x313   : > { %v8922_v15 = vpack.c.f32.eXmY %v5266_v0, %v5298_v4, 312  ;;  %v8926_v19 = vpack.c.f32.eXmY %v5330_v7, %v5362_v8, 312  ;;  %v5299_v20 = vtrunc.f32 %v3251_v9  ;;  %v3220_v22 = vmul.f32 0.5, %v1172_v6  ;;  %v1208_v7 = vld [vmem:[%s12293_s30 + $0x2170] sm:$0xff] }
 0x314   : > { %v5331_v21 = vtrunc.f32 %v3283_v10  ;;  %11665 = vst [vmem:[%s12322_s25 + $0x838] sm:$0xff] %v8920_v14  ;;  %v5363_v23 = vtrunc.f32 %v3315_v16  ;;  %v3252_v24 = vmul.f32 0.5, %v1204_v11  ;;  %v3284_v25 = vmul.f32 0.5, %v1236_v12  ;;  %v1240_v8 = vld [vmem:[%s12293_s30 + $0x2270] sm:$0xff]  ;;  %v1177_v14 = vld [vmem:[%s12293_s30 + $0x2078] sm:$0xff] }
 0x315   : > { %v3316_v26 = vmul.f32 0.5, %v1268_v13  ;;  %v8930_v30 = vpack.c.b8 %v8926_v19, %v8922_v15  ;;  %v8932_v31 = vpack.c.f32.eXmY %v5267_v17, %v5299_v20, 312  ;;  %v5268_v32 = vtrunc.f32 %v3220_v22  ;;  %v1272_v9 = vld [vmem:[%s12293_s30 + $0x2370] sm:$0xff] }
 0x316   : > { %v3221_v33 = vmul.f32 0.5, %v1173_v18  ;;  %v8936_v35 = vpack.c.f32.eXmY %v5331_v21, %v5363_v23, 312  ;;  %v5300_v36 = vtrunc.f32 %v3252_v24  ;;  %v5332_v37 = vtrunc.f32 %v3284_v25  ;;  %v1209_v23 = vld [vmem:[%s12293_s30 + $0x2178] sm:$0xff] }
 0x317   : > { %v5364_v38 = vtrunc.f32 %v3316_v26  ;;  %11666 = vst [vmem:[%s12322_s25 + $0x840] sm:$0xff] %v8930_v30  ;;  %v3253_v40 = vmul.f32 0.5, %v1205_v27  ;;  %v3285_v41 = vmul.f32 0.5, %v1237_v28  ;;  %v3317_v42 = vmul.f32 0.5, %v1269_v29  ;;  %v1241_v24 = vld [vmem:[%s12293_s30 + $0x2278] sm:$0xff]  ;;  %v1178_v30 = vld [vmem:[%s12293_s30 + $0x2080] sm:$0xff] }
 0x318   : > { %v5269_v43 = vtrunc.f32 %v3221_v33  ;;  %v8940_v46 = vpack.c.b8 %v8936_v35, %v8932_v31  ;;  %v8942_v47 = vpack.c.f32.eXmY %v5268_v32, %v5300_v36, 312  ;;  %v3222_v49 = vmul.f32 0.5, %v1174_v34  ;;  %v1273_v25 = vld [vmem:[%s12293_s30 + $0x2378] sm:$0xff]  ;;  %v1210_v35 = vld [vmem:[%s12293_s30 + $0x2180] sm:$0xff] }
 0x319   : > { %v8946_v48 = vpack.c.f32.eXmY %v5332_v37, %v5364_v38, 312  ;;  %v5301_v51 = vtrunc.f32 %v3253_v40  ;;  %v5333_v52 = vtrunc.f32 %v3285_v41  ;;  %v5365_v53 = vtrunc.f32 %v3317_v42  ;;  %v1242_v40 = vld [vmem:[%s12293_s30 + $0x2280] sm:$0xff] }
 0x31a   : > { %v3254_v54 = vmul.f32 0.5, %v1206_v39  ;;  %11667 = vst [vmem:[%s12322_s25 + $0x848] sm:$0xff] %v8940_v46  ;;  %v3286_v58 = vmul.f32 0.5, %v1238_v44  ;;  %v3318_v59 = vmul.f32 0.5, %v1270_v45  ;;  %v5270_v60 = vtrunc.f32 %v3222_v49  ;;  %v1274_v41 = vld [vmem:[%s12293_s30 + $0x2380] sm:$0xff]  ;;  %v1179_v46 = vld [vmem:[%s12293_s30 + $0x2088] sm:$0xff] }
 0x31b   : > { %v8950_v57 = vpack.c.b8 %v8946_v48, %v8942_v47  ;;  %v8952_v62 = vpack.c.f32.eXmY %v5269_v43, %v5301_v51, 312  ;;  %v8956_v63 = vpack.c.f32.eXmY %v5333_v52, %v5365_v53, 312  ;;  %v3223_v1 = vmul.f32 0.5, %v1175_v50  ;;  %v1211_v51 = vld [vmem:[%s12293_s30 + $0x2188] sm:$0xff] }
 0x31c   : > { %v5302_v0 = vtrunc.f32 %v3254_v54  ;;  %v5334_v3 = vtrunc.f32 %v3286_v58  ;;  %v5366_v4 = vtrunc.f32 %v3318_v59  ;;  %v3255_v5 = vmul.f32 0.5, %v1207_v55  ;;  %v1243_v52 = vld [vmem:[%s12293_s30 + $0x2288] sm:$0xff] }
 0x31d   : > { %11668 = vst [vmem:[%s12322_s25 + $0x850] sm:$0xff] %v8950_v57  ;;  %v3287_v6 = vmul.f32 0.5, %v1239_v56  ;;  %v8960_v10 = vpack.c.b8 %v8956_v63, %v8952_v62  ;;  %v3319_v12 = vmul.f32 0.5, %v1271_v61  ;;  %v5271_v13 = vtrunc.f32 %v3223_v1  ;;  %v1275_v57 = vld [vmem:[%s12293_s30 + $0x2388] sm:$0xff]  ;;  %v1180_v62 = vld [vmem:[%s12293_s30 + $0x2090] sm:$0xff] }
 0x31e   : > { %v8962_v11 = vpack.c.f32.eXmY %v5270_v60, %v5302_v0, 312  ;;  %v8966_v15 = vpack.c.f32.eXmY %v5334_v3, %v5366_v4, 312  ;;  %v5303_v16 = vtrunc.f32 %v3255_v5  ;;  %v3224_v18 = vmul.f32 0.5, %v1176_v2  ;;  %v1212_v3 = vld [vmem:[%s12293_s30 + $0x2190] sm:$0xff] }
 0x31f   : > { %v5335_v17 = vtrunc.f32 %v3287_v6  ;;  %11669 = vst [vmem:[%s12322_s25 + $0x858] sm:$0xff] %v8960_v10  ;;  %v5367_v19 = vtrunc.f32 %v3319_v12  ;;  %v3256_v20 = vmul.f32 0.5, %v1208_v7  ;;  %v3288_v21 = vmul.f32 0.5, %v1240_v8  ;;  %v1244_v4 = vld [vmem:[%s12293_s30 + $0x2290] sm:$0xff]  ;;  %v1181_v10 = vld [vmem:[%s12293_s30 + $0x2098] sm:$0xff] }
 0x320   : > { %v3320_v22 = vmul.f32 0.5, %v1272_v9  ;;  %v8970_v26 = vpack.c.b8 %v8966_v15, %v8962_v11  ;;  %v8972_v27 = vpack.c.f32.eXmY %v5271_v13, %v5303_v16, 312  ;;  %v5272_v28 = vtrunc.f32 %v3224_v18  ;;  %v1276_v5 = vld [vmem:[%s12293_s30 + $0x2390] sm:$0xff] }
 0x321   : > { %v3225_v29 = vmul.f32 0.5, %v1177_v14  ;;  %v8976_v31 = vpack.c.f32.eXmY %v5335_v17, %v5367_v19, 312  ;;  %v5304_v32 = vtrunc.f32 %v3256_v20  ;;  %v5336_v33 = vtrunc.f32 %v3288_v21  ;;  %v1213_v19 = vld [vmem:[%s12293_s30 + $0x2198] sm:$0xff] }
 0x322   : > { %v5368_v34 = vtrunc.f32 %v3320_v22  ;;  %11670 = vst [vmem:[%s12322_s25 + $0x860] sm:$0xff] %v8970_v26  ;;  %v3257_v36 = vmul.f32 0.5, %v1209_v23  ;;  %v3289_v37 = vmul.f32 0.5, %v1241_v24  ;;  %v3321_v38 = vmul.f32 0.5, %v1273_v25  ;;  %v1245_v20 = vld [vmem:[%s12293_s30 + $0x2298] sm:$0xff]  ;;  %v1182_v26 = vld [vmem:[%s12293_s30 + $0x20a0] sm:$0xff] }
 0x323   : > { %v5273_v39 = vtrunc.f32 %v3225_v29  ;;  %v8980_v42 = vpack.c.b8 %v8976_v31, %v8972_v27  ;;  %v8982_v43 = vpack.c.f32.eXmY %v5272_v28, %v5304_v32, 312  ;;  %v3226_v45 = vmul.f32 0.5, %v1178_v30  ;;  %v1277_v21 = vld [vmem:[%s12293_s30 + $0x2398] sm:$0xff]  ;;  %v1214_v31 = vld [vmem:[%s12293_s30 + $0x21a0] sm:$0xff] }
 0x324   : > { %v8986_v44 = vpack.c.f32.eXmY %v5336_v33, %v5368_v34, 312  ;;  %v5305_v47 = vtrunc.f32 %v3257_v36  ;;  %v5337_v48 = vtrunc.f32 %v3289_v37  ;;  %v5369_v49 = vtrunc.f32 %v3321_v38  ;;  %v1246_v36 = vld [vmem:[%s12293_s30 + $0x22a0] sm:$0xff] }
 0x325   : > { %v3258_v50 = vmul.f32 0.5, %v1210_v35  ;;  %11671 = vst [vmem:[%s12322_s25 + $0x868] sm:$0xff] %v8980_v42  ;;  %v3290_v54 = vmul.f32 0.5, %v1242_v40  ;;  %v3322_v55 = vmul.f32 0.5, %v1274_v41  ;;  %v5274_v56 = vtrunc.f32 %v3226_v45  ;;  %v1278_v37 = vld [vmem:[%s12293_s30 + $0x23a0] sm:$0xff]  ;;  %v1183_v42 = vld [vmem:[%s12293_s30 + $0x20a8] sm:$0xff] }
 0x326   : > { %v8990_v53 = vpack.c.b8 %v8986_v44, %v8982_v43  ;;  %v8992_v58 = vpack.c.f32.eXmY %v5273_v39, %v5305_v47, 312  ;;  %v8996_v59 = vpack.c.f32.eXmY %v5337_v48, %v5369_v49, 312  ;;  %v3227_v61 = vmul.f32 0.5, %v1179_v46  ;;  %v1215_v47 = vld [vmem:[%s12293_s30 + $0x21a8] sm:$0xff] }
 0x327   : > { %v5306_v60 = vtrunc.f32 %v3258_v50  ;;  %v5338_v63 = vtrunc.f32 %v3290_v54  ;;  %v5370_v0 = vtrunc.f32 %v3322_v55  ;;  %v3259_v1 = vmul.f32 0.5, %v1211_v51  ;;  %v1247_v48 = vld [vmem:[%s12293_s30 + $0x22a8] sm:$0xff] }
 0x328   : > { %11672 = vst [vmem:[%s12322_s25 + $0x870] sm:$0xff] %v8990_v53  ;;  %v3291_v2 = vmul.f32 0.5, %v1243_v52  ;;  %v9000_v6 = vpack.c.b8 %v8996_v59, %v8992_v58  ;;  %v3323_v8 = vmul.f32 0.5, %v1275_v57  ;;  %v5275_v9 = vtrunc.f32 %v3227_v61  ;;  %v1279_v53 = vld [vmem:[%s12293_s30 + $0x23a8] sm:$0xff]  ;;  %v1184_v58 = vld [vmem:[%s12293_s30 + $0x20b0] sm:$0xff] }
 0x329   : > { %v9002_v7 = vpack.c.f32.eXmY %v5274_v56, %v5306_v60, 312  ;;  %v9006_v11 = vpack.c.f32.eXmY %v5338_v63, %v5370_v0, 312  ;;  %v5307_v12 = vtrunc.f32 %v3259_v1  ;;  %v3228_v14 = vmul.f32 0.5, %v1180_v62  ;;  %v1216_v63 = vld [vmem:[%s12293_s30 + $0x21b0] sm:$0xff] }
 0x32a   : > { %v5339_v13 = vtrunc.f32 %v3291_v2  ;;  %11673 = vst [vmem:[%s12322_s25 + $0x878] sm:$0xff] %v9000_v6  ;;  %v5371_v15 = vtrunc.f32 %v3323_v8  ;;  %v3260_v16 = vmul.f32 0.5, %v1212_v3  ;;  %v3292_v17 = vmul.f32 0.5, %v1244_v4  ;;  %v1248_v0 = vld [vmem:[%s12293_s30 + $0x22b0] sm:$0xff]  ;;  %v1185_v6 = vld [vmem:[%s12293_s30 + $0x20b8] sm:$0xff] }
 0x32b   : > { %v3324_v18 = vmul.f32 0.5, %v1276_v5  ;;  %v9010_v22 = vpack.c.b8 %v9006_v11, %v9002_v7  ;;  %v9012_v23 = vpack.c.f32.eXmY %v5275_v9, %v5307_v12, 312  ;;  %v5276_v24 = vtrunc.f32 %v3228_v14  ;;  %v1280_v1 = vld [vmem:[%s12293_s30 + $0x23b0] sm:$0xff] }
 0x32c   : > { %v3229_v25 = vmul.f32 0.5, %v1181_v10  ;;  %v9016_v27 = vpack.c.f32.eXmY %v5339_v13, %v5371_v15, 312  ;;  %v5308_v28 = vtrunc.f32 %v3260_v16  ;;  %v5340_v29 = vtrunc.f32 %v3292_v17  ;;  %v1217_v15 = vld [vmem:[%s12293_s30 + $0x21b8] sm:$0xff] }
 0x32d   : > { %v5372_v30 = vtrunc.f32 %v3324_v18  ;;  %11674 = vst [vmem:[%s12322_s25 + $0x880] sm:$0xff] %v9010_v22  ;;  %v3261_v32 = vmul.f32 0.5, %v1213_v19  ;;  %v3293_v33 = vmul.f32 0.5, %v1245_v20  ;;  %v3325_v34 = vmul.f32 0.5, %v1277_v21  ;;  %v1249_v16 = vld [vmem:[%s12293_s30 + $0x22b8] sm:$0xff]  ;;  %v1186_v22 = vld [vmem:[%s12293_s30 + $0x20c0] sm:$0xff] }
 0x32e   : > { %v5277_v35 = vtrunc.f32 %v3229_v25  ;;  %v9020_v38 = vpack.c.b8 %v9016_v27, %v9012_v23  ;;  %v9022_v39 = vpack.c.f32.eXmY %v5276_v24, %v5308_v28, 312  ;;  %v3230_v41 = vmul.f32 0.5, %v1182_v26  ;;  %v1281_v17 = vld [vmem:[%s12293_s30 + $0x23b8] sm:$0xff]  ;;  %v1218_v27 = vld [vmem:[%s12293_s30 + $0x21c0] sm:$0xff] }
 0x32f   : > { %v9026_v40 = vpack.c.f32.eXmY %v5340_v29, %v5372_v30, 312  ;;  %v5309_v43 = vtrunc.f32 %v3261_v32  ;;  %v5341_v44 = vtrunc.f32 %v3293_v33  ;;  %v5373_v45 = vtrunc.f32 %v3325_v34  ;;  %v1250_v32 = vld [vmem:[%s12293_s30 + $0x22c0] sm:$0xff] }
 0x330   : > { %v3262_v46 = vmul.f32 0.5, %v1214_v31  ;;  %11675 = vst [vmem:[%s12322_s25 + $0x888] sm:$0xff] %v9020_v38  ;;  %v3294_v50 = vmul.f32 0.5, %v1246_v36  ;;  %v3326_v51 = vmul.f32 0.5, %v1278_v37  ;;  %v5278_v52 = vtrunc.f32 %v3230_v41  ;;  %v1282_v33 = vld [vmem:[%s12293_s30 + $0x23c0] sm:$0xff]  ;;  %v1187_v38 = vld [vmem:[%s12293_s30 + $0x20c8] sm:$0xff] }
 0x331   : > { %v9030_v49 = vpack.c.b8 %v9026_v40, %v9022_v39  ;;  %v9032_v54 = vpack.c.f32.eXmY %v5277_v35, %v5309_v43, 312  ;;  %v9036_v55 = vpack.c.f32.eXmY %v5341_v44, %v5373_v45, 312  ;;  %v3231_v57 = vmul.f32 0.5, %v1183_v42  ;;  %v1219_v43 = vld [vmem:[%s12293_s30 + $0x21c8] sm:$0xff] }
 0x332   : > { %v5310_v56 = vtrunc.f32 %v3262_v46  ;;  %v5342_v59 = vtrunc.f32 %v3294_v50  ;;  %v5374_v60 = vtrunc.f32 %v3326_v51  ;;  %v3263_v61 = vmul.f32 0.5, %v1215_v47  ;;  %v1251_v44 = vld [vmem:[%s12293_s30 + $0x22c8] sm:$0xff] }
 0x333   : > { %11676 = vst [vmem:[%s12322_s25 + $0x890] sm:$0xff] %v9030_v49  ;;  %v3295_v62 = vmul.f32 0.5, %v1247_v48  ;;  %v9040_v2 = vpack.c.b8 %v9036_v55, %v9032_v54  ;;  %v3327_v4 = vmul.f32 0.5, %v1279_v53  ;;  %v5279_v5 = vtrunc.f32 %v3231_v57  ;;  %v1283_v49 = vld [vmem:[%s12293_s30 + $0x23c8] sm:$0xff]  ;;  %v1188_v54 = vld [vmem:[%s12293_s30 + $0x20d0] sm:$0xff] }
 0x334   : > { %v9042_v3 = vpack.c.f32.eXmY %v5278_v52, %v5310_v56, 312  ;;  %v9046_v7 = vpack.c.f32.eXmY %v5342_v59, %v5374_v60, 312  ;;  %v5311_v8 = vtrunc.f32 %v3263_v61  ;;  %v3232_v10 = vmul.f32 0.5, %v1184_v58  ;;  %v1220_v59 = vld [vmem:[%s12293_s30 + $0x21d0] sm:$0xff] }
 0x335   : > { %v5343_v9 = vtrunc.f32 %v3295_v62  ;;  %11677 = vst [vmem:[%s12322_s25 + $0x898] sm:$0xff] %v9040_v2  ;;  %v5375_v11 = vtrunc.f32 %v3327_v4  ;;  %v3264_v12 = vmul.f32 0.5, %v1216_v63  ;;  %v3296_v13 = vmul.f32 0.5, %v1248_v0  ;;  %v1252_v60 = vld [vmem:[%s12293_s30 + $0x22d0] sm:$0xff]  ;;  %v1189_v2 = vld [vmem:[%s12293_s30 + $0x20d8] sm:$0xff] }
 0x336   : > { %v3328_v14 = vmul.f32 0.5, %v1280_v1  ;;  %v9050_v18 = vpack.c.b8 %v9046_v7, %v9042_v3  ;;  %v9052_v19 = vpack.c.f32.eXmY %v5279_v5, %v5311_v8, 312  ;;  %v5280_v20 = vtrunc.f32 %v3232_v10  ;;  %v1284_v61 = vld [vmem:[%s12293_s30 + $0x23d0] sm:$0xff] }
 0x337   : > { %v3233_v21 = vmul.f32 0.5, %v1185_v6  ;;  %v9056_v23 = vpack.c.f32.eXmY %v5343_v9, %v5375_v11, 312  ;;  %v5312_v24 = vtrunc.f32 %v3264_v12  ;;  %v5344_v25 = vtrunc.f32 %v3296_v13  ;;  %v1221_v11 = vld [vmem:[%s12293_s30 + $0x21d8] sm:$0xff] }
 0x338   : > { %v5376_v26 = vtrunc.f32 %v3328_v14  ;;  %11678 = vst [vmem:[%s12322_s25 + $0x8a0] sm:$0xff] %v9050_v18  ;;  %v3265_v28 = vmul.f32 0.5, %v1217_v15  ;;  %v3297_v29 = vmul.f32 0.5, %v1249_v16  ;;  %v3329_v30 = vmul.f32 0.5, %v1281_v17  ;;  %v1253_v12 = vld [vmem:[%s12293_s30 + $0x22d8] sm:$0xff]  ;;  %v1190_v18 = vld [vmem:[%s12293_s30 + $0x20e0] sm:$0xff] }
 0x339   : > { %v5281_v31 = vtrunc.f32 %v3233_v21  ;;  %v9060_v34 = vpack.c.b8 %v9056_v23, %v9052_v19  ;;  %v9062_v35 = vpack.c.f32.eXmY %v5280_v20, %v5312_v24, 312  ;;  %v3234_v37 = vmul.f32 0.5, %v1186_v22  ;;  %v1285_v13 = vld [vmem:[%s12293_s30 + $0x23d8] sm:$0xff]  ;;  %v1222_v23 = vld [vmem:[%s12293_s30 + $0x21e0] sm:$0xff] }
 0x33a   : > { %v9066_v36 = vpack.c.f32.eXmY %v5344_v25, %v5376_v26, 312  ;;  %v5313_v39 = vtrunc.f32 %v3265_v28  ;;  %v5345_v40 = vtrunc.f32 %v3297_v29  ;;  %v5377_v41 = vtrunc.f32 %v3329_v30  ;;  %v1254_v28 = vld [vmem:[%s12293_s30 + $0x22e0] sm:$0xff] }
 0x33b   : > { %v3266_v42 = vmul.f32 0.5, %v1218_v27  ;;  %11679 = vst [vmem:[%s12322_s25 + $0x8a8] sm:$0xff] %v9060_v34  ;;  %v3298_v46 = vmul.f32 0.5, %v1250_v32  ;;  %v3330_v47 = vmul.f32 0.5, %v1282_v33  ;;  %v5282_v48 = vtrunc.f32 %v3234_v37  ;;  %v1286_v29 = vld [vmem:[%s12293_s30 + $0x23e0] sm:$0xff]  ;;  %v1191_v34 = vld [vmem:[%s12293_s30 + $0x20e8] sm:$0xff] }
 0x33c   : > { %v9070_v45 = vpack.c.b8 %v9066_v36, %v9062_v35  ;;  %v9072_v50 = vpack.c.f32.eXmY %v5281_v31, %v5313_v39, 312  ;;  %v9076_v51 = vpack.c.f32.eXmY %v5345_v40, %v5377_v41, 312  ;;  %v3235_v53 = vmul.f32 0.5, %v1187_v38  ;;  %v1223_v39 = vld [vmem:[%s12293_s30 + $0x21e8] sm:$0xff] }
 0x33d   : > { %v5314_v52 = vtrunc.f32 %v3266_v42  ;;  %v5346_v55 = vtrunc.f32 %v3298_v46  ;;  %v5378_v56 = vtrunc.f32 %v3330_v47  ;;  %v3267_v57 = vmul.f32 0.5, %v1219_v43  ;;  %v1255_v40 = vld [vmem:[%s12293_s30 + $0x22e8] sm:$0xff] }
 0x33e   : > { %11680 = vst [vmem:[%s12322_s25 + $0x8b0] sm:$0xff] %v9070_v45  ;;  %v3299_v58 = vmul.f32 0.5, %v1251_v44  ;;  %v9080_v62 = vpack.c.b8 %v9076_v51, %v9072_v50  ;;  %v3331_v0 = vmul.f32 0.5, %v1283_v49  ;;  %v5283_v1 = vtrunc.f32 %v3235_v53  ;;  %v1287_v45 = vld [vmem:[%s12293_s30 + $0x23e8] sm:$0xff]  ;;  %v1192_v50 = vld [vmem:[%s12293_s30 + $0x20f0] sm:$0xff] }
 0x33f   : > { %v9082_v63 = vpack.c.f32.eXmY %v5282_v48, %v5314_v52, 312  ;;  %v9086_v3 = vpack.c.f32.eXmY %v5346_v55, %v5378_v56, 312  ;;  %v5315_v4 = vtrunc.f32 %v3267_v57  ;;  %v3236_v6 = vmul.f32 0.5, %v1188_v54  ;;  %v1224_v55 = vld [vmem:[%s12293_s30 + $0x21f0] sm:$0xff] }
 0x340   : > { %v5347_v5 = vtrunc.f32 %v3299_v58  ;;  %11681 = vst [vmem:[%s12322_s25 + $0x8b8] sm:$0xff] %v9080_v62  ;;  %v5379_v7 = vtrunc.f32 %v3331_v0  ;;  %v3268_v8 = vmul.f32 0.5, %v1220_v59  ;;  %v3300_v9 = vmul.f32 0.5, %v1252_v60  ;;  %v1256_v56 = vld [vmem:[%s12293_s30 + $0x22f0] sm:$0xff]  ;;  %v1193_v62 = vld [vmem:[%s12293_s30 + $0x20f8] sm:$0xff] }
 0x341   : > { %v3332_v10 = vmul.f32 0.5, %v1284_v61  ;;  %v9090_v14 = vpack.c.b8 %v9086_v3, %v9082_v63  ;;  %v9092_v15 = vpack.c.f32.eXmY %v5283_v1, %v5315_v4, 312  ;;  %v5284_v16 = vtrunc.f32 %v3236_v6  ;;  %v1288_v57 = vld [vmem:[%s12293_s30 + $0x23f0] sm:$0xff] }
 0x342   : > { %v3237_v17 = vmul.f32 0.5, %v1189_v2  ;;  %v9096_v19 = vpack.c.f32.eXmY %v5347_v5, %v5379_v7, 312  ;;  %v5316_v20 = vtrunc.f32 %v3268_v8  ;;  %v5348_v21 = vtrunc.f32 %v3300_v9  ;;  %v1225_v7 = vld [vmem:[%s12293_s30 + $0x21f8] sm:$0xff] }
 0x343   : > { %v5380_v22 = vtrunc.f32 %v3332_v10  ;;  %11682 = vst [vmem:[%s12322_s25 + $0x8c0] sm:$0xff] %v9090_v14  ;;  %v3269_v24 = vmul.f32 0.5, %v1221_v11  ;;  %v3301_v25 = vmul.f32 0.5, %v1253_v12  ;;  %v3333_v26 = vmul.f32 0.5, %v1285_v13  ;;  %v1257_v8 = vld [vmem:[%s12293_s30 + $0x22f8] sm:$0xff]  ;;  %v1290_v14 = vld [vmem:[%s12293_s30 + $0x2400] sm:$0xff] }
 0x344   : > { %v5285_v27 = vtrunc.f32 %v3237_v17  ;;  %v9100_v30 = vpack.c.b8 %v9096_v19, %v9092_v15  ;;  %v9102_v31 = vpack.c.f32.eXmY %v5284_v16, %v5316_v20, 312  ;;  %v3238_v33 = vmul.f32 0.5, %v1190_v18  ;;  %v1289_v9 = vld [vmem:[%s12293_s30 + $0x23f8] sm:$0xff]  ;;  %v1322_v19 = vld [vmem:[%s12293_s30 + $0x2500] sm:$0xff] }
 0x345   : > { %v9106_v32 = vpack.c.f32.eXmY %v5348_v21, %v5380_v22, 312  ;;  %v5317_v35 = vtrunc.f32 %v3269_v24  ;;  %v5349_v36 = vtrunc.f32 %v3301_v25  ;;  %v5381_v37 = vtrunc.f32 %v3333_v26  ;;  %v1354_v24 = vld [vmem:[%s12293_s30 + $0x2600] sm:$0xff] }
 0x346   : > { %v3270_v38 = vmul.f32 0.5, %v1222_v23  ;;  %11683 = vst [vmem:[%s12322_s25 + $0x8c8] sm:$0xff] %v9100_v30  ;;  %v3302_v42 = vmul.f32 0.5, %v1254_v28  ;;  %v3334_v43 = vmul.f32 0.5, %v1286_v29  ;;  %v5286_v44 = vtrunc.f32 %v3238_v33  ;;  %v1386_v25 = vld [vmem:[%s12293_s30 + $0x2700] sm:$0xff]  ;;  %v1291_v30 = vld [vmem:[%s12293_s30 + $0x2408] sm:$0xff] }
 0x347   : > { %v9110_v41 = vpack.c.b8 %v9106_v32, %v9102_v31  ;;  %v9112_v46 = vpack.c.f32.eXmY %v5285_v27, %v5317_v35, 312  ;;  %v9116_v47 = vpack.c.f32.eXmY %v5349_v36, %v5381_v37, 312  ;;  %v3239_v49 = vmul.f32 0.5, %v1191_v34  ;;  %v1323_v35 = vld [vmem:[%s12293_s30 + $0x2508] sm:$0xff] }
 0x348   : > { %v5318_v48 = vtrunc.f32 %v3270_v38  ;;  %v5350_v51 = vtrunc.f32 %v3302_v42  ;;  %v5382_v52 = vtrunc.f32 %v3334_v43  ;;  %v3271_v53 = vmul.f32 0.5, %v1223_v39  ;;  %v1355_v36 = vld [vmem:[%s12293_s30 + $0x2608] sm:$0xff] }
 0x349   : > { %11684 = vst [vmem:[%s12322_s25 + $0x8d0] sm:$0xff] %v9110_v41  ;;  %v3303_v54 = vmul.f32 0.5, %v1255_v40  ;;  %v9120_v58 = vpack.c.b8 %v9116_v47, %v9112_v46  ;;  %v3335_v60 = vmul.f32 0.5, %v1287_v45  ;;  %v5287_v61 = vtrunc.f32 %v3239_v49  ;;  %v1387_v41 = vld [vmem:[%s12293_s30 + $0x2708] sm:$0xff]  ;;  %v1292_v46 = vld [vmem:[%s12293_s30 + $0x2410] sm:$0xff] }
 0x34a   : > { %v9122_v59 = vpack.c.f32.eXmY %v5286_v44, %v5318_v48, 312  ;;  %v9126_v63 = vpack.c.f32.eXmY %v5350_v51, %v5382_v52, 312  ;;  %v5319_v0 = vtrunc.f32 %v3271_v53  ;;  %v3240_v2 = vmul.f32 0.5, %v1192_v50  ;;  %v1324_v51 = vld [vmem:[%s12293_s30 + $0x2510] sm:$0xff] }
 0x34b   : > { %v5351_v1 = vtrunc.f32 %v3303_v54  ;;  %11685 = vst [vmem:[%s12322_s25 + $0x8d8] sm:$0xff] %v9120_v58  ;;  %v5383_v3 = vtrunc.f32 %v3335_v60  ;;  %v3272_v4 = vmul.f32 0.5, %v1224_v55  ;;  %v3304_v5 = vmul.f32 0.5, %v1256_v56  ;;  %v1356_v52 = vld [vmem:[%s12293_s30 + $0x2610] sm:$0xff]  ;;  %v1293_v58 = vld [vmem:[%s12293_s30 + $0x2418] sm:$0xff] }
 0x34c   : > { %v3336_v6 = vmul.f32 0.5, %v1288_v57  ;;  %v9130_v10 = vpack.c.b8 %v9126_v63, %v9122_v59  ;;  %v9132_v11 = vpack.c.f32.eXmY %v5287_v61, %v5319_v0, 312  ;;  %v5288_v12 = vtrunc.f32 %v3240_v2  ;;  %v1388_v53 = vld [vmem:[%s12293_s30 + $0x2710] sm:$0xff] }
 0x34d   : > { %v3241_v13 = vmul.f32 0.5, %v1193_v62  ;;  %v9136_v15 = vpack.c.f32.eXmY %v5351_v1, %v5383_v3, 312  ;;  %v5320_v16 = vtrunc.f32 %v3272_v4  ;;  %v5352_v17 = vtrunc.f32 %v3304_v5  ;;  %v1325_v3 = vld [vmem:[%s12293_s30 + $0x2518] sm:$0xff] }
 0x34e   : > { %v5384_v18 = vtrunc.f32 %v3336_v6  ;;  %11686 = vst [vmem:[%s12322_s25 + $0x8e0] sm:$0xff] %v9130_v10  ;;  %v3273_v20 = vmul.f32 0.5, %v1225_v7  ;;  %v3305_v21 = vmul.f32 0.5, %v1257_v8  ;;  %v3337_v22 = vmul.f32 0.5, %v1289_v9  ;;  %v1357_v4 = vld [vmem:[%s12293_s30 + $0x2618] sm:$0xff]  ;;  %v1294_v10 = vld [vmem:[%s12293_s30 + $0x2420] sm:$0xff] }
 0x34f   : > { %v5289_v23 = vtrunc.f32 %v3241_v13  ;;  %v9140_v26 = vpack.c.b8 %v9136_v15, %v9132_v11  ;;  %v9142_v27 = vpack.c.f32.eXmY %v5288_v12, %v5320_v16, 312  ;;  %v3338_v29 = vmul.f32 0.5, %v1290_v14  ;;  %v1389_v5 = vld [vmem:[%s12293_s30 + $0x2718] sm:$0xff]  ;;  %v1326_v15 = vld [vmem:[%s12293_s30 + $0x2520] sm:$0xff] }
 0x350   : > { %v9146_v28 = vpack.c.f32.eXmY %v5352_v17, %v5384_v18, 312  ;;  %v5321_v31 = vtrunc.f32 %v3273_v20  ;;  %v5353_v32 = vtrunc.f32 %v3305_v21  ;;  %v5385_v33 = vtrunc.f32 %v3337_v22  ;;  %v1358_v20 = vld [vmem:[%s12293_s30 + $0x2620] sm:$0xff] }
 0x351   : > { %v3370_v34 = vmul.f32 0.5, %v1322_v19  ;;  %11687 = vst [vmem:[%s12322_s25 + $0x8e8] sm:$0xff] %v9140_v26  ;;  %v3402_v38 = vmul.f32 0.5, %v1354_v24  ;;  %v3434_v39 = vmul.f32 0.5, %v1386_v25  ;;  %v5386_v40 = vtrunc.f32 %v3338_v29  ;;  %v1390_v21 = vld [vmem:[%s12293_s30 + $0x2720] sm:$0xff]  ;;  %v1295_v26 = vld [vmem:[%s12293_s30 + $0x2428] sm:$0xff] }
 0x352   : > { %v9150_v37 = vpack.c.b8 %v9146_v28, %v9142_v27  ;;  %v9152_v42 = vpack.c.f32.eXmY %v5289_v23, %v5321_v31, 312  ;;  %v9156_v43 = vpack.c.f32.eXmY %v5353_v32, %v5385_v33, 312  ;;  %v3339_v45 = vmul.f32 0.5, %v1291_v30  ;;  %v1327_v31 = vld [vmem:[%s12293_s30 + $0x2528] sm:$0xff] }
 0x353   : > { %v5418_v44 = vtrunc.f32 %v3370_v34  ;;  %v5450_v47 = vtrunc.f32 %v3402_v38  ;;  %v5482_v48 = vtrunc.f32 %v3434_v39  ;;  %v3371_v49 = vmul.f32 0.5, %v1323_v35  ;;  %v1359_v32 = vld [vmem:[%s12293_s30 + $0x2628] sm:$0xff] }
 0x354   : > { %11688 = vst [vmem:[%s12322_s25 + $0x8f0] sm:$0xff] %v9150_v37  ;;  %v3403_v50 = vmul.f32 0.5, %v1355_v36  ;;  %v9160_v54 = vpack.c.b8 %v9156_v43, %v9152_v42  ;;  %v3435_v56 = vmul.f32 0.5, %v1387_v41  ;;  %v5387_v57 = vtrunc.f32 %v3339_v45  ;;  %v1391_v37 = vld [vmem:[%s12293_s30 + $0x2728] sm:$0xff]  ;;  %v1296_v42 = vld [vmem:[%s12293_s30 + $0x2430] sm:$0xff] }
 0x355   : > { %v9162_v55 = vpack.c.f32.eXmY %v5386_v40, %v5418_v44, 312  ;;  %v9166_v59 = vpack.c.f32.eXmY %v5450_v47, %v5482_v48, 312  ;;  %v5419_v60 = vtrunc.f32 %v3371_v49  ;;  %v3340_v62 = vmul.f32 0.5, %v1292_v46  ;;  %v1328_v47 = vld [vmem:[%s12293_s30 + $0x2530] sm:$0xff] }
 0x356   : > { %v5451_v61 = vtrunc.f32 %v3403_v50  ;;  %11689 = vst [vmem:[%s12322_s25 + $0x8f8] sm:$0xff] %v9160_v54  ;;  %v5483_v63 = vtrunc.f32 %v3435_v56  ;;  %v3372_v0 = vmul.f32 0.5, %v1324_v51  ;;  %v3404_v1 = vmul.f32 0.5, %v1356_v52  ;;  %v1360_v48 = vld [vmem:[%s12293_s30 + $0x2630] sm:$0xff]  ;;  %v1297_v54 = vld [vmem:[%s12293_s30 + $0x2438] sm:$0xff] }
 0x357   : > { %v3436_v2 = vmul.f32 0.5, %v1388_v53  ;;  %v9170_v6 = vpack.c.b8 %v9166_v59, %v9162_v55  ;;  %v9172_v7 = vpack.c.f32.eXmY %v5387_v57, %v5419_v60, 312  ;;  %v5388_v8 = vtrunc.f32 %v3340_v62  ;;  %v1392_v49 = vld [vmem:[%s12293_s30 + $0x2730] sm:$0xff] }
 0x358   : > { %v3341_v9 = vmul.f32 0.5, %v1293_v58  ;;  %v9176_v11 = vpack.c.f32.eXmY %v5451_v61, %v5483_v63, 312  ;;  %v5420_v12 = vtrunc.f32 %v3372_v0  ;;  %v5452_v13 = vtrunc.f32 %v3404_v1  ;;  %v1329_v63 = vld [vmem:[%s12293_s30 + $0x2538] sm:$0xff] }
 0x359   : > { %v5484_v14 = vtrunc.f32 %v3436_v2  ;;  %11690 = vst [vmem:[%s12322_s25 + $0x900] sm:$0xff] %v9170_v6  ;;  %v3373_v16 = vmul.f32 0.5, %v1325_v3  ;;  %v3405_v17 = vmul.f32 0.5, %v1357_v4  ;;  %v3437_v18 = vmul.f32 0.5, %v1389_v5  ;;  %v1361_v0 = vld [vmem:[%s12293_s30 + $0x2638] sm:$0xff]  ;;  %v1298_v6 = vld [vmem:[%s12293_s30 + $0x2440] sm:$0xff] }
 0x35a   : > { %v5389_v19 = vtrunc.f32 %v3341_v9  ;;  %v9180_v22 = vpack.c.b8 %v9176_v11, %v9172_v7  ;;  %v9182_v23 = vpack.c.f32.eXmY %v5388_v8, %v5420_v12, 312  ;;  %v3342_v25 = vmul.f32 0.5, %v1294_v10  ;;  %v1393_v1 = vld [vmem:[%s12293_s30 + $0x2738] sm:$0xff]  ;;  %v1330_v11 = vld [vmem:[%s12293_s30 + $0x2540] sm:$0xff] }
 0x35b   : > { %v9186_v24 = vpack.c.f32.eXmY %v5452_v13, %v5484_v14, 312  ;;  %v5421_v27 = vtrunc.f32 %v3373_v16  ;;  %v5453_v28 = vtrunc.f32 %v3405_v17  ;;  %v5485_v29 = vtrunc.f32 %v3437_v18  ;;  %v1362_v16 = vld [vmem:[%s12293_s30 + $0x2640] sm:$0xff] }
 0x35c   : > { %v3374_v30 = vmul.f32 0.5, %v1326_v15  ;;  %11691 = vst [vmem:[%s12322_s25 + $0x908] sm:$0xff] %v9180_v22  ;;  %v3406_v34 = vmul.f32 0.5, %v1358_v20  ;;  %v3438_v35 = vmul.f32 0.5, %v1390_v21  ;;  %v5390_v36 = vtrunc.f32 %v3342_v25  ;;  %v1394_v17 = vld [vmem:[%s12293_s30 + $0x2740] sm:$0xff]  ;;  %v1299_v22 = vld [vmem:[%s12293_s30 + $0x2448] sm:$0xff] }
 0x35d   : > { %v9190_v33 = vpack.c.b8 %v9186_v24, %v9182_v23  ;;  %v9192_v38 = vpack.c.f32.eXmY %v5389_v19, %v5421_v27, 312  ;;  %v9196_v39 = vpack.c.f32.eXmY %v5453_v28, %v5485_v29, 312  ;;  %v3343_v41 = vmul.f32 0.5, %v1295_v26  ;;  %v1331_v27 = vld [vmem:[%s12293_s30 + $0x2548] sm:$0xff] }
 0x35e   : > { %v5422_v40 = vtrunc.f32 %v3374_v30  ;;  %v5454_v43 = vtrunc.f32 %v3406_v34  ;;  %v5486_v44 = vtrunc.f32 %v3438_v35  ;;  %v3375_v45 = vmul.f32 0.5, %v1327_v31  ;;  %v1363_v28 = vld [vmem:[%s12293_s30 + $0x2648] sm:$0xff] }
 0x35f   : > { %11692 = vst [vmem:[%s12322_s25 + $0x910] sm:$0xff] %v9190_v33  ;;  %v3407_v46 = vmul.f32 0.5, %v1359_v32  ;;  %v9200_v50 = vpack.c.b8 %v9196_v39, %v9192_v38  ;;  %v3439_v52 = vmul.f32 0.5, %v1391_v37  ;;  %v5391_v53 = vtrunc.f32 %v3343_v41  ;;  %v1395_v33 = vld [vmem:[%s12293_s30 + $0x2748] sm:$0xff]  ;;  %v1300_v38 = vld [vmem:[%s12293_s30 + $0x2450] sm:$0xff] }
 0x360   : > { %v9202_v51 = vpack.c.f32.eXmY %v5390_v36, %v5422_v40, 312  ;;  %v9206_v55 = vpack.c.f32.eXmY %v5454_v43, %v5486_v44, 312  ;;  %v5423_v56 = vtrunc.f32 %v3375_v45  ;;  %v3344_v58 = vmul.f32 0.5, %v1296_v42  ;;  %v1332_v43 = vld [vmem:[%s12293_s30 + $0x2550] sm:$0xff] }
 0x361   : > { %v5455_v57 = vtrunc.f32 %v3407_v46  ;;  %11693 = vst [vmem:[%s12322_s25 + $0x918] sm:$0xff] %v9200_v50  ;;  %v5487_v59 = vtrunc.f32 %v3439_v52  ;;  %v3376_v60 = vmul.f32 0.5, %v1328_v47  ;;  %v3408_v61 = vmul.f32 0.5, %v1360_v48  ;;  %v1364_v44 = vld [vmem:[%s12293_s30 + $0x2650] sm:$0xff]  ;;  %v1301_v50 = vld [vmem:[%s12293_s30 + $0x2458] sm:$0xff] }
 0x362   : > { %v3440_v62 = vmul.f32 0.5, %v1392_v49  ;;  %v9210_v2 = vpack.c.b8 %v9206_v55, %v9202_v51  ;;  %v9212_v3 = vpack.c.f32.eXmY %v5391_v53, %v5423_v56, 312  ;;  %v5392_v4 = vtrunc.f32 %v3344_v58  ;;  %v1396_v45 = vld [vmem:[%s12293_s30 + $0x2750] sm:$0xff] }
 0x363   : > { %v3345_v5 = vmul.f32 0.5, %v1297_v54  ;;  %v9216_v7 = vpack.c.f32.eXmY %v5455_v57, %v5487_v59, 312  ;;  %v5424_v8 = vtrunc.f32 %v3376_v60  ;;  %v5456_v9 = vtrunc.f32 %v3408_v61  ;;  %v1333_v59 = vld [vmem:[%s12293_s30 + $0x2558] sm:$0xff] }
 0x364   : > { %v5488_v10 = vtrunc.f32 %v3440_v62  ;;  %11694 = vst [vmem:[%s12322_s25 + $0x920] sm:$0xff] %v9210_v2  ;;  %v3377_v12 = vmul.f32 0.5, %v1329_v63  ;;  %v3409_v13 = vmul.f32 0.5, %v1361_v0  ;;  %v3441_v14 = vmul.f32 0.5, %v1393_v1  ;;  %v1365_v60 = vld [vmem:[%s12293_s30 + $0x2658] sm:$0xff]  ;;  %v1302_v2 = vld [vmem:[%s12293_s30 + $0x2460] sm:$0xff] }
 0x365   : > { %v5393_v15 = vtrunc.f32 %v3345_v5  ;;  %v9220_v18 = vpack.c.b8 %v9216_v7, %v9212_v3  ;;  %v9222_v19 = vpack.c.f32.eXmY %v5392_v4, %v5424_v8, 312  ;;  %v3346_v21 = vmul.f32 0.5, %v1298_v6  ;;  %v1397_v61 = vld [vmem:[%s12293_s30 + $0x2758] sm:$0xff]  ;;  %v1334_v7 = vld [vmem:[%s12293_s30 + $0x2560] sm:$0xff] }
 0x366   : > { %v9226_v20 = vpack.c.f32.eXmY %v5456_v9, %v5488_v10, 312  ;;  %v5425_v23 = vtrunc.f32 %v3377_v12  ;;  %v5457_v24 = vtrunc.f32 %v3409_v13  ;;  %v5489_v25 = vtrunc.f32 %v3441_v14  ;;  %v1366_v12 = vld [vmem:[%s12293_s30 + $0x2660] sm:$0xff] }
 0x367   : > { %v3378_v26 = vmul.f32 0.5, %v1330_v11  ;;  %11695 = vst [vmem:[%s12322_s25 + $0x928] sm:$0xff] %v9220_v18  ;;  %v3410_v30 = vmul.f32 0.5, %v1362_v16  ;;  %v3442_v31 = vmul.f32 0.5, %v1394_v17  ;;  %v5394_v32 = vtrunc.f32 %v3346_v21  ;;  %v1398_v13 = vld [vmem:[%s12293_s30 + $0x2760] sm:$0xff]  ;;  %v1303_v18 = vld [vmem:[%s12293_s30 + $0x2468] sm:$0xff] }
 0x368   : > { %v9230_v29 = vpack.c.b8 %v9226_v20, %v9222_v19  ;;  %v9232_v34 = vpack.c.f32.eXmY %v5393_v15, %v5425_v23, 312  ;;  %v9236_v35 = vpack.c.f32.eXmY %v5457_v24, %v5489_v25, 312  ;;  %v3347_v37 = vmul.f32 0.5, %v1299_v22  ;;  %v1335_v23 = vld [vmem:[%s12293_s30 + $0x2568] sm:$0xff] }
 0x369   : > { %v5426_v36 = vtrunc.f32 %v3378_v26  ;;  %v5458_v39 = vtrunc.f32 %v3410_v30  ;;  %v5490_v40 = vtrunc.f32 %v3442_v31  ;;  %v3379_v41 = vmul.f32 0.5, %v1331_v27  ;;  %v1367_v24 = vld [vmem:[%s12293_s30 + $0x2668] sm:$0xff] }
 0x36a   : > { %11696 = vst [vmem:[%s12322_s25 + $0x930] sm:$0xff] %v9230_v29  ;;  %v3411_v42 = vmul.f32 0.5, %v1363_v28  ;;  %v9240_v46 = vpack.c.b8 %v9236_v35, %v9232_v34  ;;  %v3443_v48 = vmul.f32 0.5, %v1395_v33  ;;  %v5395_v49 = vtrunc.f32 %v3347_v37  ;;  %v1399_v29 = vld [vmem:[%s12293_s30 + $0x2768] sm:$0xff]  ;;  %v1304_v34 = vld [vmem:[%s12293_s30 + $0x2470] sm:$0xff] }
 0x36b   : > { %v9242_v47 = vpack.c.f32.eXmY %v5394_v32, %v5426_v36, 312  ;;  %v9246_v51 = vpack.c.f32.eXmY %v5458_v39, %v5490_v40, 312  ;;  %v5427_v52 = vtrunc.f32 %v3379_v41  ;;  %v3348_v54 = vmul.f32 0.5, %v1300_v38  ;;  %v1336_v39 = vld [vmem:[%s12293_s30 + $0x2570] sm:$0xff] }
 0x36c   : > { %v5459_v53 = vtrunc.f32 %v3411_v42  ;;  %11697 = vst [vmem:[%s12322_s25 + $0x938] sm:$0xff] %v9240_v46  ;;  %v5491_v55 = vtrunc.f32 %v3443_v48  ;;  %v3380_v56 = vmul.f32 0.5, %v1332_v43  ;;  %v3412_v57 = vmul.f32 0.5, %v1364_v44  ;;  %v1368_v40 = vld [vmem:[%s12293_s30 + $0x2670] sm:$0xff]  ;;  %v1305_v46 = vld [vmem:[%s12293_s30 + $0x2478] sm:$0xff] }
 0x36d   : > { %v3444_v58 = vmul.f32 0.5, %v1396_v45  ;;  %v9250_v62 = vpack.c.b8 %v9246_v51, %v9242_v47  ;;  %v9252_v63 = vpack.c.f32.eXmY %v5395_v49, %v5427_v52, 312  ;;  %v5396_v0 = vtrunc.f32 %v3348_v54  ;;  %v1400_v41 = vld [vmem:[%s12293_s30 + $0x2770] sm:$0xff] }
 0x36e   : > { %v3349_v1 = vmul.f32 0.5, %v1301_v50  ;;  %v9256_v3 = vpack.c.f32.eXmY %v5459_v53, %v5491_v55, 312  ;;  %v5428_v4 = vtrunc.f32 %v3380_v56  ;;  %v5460_v5 = vtrunc.f32 %v3412_v57  ;;  %v1337_v55 = vld [vmem:[%s12293_s30 + $0x2578] sm:$0xff] }
 0x36f   : > { %v5492_v6 = vtrunc.f32 %v3444_v58  ;;  %11698 = vst [vmem:[%s12322_s25 + $0x940] sm:$0xff] %v9250_v62  ;;  %v3381_v8 = vmul.f32 0.5, %v1333_v59  ;;  %v3413_v9 = vmul.f32 0.5, %v1365_v60  ;;  %v3445_v10 = vmul.f32 0.5, %v1397_v61  ;;  %v1369_v56 = vld [vmem:[%s12293_s30 + $0x2678] sm:$0xff]  ;;  %v1306_v62 = vld [vmem:[%s12293_s30 + $0x2480] sm:$0xff] }
 0x370   : > { %v5397_v11 = vtrunc.f32 %v3349_v1  ;;  %v9260_v14 = vpack.c.b8 %v9256_v3, %v9252_v63  ;;  %v9262_v15 = vpack.c.f32.eXmY %v5396_v0, %v5428_v4, 312  ;;  %v3350_v17 = vmul.f32 0.5, %v1302_v2  ;;  %v1401_v57 = vld [vmem:[%s12293_s30 + $0x2778] sm:$0xff]  ;;  %v1338_v3 = vld [vmem:[%s12293_s30 + $0x2580] sm:$0xff] }
 0x371   : > { %v9266_v16 = vpack.c.f32.eXmY %v5460_v5, %v5492_v6, 312  ;;  %v5429_v19 = vtrunc.f32 %v3381_v8  ;;  %v5461_v20 = vtrunc.f32 %v3413_v9  ;;  %v5493_v21 = vtrunc.f32 %v3445_v10  ;;  %v1370_v8 = vld [vmem:[%s12293_s30 + $0x2680] sm:$0xff] }
 0x372   : > { %v3382_v22 = vmul.f32 0.5, %v1334_v7  ;;  %11699 = vst [vmem:[%s12322_s25 + $0x948] sm:$0xff] %v9260_v14  ;;  %v3414_v26 = vmul.f32 0.5, %v1366_v12  ;;  %v3446_v27 = vmul.f32 0.5, %v1398_v13  ;;  %v5398_v28 = vtrunc.f32 %v3350_v17  ;;  %v1402_v9 = vld [vmem:[%s12293_s30 + $0x2780] sm:$0xff]  ;;  %v1307_v14 = vld [vmem:[%s12293_s30 + $0x2488] sm:$0xff] }
 0x373   : > { %v9270_v25 = vpack.c.b8 %v9266_v16, %v9262_v15  ;;  %v9272_v30 = vpack.c.f32.eXmY %v5397_v11, %v5429_v19, 312  ;;  %v9276_v31 = vpack.c.f32.eXmY %v5461_v20, %v5493_v21, 312  ;;  %v3351_v33 = vmul.f32 0.5, %v1303_v18  ;;  %v1339_v19 = vld [vmem:[%s12293_s30 + $0x2588] sm:$0xff] }
 0x374   : > { %v5430_v32 = vtrunc.f32 %v3382_v22  ;;  %v5462_v35 = vtrunc.f32 %v3414_v26  ;;  %v5494_v36 = vtrunc.f32 %v3446_v27  ;;  %v3383_v37 = vmul.f32 0.5, %v1335_v23  ;;  %v1371_v20 = vld [vmem:[%s12293_s30 + $0x2688] sm:$0xff] }
 0x375   : > { %11700 = vst [vmem:[%s12322_s25 + $0x950] sm:$0xff] %v9270_v25  ;;  %v3415_v38 = vmul.f32 0.5, %v1367_v24  ;;  %v9280_v42 = vpack.c.b8 %v9276_v31, %v9272_v30  ;;  %v3447_v44 = vmul.f32 0.5, %v1399_v29  ;;  %v5399_v45 = vtrunc.f32 %v3351_v33  ;;  %v1403_v25 = vld [vmem:[%s12293_s30 + $0x2788] sm:$0xff]  ;;  %v1308_v30 = vld [vmem:[%s12293_s30 + $0x2490] sm:$0xff] }
 0x376   : > { %v9282_v43 = vpack.c.f32.eXmY %v5398_v28, %v5430_v32, 312  ;;  %v9286_v47 = vpack.c.f32.eXmY %v5462_v35, %v5494_v36, 312  ;;  %v5431_v48 = vtrunc.f32 %v3383_v37  ;;  %v3352_v50 = vmul.f32 0.5, %v1304_v34  ;;  %v1340_v35 = vld [vmem:[%s12293_s30 + $0x2590] sm:$0xff] }
 0x377   : > { %v5463_v49 = vtrunc.f32 %v3415_v38  ;;  %11701 = vst [vmem:[%s12322_s25 + $0x958] sm:$0xff] %v9280_v42  ;;  %v5495_v51 = vtrunc.f32 %v3447_v44  ;;  %v3384_v52 = vmul.f32 0.5, %v1336_v39  ;;  %v3416_v53 = vmul.f32 0.5, %v1368_v40  ;;  %v1372_v36 = vld [vmem:[%s12293_s30 + $0x2690] sm:$0xff]  ;;  %v1309_v42 = vld [vmem:[%s12293_s30 + $0x2498] sm:$0xff] }
 0x378   : > { %v3448_v54 = vmul.f32 0.5, %v1400_v41  ;;  %v9290_v58 = vpack.c.b8 %v9286_v47, %v9282_v43  ;;  %v9292_v59 = vpack.c.f32.eXmY %v5399_v45, %v5431_v48, 312  ;;  %v5400_v60 = vtrunc.f32 %v3352_v50  ;;  %v1404_v37 = vld [vmem:[%s12293_s30 + $0x2790] sm:$0xff] }
 0x379   : > { %v3353_v61 = vmul.f32 0.5, %v1305_v46  ;;  %v9296_v63 = vpack.c.f32.eXmY %v5463_v49, %v5495_v51, 312  ;;  %v5432_v0 = vtrunc.f32 %v3384_v52  ;;  %v5464_v1 = vtrunc.f32 %v3416_v53  ;;  %v1341_v51 = vld [vmem:[%s12293_s30 + $0x2598] sm:$0xff] }
 0x37a   : > { %v5496_v2 = vtrunc.f32 %v3448_v54  ;;  %11702 = vst [vmem:[%s12322_s25 + $0x960] sm:$0xff] %v9290_v58  ;;  %v3385_v4 = vmul.f32 0.5, %v1337_v55  ;;  %v3417_v5 = vmul.f32 0.5, %v1369_v56  ;;  %v3449_v6 = vmul.f32 0.5, %v1401_v57  ;;  %v1373_v52 = vld [vmem:[%s12293_s30 + $0x2698] sm:$0xff]  ;;  %v1310_v58 = vld [vmem:[%s12293_s30 + $0x24a0] sm:$0xff] }
 0x37b   : > { %v5401_v7 = vtrunc.f32 %v3353_v61  ;;  %v9300_v10 = vpack.c.b8 %v9296_v63, %v9292_v59  ;;  %v9302_v11 = vpack.c.f32.eXmY %v5400_v60, %v5432_v0, 312  ;;  %v3354_v13 = vmul.f32 0.5, %v1306_v62  ;;  %v1405_v53 = vld [vmem:[%s12293_s30 + $0x2798] sm:$0xff]  ;;  %v1342_v63 = vld [vmem:[%s12293_s30 + $0x25a0] sm:$0xff] }
 0x37c   : > { %v9306_v12 = vpack.c.f32.eXmY %v5464_v1, %v5496_v2, 312  ;;  %v5433_v15 = vtrunc.f32 %v3385_v4  ;;  %v5465_v16 = vtrunc.f32 %v3417_v5  ;;  %v5497_v17 = vtrunc.f32 %v3449_v6  ;;  %v1374_v4 = vld [vmem:[%s12293_s30 + $0x26a0] sm:$0xff] }
 0x37d   : > { %v3386_v18 = vmul.f32 0.5, %v1338_v3  ;;  %11703 = vst [vmem:[%s12322_s25 + $0x968] sm:$0xff] %v9300_v10  ;;  %v3418_v22 = vmul.f32 0.5, %v1370_v8  ;;  %v3450_v23 = vmul.f32 0.5, %v1402_v9  ;;  %v5402_v24 = vtrunc.f32 %v3354_v13  ;;  %v1406_v5 = vld [vmem:[%s12293_s30 + $0x27a0] sm:$0xff]  ;;  %v1311_v10 = vld [vmem:[%s12293_s30 + $0x24a8] sm:$0xff] }
 0x37e   : > { %v9310_v21 = vpack.c.b8 %v9306_v12, %v9302_v11  ;;  %v9312_v26 = vpack.c.f32.eXmY %v5401_v7, %v5433_v15, 312  ;;  %v9316_v27 = vpack.c.f32.eXmY %v5465_v16, %v5497_v17, 312  ;;  %v3355_v29 = vmul.f32 0.5, %v1307_v14  ;;  %v1343_v15 = vld [vmem:[%s12293_s30 + $0x25a8] sm:$0xff] }
 0x37f   : > { %v5434_v28 = vtrunc.f32 %v3386_v18  ;;  %v5466_v31 = vtrunc.f32 %v3418_v22  ;;  %v5498_v32 = vtrunc.f32 %v3450_v23  ;;  %v3387_v33 = vmul.f32 0.5, %v1339_v19  ;;  %v1375_v16 = vld [vmem:[%s12293_s30 + $0x26a8] sm:$0xff] }
 0x380   : > { %11704 = vst [vmem:[%s12322_s25 + $0x970] sm:$0xff] %v9310_v21  ;;  %v3419_v34 = vmul.f32 0.5, %v1371_v20  ;;  %v9320_v38 = vpack.c.b8 %v9316_v27, %v9312_v26  ;;  %v3451_v40 = vmul.f32 0.5, %v1403_v25  ;;  %v5403_v41 = vtrunc.f32 %v3355_v29  ;;  %v1407_v21 = vld [vmem:[%s12293_s30 + $0x27a8] sm:$0xff]  ;;  %v1312_v26 = vld [vmem:[%s12293_s30 + $0x24b0] sm:$0xff] }
 0x381   : > { %v9322_v39 = vpack.c.f32.eXmY %v5402_v24, %v5434_v28, 312  ;;  %v9326_v43 = vpack.c.f32.eXmY %v5466_v31, %v5498_v32, 312  ;;  %v5435_v44 = vtrunc.f32 %v3387_v33  ;;  %v3356_v46 = vmul.f32 0.5, %v1308_v30  ;;  %v1344_v31 = vld [vmem:[%s12293_s30 + $0x25b0] sm:$0xff] }
 0x382   : > { %v5467_v45 = vtrunc.f32 %v3419_v34  ;;  %11705 = vst [vmem:[%s12322_s25 + $0x978] sm:$0xff] %v9320_v38  ;;  %v5499_v47 = vtrunc.f32 %v3451_v40  ;;  %v3388_v48 = vmul.f32 0.5, %v1340_v35  ;;  %v3420_v49 = vmul.f32 0.5, %v1372_v36  ;;  %v1376_v32 = vld [vmem:[%s12293_s30 + $0x26b0] sm:$0xff]  ;;  %v1313_v38 = vld [vmem:[%s12293_s30 + $0x24b8] sm:$0xff] }
 0x383   : > { %v3452_v50 = vmul.f32 0.5, %v1404_v37  ;;  %v9330_v54 = vpack.c.b8 %v9326_v43, %v9322_v39  ;;  %v9332_v55 = vpack.c.f32.eXmY %v5403_v41, %v5435_v44, 312  ;;  %v5404_v56 = vtrunc.f32 %v3356_v46  ;;  %v1408_v33 = vld [vmem:[%s12293_s30 + $0x27b0] sm:$0xff] }
 0x384   : > { %v3357_v57 = vmul.f32 0.5, %v1309_v42  ;;  %v9336_v59 = vpack.c.f32.eXmY %v5467_v45, %v5499_v47, 312  ;;  %v5436_v60 = vtrunc.f32 %v3388_v48  ;;  %v5468_v61 = vtrunc.f32 %v3420_v49  ;;  %v1345_v47 = vld [vmem:[%s12293_s30 + $0x25b8] sm:$0xff] }
 0x385   : > { %v5500_v62 = vtrunc.f32 %v3452_v50  ;;  %11706 = vst [vmem:[%s12322_s25 + $0x980] sm:$0xff] %v9330_v54  ;;  %v3389_v0 = vmul.f32 0.5, %v1341_v51  ;;  %v3421_v1 = vmul.f32 0.5, %v1373_v52  ;;  %v3453_v2 = vmul.f32 0.5, %v1405_v53  ;;  %v1377_v48 = vld [vmem:[%s12293_s30 + $0x26b8] sm:$0xff]  ;;  %v1314_v54 = vld [vmem:[%s12293_s30 + $0x24c0] sm:$0xff] }
 0x386   : > { %v5405_v3 = vtrunc.f32 %v3357_v57  ;;  %v9340_v6 = vpack.c.b8 %v9336_v59, %v9332_v55  ;;  %v9342_v7 = vpack.c.f32.eXmY %v5404_v56, %v5436_v60, 312  ;;  %v3358_v9 = vmul.f32 0.5, %v1310_v58  ;;  %v1409_v49 = vld [vmem:[%s12293_s30 + $0x27b8] sm:$0xff]  ;;  %v1346_v59 = vld [vmem:[%s12293_s30 + $0x25c0] sm:$0xff] }
 0x387   : > { %v9346_v8 = vpack.c.f32.eXmY %v5468_v61, %v5500_v62, 312  ;;  %v5437_v11 = vtrunc.f32 %v3389_v0  ;;  %v5469_v12 = vtrunc.f32 %v3421_v1  ;;  %v5501_v13 = vtrunc.f32 %v3453_v2  ;;  %v1378_v0 = vld [vmem:[%s12293_s30 + $0x26c0] sm:$0xff] }
 0x388   : > { %v3390_v14 = vmul.f32 0.5, %v1342_v63  ;;  %11707 = vst [vmem:[%s12322_s25 + $0x988] sm:$0xff] %v9340_v6  ;;  %v3422_v18 = vmul.f32 0.5, %v1374_v4  ;;  %v3454_v19 = vmul.f32 0.5, %v1406_v5  ;;  %v5406_v20 = vtrunc.f32 %v3358_v9  ;;  %v1410_v1 = vld [vmem:[%s12293_s30 + $0x27c0] sm:$0xff]  ;;  %v1315_v6 = vld [vmem:[%s12293_s30 + $0x24c8] sm:$0xff] }
 0x389   : > { %v9350_v17 = vpack.c.b8 %v9346_v8, %v9342_v7  ;;  %v9352_v22 = vpack.c.f32.eXmY %v5405_v3, %v5437_v11, 312  ;;  %v9356_v23 = vpack.c.f32.eXmY %v5469_v12, %v5501_v13, 312  ;;  %v3359_v25 = vmul.f32 0.5, %v1311_v10  ;;  %v1347_v11 = vld [vmem:[%s12293_s30 + $0x25c8] sm:$0xff] }
 0x38a   : > { %v5438_v24 = vtrunc.f32 %v3390_v14  ;;  %v5470_v27 = vtrunc.f32 %v3422_v18  ;;  %v5502_v28 = vtrunc.f32 %v3454_v19  ;;  %v3391_v29 = vmul.f32 0.5, %v1343_v15  ;;  %v1379_v12 = vld [vmem:[%s12293_s30 + $0x26c8] sm:$0xff] }
 0x38b   : > { %11708 = vst [vmem:[%s12322_s25 + $0x990] sm:$0xff] %v9350_v17  ;;  %v3423_v30 = vmul.f32 0.5, %v1375_v16  ;;  %v9360_v34 = vpack.c.b8 %v9356_v23, %v9352_v22  ;;  %v3455_v36 = vmul.f32 0.5, %v1407_v21  ;;  %v5407_v37 = vtrunc.f32 %v3359_v25  ;;  %v1411_v17 = vld [vmem:[%s12293_s30 + $0x27c8] sm:$0xff]  ;;  %v1316_v22 = vld [vmem:[%s12293_s30 + $0x24d0] sm:$0xff] }
 0x38c   : > { %v9362_v35 = vpack.c.f32.eXmY %v5406_v20, %v5438_v24, 312  ;;  %v9366_v39 = vpack.c.f32.eXmY %v5470_v27, %v5502_v28, 312  ;;  %v5439_v40 = vtrunc.f32 %v3391_v29  ;;  %v3360_v42 = vmul.f32 0.5, %v1312_v26  ;;  %v1348_v27 = vld [vmem:[%s12293_s30 + $0x25d0] sm:$0xff] }
 0x38d   : > { %v5471_v41 = vtrunc.f32 %v3423_v30  ;;  %11709 = vst [vmem:[%s12322_s25 + $0x998] sm:$0xff] %v9360_v34  ;;  %v5503_v43 = vtrunc.f32 %v3455_v36  ;;  %v3392_v44 = vmul.f32 0.5, %v1344_v31  ;;  %v3424_v45 = vmul.f32 0.5, %v1376_v32  ;;  %v1380_v28 = vld [vmem:[%s12293_s30 + $0x26d0] sm:$0xff]  ;;  %v1317_v34 = vld [vmem:[%s12293_s30 + $0x24d8] sm:$0xff] }
 0x38e   : > { %v3456_v46 = vmul.f32 0.5, %v1408_v33  ;;  %v9370_v50 = vpack.c.b8 %v9366_v39, %v9362_v35  ;;  %v9372_v51 = vpack.c.f32.eXmY %v5407_v37, %v5439_v40, 312  ;;  %v5408_v52 = vtrunc.f32 %v3360_v42  ;;  %v1412_v29 = vld [vmem:[%s12293_s30 + $0x27d0] sm:$0xff] }
 0x38f   : > { %v3361_v53 = vmul.f32 0.5, %v1313_v38  ;;  %v9376_v55 = vpack.c.f32.eXmY %v5471_v41, %v5503_v43, 312  ;;  %v5440_v56 = vtrunc.f32 %v3392_v44  ;;  %v5472_v57 = vtrunc.f32 %v3424_v45  ;;  %v1349_v43 = vld [vmem:[%s12293_s30 + $0x25d8] sm:$0xff] }
 0x390   : > { %v5504_v58 = vtrunc.f32 %v3456_v46  ;;  %11710 = vst [vmem:[%s12322_s25 + $0x9a0] sm:$0xff] %v9370_v50  ;;  %v3393_v60 = vmul.f32 0.5, %v1345_v47  ;;  %v3425_v61 = vmul.f32 0.5, %v1377_v48  ;;  %v3457_v62 = vmul.f32 0.5, %v1409_v49  ;;  %v1381_v44 = vld [vmem:[%s12293_s30 + $0x26d8] sm:$0xff]  ;;  %v1318_v50 = vld [vmem:[%s12293_s30 + $0x24e0] sm:$0xff] }
 0x391   : > { %v5409_v63 = vtrunc.f32 %v3361_v53  ;;  %v9380_v2 = vpack.c.b8 %v9376_v55, %v9372_v51  ;;  %v9382_v3 = vpack.c.f32.eXmY %v5408_v52, %v5440_v56, 312  ;;  %v3362_v5 = vmul.f32 0.5, %v1314_v54  ;;  %v1413_v45 = vld [vmem:[%s12293_s30 + $0x27d8] sm:$0xff]  ;;  %v1350_v55 = vld [vmem:[%s12293_s30 + $0x25e0] sm:$0xff] }
 0x392   : > { %v9386_v4 = vpack.c.f32.eXmY %v5472_v57, %v5504_v58, 312  ;;  %v5441_v7 = vtrunc.f32 %v3393_v60  ;;  %v5473_v8 = vtrunc.f32 %v3425_v61  ;;  %v5505_v9 = vtrunc.f32 %v3457_v62  ;;  %v1382_v60 = vld [vmem:[%s12293_s30 + $0x26e0] sm:$0xff] }
 0x393   : > { %v3394_v10 = vmul.f32 0.5, %v1346_v59  ;;  %11711 = vst [vmem:[%s12322_s25 + $0x9a8] sm:$0xff] %v9380_v2  ;;  %v3426_v14 = vmul.f32 0.5, %v1378_v0  ;;  %v3458_v15 = vmul.f32 0.5, %v1410_v1  ;;  %v5410_v16 = vtrunc.f32 %v3362_v5  ;;  %v1414_v61 = vld [vmem:[%s12293_s30 + $0x27e0] sm:$0xff]  ;;  %v1319_v2 = vld [vmem:[%s12293_s30 + $0x24e8] sm:$0xff] }
 0x394   : > { %v9390_v13 = vpack.c.b8 %v9386_v4, %v9382_v3  ;;  %v9392_v18 = vpack.c.f32.eXmY %v5409_v63, %v5441_v7, 312  ;;  %v9396_v19 = vpack.c.f32.eXmY %v5473_v8, %v5505_v9, 312  ;;  %v3363_v21 = vmul.f32 0.5, %v1315_v6  ;;  %v1351_v7 = vld [vmem:[%s12293_s30 + $0x25e8] sm:$0xff] }
 0x395   : > { %v5442_v20 = vtrunc.f32 %v3394_v10  ;;  %v5474_v23 = vtrunc.f32 %v3426_v14  ;;  %v5506_v24 = vtrunc.f32 %v3458_v15  ;;  %v3395_v25 = vmul.f32 0.5, %v1347_v11  ;;  %v1383_v8 = vld [vmem:[%s12293_s30 + $0x26e8] sm:$0xff] }
 0x396   : > { %11712 = vst [vmem:[%s12322_s25 + $0x9b0] sm:$0xff] %v9390_v13  ;;  %v3427_v26 = vmul.f32 0.5, %v1379_v12  ;;  %v9400_v30 = vpack.c.b8 %v9396_v19, %v9392_v18  ;;  %v3459_v32 = vmul.f32 0.5, %v1411_v17  ;;  %v5411_v33 = vtrunc.f32 %v3363_v21  ;;  %v1415_v13 = vld [vmem:[%s12293_s30 + $0x27e8] sm:$0xff]  ;;  %v1320_v18 = vld [vmem:[%s12293_s30 + $0x24f0] sm:$0xff] }
 0x397   : > { %v9402_v31 = vpack.c.f32.eXmY %v5410_v16, %v5442_v20, 312  ;;  %v9406_v35 = vpack.c.f32.eXmY %v5474_v23, %v5506_v24, 312  ;;  %v5443_v36 = vtrunc.f32 %v3395_v25  ;;  %v3364_v38 = vmul.f32 0.5, %v1316_v22  ;;  %v1352_v23 = vld [vmem:[%s12293_s30 + $0x25f0] sm:$0xff] }
 0x398   : > { %v5475_v37 = vtrunc.f32 %v3427_v26  ;;  %11713 = vst [vmem:[%s12322_s25 + $0x9b8] sm:$0xff] %v9400_v30  ;;  %v5507_v39 = vtrunc.f32 %v3459_v32  ;;  %v3396_v40 = vmul.f32 0.5, %v1348_v27  ;;  %v3428_v41 = vmul.f32 0.5, %v1380_v28  ;;  %v1384_v24 = vld [vmem:[%s12293_s30 + $0x26f0] sm:$0xff]  ;;  %v1321_v30 = vld [vmem:[%s12293_s30 + $0x24f8] sm:$0xff] }
 0x399   : > { %v3460_v42 = vmul.f32 0.5, %v1412_v29  ;;  %v9410_v46 = vpack.c.b8 %v9406_v35, %v9402_v31  ;;  %v9412_v47 = vpack.c.f32.eXmY %v5411_v33, %v5443_v36, 312  ;;  %v5412_v48 = vtrunc.f32 %v3364_v38  ;;  %v1416_v25 = vld [vmem:[%s12293_s30 + $0x27f0] sm:$0xff] }
 0x39a   : > { %v3365_v49 = vmul.f32 0.5, %v1317_v34  ;;  %v9416_v51 = vpack.c.f32.eXmY %v5475_v37, %v5507_v39, 312  ;;  %v5444_v52 = vtrunc.f32 %v3396_v40  ;;  %v5476_v53 = vtrunc.f32 %v3428_v41  ;;  %v1353_v39 = vld [vmem:[%s12293_s30 + $0x25f8] sm:$0xff] }
 0x39b   : > { %v5508_v54 = vtrunc.f32 %v3460_v42  ;;  %11714 = vst [vmem:[%s12322_s25 + $0x9c0] sm:$0xff] %v9410_v46  ;;  %v3397_v56 = vmul.f32 0.5, %v1349_v43  ;;  %v3429_v57 = vmul.f32 0.5, %v1381_v44  ;;  %v3461_v58 = vmul.f32 0.5, %v1413_v45  ;;  %v1385_v40 = vld [vmem:[%s12293_s30 + $0x26f8] sm:$0xff]  ;;  %v1418_v46 = vld [vmem:[%s12293_s30 + $0x2800] sm:$0xff] }
 0x39c   : > { %v5413_v59 = vtrunc.f32 %v3365_v49  ;;  %v9420_v62 = vpack.c.b8 %v9416_v51, %v9412_v47  ;;  %v9422_v63 = vpack.c.f32.eXmY %v5412_v48, %v5444_v52, 312  ;;  %v3366_v1 = vmul.f32 0.5, %v1318_v50  ;;  %v1417_v41 = vld [vmem:[%s12293_s30 + $0x27f8] sm:$0xff]  ;;  %v1450_v51 = vld [vmem:[%s12293_s30 + $0x2900] sm:$0xff] }
 0x39d   : > { %v9426_v0 = vpack.c.f32.eXmY %v5476_v53, %v5508_v54, 312  ;;  %v5445_v3 = vtrunc.f32 %v3397_v56  ;;  %v5477_v4 = vtrunc.f32 %v3429_v57  ;;  %v5509_v5 = vtrunc.f32 %v3461_v58  ;;  %v1482_v56 = vld [vmem:[%s12293_s30 + $0x2a00] sm:$0xff] }
 0x39e   : > { %v3398_v6 = vmul.f32 0.5, %v1350_v55  ;;  %11715 = vst [vmem:[%s12322_s25 + $0x9c8] sm:$0xff] %v9420_v62  ;;  %v3430_v10 = vmul.f32 0.5, %v1382_v60  ;;  %v3462_v11 = vmul.f32 0.5, %v1414_v61  ;;  %v5414_v12 = vtrunc.f32 %v3366_v1  ;;  %v1514_v57 = vld [vmem:[%s12293_s30 + $0x2b00] sm:$0xff]  ;;  %v1419_v62 = vld [vmem:[%s12293_s30 + $0x2808] sm:$0xff] }
 0x39f   : > { %v9430_v9 = vpack.c.b8 %v9426_v0, %v9422_v63  ;;  %v9432_v14 = vpack.c.f32.eXmY %v5413_v59, %v5445_v3, 312  ;;  %v9436_v15 = vpack.c.f32.eXmY %v5477_v4, %v5509_v5, 312  ;;  %v3367_v17 = vmul.f32 0.5, %v1319_v2  ;;  %v1451_v3 = vld [vmem:[%s12293_s30 + $0x2908] sm:$0xff] }
 0x3a0   : > { %v5446_v16 = vtrunc.f32 %v3398_v6  ;;  %v5478_v19 = vtrunc.f32 %v3430_v10  ;;  %v5510_v20 = vtrunc.f32 %v3462_v11  ;;  %v3399_v21 = vmul.f32 0.5, %v1351_v7  ;;  %v1483_v4 = vld [vmem:[%s12293_s30 + $0x2a08] sm:$0xff] }
 0x3a1   : > { %11716 = vst [vmem:[%s12322_s25 + $0x9d0] sm:$0xff] %v9430_v9  ;;  %v3431_v22 = vmul.f32 0.5, %v1383_v8  ;;  %v9440_v26 = vpack.c.b8 %v9436_v15, %v9432_v14  ;;  %v3463_v28 = vmul.f32 0.5, %v1415_v13  ;;  %v5415_v29 = vtrunc.f32 %v3367_v17  ;;  %v1515_v9 = vld [vmem:[%s12293_s30 + $0x2b08] sm:$0xff]  ;;  %v1420_v14 = vld [vmem:[%s12293_s30 + $0x2810] sm:$0xff] }
 0x3a2   : > { %v9442_v27 = vpack.c.f32.eXmY %v5414_v12, %v5446_v16, 312  ;;  %v9446_v31 = vpack.c.f32.eXmY %v5478_v19, %v5510_v20, 312  ;;  %v5447_v32 = vtrunc.f32 %v3399_v21  ;;  %v3368_v34 = vmul.f32 0.5, %v1320_v18  ;;  %v1452_v19 = vld [vmem:[%s12293_s30 + $0x2910] sm:$0xff] }
 0x3a3   : > { %v5479_v33 = vtrunc.f32 %v3431_v22  ;;  %11717 = vst [vmem:[%s12322_s25 + $0x9d8] sm:$0xff] %v9440_v26  ;;  %v5511_v35 = vtrunc.f32 %v3463_v28  ;;  %v3400_v36 = vmul.f32 0.5, %v1352_v23  ;;  %v3432_v37 = vmul.f32 0.5, %v1384_v24  ;;  %v1484_v20 = vld [vmem:[%s12293_s30 + $0x2a10] sm:$0xff]  ;;  %v1421_v26 = vld [vmem:[%s12293_s30 + $0x2818] sm:$0xff] }
 0x3a4   : > { %v3464_v38 = vmul.f32 0.5, %v1416_v25  ;;  %v9450_v42 = vpack.c.b8 %v9446_v31, %v9442_v27  ;;  %v9452_v43 = vpack.c.f32.eXmY %v5415_v29, %v5447_v32, 312  ;;  %v5416_v44 = vtrunc.f32 %v3368_v34  ;;  %v1516_v21 = vld [vmem:[%s12293_s30 + $0x2b10] sm:$0xff] }
 0x3a5   : > { %v3369_v45 = vmul.f32 0.5, %v1321_v30  ;;  %v9456_v47 = vpack.c.f32.eXmY %v5479_v33, %v5511_v35, 312  ;;  %v5448_v48 = vtrunc.f32 %v3400_v36  ;;  %v5480_v49 = vtrunc.f32 %v3432_v37  ;;  %v1453_v35 = vld [vmem:[%s12293_s30 + $0x2918] sm:$0xff] }
 0x3a6   : > { %v5512_v50 = vtrunc.f32 %v3464_v38  ;;  %11718 = vst [vmem:[%s12322_s25 + $0x9e0] sm:$0xff] %v9450_v42  ;;  %v3401_v52 = vmul.f32 0.5, %v1353_v39  ;;  %v3433_v53 = vmul.f32 0.5, %v1385_v40  ;;  %v3465_v54 = vmul.f32 0.5, %v1417_v41  ;;  %v1485_v36 = vld [vmem:[%s12293_s30 + $0x2a18] sm:$0xff]  ;;  %v1422_v42 = vld [vmem:[%s12293_s30 + $0x2820] sm:$0xff] }
 0x3a7   : > { %v5417_v55 = vtrunc.f32 %v3369_v45  ;;  %v9460_v58 = vpack.c.b8 %v9456_v47, %v9452_v43  ;;  %v9462_v59 = vpack.c.f32.eXmY %v5416_v44, %v5448_v48, 312  ;;  %v3466_v61 = vmul.f32 0.5, %v1418_v46  ;;  %v1517_v37 = vld [vmem:[%s12293_s30 + $0x2b18] sm:$0xff]  ;;  %v1454_v47 = vld [vmem:[%s12293_s30 + $0x2920] sm:$0xff] }
 0x3a8   : > { %v9466_v60 = vpack.c.f32.eXmY %v5480_v49, %v5512_v50, 312  ;;  %v5449_v63 = vtrunc.f32 %v3401_v52  ;;  %v5481_v0 = vtrunc.f32 %v3433_v53  ;;  %v5513_v1 = vtrunc.f32 %v3465_v54  ;;  %v1486_v52 = vld [vmem:[%s12293_s30 + $0x2a20] sm:$0xff] }
 0x3a9   : > { %v3498_v2 = vmul.f32 0.5, %v1450_v51  ;;  %11719 = vst [vmem:[%s12322_s25 + $0x9e8] sm:$0xff] %v9460_v58  ;;  %v3530_v6 = vmul.f32 0.5, %v1482_v56  ;;  %v3562_v7 = vmul.f32 0.5, %v1514_v57  ;;  %v5514_v8 = vtrunc.f32 %v3466_v61  ;;  %v1518_v53 = vld [vmem:[%s12293_s30 + $0x2b20] sm:$0xff]  ;;  %v1423_v58 = vld [vmem:[%s12293_s30 + $0x2828] sm:$0xff] }
 0x3aa   : > { %v9470_v5 = vpack.c.b8 %v9466_v60, %v9462_v59  ;;  %v9472_v10 = vpack.c.f32.eXmY %v5417_v55, %v5449_v63, 312  ;;  %v9476_v11 = vpack.c.f32.eXmY %v5481_v0, %v5513_v1, 312  ;;  %v3467_v13 = vmul.f32 0.5, %v1419_v62  ;;  %v1455_v63 = vld [vmem:[%s12293_s30 + $0x2928] sm:$0xff] }
 0x3ab   : > { %v5546_v12 = vtrunc.f32 %v3498_v2  ;;  %v5578_v15 = vtrunc.f32 %v3530_v6  ;;  %v5610_v16 = vtrunc.f32 %v3562_v7  ;;  %v3499_v17 = vmul.f32 0.5, %v1451_v3  ;;  %v1487_v0 = vld [vmem:[%s12293_s30 + $0x2a28] sm:$0xff] }
 0x3ac   : > { %11720 = vst [vmem:[%s12322_s25 + $0x9f0] sm:$0xff] %v9470_v5  ;;  %v3531_v18 = vmul.f32 0.5, %v1483_v4  ;;  %v9480_v22 = vpack.c.b8 %v9476_v11, %v9472_v10  ;;  %v3563_v24 = vmul.f32 0.5, %v1515_v9  ;;  %v5515_v25 = vtrunc.f32 %v3467_v13  ;;  %v1519_v5 = vld [vmem:[%s12293_s30 + $0x2b28] sm:$0xff]  ;;  %v1424_v10 = vld [vmem:[%s12293_s30 + $0x2830] sm:$0xff] }
 0x3ad   : > { %v9482_v23 = vpack.c.f32.eXmY %v5514_v8, %v5546_v12, 312  ;;  %v9486_v27 = vpack.c.f32.eXmY %v5578_v15, %v5610_v16, 312  ;;  %v5547_v28 = vtrunc.f32 %v3499_v17  ;;  %v3468_v30 = vmul.f32 0.5, %v1420_v14  ;;  %v1456_v15 = vld [vmem:[%s12293_s30 + $0x2930] sm:$0xff] }
 0x3ae   : > { %v5579_v29 = vtrunc.f32 %v3531_v18  ;;  %11721 = vst [vmem:[%s12322_s25 + $0x9f8] sm:$0xff] %v9480_v22  ;;  %v5611_v31 = vtrunc.f32 %v3563_v24  ;;  %v3500_v32 = vmul.f32 0.5, %v1452_v19  ;;  %v3532_v33 = vmul.f32 0.5, %v1484_v20  ;;  %v1488_v16 = vld [vmem:[%s12293_s30 + $0x2a30] sm:$0xff]  ;;  %v1425_v22 = vld [vmem:[%s12293_s30 + $0x2838] sm:$0xff] }
 0x3af   : > { %v3564_v34 = vmul.f32 0.5, %v1516_v21  ;;  %v9490_v38 = vpack.c.b8 %v9486_v27, %v9482_v23  ;;  %v9492_v39 = vpack.c.f32.eXmY %v5515_v25, %v5547_v28, 312  ;;  %v5516_v40 = vtrunc.f32 %v3468_v30  ;;  %v1520_v17 = vld [vmem:[%s12293_s30 + $0x2b30] sm:$0xff] }
 0x3b0   : > { %v3469_v41 = vmul.f32 0.5, %v1421_v26  ;;  %v9496_v43 = vpack.c.f32.eXmY %v5579_v29, %v5611_v31, 312  ;;  %v5548_v44 = vtrunc.f32 %v3500_v32  ;;  %v5580_v45 = vtrunc.f32 %v3532_v33  ;;  %v1457_v31 = vld [vmem:[%s12293_s30 + $0x2938] sm:$0xff] }
 0x3b1   : > { %v5612_v46 = vtrunc.f32 %v3564_v34  ;;  %11722 = vst [vmem:[%s12322_s25 + $0xa00] sm:$0xff] %v9490_v38  ;;  %v3501_v48 = vmul.f32 0.5, %v1453_v35  ;;  %v3533_v49 = vmul.f32 0.5, %v1485_v36  ;;  %v3565_v50 = vmul.f32 0.5, %v1517_v37  ;;  %v1489_v32 = vld [vmem:[%s12293_s30 + $0x2a38] sm:$0xff]  ;;  %v1426_v38 = vld [vmem:[%s12293_s30 + $0x2840] sm:$0xff] }
 0x3b2   : > { %v5517_v51 = vtrunc.f32 %v3469_v41  ;;  %v9500_v54 = vpack.c.b8 %v9496_v43, %v9492_v39  ;;  %v9502_v55 = vpack.c.f32.eXmY %v5516_v40, %v5548_v44, 312  ;;  %v3470_v57 = vmul.f32 0.5, %v1422_v42  ;;  %v1521_v33 = vld [vmem:[%s12293_s30 + $0x2b38] sm:$0xff]  ;;  %v1458_v43 = vld [vmem:[%s12293_s30 + $0x2940] sm:$0xff] }
 0x3b3   : > { %v9506_v56 = vpack.c.f32.eXmY %v5580_v45, %v5612_v46, 312  ;;  %v5549_v59 = vtrunc.f32 %v3501_v48  ;;  %v5581_v60 = vtrunc.f32 %v3533_v49  ;;  %v5613_v61 = vtrunc.f32 %v3565_v50  ;;  %v1490_v48 = vld [vmem:[%s12293_s30 + $0x2a40] sm:$0xff] }
 0x3b4   : > { %v3502_v62 = vmul.f32 0.5, %v1454_v47  ;;  %11723 = vst [vmem:[%s12322_s25 + $0xa08] sm:$0xff] %v9500_v54  ;;  %v3534_v2 = vmul.f32 0.5, %v1486_v52  ;;  %v3566_v3 = vmul.f32 0.5, %v1518_v53  ;;  %v5518_v4 = vtrunc.f32 %v3470_v57  ;;  %v1522_v49 = vld [vmem:[%s12293_s30 + $0x2b40] sm:$0xff]  ;;  %v1427_v54 = vld [vmem:[%s12293_s30 + $0x2848] sm:$0xff] }
 0x3b5   : > { %v9510_v1 = vpack.c.b8 %v9506_v56, %v9502_v55  ;;  %v9512_v6 = vpack.c.f32.eXmY %v5517_v51, %v5549_v59, 312  ;;  %v9516_v7 = vpack.c.f32.eXmY %v5581_v60, %v5613_v61, 312  ;;  %v3471_v9 = vmul.f32 0.5, %v1423_v58  ;;  %v1459_v59 = vld [vmem:[%s12293_s30 + $0x2948] sm:$0xff] }
 0x3b6   : > { %v5550_v8 = vtrunc.f32 %v3502_v62  ;;  %v5582_v11 = vtrunc.f32 %v3534_v2  ;;  %v5614_v12 = vtrunc.f32 %v3566_v3  ;;  %v3503_v13 = vmul.f32 0.5, %v1455_v63  ;;  %v1491_v60 = vld [vmem:[%s12293_s30 + $0x2a48] sm:$0xff] }
 0x3b7   : > { %11724 = vst [vmem:[%s12322_s25 + $0xa10] sm:$0xff] %v9510_v1  ;;  %v3535_v14 = vmul.f32 0.5, %v1487_v0  ;;  %v9520_v18 = vpack.c.b8 %v9516_v7, %v9512_v6  ;;  %v3567_v20 = vmul.f32 0.5, %v1519_v5  ;;  %v5519_v21 = vtrunc.f32 %v3471_v9  ;;  %v1523_v1 = vld [vmem:[%s12293_s30 + $0x2b48] sm:$0xff]  ;;  %v1428_v6 = vld [vmem:[%s12293_s30 + $0x2850] sm:$0xff] }
 0x3b8   : > { %v9522_v19 = vpack.c.f32.eXmY %v5518_v4, %v5550_v8, 312  ;;  %v9526_v23 = vpack.c.f32.eXmY %v5582_v11, %v5614_v12, 312  ;;  %v5551_v24 = vtrunc.f32 %v3503_v13  ;;  %v3472_v26 = vmul.f32 0.5, %v1424_v10  ;;  %v1460_v11 = vld [vmem:[%s12293_s30 + $0x2950] sm:$0xff] }
 0x3b9   : > { %v5583_v25 = vtrunc.f32 %v3535_v14  ;;  %11725 = vst [vmem:[%s12322_s25 + $0xa18] sm:$0xff] %v9520_v18  ;;  %v5615_v27 = vtrunc.f32 %v3567_v20  ;;  %v3504_v28 = vmul.f32 0.5, %v1456_v15  ;;  %v3536_v29 = vmul.f32 0.5, %v1488_v16  ;;  %v1492_v12 = vld [vmem:[%s12293_s30 + $0x2a50] sm:$0xff]  ;;  %v1429_v18 = vld [vmem:[%s12293_s30 + $0x2858] sm:$0xff] }
 0x3ba   : > { %v3568_v30 = vmul.f32 0.5, %v1520_v17  ;;  %v9530_v34 = vpack.c.b8 %v9526_v23, %v9522_v19  ;;  %v9532_v35 = vpack.c.f32.eXmY %v5519_v21, %v5551_v24, 312  ;;  %v5520_v36 = vtrunc.f32 %v3472_v26  ;;  %v1524_v13 = vld [vmem:[%s12293_s30 + $0x2b50] sm:$0xff] }
 0x3bb   : > { %v3473_v37 = vmul.f32 0.5, %v1425_v22  ;;  %v9536_v39 = vpack.c.f32.eXmY %v5583_v25, %v5615_v27, 312  ;;  %v5552_v40 = vtrunc.f32 %v3504_v28  ;;  %v5584_v41 = vtrunc.f32 %v3536_v29  ;;  %v1461_v27 = vld [vmem:[%s12293_s30 + $0x2958] sm:$0xff] }
 0x3bc   : > { %v5616_v42 = vtrunc.f32 %v3568_v30  ;;  %11726 = vst [vmem:[%s12322_s25 + $0xa20] sm:$0xff] %v9530_v34  ;;  %v3505_v44 = vmul.f32 0.5, %v1457_v31  ;;  %v3537_v45 = vmul.f32 0.5, %v1489_v32  ;;  %v3569_v46 = vmul.f32 0.5, %v1521_v33  ;;  %v1493_v28 = vld [vmem:[%s12293_s30 + $0x2a58] sm:$0xff]  ;;  %v1430_v34 = vld [vmem:[%s12293_s30 + $0x2860] sm:$0xff] }
 0x3bd   : > { %v5521_v47 = vtrunc.f32 %v3473_v37  ;;  %v9540_v50 = vpack.c.b8 %v9536_v39, %v9532_v35  ;;  %v9542_v51 = vpack.c.f32.eXmY %v5520_v36, %v5552_v40, 312  ;;  %v3474_v53 = vmul.f32 0.5, %v1426_v38  ;;  %v1525_v29 = vld [vmem:[%s12293_s30 + $0x2b58] sm:$0xff]  ;;  %v1462_v39 = vld [vmem:[%s12293_s30 + $0x2960] sm:$0xff] }
 0x3be   : > { %v9546_v52 = vpack.c.f32.eXmY %v5584_v41, %v5616_v42, 312  ;;  %v5553_v55 = vtrunc.f32 %v3505_v44  ;;  %v5585_v56 = vtrunc.f32 %v3537_v45  ;;  %v5617_v57 = vtrunc.f32 %v3569_v46  ;;  %v1494_v44 = vld [vmem:[%s12293_s30 + $0x2a60] sm:$0xff] }
 0x3bf   : > { %v3506_v58 = vmul.f32 0.5, %v1458_v43  ;;  %11727 = vst [vmem:[%s12322_s25 + $0xa28] sm:$0xff] %v9540_v50  ;;  %v3538_v62 = vmul.f32 0.5, %v1490_v48  ;;  %v3570_v63 = vmul.f32 0.5, %v1522_v49  ;;  %v5522_v0 = vtrunc.f32 %v3474_v53  ;;  %v1526_v45 = vld [vmem:[%s12293_s30 + $0x2b60] sm:$0xff]  ;;  %v1431_v50 = vld [vmem:[%s12293_s30 + $0x2868] sm:$0xff] }
 0x3c0   : > { %v9550_v61 = vpack.c.b8 %v9546_v52, %v9542_v51  ;;  %v9552_v2 = vpack.c.f32.eXmY %v5521_v47, %v5553_v55, 312  ;;  %v9556_v3 = vpack.c.f32.eXmY %v5585_v56, %v5617_v57, 312  ;;  %v3475_v5 = vmul.f32 0.5, %v1427_v54  ;;  %v1463_v55 = vld [vmem:[%s12293_s30 + $0x2968] sm:$0xff] }
 0x3c1   : > { %v5554_v4 = vtrunc.f32 %v3506_v58  ;;  %v5586_v7 = vtrunc.f32 %v3538_v62  ;;  %v5618_v8 = vtrunc.f32 %v3570_v63  ;;  %v3507_v9 = vmul.f32 0.5, %v1459_v59  ;;  %v1495_v56 = vld [vmem:[%s12293_s30 + $0x2a68] sm:$0xff] }
 0x3c2   : > { %11728 = vst [vmem:[%s12322_s25 + $0xa30] sm:$0xff] %v9550_v61  ;;  %v3539_v10 = vmul.f32 0.5, %v1491_v60  ;;  %v9560_v14 = vpack.c.b8 %v9556_v3, %v9552_v2  ;;  %v3571_v16 = vmul.f32 0.5, %v1523_v1  ;;  %v5523_v17 = vtrunc.f32 %v3475_v5  ;;  %v1527_v61 = vld [vmem:[%s12293_s30 + $0x2b68] sm:$0xff]  ;;  %v1432_v2 = vld [vmem:[%s12293_s30 + $0x2870] sm:$0xff] }
 0x3c3   : > { %v9562_v15 = vpack.c.f32.eXmY %v5522_v0, %v5554_v4, 312  ;;  %v9566_v19 = vpack.c.f32.eXmY %v5586_v7, %v5618_v8, 312  ;;  %v5555_v20 = vtrunc.f32 %v3507_v9  ;;  %v3476_v22 = vmul.f32 0.5, %v1428_v6  ;;  %v1464_v7 = vld [vmem:[%s12293_s30 + $0x2970] sm:$0xff] }
 0x3c4   : > { %v5587_v21 = vtrunc.f32 %v3539_v10  ;;  %11729 = vst [vmem:[%s12322_s25 + $0xa38] sm:$0xff] %v9560_v14  ;;  %v5619_v23 = vtrunc.f32 %v3571_v16  ;;  %v3508_v24 = vmul.f32 0.5, %v1460_v11  ;;  %v3540_v25 = vmul.f32 0.5, %v1492_v12  ;;  %v1496_v8 = vld [vmem:[%s12293_s30 + $0x2a70] sm:$0xff]  ;;  %v1433_v14 = vld [vmem:[%s12293_s30 + $0x2878] sm:$0xff] }
 0x3c5   : > { %v3572_v26 = vmul.f32 0.5, %v1524_v13  ;;  %v9570_v30 = vpack.c.b8 %v9566_v19, %v9562_v15  ;;  %v9572_v31 = vpack.c.f32.eXmY %v5523_v17, %v5555_v20, 312  ;;  %v5524_v32 = vtrunc.f32 %v3476_v22  ;;  %v1528_v9 = vld [vmem:[%s12293_s30 + $0x2b70] sm:$0xff] }
 0x3c6   : > { %v3477_v33 = vmul.f32 0.5, %v1429_v18  ;;  %v9576_v35 = vpack.c.f32.eXmY %v5587_v21, %v5619_v23, 312  ;;  %v5556_v36 = vtrunc.f32 %v3508_v24  ;;  %v5588_v37 = vtrunc.f32 %v3540_v25  ;;  %v1465_v23 = vld [vmem:[%s12293_s30 + $0x2978] sm:$0xff] }
 0x3c7   : > { %v5620_v38 = vtrunc.f32 %v3572_v26  ;;  %11730 = vst [vmem:[%s12322_s25 + $0xa40] sm:$0xff] %v9570_v30  ;;  %v3509_v40 = vmul.f32 0.5, %v1461_v27  ;;  %v3541_v41 = vmul.f32 0.5, %v1493_v28  ;;  %v3573_v42 = vmul.f32 0.5, %v1525_v29  ;;  %v1497_v24 = vld [vmem:[%s12293_s30 + $0x2a78] sm:$0xff]  ;;  %v1434_v30 = vld [vmem:[%s12293_s30 + $0x2880] sm:$0xff] }
 0x3c8   : > { %v5525_v43 = vtrunc.f32 %v3477_v33  ;;  %v9580_v46 = vpack.c.b8 %v9576_v35, %v9572_v31  ;;  %v9582_v47 = vpack.c.f32.eXmY %v5524_v32, %v5556_v36, 312  ;;  %v3478_v49 = vmul.f32 0.5, %v1430_v34  ;;  %v1529_v25 = vld [vmem:[%s12293_s30 + $0x2b78] sm:$0xff]  ;;  %v1466_v35 = vld [vmem:[%s12293_s30 + $0x2980] sm:$0xff] }
 0x3c9   : > { %v9586_v48 = vpack.c.f32.eXmY %v5588_v37, %v5620_v38, 312  ;;  %v5557_v51 = vtrunc.f32 %v3509_v40  ;;  %v5589_v52 = vtrunc.f32 %v3541_v41  ;;  %v5621_v53 = vtrunc.f32 %v3573_v42  ;;  %v1498_v40 = vld [vmem:[%s12293_s30 + $0x2a80] sm:$0xff] }
 0x3ca   : > { %v3510_v54 = vmul.f32 0.5, %v1462_v39  ;;  %11731 = vst [vmem:[%s12322_s25 + $0xa48] sm:$0xff] %v9580_v46  ;;  %v3542_v58 = vmul.f32 0.5, %v1494_v44  ;;  %v3574_v59 = vmul.f32 0.5, %v1526_v45  ;;  %v5526_v60 = vtrunc.f32 %v3478_v49  ;;  %v1530_v41 = vld [vmem:[%s12293_s30 + $0x2b80] sm:$0xff]  ;;  %v1435_v46 = vld [vmem:[%s12293_s30 + $0x2888] sm:$0xff] }
 0x3cb   : > { %v9590_v57 = vpack.c.b8 %v9586_v48, %v9582_v47  ;;  %v9592_v62 = vpack.c.f32.eXmY %v5525_v43, %v5557_v51, 312  ;;  %v9596_v63 = vpack.c.f32.eXmY %v5589_v52, %v5621_v53, 312  ;;  %v3479_v1 = vmul.f32 0.5, %v1431_v50  ;;  %v1467_v51 = vld [vmem:[%s12293_s30 + $0x2988] sm:$0xff] }
 0x3cc   : > { %v5558_v0 = vtrunc.f32 %v3510_v54  ;;  %v5590_v3 = vtrunc.f32 %v3542_v58  ;;  %v5622_v4 = vtrunc.f32 %v3574_v59  ;;  %v3511_v5 = vmul.f32 0.5, %v1463_v55  ;;  %v1499_v52 = vld [vmem:[%s12293_s30 + $0x2a88] sm:$0xff] }
 0x3cd   : > { %11732 = vst [vmem:[%s12322_s25 + $0xa50] sm:$0xff] %v9590_v57  ;;  %v3543_v6 = vmul.f32 0.5, %v1495_v56  ;;  %v9600_v10 = vpack.c.b8 %v9596_v63, %v9592_v62  ;;  %v3575_v12 = vmul.f32 0.5, %v1527_v61  ;;  %v5527_v13 = vtrunc.f32 %v3479_v1  ;;  %v1531_v57 = vld [vmem:[%s12293_s30 + $0x2b88] sm:$0xff]  ;;  %v1436_v62 = vld [vmem:[%s12293_s30 + $0x2890] sm:$0xff] }
 0x3ce   : > { %v9602_v11 = vpack.c.f32.eXmY %v5526_v60, %v5558_v0, 312  ;;  %v9606_v15 = vpack.c.f32.eXmY %v5590_v3, %v5622_v4, 312  ;;  %v5559_v16 = vtrunc.f32 %v3511_v5  ;;  %v3480_v18 = vmul.f32 0.5, %v1432_v2  ;;  %v1468_v3 = vld [vmem:[%s12293_s30 + $0x2990] sm:$0xff] }
 0x3cf   : > { %v5591_v17 = vtrunc.f32 %v3543_v6  ;;  %11733 = vst [vmem:[%s12322_s25 + $0xa58] sm:$0xff] %v9600_v10  ;;  %v5623_v19 = vtrunc.f32 %v3575_v12  ;;  %v3512_v20 = vmul.f32 0.5, %v1464_v7  ;;  %v3544_v21 = vmul.f32 0.5, %v1496_v8  ;;  %v1500_v4 = vld [vmem:[%s12293_s30 + $0x2a90] sm:$0xff]  ;;  %v1437_v10 = vld [vmem:[%s12293_s30 + $0x2898] sm:$0xff] }
 0x3d0   : > { %v3576_v22 = vmul.f32 0.5, %v1528_v9  ;;  %v9610_v26 = vpack.c.b8 %v9606_v15, %v9602_v11  ;;  %v9612_v27 = vpack.c.f32.eXmY %v5527_v13, %v5559_v16, 312  ;;  %v5528_v28 = vtrunc.f32 %v3480_v18  ;;  %v1532_v5 = vld [vmem:[%s12293_s30 + $0x2b90] sm:$0xff] }
 0x3d1   : > { %v3481_v29 = vmul.f32 0.5, %v1433_v14  ;;  %v9616_v31 = vpack.c.f32.eXmY %v5591_v17, %v5623_v19, 312  ;;  %v5560_v32 = vtrunc.f32 %v3512_v20  ;;  %v5592_v33 = vtrunc.f32 %v3544_v21  ;;  %v1469_v19 = vld [vmem:[%s12293_s30 + $0x2998] sm:$0xff] }
 0x3d2   : > { %v5624_v34 = vtrunc.f32 %v3576_v22  ;;  %11734 = vst [vmem:[%s12322_s25 + $0xa60] sm:$0xff] %v9610_v26  ;;  %v3513_v36 = vmul.f32 0.5, %v1465_v23  ;;  %v3545_v37 = vmul.f32 0.5, %v1497_v24  ;;  %v3577_v38 = vmul.f32 0.5, %v1529_v25  ;;  %v1501_v20 = vld [vmem:[%s12293_s30 + $0x2a98] sm:$0xff]  ;;  %v1438_v26 = vld [vmem:[%s12293_s30 + $0x28a0] sm:$0xff] }
 0x3d3   : > { %v5529_v39 = vtrunc.f32 %v3481_v29  ;;  %v9620_v42 = vpack.c.b8 %v9616_v31, %v9612_v27  ;;  %v9622_v43 = vpack.c.f32.eXmY %v5528_v28, %v5560_v32, 312  ;;  %v3482_v45 = vmul.f32 0.5, %v1434_v30  ;;  %v1533_v21 = vld [vmem:[%s12293_s30 + $0x2b98] sm:$0xff]  ;;  %v1470_v31 = vld [vmem:[%s12293_s30 + $0x29a0] sm:$0xff] }
 0x3d4   : > { %v9626_v44 = vpack.c.f32.eXmY %v5592_v33, %v5624_v34, 312  ;;  %v5561_v47 = vtrunc.f32 %v3513_v36  ;;  %v5593_v48 = vtrunc.f32 %v3545_v37  ;;  %v5625_v49 = vtrunc.f32 %v3577_v38  ;;  %v1502_v36 = vld [vmem:[%s12293_s30 + $0x2aa0] sm:$0xff] }
 0x3d5   : > { %v3514_v50 = vmul.f32 0.5, %v1466_v35  ;;  %11735 = vst [vmem:[%s12322_s25 + $0xa68] sm:$0xff] %v9620_v42  ;;  %v3546_v54 = vmul.f32 0.5, %v1498_v40  ;;  %v3578_v55 = vmul.f32 0.5, %v1530_v41  ;;  %v5530_v56 = vtrunc.f32 %v3482_v45  ;;  %v1534_v37 = vld [vmem:[%s12293_s30 + $0x2ba0] sm:$0xff]  ;;  %v1439_v42 = vld [vmem:[%s12293_s30 + $0x28a8] sm:$0xff] }
 0x3d6   : > { %v9630_v53 = vpack.c.b8 %v9626_v44, %v9622_v43  ;;  %v9632_v58 = vpack.c.f32.eXmY %v5529_v39, %v5561_v47, 312  ;;  %v9636_v59 = vpack.c.f32.eXmY %v5593_v48, %v5625_v49, 312  ;;  %v3483_v61 = vmul.f32 0.5, %v1435_v46  ;;  %v1471_v47 = vld [vmem:[%s12293_s30 + $0x29a8] sm:$0xff] }
 0x3d7   : > { %v5562_v60 = vtrunc.f32 %v3514_v50  ;;  %v5594_v63 = vtrunc.f32 %v3546_v54  ;;  %v5626_v0 = vtrunc.f32 %v3578_v55  ;;  %v3515_v1 = vmul.f32 0.5, %v1467_v51  ;;  %v1503_v48 = vld [vmem:[%s12293_s30 + $0x2aa8] sm:$0xff] }
 0x3d8   : > { %11736 = vst [vmem:[%s12322_s25 + $0xa70] sm:$0xff] %v9630_v53  ;;  %v3547_v2 = vmul.f32 0.5, %v1499_v52  ;;  %v9640_v6 = vpack.c.b8 %v9636_v59, %v9632_v58  ;;  %v3579_v8 = vmul.f32 0.5, %v1531_v57  ;;  %v5531_v9 = vtrunc.f32 %v3483_v61  ;;  %v1535_v53 = vld [vmem:[%s12293_s30 + $0x2ba8] sm:$0xff]  ;;  %v1440_v58 = vld [vmem:[%s12293_s30 + $0x28b0] sm:$0xff] }
 0x3d9   : > { %v9642_v7 = vpack.c.f32.eXmY %v5530_v56, %v5562_v60, 312  ;;  %v9646_v11 = vpack.c.f32.eXmY %v5594_v63, %v5626_v0, 312  ;;  %v5563_v12 = vtrunc.f32 %v3515_v1  ;;  %v3484_v14 = vmul.f32 0.5, %v1436_v62  ;;  %v1472_v63 = vld [vmem:[%s12293_s30 + $0x29b0] sm:$0xff] }
 0x3da   : > { %v5595_v13 = vtrunc.f32 %v3547_v2  ;;  %11737 = vst [vmem:[%s12322_s25 + $0xa78] sm:$0xff] %v9640_v6  ;;  %v5627_v15 = vtrunc.f32 %v3579_v8  ;;  %v3516_v16 = vmul.f32 0.5, %v1468_v3  ;;  %v3548_v17 = vmul.f32 0.5, %v1500_v4  ;;  %v1504_v0 = vld [vmem:[%s12293_s30 + $0x2ab0] sm:$0xff]  ;;  %v1441_v6 = vld [vmem:[%s12293_s30 + $0x28b8] sm:$0xff] }
 0x3db   : > { %v3580_v18 = vmul.f32 0.5, %v1532_v5  ;;  %v9650_v22 = vpack.c.b8 %v9646_v11, %v9642_v7  ;;  %v9652_v23 = vpack.c.f32.eXmY %v5531_v9, %v5563_v12, 312  ;;  %v5532_v24 = vtrunc.f32 %v3484_v14  ;;  %v1536_v1 = vld [vmem:[%s12293_s30 + $0x2bb0] sm:$0xff] }
 0x3dc   : > { %v3485_v25 = vmul.f32 0.5, %v1437_v10  ;;  %v9656_v27 = vpack.c.f32.eXmY %v5595_v13, %v5627_v15, 312  ;;  %v5564_v28 = vtrunc.f32 %v3516_v16  ;;  %v5596_v29 = vtrunc.f32 %v3548_v17  ;;  %v1473_v15 = vld [vmem:[%s12293_s30 + $0x29b8] sm:$0xff] }
 0x3dd   : > { %v5628_v30 = vtrunc.f32 %v3580_v18  ;;  %11738 = vst [vmem:[%s12322_s25 + $0xa80] sm:$0xff] %v9650_v22  ;;  %v3517_v32 = vmul.f32 0.5, %v1469_v19  ;;  %v3549_v33 = vmul.f32 0.5, %v1501_v20  ;;  %v3581_v34 = vmul.f32 0.5, %v1533_v21  ;;  %v1505_v16 = vld [vmem:[%s12293_s30 + $0x2ab8] sm:$0xff]  ;;  %v1442_v22 = vld [vmem:[%s12293_s30 + $0x28c0] sm:$0xff] }
 0x3de   : > { %v5533_v35 = vtrunc.f32 %v3485_v25  ;;  %v9660_v38 = vpack.c.b8 %v9656_v27, %v9652_v23  ;;  %v9662_v39 = vpack.c.f32.eXmY %v5532_v24, %v5564_v28, 312  ;;  %v3486_v41 = vmul.f32 0.5, %v1438_v26  ;;  %v1537_v17 = vld [vmem:[%s12293_s30 + $0x2bb8] sm:$0xff]  ;;  %v1474_v27 = vld [vmem:[%s12293_s30 + $0x29c0] sm:$0xff] }
 0x3df   : > { %v9666_v40 = vpack.c.f32.eXmY %v5596_v29, %v5628_v30, 312  ;;  %v5565_v43 = vtrunc.f32 %v3517_v32  ;;  %v5597_v44 = vtrunc.f32 %v3549_v33  ;;  %v5629_v45 = vtrunc.f32 %v3581_v34  ;;  %v1506_v32 = vld [vmem:[%s12293_s30 + $0x2ac0] sm:$0xff] }
 0x3e0   : > { %v3518_v46 = vmul.f32 0.5, %v1470_v31  ;;  %11739 = vst [vmem:[%s12322_s25 + $0xa88] sm:$0xff] %v9660_v38  ;;  %v3550_v50 = vmul.f32 0.5, %v1502_v36  ;;  %v3582_v51 = vmul.f32 0.5, %v1534_v37  ;;  %v5534_v52 = vtrunc.f32 %v3486_v41  ;;  %v1538_v33 = vld [vmem:[%s12293_s30 + $0x2bc0] sm:$0xff]  ;;  %v1443_v38 = vld [vmem:[%s12293_s30 + $0x28c8] sm:$0xff] }
 0x3e1   : > { %v9670_v49 = vpack.c.b8 %v9666_v40, %v9662_v39  ;;  %v9672_v54 = vpack.c.f32.eXmY %v5533_v35, %v5565_v43, 312  ;;  %v9676_v55 = vpack.c.f32.eXmY %v5597_v44, %v5629_v45, 312  ;;  %v3487_v57 = vmul.f32 0.5, %v1439_v42  ;;  %v1475_v43 = vld [vmem:[%s12293_s30 + $0x29c8] sm:$0xff] }
 0x3e2   : > { %v5566_v56 = vtrunc.f32 %v3518_v46  ;;  %v5598_v59 = vtrunc.f32 %v3550_v50  ;;  %v5630_v60 = vtrunc.f32 %v3582_v51  ;;  %v3519_v61 = vmul.f32 0.5, %v1471_v47  ;;  %v1507_v44 = vld [vmem:[%s12293_s30 + $0x2ac8] sm:$0xff] }
 0x3e3   : > { %11740 = vst [vmem:[%s12322_s25 + $0xa90] sm:$0xff] %v9670_v49  ;;  %v3551_v62 = vmul.f32 0.5, %v1503_v48  ;;  %v9680_v2 = vpack.c.b8 %v9676_v55, %v9672_v54  ;;  %v3583_v4 = vmul.f32 0.5, %v1535_v53  ;;  %v5535_v5 = vtrunc.f32 %v3487_v57  ;;  %v1539_v49 = vld [vmem:[%s12293_s30 + $0x2bc8] sm:$0xff]  ;;  %v1444_v54 = vld [vmem:[%s12293_s30 + $0x28d0] sm:$0xff] }
 0x3e4   : > { %v9682_v3 = vpack.c.f32.eXmY %v5534_v52, %v5566_v56, 312  ;;  %v9686_v7 = vpack.c.f32.eXmY %v5598_v59, %v5630_v60, 312  ;;  %v5567_v8 = vtrunc.f32 %v3519_v61  ;;  %v3488_v10 = vmul.f32 0.5, %v1440_v58  ;;  %v1476_v59 = vld [vmem:[%s12293_s30 + $0x29d0] sm:$0xff] }
 0x3e5   : > { %v5599_v9 = vtrunc.f32 %v3551_v62  ;;  %11741 = vst [vmem:[%s12322_s25 + $0xa98] sm:$0xff] %v9680_v2  ;;  %v5631_v11 = vtrunc.f32 %v3583_v4  ;;  %v3520_v12 = vmul.f32 0.5, %v1472_v63  ;;  %v3552_v13 = vmul.f32 0.5, %v1504_v0  ;;  %v1508_v60 = vld [vmem:[%s12293_s30 + $0x2ad0] sm:$0xff]  ;;  %v1445_v2 = vld [vmem:[%s12293_s30 + $0x28d8] sm:$0xff] }
 0x3e6   : > { %v3584_v14 = vmul.f32 0.5, %v1536_v1  ;;  %v9690_v18 = vpack.c.b8 %v9686_v7, %v9682_v3  ;;  %v9692_v19 = vpack.c.f32.eXmY %v5535_v5, %v5567_v8, 312  ;;  %v5536_v20 = vtrunc.f32 %v3488_v10  ;;  %v1540_v61 = vld [vmem:[%s12293_s30 + $0x2bd0] sm:$0xff] }
 0x3e7   : > { %v3489_v21 = vmul.f32 0.5, %v1441_v6  ;;  %v9696_v23 = vpack.c.f32.eXmY %v5599_v9, %v5631_v11, 312  ;;  %v5568_v24 = vtrunc.f32 %v3520_v12  ;;  %v5600_v25 = vtrunc.f32 %v3552_v13  ;;  %v1477_v11 = vld [vmem:[%s12293_s30 + $0x29d8] sm:$0xff] }
 0x3e8   : > { %v5632_v26 = vtrunc.f32 %v3584_v14  ;;  %11742 = vst [vmem:[%s12322_s25 + $0xaa0] sm:$0xff] %v9690_v18  ;;  %v3521_v28 = vmul.f32 0.5, %v1473_v15  ;;  %v3553_v29 = vmul.f32 0.5, %v1505_v16  ;;  %v3585_v30 = vmul.f32 0.5, %v1537_v17  ;;  %v1509_v12 = vld [vmem:[%s12293_s30 + $0x2ad8] sm:$0xff]  ;;  %v1446_v18 = vld [vmem:[%s12293_s30 + $0x28e0] sm:$0xff] }
 0x3e9   : > { %v5537_v31 = vtrunc.f32 %v3489_v21  ;;  %v9700_v34 = vpack.c.b8 %v9696_v23, %v9692_v19  ;;  %v9702_v35 = vpack.c.f32.eXmY %v5536_v20, %v5568_v24, 312  ;;  %v3490_v37 = vmul.f32 0.5, %v1442_v22  ;;  %v1541_v13 = vld [vmem:[%s12293_s30 + $0x2bd8] sm:$0xff]  ;;  %v1478_v23 = vld [vmem:[%s12293_s30 + $0x29e0] sm:$0xff] }
 0x3ea   : > { %v9706_v36 = vpack.c.f32.eXmY %v5600_v25, %v5632_v26, 312  ;;  %v5569_v39 = vtrunc.f32 %v3521_v28  ;;  %v5601_v40 = vtrunc.f32 %v3553_v29  ;;  %v5633_v41 = vtrunc.f32 %v3585_v30  ;;  %v1510_v28 = vld [vmem:[%s12293_s30 + $0x2ae0] sm:$0xff] }
 0x3eb   : > { %v3522_v42 = vmul.f32 0.5, %v1474_v27  ;;  %11743 = vst [vmem:[%s12322_s25 + $0xaa8] sm:$0xff] %v9700_v34  ;;  %v3554_v46 = vmul.f32 0.5, %v1506_v32  ;;  %v3586_v47 = vmul.f32 0.5, %v1538_v33  ;;  %v5538_v48 = vtrunc.f32 %v3490_v37  ;;  %v1542_v29 = vld [vmem:[%s12293_s30 + $0x2be0] sm:$0xff]  ;;  %v1447_v34 = vld [vmem:[%s12293_s30 + $0x28e8] sm:$0xff] }
 0x3ec   : > { %v9710_v45 = vpack.c.b8 %v9706_v36, %v9702_v35  ;;  %v9712_v50 = vpack.c.f32.eXmY %v5537_v31, %v5569_v39, 312  ;;  %v9716_v51 = vpack.c.f32.eXmY %v5601_v40, %v5633_v41, 312  ;;  %v3491_v53 = vmul.f32 0.5, %v1443_v38  ;;  %v1479_v39 = vld [vmem:[%s12293_s30 + $0x29e8] sm:$0xff] }
 0x3ed   : > { %v5570_v52 = vtrunc.f32 %v3522_v42  ;;  %v5602_v55 = vtrunc.f32 %v3554_v46  ;;  %v5634_v56 = vtrunc.f32 %v3586_v47  ;;  %v3523_v57 = vmul.f32 0.5, %v1475_v43  ;;  %v1511_v40 = vld [vmem:[%s12293_s30 + $0x2ae8] sm:$0xff] }
 0x3ee   : > { %11744 = vst [vmem:[%s12322_s25 + $0xab0] sm:$0xff] %v9710_v45  ;;  %v3555_v58 = vmul.f32 0.5, %v1507_v44  ;;  %v9720_v62 = vpack.c.b8 %v9716_v51, %v9712_v50  ;;  %v3587_v0 = vmul.f32 0.5, %v1539_v49  ;;  %v5539_v1 = vtrunc.f32 %v3491_v53  ;;  %v1543_v45 = vld [vmem:[%s12293_s30 + $0x2be8] sm:$0xff]  ;;  %v1448_v50 = vld [vmem:[%s12293_s30 + $0x28f0] sm:$0xff] }
 0x3ef   : > { %v9722_v63 = vpack.c.f32.eXmY %v5538_v48, %v5570_v52, 312  ;;  %v9726_v3 = vpack.c.f32.eXmY %v5602_v55, %v5634_v56, 312  ;;  %v5571_v4 = vtrunc.f32 %v3523_v57  ;;  %v3492_v6 = vmul.f32 0.5, %v1444_v54  ;;  %v1480_v55 = vld [vmem:[%s12293_s30 + $0x29f0] sm:$0xff] }
 0x3f0   : > { %v5603_v5 = vtrunc.f32 %v3555_v58  ;;  %11745 = vst [vmem:[%s12322_s25 + $0xab8] sm:$0xff] %v9720_v62  ;;  %v5635_v7 = vtrunc.f32 %v3587_v0  ;;  %v3524_v8 = vmul.f32 0.5, %v1476_v59  ;;  %v3556_v9 = vmul.f32 0.5, %v1508_v60  ;;  %v1512_v56 = vld [vmem:[%s12293_s30 + $0x2af0] sm:$0xff]  ;;  %v1449_v62 = vld [vmem:[%s12293_s30 + $0x28f8] sm:$0xff] }
 0x3f1   : > { %v3588_v10 = vmul.f32 0.5, %v1540_v61  ;;  %v9730_v14 = vpack.c.b8 %v9726_v3, %v9722_v63  ;;  %v9732_v15 = vpack.c.f32.eXmY %v5539_v1, %v5571_v4, 312  ;;  %v5540_v16 = vtrunc.f32 %v3492_v6  ;;  %v1544_v57 = vld [vmem:[%s12293_s30 + $0x2bf0] sm:$0xff] }
 0x3f2   : > { %v3493_v17 = vmul.f32 0.5, %v1445_v2  ;;  %v9736_v19 = vpack.c.f32.eXmY %v5603_v5, %v5635_v7, 312  ;;  %v5572_v20 = vtrunc.f32 %v3524_v8  ;;  %v5604_v21 = vtrunc.f32 %v3556_v9  ;;  %v1481_v7 = vld [vmem:[%s12293_s30 + $0x29f8] sm:$0xff] }
 0x3f3   : > { %v5636_v22 = vtrunc.f32 %v3588_v10  ;;  %11746 = vst [vmem:[%s12322_s25 + $0xac0] sm:$0xff] %v9730_v14  ;;  %v3525_v24 = vmul.f32 0.5, %v1477_v11  ;;  %v3557_v25 = vmul.f32 0.5, %v1509_v12  ;;  %v3589_v26 = vmul.f32 0.5, %v1541_v13  ;;  %v1513_v8 = vld [vmem:[%s12293_s30 + $0x2af8] sm:$0xff]  ;;  %v1546_v14 = vld [vmem:[%s12293_s30 + $0x2c00] sm:$0xff] }
 0x3f4   : > { %v5541_v27 = vtrunc.f32 %v3493_v17  ;;  %v9740_v30 = vpack.c.b8 %v9736_v19, %v9732_v15  ;;  %v9742_v31 = vpack.c.f32.eXmY %v5540_v16, %v5572_v20, 312  ;;  %v3494_v33 = vmul.f32 0.5, %v1446_v18  ;;  %v1545_v9 = vld [vmem:[%s12293_s30 + $0x2bf8] sm:$0xff]  ;;  %v1578_v19 = vld [vmem:[%s12293_s30 + $0x2d00] sm:$0xff] }
 0x3f5   : > { %v9746_v32 = vpack.c.f32.eXmY %v5604_v21, %v5636_v22, 312  ;;  %v5573_v35 = vtrunc.f32 %v3525_v24  ;;  %v5605_v36 = vtrunc.f32 %v3557_v25  ;;  %v5637_v37 = vtrunc.f32 %v3589_v26  ;;  %v1610_v24 = vld [vmem:[%s12293_s30 + $0x2e00] sm:$0xff] }
 0x3f6   : > { %v3526_v38 = vmul.f32 0.5, %v1478_v23  ;;  %11747 = vst [vmem:[%s12322_s25 + $0xac8] sm:$0xff] %v9740_v30  ;;  %v3558_v42 = vmul.f32 0.5, %v1510_v28  ;;  %v3590_v43 = vmul.f32 0.5, %v1542_v29  ;;  %v5542_v44 = vtrunc.f32 %v3494_v33  ;;  %v1642_v25 = vld [vmem:[%s12293_s30 + $0x2f00] sm:$0xff]  ;;  %v1547_v30 = vld [vmem:[%s12293_s30 + $0x2c08] sm:$0xff] }
 0x3f7   : > { %v9750_v41 = vpack.c.b8 %v9746_v32, %v9742_v31  ;;  %v9752_v46 = vpack.c.f32.eXmY %v5541_v27, %v5573_v35, 312  ;;  %v9756_v47 = vpack.c.f32.eXmY %v5605_v36, %v5637_v37, 312  ;;  %v3495_v49 = vmul.f32 0.5, %v1447_v34  ;;  %v1579_v35 = vld [vmem:[%s12293_s30 + $0x2d08] sm:$0xff] }
 0x3f8   : > { %v5574_v48 = vtrunc.f32 %v3526_v38  ;;  %v5606_v51 = vtrunc.f32 %v3558_v42  ;;  %v5638_v52 = vtrunc.f32 %v3590_v43  ;;  %v3527_v53 = vmul.f32 0.5, %v1479_v39  ;;  %v1611_v36 = vld [vmem:[%s12293_s30 + $0x2e08] sm:$0xff] }
 0x3f9   : > { %11748 = vst [vmem:[%s12322_s25 + $0xad0] sm:$0xff] %v9750_v41  ;;  %v3559_v54 = vmul.f32 0.5, %v1511_v40  ;;  %v9760_v58 = vpack.c.b8 %v9756_v47, %v9752_v46  ;;  %v3591_v60 = vmul.f32 0.5, %v1543_v45  ;;  %v5543_v61 = vtrunc.f32 %v3495_v49  ;;  %v1643_v41 = vld [vmem:[%s12293_s30 + $0x2f08] sm:$0xff]  ;;  %v1548_v46 = vld [vmem:[%s12293_s30 + $0x2c10] sm:$0xff] }
 0x3fa   : > { %v9762_v59 = vpack.c.f32.eXmY %v5542_v44, %v5574_v48, 312  ;;  %v9766_v63 = vpack.c.f32.eXmY %v5606_v51, %v5638_v52, 312  ;;  %v5575_v0 = vtrunc.f32 %v3527_v53  ;;  %v3496_v2 = vmul.f32 0.5, %v1448_v50  ;;  %v1580_v51 = vld [vmem:[%s12293_s30 + $0x2d10] sm:$0xff] }
 0x3fb   : > { %v5607_v1 = vtrunc.f32 %v3559_v54  ;;  %11749 = vst [vmem:[%s12322_s25 + $0xad8] sm:$0xff] %v9760_v58  ;;  %v5639_v3 = vtrunc.f32 %v3591_v60  ;;  %v3528_v4 = vmul.f32 0.5, %v1480_v55  ;;  %v3560_v5 = vmul.f32 0.5, %v1512_v56  ;;  %v1612_v52 = vld [vmem:[%s12293_s30 + $0x2e10] sm:$0xff]  ;;  %v1549_v58 = vld [vmem:[%s12293_s30 + $0x2c18] sm:$0xff] }
 0x3fc   : > { %v3592_v6 = vmul.f32 0.5, %v1544_v57  ;;  %v9770_v10 = vpack.c.b8 %v9766_v63, %v9762_v59  ;;  %v9772_v11 = vpack.c.f32.eXmY %v5543_v61, %v5575_v0, 312  ;;  %v5544_v12 = vtrunc.f32 %v3496_v2  ;;  %v1644_v53 = vld [vmem:[%s12293_s30 + $0x2f10] sm:$0xff] }
 0x3fd   : > { %v3497_v13 = vmul.f32 0.5, %v1449_v62  ;;  %v9776_v15 = vpack.c.f32.eXmY %v5607_v1, %v5639_v3, 312  ;;  %v5576_v16 = vtrunc.f32 %v3528_v4  ;;  %v5608_v17 = vtrunc.f32 %v3560_v5  ;;  %v1581_v3 = vld [vmem:[%s12293_s30 + $0x2d18] sm:$0xff] }
 0x3fe   : > { %v5640_v18 = vtrunc.f32 %v3592_v6  ;;  %11750 = vst [vmem:[%s12322_s25 + $0xae0] sm:$0xff] %v9770_v10  ;;  %v3529_v20 = vmul.f32 0.5, %v1481_v7  ;;  %v3561_v21 = vmul.f32 0.5, %v1513_v8  ;;  %v3593_v22 = vmul.f32 0.5, %v1545_v9  ;;  %v1613_v4 = vld [vmem:[%s12293_s30 + $0x2e18] sm:$0xff]  ;;  %v1550_v10 = vld [vmem:[%s12293_s30 + $0x2c20] sm:$0xff] }
 0x3ff   : > { %v5545_v23 = vtrunc.f32 %v3497_v13  ;;  %v9780_v26 = vpack.c.b8 %v9776_v15, %v9772_v11  ;;  %v9782_v27 = vpack.c.f32.eXmY %v5544_v12, %v5576_v16, 312  ;;  %v3594_v29 = vmul.f32 0.5, %v1546_v14  ;;  %v1645_v5 = vld [vmem:[%s12293_s30 + $0x2f18] sm:$0xff]  ;;  %v1582_v15 = vld [vmem:[%s12293_s30 + $0x2d20] sm:$0xff] }
 0x400   : > { %v9786_v28 = vpack.c.f32.eXmY %v5608_v17, %v5640_v18, 312  ;;  %v5577_v31 = vtrunc.f32 %v3529_v20  ;;  %v5609_v32 = vtrunc.f32 %v3561_v21  ;;  %v5641_v33 = vtrunc.f32 %v3593_v22  ;;  %v1614_v20 = vld [vmem:[%s12293_s30 + $0x2e20] sm:$0xff] }
 0x401   : > { %v3626_v34 = vmul.f32 0.5, %v1578_v19  ;;  %11751 = vst [vmem:[%s12322_s25 + $0xae8] sm:$0xff] %v9780_v26  ;;  %v3658_v38 = vmul.f32 0.5, %v1610_v24  ;;  %v3690_v39 = vmul.f32 0.5, %v1642_v25  ;;  %v5642_v40 = vtrunc.f32 %v3594_v29  ;;  %v1646_v21 = vld [vmem:[%s12293_s30 + $0x2f20] sm:$0xff]  ;;  %v1551_v26 = vld [vmem:[%s12293_s30 + $0x2c28] sm:$0xff] }
 0x402   : > { %v9790_v37 = vpack.c.b8 %v9786_v28, %v9782_v27  ;;  %v9792_v42 = vpack.c.f32.eXmY %v5545_v23, %v5577_v31, 312  ;;  %v9796_v43 = vpack.c.f32.eXmY %v5609_v32, %v5641_v33, 312  ;;  %v3595_v45 = vmul.f32 0.5, %v1547_v30  ;;  %v1583_v31 = vld [vmem:[%s12293_s30 + $0x2d28] sm:$0xff] }
 0x403   : > { %v5674_v44 = vtrunc.f32 %v3626_v34  ;;  %v5706_v47 = vtrunc.f32 %v3658_v38  ;;  %v5738_v48 = vtrunc.f32 %v3690_v39  ;;  %v3627_v49 = vmul.f32 0.5, %v1579_v35  ;;  %v1615_v32 = vld [vmem:[%s12293_s30 + $0x2e28] sm:$0xff] }
 0x404   : > { %11752 = vst [vmem:[%s12322_s25 + $0xaf0] sm:$0xff] %v9790_v37  ;;  %v3659_v50 = vmul.f32 0.5, %v1611_v36  ;;  %v9800_v54 = vpack.c.b8 %v9796_v43, %v9792_v42  ;;  %v3691_v56 = vmul.f32 0.5, %v1643_v41  ;;  %v5643_v57 = vtrunc.f32 %v3595_v45  ;;  %v1647_v37 = vld [vmem:[%s12293_s30 + $0x2f28] sm:$0xff]  ;;  %v1552_v42 = vld [vmem:[%s12293_s30 + $0x2c30] sm:$0xff] }
 0x405   : > { %v9802_v55 = vpack.c.f32.eXmY %v5642_v40, %v5674_v44, 312  ;;  %v9806_v59 = vpack.c.f32.eXmY %v5706_v47, %v5738_v48, 312  ;;  %v5675_v60 = vtrunc.f32 %v3627_v49  ;;  %v3596_v62 = vmul.f32 0.5, %v1548_v46  ;;  %v1584_v47 = vld [vmem:[%s12293_s30 + $0x2d30] sm:$0xff] }
 0x406   : > { %v5707_v61 = vtrunc.f32 %v3659_v50  ;;  %11753 = vst [vmem:[%s12322_s25 + $0xaf8] sm:$0xff] %v9800_v54  ;;  %v5739_v63 = vtrunc.f32 %v3691_v56  ;;  %v3628_v0 = vmul.f32 0.5, %v1580_v51  ;;  %v3660_v1 = vmul.f32 0.5, %v1612_v52  ;;  %v1616_v48 = vld [vmem:[%s12293_s30 + $0x2e30] sm:$0xff]  ;;  %v1553_v54 = vld [vmem:[%s12293_s30 + $0x2c38] sm:$0xff] }
 0x407   : > { %v3692_v2 = vmul.f32 0.5, %v1644_v53  ;;  %v9810_v6 = vpack.c.b8 %v9806_v59, %v9802_v55  ;;  %v9812_v7 = vpack.c.f32.eXmY %v5643_v57, %v5675_v60, 312  ;;  %v5644_v8 = vtrunc.f32 %v3596_v62  ;;  %v1648_v49 = vld [vmem:[%s12293_s30 + $0x2f30] sm:$0xff] }
 0x408   : > { %v3597_v9 = vmul.f32 0.5, %v1549_v58  ;;  %v9816_v11 = vpack.c.f32.eXmY %v5707_v61, %v5739_v63, 312  ;;  %v5676_v12 = vtrunc.f32 %v3628_v0  ;;  %v5708_v13 = vtrunc.f32 %v3660_v1  ;;  %v1585_v63 = vld [vmem:[%s12293_s30 + $0x2d38] sm:$0xff] }
 0x409   : > { %v5740_v14 = vtrunc.f32 %v3692_v2  ;;  %11754 = vst [vmem:[%s12322_s25 + $0xb00] sm:$0xff] %v9810_v6  ;;  %v3629_v16 = vmul.f32 0.5, %v1581_v3  ;;  %v3661_v17 = vmul.f32 0.5, %v1613_v4  ;;  %v3693_v18 = vmul.f32 0.5, %v1645_v5  ;;  %v1617_v0 = vld [vmem:[%s12293_s30 + $0x2e38] sm:$0xff]  ;;  %v1554_v6 = vld [vmem:[%s12293_s30 + $0x2c40] sm:$0xff] }
 0x40a   : > { %v5645_v19 = vtrunc.f32 %v3597_v9  ;;  %v9820_v22 = vpack.c.b8 %v9816_v11, %v9812_v7  ;;  %v9822_v23 = vpack.c.f32.eXmY %v5644_v8, %v5676_v12, 312  ;;  %v3598_v25 = vmul.f32 0.5, %v1550_v10  ;;  %v1649_v1 = vld [vmem:[%s12293_s30 + $0x2f38] sm:$0xff]  ;;  %v1586_v11 = vld [vmem:[%s12293_s30 + $0x2d40] sm:$0xff] }
 0x40b   : > { %v9826_v24 = vpack.c.f32.eXmY %v5708_v13, %v5740_v14, 312  ;;  %v5677_v27 = vtrunc.f32 %v3629_v16  ;;  %v5709_v28 = vtrunc.f32 %v3661_v17  ;;  %v5741_v29 = vtrunc.f32 %v3693_v18  ;;  %v1618_v16 = vld [vmem:[%s12293_s30 + $0x2e40] sm:$0xff] }
 0x40c   : > { %v3630_v30 = vmul.f32 0.5, %v1582_v15  ;;  %11755 = vst [vmem:[%s12322_s25 + $0xb08] sm:$0xff] %v9820_v22  ;;  %v3662_v34 = vmul.f32 0.5, %v1614_v20  ;;  %v3694_v35 = vmul.f32 0.5, %v1646_v21  ;;  %v5646_v36 = vtrunc.f32 %v3598_v25  ;;  %v1650_v17 = vld [vmem:[%s12293_s30 + $0x2f40] sm:$0xff]  ;;  %v1555_v22 = vld [vmem:[%s12293_s30 + $0x2c48] sm:$0xff] }
 0x40d   : > { %v9830_v33 = vpack.c.b8 %v9826_v24, %v9822_v23  ;;  %v9832_v38 = vpack.c.f32.eXmY %v5645_v19, %v5677_v27, 312  ;;  %v9836_v39 = vpack.c.f32.eXmY %v5709_v28, %v5741_v29, 312  ;;  %v3599_v41 = vmul.f32 0.5, %v1551_v26  ;;  %v1587_v27 = vld [vmem:[%s12293_s30 + $0x2d48] sm:$0xff] }
 0x40e   : > { %v5678_v40 = vtrunc.f32 %v3630_v30  ;;  %v5710_v43 = vtrunc.f32 %v3662_v34  ;;  %v5742_v44 = vtrunc.f32 %v3694_v35  ;;  %v3631_v45 = vmul.f32 0.5, %v1583_v31  ;;  %v1619_v28 = vld [vmem:[%s12293_s30 + $0x2e48] sm:$0xff] }
 0x40f   : > { %11756 = vst [vmem:[%s12322_s25 + $0xb10] sm:$0xff] %v9830_v33  ;;  %v3663_v46 = vmul.f32 0.5, %v1615_v32  ;;  %v9840_v50 = vpack.c.b8 %v9836_v39, %v9832_v38  ;;  %v3695_v52 = vmul.f32 0.5, %v1647_v37  ;;  %v5647_v53 = vtrunc.f32 %v3599_v41  ;;  %v1651_v33 = vld [vmem:[%s12293_s30 + $0x2f48] sm:$0xff]  ;;  %v1556_v38 = vld [vmem:[%s12293_s30 + $0x2c50] sm:$0xff] }
 0x410   : > { %v9842_v51 = vpack.c.f32.eXmY %v5646_v36, %v5678_v40, 312  ;;  %v9846_v55 = vpack.c.f32.eXmY %v5710_v43, %v5742_v44, 312  ;;  %v5679_v56 = vtrunc.f32 %v3631_v45  ;;  %v3600_v58 = vmul.f32 0.5, %v1552_v42  ;;  %v1588_v43 = vld [vmem:[%s12293_s30 + $0x2d50] sm:$0xff] }
 0x411   : > { %v5711_v57 = vtrunc.f32 %v3663_v46  ;;  %11757 = vst [vmem:[%s12322_s25 + $0xb18] sm:$0xff] %v9840_v50  ;;  %v5743_v59 = vtrunc.f32 %v3695_v52  ;;  %v3632_v60 = vmul.f32 0.5, %v1584_v47  ;;  %v3664_v61 = vmul.f32 0.5, %v1616_v48  ;;  %v1620_v44 = vld [vmem:[%s12293_s30 + $0x2e50] sm:$0xff]  ;;  %v1557_v50 = vld [vmem:[%s12293_s30 + $0x2c58] sm:$0xff] }
 0x412   : > { %v3696_v62 = vmul.f32 0.5, %v1648_v49  ;;  %v9850_v2 = vpack.c.b8 %v9846_v55, %v9842_v51  ;;  %v9852_v3 = vpack.c.f32.eXmY %v5647_v53, %v5679_v56, 312  ;;  %v5648_v4 = vtrunc.f32 %v3600_v58  ;;  %v1652_v45 = vld [vmem:[%s12293_s30 + $0x2f50] sm:$0xff] }
 0x413   : > { %v3601_v5 = vmul.f32 0.5, %v1553_v54  ;;  %v9856_v7 = vpack.c.f32.eXmY %v5711_v57, %v5743_v59, 312  ;;  %v5680_v8 = vtrunc.f32 %v3632_v60  ;;  %v5712_v9 = vtrunc.f32 %v3664_v61  ;;  %v1589_v59 = vld [vmem:[%s12293_s30 + $0x2d58] sm:$0xff] }
 0x414   : > { %v5744_v10 = vtrunc.f32 %v3696_v62  ;;  %11758 = vst [vmem:[%s12322_s25 + $0xb20] sm:$0xff] %v9850_v2  ;;  %v3633_v12 = vmul.f32 0.5, %v1585_v63  ;;  %v3665_v13 = vmul.f32 0.5, %v1617_v0  ;;  %v3697_v14 = vmul.f32 0.5, %v1649_v1  ;;  %v1621_v60 = vld [vmem:[%s12293_s30 + $0x2e58] sm:$0xff]  ;;  %v1558_v2 = vld [vmem:[%s12293_s30 + $0x2c60] sm:$0xff] }
 0x415   : > { %v5649_v15 = vtrunc.f32 %v3601_v5  ;;  %v9860_v18 = vpack.c.b8 %v9856_v7, %v9852_v3  ;;  %v9862_v19 = vpack.c.f32.eXmY %v5648_v4, %v5680_v8, 312  ;;  %v3602_v21 = vmul.f32 0.5, %v1554_v6  ;;  %v1653_v61 = vld [vmem:[%s12293_s30 + $0x2f58] sm:$0xff]  ;;  %v1590_v7 = vld [vmem:[%s12293_s30 + $0x2d60] sm:$0xff] }
 0x416   : > { %v9866_v20 = vpack.c.f32.eXmY %v5712_v9, %v5744_v10, 312  ;;  %v5681_v23 = vtrunc.f32 %v3633_v12  ;;  %v5713_v24 = vtrunc.f32 %v3665_v13  ;;  %v5745_v25 = vtrunc.f32 %v3697_v14  ;;  %v1622_v12 = vld [vmem:[%s12293_s30 + $0x2e60] sm:$0xff] }
 0x417   : > { %v3634_v26 = vmul.f32 0.5, %v1586_v11  ;;  %11759 = vst [vmem:[%s12322_s25 + $0xb28] sm:$0xff] %v9860_v18  ;;  %v3666_v30 = vmul.f32 0.5, %v1618_v16  ;;  %v3698_v31 = vmul.f32 0.5, %v1650_v17  ;;  %v5650_v32 = vtrunc.f32 %v3602_v21  ;;  %v1654_v13 = vld [vmem:[%s12293_s30 + $0x2f60] sm:$0xff]  ;;  %v1559_v18 = vld [vmem:[%s12293_s30 + $0x2c68] sm:$0xff] }
 0x418   : > { %v9870_v29 = vpack.c.b8 %v9866_v20, %v9862_v19  ;;  %v9872_v34 = vpack.c.f32.eXmY %v5649_v15, %v5681_v23, 312  ;;  %v9876_v35 = vpack.c.f32.eXmY %v5713_v24, %v5745_v25, 312  ;;  %v3603_v37 = vmul.f32 0.5, %v1555_v22  ;;  %v1591_v23 = vld [vmem:[%s12293_s30 + $0x2d68] sm:$0xff] }
 0x419   : > { %v5682_v36 = vtrunc.f32 %v3634_v26  ;;  %v5714_v39 = vtrunc.f32 %v3666_v30  ;;  %v5746_v40 = vtrunc.f32 %v3698_v31  ;;  %v3635_v41 = vmul.f32 0.5, %v1587_v27  ;;  %v1623_v24 = vld [vmem:[%s12293_s30 + $0x2e68] sm:$0xff] }
 0x41a   : > { %11760 = vst [vmem:[%s12322_s25 + $0xb30] sm:$0xff] %v9870_v29  ;;  %v3667_v42 = vmul.f32 0.5, %v1619_v28  ;;  %v9880_v46 = vpack.c.b8 %v9876_v35, %v9872_v34  ;;  %v3699_v48 = vmul.f32 0.5, %v1651_v33  ;;  %v5651_v49 = vtrunc.f32 %v3603_v37  ;;  %v1655_v29 = vld [vmem:[%s12293_s30 + $0x2f68] sm:$0xff]  ;;  %v1560_v34 = vld [vmem:[%s12293_s30 + $0x2c70] sm:$0xff] }
 0x41b   : > { %v9882_v47 = vpack.c.f32.eXmY %v5650_v32, %v5682_v36, 312  ;;  %v9886_v51 = vpack.c.f32.eXmY %v5714_v39, %v5746_v40, 312  ;;  %v5683_v52 = vtrunc.f32 %v3635_v41  ;;  %v3604_v54 = vmul.f32 0.5, %v1556_v38  ;;  %v1592_v39 = vld [vmem:[%s12293_s30 + $0x2d70] sm:$0xff] }
 0x41c   : > { %v5715_v53 = vtrunc.f32 %v3667_v42  ;;  %11761 = vst [vmem:[%s12322_s25 + $0xb38] sm:$0xff] %v9880_v46  ;;  %v5747_v55 = vtrunc.f32 %v3699_v48  ;;  %v3636_v56 = vmul.f32 0.5, %v1588_v43  ;;  %v3668_v57 = vmul.f32 0.5, %v1620_v44  ;;  %v1624_v40 = vld [vmem:[%s12293_s30 + $0x2e70] sm:$0xff]  ;;  %v1561_v46 = vld [vmem:[%s12293_s30 + $0x2c78] sm:$0xff] }
 0x41d   : > { %v3700_v58 = vmul.f32 0.5, %v1652_v45  ;;  %v9890_v62 = vpack.c.b8 %v9886_v51, %v9882_v47  ;;  %v9892_v63 = vpack.c.f32.eXmY %v5651_v49, %v5683_v52, 312  ;;  %v5652_v0 = vtrunc.f32 %v3604_v54  ;;  %v1656_v41 = vld [vmem:[%s12293_s30 + $0x2f70] sm:$0xff] }
 0x41e   : > { %v3605_v1 = vmul.f32 0.5, %v1557_v50  ;;  %v9896_v3 = vpack.c.f32.eXmY %v5715_v53, %v5747_v55, 312  ;;  %v5684_v4 = vtrunc.f32 %v3636_v56  ;;  %v5716_v5 = vtrunc.f32 %v3668_v57  ;;  %v1593_v55 = vld [vmem:[%s12293_s30 + $0x2d78] sm:$0xff] }
 0x41f   : > { %v5748_v6 = vtrunc.f32 %v3700_v58  ;;  %11762 = vst [vmem:[%s12322_s25 + $0xb40] sm:$0xff] %v9890_v62  ;;  %v3637_v8 = vmul.f32 0.5, %v1589_v59  ;;  %v3669_v9 = vmul.f32 0.5, %v1621_v60  ;;  %v3701_v10 = vmul.f32 0.5, %v1653_v61  ;;  %v1625_v56 = vld [vmem:[%s12293_s30 + $0x2e78] sm:$0xff]  ;;  %v1562_v62 = vld [vmem:[%s12293_s30 + $0x2c80] sm:$0xff] }
 0x420   : > { %v5653_v11 = vtrunc.f32 %v3605_v1  ;;  %v9900_v14 = vpack.c.b8 %v9896_v3, %v9892_v63  ;;  %v9902_v15 = vpack.c.f32.eXmY %v5652_v0, %v5684_v4, 312  ;;  %v3606_v17 = vmul.f32 0.5, %v1558_v2  ;;  %v1657_v57 = vld [vmem:[%s12293_s30 + $0x2f78] sm:$0xff]  ;;  %v1594_v3 = vld [vmem:[%s12293_s30 + $0x2d80] sm:$0xff] }
 0x421   : > { %v9906_v16 = vpack.c.f32.eXmY %v5716_v5, %v5748_v6, 312  ;;  %v5685_v19 = vtrunc.f32 %v3637_v8  ;;  %v5717_v20 = vtrunc.f32 %v3669_v9  ;;  %v5749_v21 = vtrunc.f32 %v3701_v10  ;;  %v1626_v8 = vld [vmem:[%s12293_s30 + $0x2e80] sm:$0xff] }
 0x422   : > { %v3638_v22 = vmul.f32 0.5, %v1590_v7  ;;  %11763 = vst [vmem:[%s12322_s25 + $0xb48] sm:$0xff] %v9900_v14  ;;  %v3670_v26 = vmul.f32 0.5, %v1622_v12  ;;  %v3702_v27 = vmul.f32 0.5, %v1654_v13  ;;  %v5654_v28 = vtrunc.f32 %v3606_v17  ;;  %v1658_v9 = vld [vmem:[%s12293_s30 + $0x2f80] sm:$0xff]  ;;  %v1563_v14 = vld [vmem:[%s12293_s30 + $0x2c88] sm:$0xff] }
 0x423   : > { %v9910_v25 = vpack.c.b8 %v9906_v16, %v9902_v15  ;;  %v9912_v30 = vpack.c.f32.eXmY %v5653_v11, %v5685_v19, 312  ;;  %v9916_v31 = vpack.c.f32.eXmY %v5717_v20, %v5749_v21, 312  ;;  %v3607_v33 = vmul.f32 0.5, %v1559_v18  ;;  %v1595_v19 = vld [vmem:[%s12293_s30 + $0x2d88] sm:$0xff] }
 0x424   : > { %v5686_v32 = vtrunc.f32 %v3638_v22  ;;  %v5718_v35 = vtrunc.f32 %v3670_v26  ;;  %v5750_v36 = vtrunc.f32 %v3702_v27  ;;  %v3639_v37 = vmul.f32 0.5, %v1591_v23  ;;  %v1627_v20 = vld [vmem:[%s12293_s30 + $0x2e88] sm:$0xff] }
 0x425   : > { %11764 = vst [vmem:[%s12322_s25 + $0xb50] sm:$0xff] %v9910_v25  ;;  %v3671_v38 = vmul.f32 0.5, %v1623_v24  ;;  %v9920_v42 = vpack.c.b8 %v9916_v31, %v9912_v30  ;;  %v3703_v44 = vmul.f32 0.5, %v1655_v29  ;;  %v5655_v45 = vtrunc.f32 %v3607_v33  ;;  %v1659_v25 = vld [vmem:[%s12293_s30 + $0x2f88] sm:$0xff]  ;;  %v1564_v30 = vld [vmem:[%s12293_s30 + $0x2c90] sm:$0xff] }
 0x426   : > { %v9922_v43 = vpack.c.f32.eXmY %v5654_v28, %v5686_v32, 312  ;;  %v9926_v47 = vpack.c.f32.eXmY %v5718_v35, %v5750_v36, 312  ;;  %v5687_v48 = vtrunc.f32 %v3639_v37  ;;  %v3608_v50 = vmul.f32 0.5, %v1560_v34  ;;  %v1596_v35 = vld [vmem:[%s12293_s30 + $0x2d90] sm:$0xff] }
 0x427   : > { %v5719_v49 = vtrunc.f32 %v3671_v38  ;;  %11765 = vst [vmem:[%s12322_s25 + $0xb58] sm:$0xff] %v9920_v42  ;;  %v5751_v51 = vtrunc.f32 %v3703_v44  ;;  %v3640_v52 = vmul.f32 0.5, %v1592_v39  ;;  %v3672_v53 = vmul.f32 0.5, %v1624_v40  ;;  %v1628_v36 = vld [vmem:[%s12293_s30 + $0x2e90] sm:$0xff]  ;;  %v1565_v42 = vld [vmem:[%s12293_s30 + $0x2c98] sm:$0xff] }
 0x428   : > { %v3704_v54 = vmul.f32 0.5, %v1656_v41  ;;  %v9930_v58 = vpack.c.b8 %v9926_v47, %v9922_v43  ;;  %v9932_v59 = vpack.c.f32.eXmY %v5655_v45, %v5687_v48, 312  ;;  %v5656_v60 = vtrunc.f32 %v3608_v50  ;;  %v1660_v37 = vld [vmem:[%s12293_s30 + $0x2f90] sm:$0xff] }
 0x429   : > { %v3609_v61 = vmul.f32 0.5, %v1561_v46  ;;  %v9936_v63 = vpack.c.f32.eXmY %v5719_v49, %v5751_v51, 312  ;;  %v5688_v0 = vtrunc.f32 %v3640_v52  ;;  %v5720_v1 = vtrunc.f32 %v3672_v53  ;;  %v1597_v51 = vld [vmem:[%s12293_s30 + $0x2d98] sm:$0xff] }
 0x42a   : > { %v5752_v2 = vtrunc.f32 %v3704_v54  ;;  %11766 = vst [vmem:[%s12322_s25 + $0xb60] sm:$0xff] %v9930_v58  ;;  %v3641_v4 = vmul.f32 0.5, %v1593_v55  ;;  %v3673_v5 = vmul.f32 0.5, %v1625_v56  ;;  %v3705_v6 = vmul.f32 0.5, %v1657_v57  ;;  %v1629_v52 = vld [vmem:[%s12293_s30 + $0x2e98] sm:$0xff]  ;;  %v1566_v58 = vld [vmem:[%s12293_s30 + $0x2ca0] sm:$0xff] }
 0x42b   : > { %v5657_v7 = vtrunc.f32 %v3609_v61  ;;  %v9940_v10 = vpack.c.b8 %v9936_v63, %v9932_v59  ;;  %v9942_v11 = vpack.c.f32.eXmY %v5656_v60, %v5688_v0, 312  ;;  %v3610_v13 = vmul.f32 0.5, %v1562_v62  ;;  %v1661_v53 = vld [vmem:[%s12293_s30 + $0x2f98] sm:$0xff]  ;;  %v1598_v63 = vld [vmem:[%s12293_s30 + $0x2da0] sm:$0xff] }
 0x42c   : > { %v9946_v12 = vpack.c.f32.eXmY %v5720_v1, %v5752_v2, 312  ;;  %v5689_v15 = vtrunc.f32 %v3641_v4  ;;  %v5721_v16 = vtrunc.f32 %v3673_v5  ;;  %v5753_v17 = vtrunc.f32 %v3705_v6  ;;  %v1630_v4 = vld [vmem:[%s12293_s30 + $0x2ea0] sm:$0xff] }
 0x42d   : > { %v3642_v18 = vmul.f32 0.5, %v1594_v3  ;;  %11767 = vst [vmem:[%s12322_s25 + $0xb68] sm:$0xff] %v9940_v10  ;;  %v3674_v22 = vmul.f32 0.5, %v1626_v8  ;;  %v3706_v23 = vmul.f32 0.5, %v1658_v9  ;;  %v5658_v24 = vtrunc.f32 %v3610_v13  ;;  %v1662_v5 = vld [vmem:[%s12293_s30 + $0x2fa0] sm:$0xff]  ;;  %v1567_v10 = vld [vmem:[%s12293_s30 + $0x2ca8] sm:$0xff] }
 0x42e   : > { %v9950_v21 = vpack.c.b8 %v9946_v12, %v9942_v11  ;;  %v9952_v26 = vpack.c.f32.eXmY %v5657_v7, %v5689_v15, 312  ;;  %v9956_v27 = vpack.c.f32.eXmY %v5721_v16, %v5753_v17, 312  ;;  %v3611_v29 = vmul.f32 0.5, %v1563_v14  ;;  %v1599_v15 = vld [vmem:[%s12293_s30 + $0x2da8] sm:$0xff] }
 0x42f   : > { %v5690_v28 = vtrunc.f32 %v3642_v18  ;;  %v5722_v31 = vtrunc.f32 %v3674_v22  ;;  %v5754_v32 = vtrunc.f32 %v3706_v23  ;;  %v3643_v33 = vmul.f32 0.5, %v1595_v19  ;;  %v1631_v16 = vld [vmem:[%s12293_s30 + $0x2ea8] sm:$0xff] }
 0x430   : > { %11768 = vst [vmem:[%s12322_s25 + $0xb70] sm:$0xff] %v9950_v21  ;;  %v3675_v34 = vmul.f32 0.5, %v1627_v20  ;;  %v9960_v38 = vpack.c.b8 %v9956_v27, %v9952_v26  ;;  %v3707_v40 = vmul.f32 0.5, %v1659_v25  ;;  %v5659_v41 = vtrunc.f32 %v3611_v29  ;;  %v1663_v21 = vld [vmem:[%s12293_s30 + $0x2fa8] sm:$0xff]  ;;  %v1568_v26 = vld [vmem:[%s12293_s30 + $0x2cb0] sm:$0xff] }
 0x431   : > { %v9962_v39 = vpack.c.f32.eXmY %v5658_v24, %v5690_v28, 312  ;;  %v9966_v43 = vpack.c.f32.eXmY %v5722_v31, %v5754_v32, 312  ;;  %v5691_v44 = vtrunc.f32 %v3643_v33  ;;  %v3612_v46 = vmul.f32 0.5, %v1564_v30  ;;  %v1600_v31 = vld [vmem:[%s12293_s30 + $0x2db0] sm:$0xff] }
 0x432   : > { %v5723_v45 = vtrunc.f32 %v3675_v34  ;;  %11769 = vst [vmem:[%s12322_s25 + $0xb78] sm:$0xff] %v9960_v38  ;;  %v5755_v47 = vtrunc.f32 %v3707_v40  ;;  %v3644_v48 = vmul.f32 0.5, %v1596_v35  ;;  %v3676_v49 = vmul.f32 0.5, %v1628_v36  ;;  %v1632_v32 = vld [vmem:[%s12293_s30 + $0x2eb0] sm:$0xff]  ;;  %v1569_v38 = vld [vmem:[%s12293_s30 + $0x2cb8] sm:$0xff] }
 0x433   : > { %v3708_v50 = vmul.f32 0.5, %v1660_v37  ;;  %v9970_v54 = vpack.c.b8 %v9966_v43, %v9962_v39  ;;  %v9972_v55 = vpack.c.f32.eXmY %v5659_v41, %v5691_v44, 312  ;;  %v5660_v56 = vtrunc.f32 %v3612_v46  ;;  %v1664_v33 = vld [vmem:[%s12293_s30 + $0x2fb0] sm:$0xff] }
 0x434   : > { %v3613_v57 = vmul.f32 0.5, %v1565_v42  ;;  %v9976_v59 = vpack.c.f32.eXmY %v5723_v45, %v5755_v47, 312  ;;  %v5692_v60 = vtrunc.f32 %v3644_v48  ;;  %v5724_v61 = vtrunc.f32 %v3676_v49  ;;  %v1601_v47 = vld [vmem:[%s12293_s30 + $0x2db8] sm:$0xff] }
 0x435   : > { %v5756_v62 = vtrunc.f32 %v3708_v50  ;;  %11770 = vst [vmem:[%s12322_s25 + $0xb80] sm:$0xff] %v9970_v54  ;;  %v3645_v0 = vmul.f32 0.5, %v1597_v51  ;;  %v3677_v1 = vmul.f32 0.5, %v1629_v52  ;;  %v3709_v2 = vmul.f32 0.5, %v1661_v53  ;;  %v1633_v48 = vld [vmem:[%s12293_s30 + $0x2eb8] sm:$0xff]  ;;  %v1570_v54 = vld [vmem:[%s12293_s30 + $0x2cc0] sm:$0xff] }
 0x436   : > { %v5661_v3 = vtrunc.f32 %v3613_v57  ;;  %v9980_v6 = vpack.c.b8 %v9976_v59, %v9972_v55  ;;  %v9982_v7 = vpack.c.f32.eXmY %v5660_v56, %v5692_v60, 312  ;;  %v3614_v9 = vmul.f32 0.5, %v1566_v58  ;;  %v1665_v49 = vld [vmem:[%s12293_s30 + $0x2fb8] sm:$0xff]  ;;  %v1602_v59 = vld [vmem:[%s12293_s30 + $0x2dc0] sm:$0xff] }
 0x437   : > { %v9986_v8 = vpack.c.f32.eXmY %v5724_v61, %v5756_v62, 312  ;;  %v5693_v11 = vtrunc.f32 %v3645_v0  ;;  %v5725_v12 = vtrunc.f32 %v3677_v1  ;;  %v5757_v13 = vtrunc.f32 %v3709_v2  ;;  %v1634_v0 = vld [vmem:[%s12293_s30 + $0x2ec0] sm:$0xff] }
 0x438   : > { %v3646_v14 = vmul.f32 0.5, %v1598_v63  ;;  %11771 = vst [vmem:[%s12322_s25 + $0xb88] sm:$0xff] %v9980_v6  ;;  %v3678_v18 = vmul.f32 0.5, %v1630_v4  ;;  %v3710_v19 = vmul.f32 0.5, %v1662_v5  ;;  %v5662_v20 = vtrunc.f32 %v3614_v9  ;;  %v1666_v1 = vld [vmem:[%s12293_s30 + $0x2fc0] sm:$0xff]  ;;  %v1571_v6 = vld [vmem:[%s12293_s30 + $0x2cc8] sm:$0xff] }
 0x439   : > { %v9990_v17 = vpack.c.b8 %v9986_v8, %v9982_v7  ;;  %v9992_v22 = vpack.c.f32.eXmY %v5661_v3, %v5693_v11, 312  ;;  %v9996_v23 = vpack.c.f32.eXmY %v5725_v12, %v5757_v13, 312  ;;  %v3615_v25 = vmul.f32 0.5, %v1567_v10  ;;  %v1603_v11 = vld [vmem:[%s12293_s30 + $0x2dc8] sm:$0xff] }
 0x43a   : > { %v5694_v24 = vtrunc.f32 %v3646_v14  ;;  %v5726_v27 = vtrunc.f32 %v3678_v18  ;;  %v5758_v28 = vtrunc.f32 %v3710_v19  ;;  %v3647_v29 = vmul.f32 0.5, %v1599_v15  ;;  %v1635_v12 = vld [vmem:[%s12293_s30 + $0x2ec8] sm:$0xff] }
 0x43b   : > { %11772 = vst [vmem:[%s12322_s25 + $0xb90] sm:$0xff] %v9990_v17  ;;  %v3679_v30 = vmul.f32 0.5, %v1631_v16  ;;  %v10000_v34 = vpack.c.b8 %v9996_v23, %v9992_v22  ;;  %v3711_v36 = vmul.f32 0.5, %v1663_v21  ;;  %v5663_v37 = vtrunc.f32 %v3615_v25  ;;  %v1667_v17 = vld [vmem:[%s12293_s30 + $0x2fc8] sm:$0xff]  ;;  %v1572_v22 = vld [vmem:[%s12293_s30 + $0x2cd0] sm:$0xff] }
 0x43c   : > { %v10002_v35 = vpack.c.f32.eXmY %v5662_v20, %v5694_v24, 312  ;;  %v10006_v39 = vpack.c.f32.eXmY %v5726_v27, %v5758_v28, 312  ;;  %v5695_v40 = vtrunc.f32 %v3647_v29  ;;  %v3616_v42 = vmul.f32 0.5, %v1568_v26  ;;  %v1604_v27 = vld [vmem:[%s12293_s30 + $0x2dd0] sm:$0xff] }
 0x43d   : > { %v5727_v41 = vtrunc.f32 %v3679_v30  ;;  %11773 = vst [vmem:[%s12322_s25 + $0xb98] sm:$0xff] %v10000_v34  ;;  %v5759_v43 = vtrunc.f32 %v3711_v36  ;;  %v3648_v44 = vmul.f32 0.5, %v1600_v31  ;;  %v3680_v45 = vmul.f32 0.5, %v1632_v32  ;;  %v1636_v28 = vld [vmem:[%s12293_s30 + $0x2ed0] sm:$0xff]  ;;  %v1573_v34 = vld [vmem:[%s12293_s30 + $0x2cd8] sm:$0xff] }
 0x43e   : > { %v3712_v46 = vmul.f32 0.5, %v1664_v33  ;;  %v10010_v50 = vpack.c.b8 %v10006_v39, %v10002_v35  ;;  %v10012_v51 = vpack.c.f32.eXmY %v5663_v37, %v5695_v40, 312  ;;  %v5664_v52 = vtrunc.f32 %v3616_v42  ;;  %v1668_v29 = vld [vmem:[%s12293_s30 + $0x2fd0] sm:$0xff] }
 0x43f   : > { %v3617_v53 = vmul.f32 0.5, %v1569_v38  ;;  %v10016_v55 = vpack.c.f32.eXmY %v5727_v41, %v5759_v43, 312  ;;  %v5696_v56 = vtrunc.f32 %v3648_v44  ;;  %v5728_v57 = vtrunc.f32 %v3680_v45  ;;  %v1605_v43 = vld [vmem:[%s12293_s30 + $0x2dd8] sm:$0xff] }
 0x440   : > { %v5760_v58 = vtrunc.f32 %v3712_v46  ;;  %11774 = vst [vmem:[%s12322_s25 + $0xba0] sm:$0xff] %v10010_v50  ;;  %v3649_v60 = vmul.f32 0.5, %v1601_v47  ;;  %v3681_v61 = vmul.f32 0.5, %v1633_v48  ;;  %v3713_v62 = vmul.f32 0.5, %v1665_v49  ;;  %v1637_v44 = vld [vmem:[%s12293_s30 + $0x2ed8] sm:$0xff]  ;;  %v1574_v50 = vld [vmem:[%s12293_s30 + $0x2ce0] sm:$0xff] }
 0x441   : > { %v5665_v63 = vtrunc.f32 %v3617_v53  ;;  %v10020_v2 = vpack.c.b8 %v10016_v55, %v10012_v51  ;;  %v10022_v3 = vpack.c.f32.eXmY %v5664_v52, %v5696_v56, 312  ;;  %v3618_v5 = vmul.f32 0.5, %v1570_v54  ;;  %v1669_v45 = vld [vmem:[%s12293_s30 + $0x2fd8] sm:$0xff]  ;;  %v1606_v55 = vld [vmem:[%s12293_s30 + $0x2de0] sm:$0xff] }
 0x442   : > { %v10026_v4 = vpack.c.f32.eXmY %v5728_v57, %v5760_v58, 312  ;;  %v5697_v7 = vtrunc.f32 %v3649_v60  ;;  %v5729_v8 = vtrunc.f32 %v3681_v61  ;;  %v5761_v9 = vtrunc.f32 %v3713_v62  ;;  %v1638_v60 = vld [vmem:[%s12293_s30 + $0x2ee0] sm:$0xff] }
 0x443   : > { %v3650_v10 = vmul.f32 0.5, %v1602_v59  ;;  %11775 = vst [vmem:[%s12322_s25 + $0xba8] sm:$0xff] %v10020_v2  ;;  %v3682_v14 = vmul.f32 0.5, %v1634_v0  ;;  %v3714_v15 = vmul.f32 0.5, %v1666_v1  ;;  %v5666_v16 = vtrunc.f32 %v3618_v5  ;;  %v1670_v61 = vld [vmem:[%s12293_s30 + $0x2fe0] sm:$0xff]  ;;  %v1575_v2 = vld [vmem:[%s12293_s30 + $0x2ce8] sm:$0xff] }
 0x444   : > { %v10030_v13 = vpack.c.b8 %v10026_v4, %v10022_v3  ;;  %v10032_v18 = vpack.c.f32.eXmY %v5665_v63, %v5697_v7, 312  ;;  %v10036_v19 = vpack.c.f32.eXmY %v5729_v8, %v5761_v9, 312  ;;  %v3619_v21 = vmul.f32 0.5, %v1571_v6  ;;  %v1607_v7 = vld [vmem:[%s12293_s30 + $0x2de8] sm:$0xff] }
 0x445   : > { %v5698_v20 = vtrunc.f32 %v3650_v10  ;;  %v5730_v23 = vtrunc.f32 %v3682_v14  ;;  %v5762_v24 = vtrunc.f32 %v3714_v15  ;;  %v3651_v25 = vmul.f32 0.5, %v1603_v11  ;;  %v1639_v8 = vld [vmem:[%s12293_s30 + $0x2ee8] sm:$0xff] }
 0x446   : > { %11776 = vst [vmem:[%s12322_s25 + $0xbb0] sm:$0xff] %v10030_v13  ;;  %v3683_v26 = vmul.f32 0.5, %v1635_v12  ;;  %v10040_v30 = vpack.c.b8 %v10036_v19, %v10032_v18  ;;  %v3715_v32 = vmul.f32 0.5, %v1667_v17  ;;  %v5667_v33 = vtrunc.f32 %v3619_v21  ;;  %v1671_v13 = vld [vmem:[%s12293_s30 + $0x2fe8] sm:$0xff]  ;;  %v1576_v18 = vld [vmem:[%s12293_s30 + $0x2cf0] sm:$0xff] }
 0x447   : > { %v10042_v31 = vpack.c.f32.eXmY %v5666_v16, %v5698_v20, 312  ;;  %v10046_v35 = vpack.c.f32.eXmY %v5730_v23, %v5762_v24, 312  ;;  %v5699_v36 = vtrunc.f32 %v3651_v25  ;;  %v3620_v38 = vmul.f32 0.5, %v1572_v22  ;;  %v1608_v23 = vld [vmem:[%s12293_s30 + $0x2df0] sm:$0xff] }
 0x448   : > { %v5731_v37 = vtrunc.f32 %v3683_v26  ;;  %11777 = vst [vmem:[%s12322_s25 + $0xbb8] sm:$0xff] %v10040_v30  ;;  %v5763_v39 = vtrunc.f32 %v3715_v32  ;;  %v3652_v40 = vmul.f32 0.5, %v1604_v27  ;;  %v3684_v41 = vmul.f32 0.5, %v1636_v28  ;;  %v1640_v24 = vld [vmem:[%s12293_s30 + $0x2ef0] sm:$0xff]  ;;  %v1577_v30 = vld [vmem:[%s12293_s30 + $0x2cf8] sm:$0xff] }
 0x449   : > { %v3716_v42 = vmul.f32 0.5, %v1668_v29  ;;  %v10050_v46 = vpack.c.b8 %v10046_v35, %v10042_v31  ;;  %v10052_v47 = vpack.c.f32.eXmY %v5667_v33, %v5699_v36, 312  ;;  %v5668_v48 = vtrunc.f32 %v3620_v38  ;;  %v1672_v25 = vld [vmem:[%s12293_s30 + $0x2ff0] sm:$0xff] }
 0x44a   : > { %v3621_v49 = vmul.f32 0.5, %v1573_v34  ;;  %v10056_v51 = vpack.c.f32.eXmY %v5731_v37, %v5763_v39, 312  ;;  %v5700_v52 = vtrunc.f32 %v3652_v40  ;;  %v5732_v53 = vtrunc.f32 %v3684_v41  ;;  %v1609_v39 = vld [vmem:[%s12293_s30 + $0x2df8] sm:$0xff] }
 0x44b   : > { %v5764_v54 = vtrunc.f32 %v3716_v42  ;;  %11778 = vst [vmem:[%s12322_s25 + $0xbc0] sm:$0xff] %v10050_v46  ;;  %v3653_v56 = vmul.f32 0.5, %v1605_v43  ;;  %v3685_v57 = vmul.f32 0.5, %v1637_v44  ;;  %v3717_v58 = vmul.f32 0.5, %v1669_v45  ;;  %v1641_v40 = vld [vmem:[%s12293_s30 + $0x2ef8] sm:$0xff]  ;;  %v1674_v46 = vld [vmem:[%s12293_s30 + $0x3000] sm:$0xff] }
 0x44c   : > { %v5669_v59 = vtrunc.f32 %v3621_v49  ;;  %v10060_v62 = vpack.c.b8 %v10056_v51, %v10052_v47  ;;  %v10062_v63 = vpack.c.f32.eXmY %v5668_v48, %v5700_v52, 312  ;;  %v3622_v1 = vmul.f32 0.5, %v1574_v50  ;;  %v1673_v41 = vld [vmem:[%s12293_s30 + $0x2ff8] sm:$0xff]  ;;  %v1706_v51 = vld [vmem:[%s12293_s30 + $0x3100] sm:$0xff] }
 0x44d   : > { %v10066_v0 = vpack.c.f32.eXmY %v5732_v53, %v5764_v54, 312  ;;  %v5701_v3 = vtrunc.f32 %v3653_v56  ;;  %v5733_v4 = vtrunc.f32 %v3685_v57  ;;  %v5765_v5 = vtrunc.f32 %v3717_v58  ;;  %v1738_v56 = vld [vmem:[%s12293_s30 + $0x3200] sm:$0xff] }
 0x44e   : > { %v3654_v6 = vmul.f32 0.5, %v1606_v55  ;;  %11779 = vst [vmem:[%s12322_s25 + $0xbc8] sm:$0xff] %v10060_v62  ;;  %v3686_v10 = vmul.f32 0.5, %v1638_v60  ;;  %v3718_v11 = vmul.f32 0.5, %v1670_v61  ;;  %v5670_v12 = vtrunc.f32 %v3622_v1  ;;  %v1770_v57 = vld [vmem:[%s12293_s30 + $0x3300] sm:$0xff]  ;;  %v1675_v62 = vld [vmem:[%s12293_s30 + $0x3008] sm:$0xff] }
 0x44f   : > { %v10070_v9 = vpack.c.b8 %v10066_v0, %v10062_v63  ;;  %v10072_v14 = vpack.c.f32.eXmY %v5669_v59, %v5701_v3, 312  ;;  %v10076_v15 = vpack.c.f32.eXmY %v5733_v4, %v5765_v5, 312  ;;  %v3623_v17 = vmul.f32 0.5, %v1575_v2  ;;  %v1707_v3 = vld [vmem:[%s12293_s30 + $0x3108] sm:$0xff] }
 0x450   : > { %v5702_v16 = vtrunc.f32 %v3654_v6  ;;  %v5734_v19 = vtrunc.f32 %v3686_v10  ;;  %v5766_v20 = vtrunc.f32 %v3718_v11  ;;  %v3655_v21 = vmul.f32 0.5, %v1607_v7  ;;  %v1739_v4 = vld [vmem:[%s12293_s30 + $0x3208] sm:$0xff] }
 0x451   : > { %11780 = vst [vmem:[%s12322_s25 + $0xbd0] sm:$0xff] %v10070_v9  ;;  %v3687_v22 = vmul.f32 0.5, %v1639_v8  ;;  %v10080_v26 = vpack.c.b8 %v10076_v15, %v10072_v14  ;;  %v3719_v28 = vmul.f32 0.5, %v1671_v13  ;;  %v5671_v29 = vtrunc.f32 %v3623_v17  ;;  %v1771_v9 = vld [vmem:[%s12293_s30 + $0x3308] sm:$0xff]  ;;  %v1676_v14 = vld [vmem:[%s12293_s30 + $0x3010] sm:$0xff] }
 0x452   : > { %v10082_v27 = vpack.c.f32.eXmY %v5670_v12, %v5702_v16, 312  ;;  %v10086_v31 = vpack.c.f32.eXmY %v5734_v19, %v5766_v20, 312  ;;  %v5703_v32 = vtrunc.f32 %v3655_v21  ;;  %v3624_v34 = vmul.f32 0.5, %v1576_v18  ;;  %v1708_v19 = vld [vmem:[%s12293_s30 + $0x3110] sm:$0xff] }
 0x453   : > { %v5735_v33 = vtrunc.f32 %v3687_v22  ;;  %11781 = vst [vmem:[%s12322_s25 + $0xbd8] sm:$0xff] %v10080_v26  ;;  %v5767_v35 = vtrunc.f32 %v3719_v28  ;;  %v3656_v36 = vmul.f32 0.5, %v1608_v23  ;;  %v3688_v37 = vmul.f32 0.5, %v1640_v24  ;;  %v1740_v20 = vld [vmem:[%s12293_s30 + $0x3210] sm:$0xff]  ;;  %v1677_v26 = vld [vmem:[%s12293_s30 + $0x3018] sm:$0xff] }
 0x454   : > { %v3720_v38 = vmul.f32 0.5, %v1672_v25  ;;  %v10090_v42 = vpack.c.b8 %v10086_v31, %v10082_v27  ;;  %v10092_v43 = vpack.c.f32.eXmY %v5671_v29, %v5703_v32, 312  ;;  %v5672_v44 = vtrunc.f32 %v3624_v34  ;;  %v1772_v21 = vld [vmem:[%s12293_s30 + $0x3310] sm:$0xff] }
 0x455   : > { %v3625_v45 = vmul.f32 0.5, %v1577_v30  ;;  %v10096_v47 = vpack.c.f32.eXmY %v5735_v33, %v5767_v35, 312  ;;  %v5704_v48 = vtrunc.f32 %v3656_v36  ;;  %v5736_v49 = vtrunc.f32 %v3688_v37  ;;  %v1709_v35 = vld [vmem:[%s12293_s30 + $0x3118] sm:$0xff] }
 0x456   : > { %v5768_v50 = vtrunc.f32 %v3720_v38  ;;  %11782 = vst [vmem:[%s12322_s25 + $0xbe0] sm:$0xff] %v10090_v42  ;;  %v3657_v52 = vmul.f32 0.5, %v1609_v39  ;;  %v3689_v53 = vmul.f32 0.5, %v1641_v40  ;;  %v3721_v54 = vmul.f32 0.5, %v1673_v41  ;;  %v1741_v36 = vld [vmem:[%s12293_s30 + $0x3218] sm:$0xff]  ;;  %v1678_v42 = vld [vmem:[%s12293_s30 + $0x3020] sm:$0xff] }
 0x457   : > { %v5673_v55 = vtrunc.f32 %v3625_v45  ;;  %v10100_v58 = vpack.c.b8 %v10096_v47, %v10092_v43  ;;  %v10102_v59 = vpack.c.f32.eXmY %v5672_v44, %v5704_v48, 312  ;;  %v3722_v61 = vmul.f32 0.5, %v1674_v46  ;;  %v1773_v37 = vld [vmem:[%s12293_s30 + $0x3318] sm:$0xff]  ;;  %v1710_v47 = vld [vmem:[%s12293_s30 + $0x3120] sm:$0xff] }
 0x458   : > { %v10106_v60 = vpack.c.f32.eXmY %v5736_v49, %v5768_v50, 312  ;;  %v5705_v63 = vtrunc.f32 %v3657_v52  ;;  %v5737_v0 = vtrunc.f32 %v3689_v53  ;;  %v5769_v1 = vtrunc.f32 %v3721_v54  ;;  %v1742_v52 = vld [vmem:[%s12293_s30 + $0x3220] sm:$0xff] }
 0x459   : > { %v3754_v2 = vmul.f32 0.5, %v1706_v51  ;;  %11783 = vst [vmem:[%s12322_s25 + $0xbe8] sm:$0xff] %v10100_v58  ;;  %v3786_v6 = vmul.f32 0.5, %v1738_v56  ;;  %v3818_v7 = vmul.f32 0.5, %v1770_v57  ;;  %v5770_v8 = vtrunc.f32 %v3722_v61  ;;  %v1774_v53 = vld [vmem:[%s12293_s30 + $0x3320] sm:$0xff]  ;;  %v1679_v58 = vld [vmem:[%s12293_s30 + $0x3028] sm:$0xff] }
 0x45a   : > { %v10110_v5 = vpack.c.b8 %v10106_v60, %v10102_v59  ;;  %v10112_v10 = vpack.c.f32.eXmY %v5673_v55, %v5705_v63, 312  ;;  %v10116_v11 = vpack.c.f32.eXmY %v5737_v0, %v5769_v1, 312  ;;  %v3723_v13 = vmul.f32 0.5, %v1675_v62  ;;  %v1711_v63 = vld [vmem:[%s12293_s30 + $0x3128] sm:$0xff] }
 0x45b   : > { %v5802_v12 = vtrunc.f32 %v3754_v2  ;;  %v5834_v15 = vtrunc.f32 %v3786_v6  ;;  %v5866_v16 = vtrunc.f32 %v3818_v7  ;;  %v3755_v17 = vmul.f32 0.5, %v1707_v3  ;;  %v1743_v0 = vld [vmem:[%s12293_s30 + $0x3228] sm:$0xff] }
 0x45c   : > { %11784 = vst [vmem:[%s12322_s25 + $0xbf0] sm:$0xff] %v10110_v5  ;;  %v3787_v18 = vmul.f32 0.5, %v1739_v4  ;;  %v10120_v22 = vpack.c.b8 %v10116_v11, %v10112_v10  ;;  %v3819_v24 = vmul.f32 0.5, %v1771_v9  ;;  %v5771_v25 = vtrunc.f32 %v3723_v13  ;;  %v1775_v5 = vld [vmem:[%s12293_s30 + $0x3328] sm:$0xff]  ;;  %v1680_v10 = vld [vmem:[%s12293_s30 + $0x3030] sm:$0xff] }
 0x45d   : > { %v10122_v23 = vpack.c.f32.eXmY %v5770_v8, %v5802_v12, 312  ;;  %v10126_v27 = vpack.c.f32.eXmY %v5834_v15, %v5866_v16, 312  ;;  %v5803_v28 = vtrunc.f32 %v3755_v17  ;;  %v3724_v30 = vmul.f32 0.5, %v1676_v14  ;;  %v1712_v15 = vld [vmem:[%s12293_s30 + $0x3130] sm:$0xff] }
 0x45e   : > { %v5835_v29 = vtrunc.f32 %v3787_v18  ;;  %11785 = vst [vmem:[%s12322_s25 + $0xbf8] sm:$0xff] %v10120_v22  ;;  %v5867_v31 = vtrunc.f32 %v3819_v24  ;;  %v3756_v32 = vmul.f32 0.5, %v1708_v19  ;;  %v3788_v33 = vmul.f32 0.5, %v1740_v20  ;;  %v1744_v16 = vld [vmem:[%s12293_s30 + $0x3230] sm:$0xff]  ;;  %v1681_v22 = vld [vmem:[%s12293_s30 + $0x3038] sm:$0xff] }
 0x45f   : > { %v3820_v34 = vmul.f32 0.5, %v1772_v21  ;;  %v10130_v38 = vpack.c.b8 %v10126_v27, %v10122_v23  ;;  %v10132_v39 = vpack.c.f32.eXmY %v5771_v25, %v5803_v28, 312  ;;  %v5772_v40 = vtrunc.f32 %v3724_v30  ;;  %v1776_v17 = vld [vmem:[%s12293_s30 + $0x3330] sm:$0xff] }
 0x460   : > { %v3725_v41 = vmul.f32 0.5, %v1677_v26  ;;  %v10136_v43 = vpack.c.f32.eXmY %v5835_v29, %v5867_v31, 312  ;;  %v5804_v44 = vtrunc.f32 %v3756_v32  ;;  %v5836_v45 = vtrunc.f32 %v3788_v33  ;;  %v1713_v31 = vld [vmem:[%s12293_s30 + $0x3138] sm:$0xff] }
 0x461   : > { %v5868_v46 = vtrunc.f32 %v3820_v34  ;;  %11786 = vst [vmem:[%s12322_s25 + $0xc00] sm:$0xff] %v10130_v38  ;;  %v3757_v48 = vmul.f32 0.5, %v1709_v35  ;;  %v3789_v49 = vmul.f32 0.5, %v1741_v36  ;;  %v3821_v50 = vmul.f32 0.5, %v1773_v37  ;;  %v1745_v32 = vld [vmem:[%s12293_s30 + $0x3238] sm:$0xff]  ;;  %v1682_v38 = vld [vmem:[%s12293_s30 + $0x3040] sm:$0xff] }
 0x462   : > { %v5773_v51 = vtrunc.f32 %v3725_v41  ;;  %v10140_v54 = vpack.c.b8 %v10136_v43, %v10132_v39  ;;  %v10142_v55 = vpack.c.f32.eXmY %v5772_v40, %v5804_v44, 312  ;;  %v3726_v57 = vmul.f32 0.5, %v1678_v42  ;;  %v1777_v33 = vld [vmem:[%s12293_s30 + $0x3338] sm:$0xff]  ;;  %v1714_v43 = vld [vmem:[%s12293_s30 + $0x3140] sm:$0xff] }
 0x463   : > { %v10146_v56 = vpack.c.f32.eXmY %v5836_v45, %v5868_v46, 312  ;;  %v5805_v59 = vtrunc.f32 %v3757_v48  ;;  %v5837_v60 = vtrunc.f32 %v3789_v49  ;;  %v5869_v61 = vtrunc.f32 %v3821_v50  ;;  %v1746_v48 = vld [vmem:[%s12293_s30 + $0x3240] sm:$0xff] }
 0x464   : > { %v3758_v62 = vmul.f32 0.5, %v1710_v47  ;;  %11787 = vst [vmem:[%s12322_s25 + $0xc08] sm:$0xff] %v10140_v54  ;;  %v3790_v2 = vmul.f32 0.5, %v1742_v52  ;;  %v3822_v3 = vmul.f32 0.5, %v1774_v53  ;;  %v5774_v4 = vtrunc.f32 %v3726_v57  ;;  %v1778_v49 = vld [vmem:[%s12293_s30 + $0x3340] sm:$0xff]  ;;  %v1683_v54 = vld [vmem:[%s12293_s30 + $0x3048] sm:$0xff] }
 0x465   : > { %v10150_v1 = vpack.c.b8 %v10146_v56, %v10142_v55  ;;  %v10152_v6 = vpack.c.f32.eXmY %v5773_v51, %v5805_v59, 312  ;;  %v10156_v7 = vpack.c.f32.eXmY %v5837_v60, %v5869_v61, 312  ;;  %v3727_v9 = vmul.f32 0.5, %v1679_v58  ;;  %v1715_v59 = vld [vmem:[%s12293_s30 + $0x3148] sm:$0xff] }
 0x466   : > { %v5806_v8 = vtrunc.f32 %v3758_v62  ;;  %v5838_v11 = vtrunc.f32 %v3790_v2  ;;  %v5870_v12 = vtrunc.f32 %v3822_v3  ;;  %v3759_v13 = vmul.f32 0.5, %v1711_v63  ;;  %v1747_v60 = vld [vmem:[%s12293_s30 + $0x3248] sm:$0xff] }
 0x467   : > { %11788 = vst [vmem:[%s12322_s25 + $0xc10] sm:$0xff] %v10150_v1  ;;  %v3791_v14 = vmul.f32 0.5, %v1743_v0  ;;  %v10160_v18 = vpack.c.b8 %v10156_v7, %v10152_v6  ;;  %v3823_v20 = vmul.f32 0.5, %v1775_v5  ;;  %v5775_v21 = vtrunc.f32 %v3727_v9  ;;  %v1779_v1 = vld [vmem:[%s12293_s30 + $0x3348] sm:$0xff]  ;;  %v1684_v6 = vld [vmem:[%s12293_s30 + $0x3050] sm:$0xff] }
 0x468   : > { %v10162_v19 = vpack.c.f32.eXmY %v5774_v4, %v5806_v8, 312  ;;  %v10166_v23 = vpack.c.f32.eXmY %v5838_v11, %v5870_v12, 312  ;;  %v5807_v24 = vtrunc.f32 %v3759_v13  ;;  %v3728_v26 = vmul.f32 0.5, %v1680_v10  ;;  %v1716_v11 = vld [vmem:[%s12293_s30 + $0x3150] sm:$0xff] }
 0x469   : > { %v5839_v25 = vtrunc.f32 %v3791_v14  ;;  %11789 = vst [vmem:[%s12322_s25 + $0xc18] sm:$0xff] %v10160_v18  ;;  %v5871_v27 = vtrunc.f32 %v3823_v20  ;;  %v3760_v28 = vmul.f32 0.5, %v1712_v15  ;;  %v3792_v29 = vmul.f32 0.5, %v1744_v16  ;;  %v1748_v12 = vld [vmem:[%s12293_s30 + $0x3250] sm:$0xff]  ;;  %v1685_v18 = vld [vmem:[%s12293_s30 + $0x3058] sm:$0xff] }
 0x46a   : > { %v3824_v30 = vmul.f32 0.5, %v1776_v17  ;;  %v10170_v34 = vpack.c.b8 %v10166_v23, %v10162_v19  ;;  %v10172_v35 = vpack.c.f32.eXmY %v5775_v21, %v5807_v24, 312  ;;  %v5776_v36 = vtrunc.f32 %v3728_v26  ;;  %v1780_v13 = vld [vmem:[%s12293_s30 + $0x3350] sm:$0xff] }
 0x46b   : > { %v3729_v37 = vmul.f32 0.5, %v1681_v22  ;;  %v10176_v39 = vpack.c.f32.eXmY %v5839_v25, %v5871_v27, 312  ;;  %v5808_v40 = vtrunc.f32 %v3760_v28  ;;  %v5840_v41 = vtrunc.f32 %v3792_v29  ;;  %v1717_v27 = vld [vmem:[%s12293_s30 + $0x3158] sm:$0xff] }
 0x46c   : > { %v5872_v42 = vtrunc.f32 %v3824_v30  ;;  %11790 = vst [vmem:[%s12322_s25 + $0xc20] sm:$0xff] %v10170_v34  ;;  %v3761_v44 = vmul.f32 0.5, %v1713_v31  ;;  %v3793_v45 = vmul.f32 0.5, %v1745_v32  ;;  %v3825_v46 = vmul.f32 0.5, %v1777_v33  ;;  %v1749_v28 = vld [vmem:[%s12293_s30 + $0x3258] sm:$0xff]  ;;  %v1686_v34 = vld [vmem:[%s12293_s30 + $0x3060] sm:$0xff] }
 0x46d   : > { %v5777_v47 = vtrunc.f32 %v3729_v37  ;;  %v10180_v50 = vpack.c.b8 %v10176_v39, %v10172_v35  ;;  %v10182_v51 = vpack.c.f32.eXmY %v5776_v36, %v5808_v40, 312  ;;  %v3730_v53 = vmul.f32 0.5, %v1682_v38  ;;  %v1781_v29 = vld [vmem:[%s12293_s30 + $0x3358] sm:$0xff]  ;;  %v1718_v39 = vld [vmem:[%s12293_s30 + $0x3160] sm:$0xff] }
 0x46e   : > { %v10186_v52 = vpack.c.f32.eXmY %v5840_v41, %v5872_v42, 312  ;;  %v5809_v55 = vtrunc.f32 %v3761_v44  ;;  %v5841_v56 = vtrunc.f32 %v3793_v45  ;;  %v5873_v57 = vtrunc.f32 %v3825_v46  ;;  %v1750_v44 = vld [vmem:[%s12293_s30 + $0x3260] sm:$0xff] }
 0x46f   : > { %v3762_v58 = vmul.f32 0.5, %v1714_v43  ;;  %11791 = vst [vmem:[%s12322_s25 + $0xc28] sm:$0xff] %v10180_v50  ;;  %v3794_v62 = vmul.f32 0.5, %v1746_v48  ;;  %v3826_v63 = vmul.f32 0.5, %v1778_v49  ;;  %v5778_v0 = vtrunc.f32 %v3730_v53  ;;  %v1782_v45 = vld [vmem:[%s12293_s30 + $0x3360] sm:$0xff]  ;;  %v1687_v50 = vld [vmem:[%s12293_s30 + $0x3068] sm:$0xff] }
 0x470   : > { %v10190_v61 = vpack.c.b8 %v10186_v52, %v10182_v51  ;;  %v10192_v2 = vpack.c.f32.eXmY %v5777_v47, %v5809_v55, 312  ;;  %v10196_v3 = vpack.c.f32.eXmY %v5841_v56, %v5873_v57, 312  ;;  %v3731_v5 = vmul.f32 0.5, %v1683_v54  ;;  %v1719_v55 = vld [vmem:[%s12293_s30 + $0x3168] sm:$0xff] }
 0x471   : > { %v5810_v4 = vtrunc.f32 %v3762_v58  ;;  %v5842_v7 = vtrunc.f32 %v3794_v62  ;;  %v5874_v8 = vtrunc.f32 %v3826_v63  ;;  %v3763_v9 = vmul.f32 0.5, %v1715_v59  ;;  %v1751_v56 = vld [vmem:[%s12293_s30 + $0x3268] sm:$0xff] }
 0x472   : > { %11792 = vst [vmem:[%s12322_s25 + $0xc30] sm:$0xff] %v10190_v61  ;;  %v3795_v10 = vmul.f32 0.5, %v1747_v60  ;;  %v10200_v14 = vpack.c.b8 %v10196_v3, %v10192_v2  ;;  %v3827_v16 = vmul.f32 0.5, %v1779_v1  ;;  %v5779_v17 = vtrunc.f32 %v3731_v5  ;;  %v1783_v61 = vld [vmem:[%s12293_s30 + $0x3368] sm:$0xff]  ;;  %v1688_v2 = vld [vmem:[%s12293_s30 + $0x3070] sm:$0xff] }
 0x473   : > { %v10202_v15 = vpack.c.f32.eXmY %v5778_v0, %v5810_v4, 312  ;;  %v10206_v19 = vpack.c.f32.eXmY %v5842_v7, %v5874_v8, 312  ;;  %v5811_v20 = vtrunc.f32 %v3763_v9  ;;  %v3732_v22 = vmul.f32 0.5, %v1684_v6  ;;  %v1720_v7 = vld [vmem:[%s12293_s30 + $0x3170] sm:$0xff] }
 0x474   : > { %v5843_v21 = vtrunc.f32 %v3795_v10  ;;  %11793 = vst [vmem:[%s12322_s25 + $0xc38] sm:$0xff] %v10200_v14  ;;  %v5875_v23 = vtrunc.f32 %v3827_v16  ;;  %v3764_v24 = vmul.f32 0.5, %v1716_v11  ;;  %v3796_v25 = vmul.f32 0.5, %v1748_v12  ;;  %v1752_v8 = vld [vmem:[%s12293_s30 + $0x3270] sm:$0xff]  ;;  %v1689_v14 = vld [vmem:[%s12293_s30 + $0x3078] sm:$0xff] }
 0x475   : > { %v3828_v26 = vmul.f32 0.5, %v1780_v13  ;;  %v10210_v30 = vpack.c.b8 %v10206_v19, %v10202_v15  ;;  %v10212_v31 = vpack.c.f32.eXmY %v5779_v17, %v5811_v20, 312  ;;  %v5780_v32 = vtrunc.f32 %v3732_v22  ;;  %v1784_v9 = vld [vmem:[%s12293_s30 + $0x3370] sm:$0xff] }
 0x476   : > { %v3733_v33 = vmul.f32 0.5, %v1685_v18  ;;  %v10216_v35 = vpack.c.f32.eXmY %v5843_v21, %v5875_v23, 312  ;;  %v5812_v36 = vtrunc.f32 %v3764_v24  ;;  %v5844_v37 = vtrunc.f32 %v3796_v25  ;;  %v1721_v23 = vld [vmem:[%s12293_s30 + $0x3178] sm:$0xff] }
 0x477   : > { %v5876_v38 = vtrunc.f32 %v3828_v26  ;;  %11794 = vst [vmem:[%s12322_s25 + $0xc40] sm:$0xff] %v10210_v30  ;;  %v3765_v40 = vmul.f32 0.5, %v1717_v27  ;;  %v3797_v41 = vmul.f32 0.5, %v1749_v28  ;;  %v3829_v42 = vmul.f32 0.5, %v1781_v29  ;;  %v1753_v24 = vld [vmem:[%s12293_s30 + $0x3278] sm:$0xff]  ;;  %v1690_v30 = vld [vmem:[%s12293_s30 + $0x3080] sm:$0xff] }
 0x478   : > { %v5781_v43 = vtrunc.f32 %v3733_v33  ;;  %v10220_v46 = vpack.c.b8 %v10216_v35, %v10212_v31  ;;  %v10222_v47 = vpack.c.f32.eXmY %v5780_v32, %v5812_v36, 312  ;;  %v3734_v49 = vmul.f32 0.5, %v1686_v34  ;;  %v1785_v25 = vld [vmem:[%s12293_s30 + $0x3378] sm:$0xff]  ;;  %v1722_v35 = vld [vmem:[%s12293_s30 + $0x3180] sm:$0xff] }
 0x479   : > { %v10226_v48 = vpack.c.f32.eXmY %v5844_v37, %v5876_v38, 312  ;;  %v5813_v51 = vtrunc.f32 %v3765_v40  ;;  %v5845_v52 = vtrunc.f32 %v3797_v41  ;;  %v5877_v53 = vtrunc.f32 %v3829_v42  ;;  %v1754_v40 = vld [vmem:[%s12293_s30 + $0x3280] sm:$0xff] }
 0x47a   : > { %v3766_v54 = vmul.f32 0.5, %v1718_v39  ;;  %11795 = vst [vmem:[%s12322_s25 + $0xc48] sm:$0xff] %v10220_v46  ;;  %v3798_v58 = vmul.f32 0.5, %v1750_v44  ;;  %v3830_v59 = vmul.f32 0.5, %v1782_v45  ;;  %v5782_v60 = vtrunc.f32 %v3734_v49  ;;  %v1786_v41 = vld [vmem:[%s12293_s30 + $0x3380] sm:$0xff]  ;;  %v1691_v46 = vld [vmem:[%s12293_s30 + $0x3088] sm:$0xff] }
 0x47b   : > { %v10230_v57 = vpack.c.b8 %v10226_v48, %v10222_v47  ;;  %v10232_v62 = vpack.c.f32.eXmY %v5781_v43, %v5813_v51, 312  ;;  %v10236_v63 = vpack.c.f32.eXmY %v5845_v52, %v5877_v53, 312  ;;  %v3735_v1 = vmul.f32 0.5, %v1687_v50  ;;  %v1723_v51 = vld [vmem:[%s12293_s30 + $0x3188] sm:$0xff] }
 0x47c   : > { %v5814_v0 = vtrunc.f32 %v3766_v54  ;;  %v5846_v3 = vtrunc.f32 %v3798_v58  ;;  %v5878_v4 = vtrunc.f32 %v3830_v59  ;;  %v3767_v5 = vmul.f32 0.5, %v1719_v55  ;;  %v1755_v52 = vld [vmem:[%s12293_s30 + $0x3288] sm:$0xff] }
 0x47d   : > { %11796 = vst [vmem:[%s12322_s25 + $0xc50] sm:$0xff] %v10230_v57  ;;  %v3799_v6 = vmul.f32 0.5, %v1751_v56  ;;  %v10240_v10 = vpack.c.b8 %v10236_v63, %v10232_v62  ;;  %v3831_v12 = vmul.f32 0.5, %v1783_v61  ;;  %v5783_v13 = vtrunc.f32 %v3735_v1  ;;  %v1787_v57 = vld [vmem:[%s12293_s30 + $0x3388] sm:$0xff]  ;;  %v1692_v62 = vld [vmem:[%s12293_s30 + $0x3090] sm:$0xff] }
 0x47e   : > { %v10242_v11 = vpack.c.f32.eXmY %v5782_v60, %v5814_v0, 312  ;;  %v10246_v15 = vpack.c.f32.eXmY %v5846_v3, %v5878_v4, 312  ;;  %v5815_v16 = vtrunc.f32 %v3767_v5  ;;  %v3736_v18 = vmul.f32 0.5, %v1688_v2  ;;  %v1724_v3 = vld [vmem:[%s12293_s30 + $0x3190] sm:$0xff] }
 0x47f   : > { %v5847_v17 = vtrunc.f32 %v3799_v6  ;;  %11797 = vst [vmem:[%s12322_s25 + $0xc58] sm:$0xff] %v10240_v10  ;;  %v5879_v19 = vtrunc.f32 %v3831_v12  ;;  %v3768_v20 = vmul.f32 0.5, %v1720_v7  ;;  %v3800_v21 = vmul.f32 0.5, %v1752_v8  ;;  %v1756_v4 = vld [vmem:[%s12293_s30 + $0x3290] sm:$0xff]  ;;  %v1693_v10 = vld [vmem:[%s12293_s30 + $0x3098] sm:$0xff] }
 0x480   : > { %v3832_v22 = vmul.f32 0.5, %v1784_v9  ;;  %v10250_v26 = vpack.c.b8 %v10246_v15, %v10242_v11  ;;  %v10252_v27 = vpack.c.f32.eXmY %v5783_v13, %v5815_v16, 312  ;;  %v5784_v28 = vtrunc.f32 %v3736_v18  ;;  %v1788_v5 = vld [vmem:[%s12293_s30 + $0x3390] sm:$0xff] }
 0x481   : > { %v3737_v29 = vmul.f32 0.5, %v1689_v14  ;;  %v10256_v31 = vpack.c.f32.eXmY %v5847_v17, %v5879_v19, 312  ;;  %v5816_v32 = vtrunc.f32 %v3768_v20  ;;  %v5848_v33 = vtrunc.f32 %v3800_v21  ;;  %v1725_v19 = vld [vmem:[%s12293_s30 + $0x3198] sm:$0xff] }
 0x482   : > { %v5880_v34 = vtrunc.f32 %v3832_v22  ;;  %11798 = vst [vmem:[%s12322_s25 + $0xc60] sm:$0xff] %v10250_v26  ;;  %v3769_v36 = vmul.f32 0.5, %v1721_v23  ;;  %v3801_v37 = vmul.f32 0.5, %v1753_v24  ;;  %v3833_v38 = vmul.f32 0.5, %v1785_v25  ;;  %v1757_v20 = vld [vmem:[%s12293_s30 + $0x3298] sm:$0xff]  ;;  %v1694_v26 = vld [vmem:[%s12293_s30 + $0x30a0] sm:$0xff] }
 0x483   : > { %v5785_v39 = vtrunc.f32 %v3737_v29  ;;  %v10260_v42 = vpack.c.b8 %v10256_v31, %v10252_v27  ;;  %v10262_v43 = vpack.c.f32.eXmY %v5784_v28, %v5816_v32, 312  ;;  %v3738_v45 = vmul.f32 0.5, %v1690_v30  ;;  %v1789_v21 = vld [vmem:[%s12293_s30 + $0x3398] sm:$0xff]  ;;  %v1726_v31 = vld [vmem:[%s12293_s30 + $0x31a0] sm:$0xff] }
 0x484   : > { %v10266_v44 = vpack.c.f32.eXmY %v5848_v33, %v5880_v34, 312  ;;  %v5817_v47 = vtrunc.f32 %v3769_v36  ;;  %v5849_v48 = vtrunc.f32 %v3801_v37  ;;  %v5881_v49 = vtrunc.f32 %v3833_v38  ;;  %v1758_v36 = vld [vmem:[%s12293_s30 + $0x32a0] sm:$0xff] }
 0x485   : > { %v3770_v50 = vmul.f32 0.5, %v1722_v35  ;;  %11799 = vst [vmem:[%s12322_s25 + $0xc68] sm:$0xff] %v10260_v42  ;;  %v3802_v54 = vmul.f32 0.5, %v1754_v40  ;;  %v3834_v55 = vmul.f32 0.5, %v1786_v41  ;;  %v5786_v56 = vtrunc.f32 %v3738_v45  ;;  %v1790_v37 = vld [vmem:[%s12293_s30 + $0x33a0] sm:$0xff]  ;;  %v1695_v42 = vld [vmem:[%s12293_s30 + $0x30a8] sm:$0xff] }
 0x486   : > { %v10270_v53 = vpack.c.b8 %v10266_v44, %v10262_v43  ;;  %v10272_v58 = vpack.c.f32.eXmY %v5785_v39, %v5817_v47, 312  ;;  %v10276_v59 = vpack.c.f32.eXmY %v5849_v48, %v5881_v49, 312  ;;  %v3739_v61 = vmul.f32 0.5, %v1691_v46  ;;  %v1727_v47 = vld [vmem:[%s12293_s30 + $0x31a8] sm:$0xff] }
 0x487   : > { %v5818_v60 = vtrunc.f32 %v3770_v50  ;;  %v5850_v63 = vtrunc.f32 %v3802_v54  ;;  %v5882_v0 = vtrunc.f32 %v3834_v55  ;;  %v3771_v1 = vmul.f32 0.5, %v1723_v51  ;;  %v1759_v48 = vld [vmem:[%s12293_s30 + $0x32a8] sm:$0xff] }
 0x488   : > { %11800 = vst [vmem:[%s12322_s25 + $0xc70] sm:$0xff] %v10270_v53  ;;  %v3803_v2 = vmul.f32 0.5, %v1755_v52  ;;  %v10280_v6 = vpack.c.b8 %v10276_v59, %v10272_v58  ;;  %v3835_v8 = vmul.f32 0.5, %v1787_v57  ;;  %v5787_v9 = vtrunc.f32 %v3739_v61  ;;  %v1791_v53 = vld [vmem:[%s12293_s30 + $0x33a8] sm:$0xff]  ;;  %v1696_v58 = vld [vmem:[%s12293_s30 + $0x30b0] sm:$0xff] }
 0x489   : > { %v10282_v7 = vpack.c.f32.eXmY %v5786_v56, %v5818_v60, 312  ;;  %v10286_v11 = vpack.c.f32.eXmY %v5850_v63, %v5882_v0, 312  ;;  %v5819_v12 = vtrunc.f32 %v3771_v1  ;;  %v3740_v14 = vmul.f32 0.5, %v1692_v62  ;;  %v1728_v63 = vld [vmem:[%s12293_s30 + $0x31b0] sm:$0xff] }
 0x48a   : > { %v5851_v13 = vtrunc.f32 %v3803_v2  ;;  %11801 = vst [vmem:[%s12322_s25 + $0xc78] sm:$0xff] %v10280_v6  ;;  %v5883_v15 = vtrunc.f32 %v3835_v8  ;;  %v3772_v16 = vmul.f32 0.5, %v1724_v3  ;;  %v3804_v17 = vmul.f32 0.5, %v1756_v4  ;;  %v1760_v0 = vld [vmem:[%s12293_s30 + $0x32b0] sm:$0xff]  ;;  %v1697_v6 = vld [vmem:[%s12293_s30 + $0x30b8] sm:$0xff] }
 0x48b   : > { %v3836_v18 = vmul.f32 0.5, %v1788_v5  ;;  %v10290_v22 = vpack.c.b8 %v10286_v11, %v10282_v7  ;;  %v10292_v23 = vpack.c.f32.eXmY %v5787_v9, %v5819_v12, 312  ;;  %v5788_v24 = vtrunc.f32 %v3740_v14  ;;  %v1792_v1 = vld [vmem:[%s12293_s30 + $0x33b0] sm:$0xff] }
 0x48c   : > { %v3741_v25 = vmul.f32 0.5, %v1693_v10  ;;  %v10296_v27 = vpack.c.f32.eXmY %v5851_v13, %v5883_v15, 312  ;;  %v5820_v28 = vtrunc.f32 %v3772_v16  ;;  %v5852_v29 = vtrunc.f32 %v3804_v17  ;;  %v1729_v15 = vld [vmem:[%s12293_s30 + $0x31b8] sm:$0xff] }
 0x48d   : > { %v5884_v30 = vtrunc.f32 %v3836_v18  ;;  %11802 = vst [vmem:[%s12322_s25 + $0xc80] sm:$0xff] %v10290_v22  ;;  %v3773_v32 = vmul.f32 0.5, %v1725_v19  ;;  %v3805_v33 = vmul.f32 0.5, %v1757_v20  ;;  %v3837_v34 = vmul.f32 0.5, %v1789_v21  ;;  %v1761_v16 = vld [vmem:[%s12293_s30 + $0x32b8] sm:$0xff]  ;;  %v1698_v22 = vld [vmem:[%s12293_s30 + $0x30c0] sm:$0xff] }
 0x48e   : > { %v5789_v35 = vtrunc.f32 %v3741_v25  ;;  %v10300_v38 = vpack.c.b8 %v10296_v27, %v10292_v23  ;;  %v10302_v39 = vpack.c.f32.eXmY %v5788_v24, %v5820_v28, 312  ;;  %v3742_v41 = vmul.f32 0.5, %v1694_v26  ;;  %v1793_v17 = vld [vmem:[%s12293_s30 + $0x33b8] sm:$0xff]  ;;  %v1730_v27 = vld [vmem:[%s12293_s30 + $0x31c0] sm:$0xff] }
 0x48f   : > { %v10306_v40 = vpack.c.f32.eXmY %v5852_v29, %v5884_v30, 312  ;;  %v5821_v43 = vtrunc.f32 %v3773_v32  ;;  %v5853_v44 = vtrunc.f32 %v3805_v33  ;;  %v5885_v45 = vtrunc.f32 %v3837_v34  ;;  %v1762_v32 = vld [vmem:[%s12293_s30 + $0x32c0] sm:$0xff] }
 0x490   : > { %v3774_v46 = vmul.f32 0.5, %v1726_v31  ;;  %11803 = vst [vmem:[%s12322_s25 + $0xc88] sm:$0xff] %v10300_v38  ;;  %v3806_v50 = vmul.f32 0.5, %v1758_v36  ;;  %v3838_v51 = vmul.f32 0.5, %v1790_v37  ;;  %v5790_v52 = vtrunc.f32 %v3742_v41  ;;  %v1794_v33 = vld [vmem:[%s12293_s30 + $0x33c0] sm:$0xff]  ;;  %v1699_v38 = vld [vmem:[%s12293_s30 + $0x30c8] sm:$0xff] }
 0x491   : > { %v10310_v49 = vpack.c.b8 %v10306_v40, %v10302_v39  ;;  %v10312_v54 = vpack.c.f32.eXmY %v5789_v35, %v5821_v43, 312  ;;  %v10316_v55 = vpack.c.f32.eXmY %v5853_v44, %v5885_v45, 312  ;;  %v3743_v57 = vmul.f32 0.5, %v1695_v42  ;;  %v1731_v43 = vld [vmem:[%s12293_s30 + $0x31c8] sm:$0xff] }
 0x492   : > { %v5822_v56 = vtrunc.f32 %v3774_v46  ;;  %v5854_v59 = vtrunc.f32 %v3806_v50  ;;  %v5886_v60 = vtrunc.f32 %v3838_v51  ;;  %v3775_v61 = vmul.f32 0.5, %v1727_v47  ;;  %v1763_v44 = vld [vmem:[%s12293_s30 + $0x32c8] sm:$0xff] }
 0x493   : > { %11804 = vst [vmem:[%s12322_s25 + $0xc90] sm:$0xff] %v10310_v49  ;;  %v3807_v62 = vmul.f32 0.5, %v1759_v48  ;;  %v10320_v2 = vpack.c.b8 %v10316_v55, %v10312_v54  ;;  %v3839_v4 = vmul.f32 0.5, %v1791_v53  ;;  %v5791_v5 = vtrunc.f32 %v3743_v57  ;;  %v1795_v49 = vld [vmem:[%s12293_s30 + $0x33c8] sm:$0xff]  ;;  %v1700_v54 = vld [vmem:[%s12293_s30 + $0x30d0] sm:$0xff] }
 0x494   : > { %v10322_v3 = vpack.c.f32.eXmY %v5790_v52, %v5822_v56, 312  ;;  %v10326_v7 = vpack.c.f32.eXmY %v5854_v59, %v5886_v60, 312  ;;  %v5823_v8 = vtrunc.f32 %v3775_v61  ;;  %v3744_v10 = vmul.f32 0.5, %v1696_v58  ;;  %v1732_v59 = vld [vmem:[%s12293_s30 + $0x31d0] sm:$0xff] }
 0x495   : > { %v5855_v9 = vtrunc.f32 %v3807_v62  ;;  %11805 = vst [vmem:[%s12322_s25 + $0xc98] sm:$0xff] %v10320_v2  ;;  %v5887_v11 = vtrunc.f32 %v3839_v4  ;;  %v3776_v12 = vmul.f32 0.5, %v1728_v63  ;;  %v3808_v13 = vmul.f32 0.5, %v1760_v0  ;;  %v1764_v60 = vld [vmem:[%s12293_s30 + $0x32d0] sm:$0xff]  ;;  %v1701_v2 = vld [vmem:[%s12293_s30 + $0x30d8] sm:$0xff] }
 0x496   : > { %v3840_v14 = vmul.f32 0.5, %v1792_v1  ;;  %v10330_v18 = vpack.c.b8 %v10326_v7, %v10322_v3  ;;  %v10332_v19 = vpack.c.f32.eXmY %v5791_v5, %v5823_v8, 312  ;;  %v5792_v20 = vtrunc.f32 %v3744_v10  ;;  %v1796_v61 = vld [vmem:[%s12293_s30 + $0x33d0] sm:$0xff] }
 0x497   : > { %v3745_v21 = vmul.f32 0.5, %v1697_v6  ;;  %v10336_v23 = vpack.c.f32.eXmY %v5855_v9, %v5887_v11, 312  ;;  %v5824_v24 = vtrunc.f32 %v3776_v12  ;;  %v5856_v25 = vtrunc.f32 %v3808_v13  ;;  %v1733_v11 = vld [vmem:[%s12293_s30 + $0x31d8] sm:$0xff] }
 0x498   : > { %v5888_v26 = vtrunc.f32 %v3840_v14  ;;  %11806 = vst [vmem:[%s12322_s25 + $0xca0] sm:$0xff] %v10330_v18  ;;  %v3777_v28 = vmul.f32 0.5, %v1729_v15  ;;  %v3809_v29 = vmul.f32 0.5, %v1761_v16  ;;  %v3841_v30 = vmul.f32 0.5, %v1793_v17  ;;  %v1765_v12 = vld [vmem:[%s12293_s30 + $0x32d8] sm:$0xff]  ;;  %v1702_v18 = vld [vmem:[%s12293_s30 + $0x30e0] sm:$0xff] }
 0x499   : > { %v5793_v31 = vtrunc.f32 %v3745_v21  ;;  %v10340_v34 = vpack.c.b8 %v10336_v23, %v10332_v19  ;;  %v10342_v35 = vpack.c.f32.eXmY %v5792_v20, %v5824_v24, 312  ;;  %v3746_v37 = vmul.f32 0.5, %v1698_v22  ;;  %v1797_v13 = vld [vmem:[%s12293_s30 + $0x33d8] sm:$0xff]  ;;  %v1734_v23 = vld [vmem:[%s12293_s30 + $0x31e0] sm:$0xff] }
 0x49a   : > { %v10346_v36 = vpack.c.f32.eXmY %v5856_v25, %v5888_v26, 312  ;;  %v5825_v39 = vtrunc.f32 %v3777_v28  ;;  %v5857_v40 = vtrunc.f32 %v3809_v29  ;;  %v5889_v41 = vtrunc.f32 %v3841_v30  ;;  %v1766_v28 = vld [vmem:[%s12293_s30 + $0x32e0] sm:$0xff] }
 0x49b   : > { %v3778_v42 = vmul.f32 0.5, %v1730_v27  ;;  %11807 = vst [vmem:[%s12322_s25 + $0xca8] sm:$0xff] %v10340_v34  ;;  %v3810_v46 = vmul.f32 0.5, %v1762_v32  ;;  %v3842_v47 = vmul.f32 0.5, %v1794_v33  ;;  %v5794_v48 = vtrunc.f32 %v3746_v37  ;;  %v1798_v29 = vld [vmem:[%s12293_s30 + $0x33e0] sm:$0xff]  ;;  %v1703_v34 = vld [vmem:[%s12293_s30 + $0x30e8] sm:$0xff] }
 0x49c   : > { %v10350_v45 = vpack.c.b8 %v10346_v36, %v10342_v35  ;;  %v10352_v50 = vpack.c.f32.eXmY %v5793_v31, %v5825_v39, 312  ;;  %v10356_v51 = vpack.c.f32.eXmY %v5857_v40, %v5889_v41, 312  ;;  %v3747_v53 = vmul.f32 0.5, %v1699_v38  ;;  %v1735_v39 = vld [vmem:[%s12293_s30 + $0x31e8] sm:$0xff] }
 0x49d   : > { %v5826_v52 = vtrunc.f32 %v3778_v42  ;;  %v5858_v55 = vtrunc.f32 %v3810_v46  ;;  %v5890_v56 = vtrunc.f32 %v3842_v47  ;;  %v3779_v57 = vmul.f32 0.5, %v1731_v43  ;;  %v1767_v40 = vld [vmem:[%s12293_s30 + $0x32e8] sm:$0xff] }
 0x49e   : > { %11808 = vst [vmem:[%s12322_s25 + $0xcb0] sm:$0xff] %v10350_v45  ;;  %v3811_v58 = vmul.f32 0.5, %v1763_v44  ;;  %v10360_v62 = vpack.c.b8 %v10356_v51, %v10352_v50  ;;  %v3843_v0 = vmul.f32 0.5, %v1795_v49  ;;  %v5795_v1 = vtrunc.f32 %v3747_v53  ;;  %v1799_v45 = vld [vmem:[%s12293_s30 + $0x33e8] sm:$0xff]  ;;  %v1704_v50 = vld [vmem:[%s12293_s30 + $0x30f0] sm:$0xff] }
 0x49f   : > { %v10362_v63 = vpack.c.f32.eXmY %v5794_v48, %v5826_v52, 312  ;;  %v10366_v3 = vpack.c.f32.eXmY %v5858_v55, %v5890_v56, 312  ;;  %v5827_v4 = vtrunc.f32 %v3779_v57  ;;  %v3748_v6 = vmul.f32 0.5, %v1700_v54  ;;  %v1736_v55 = vld [vmem:[%s12293_s30 + $0x31f0] sm:$0xff] }
 0x4a0   : > { %v5859_v5 = vtrunc.f32 %v3811_v58  ;;  %11809 = vst [vmem:[%s12322_s25 + $0xcb8] sm:$0xff] %v10360_v62  ;;  %v5891_v7 = vtrunc.f32 %v3843_v0  ;;  %v3780_v8 = vmul.f32 0.5, %v1732_v59  ;;  %v3812_v9 = vmul.f32 0.5, %v1764_v60  ;;  %v1768_v56 = vld [vmem:[%s12293_s30 + $0x32f0] sm:$0xff]  ;;  %v1705_v62 = vld [vmem:[%s12293_s30 + $0x30f8] sm:$0xff] }
 0x4a1   : > { %v3844_v10 = vmul.f32 0.5, %v1796_v61  ;;  %v10370_v14 = vpack.c.b8 %v10366_v3, %v10362_v63  ;;  %v10372_v15 = vpack.c.f32.eXmY %v5795_v1, %v5827_v4, 312  ;;  %v5796_v16 = vtrunc.f32 %v3748_v6  ;;  %v1800_v57 = vld [vmem:[%s12293_s30 + $0x33f0] sm:$0xff] }
 0x4a2   : > { %v3749_v17 = vmul.f32 0.5, %v1701_v2  ;;  %v10376_v19 = vpack.c.f32.eXmY %v5859_v5, %v5891_v7, 312  ;;  %v5828_v20 = vtrunc.f32 %v3780_v8  ;;  %v5860_v21 = vtrunc.f32 %v3812_v9  ;;  %v1737_v7 = vld [vmem:[%s12293_s30 + $0x31f8] sm:$0xff] }
 0x4a3   : > { %v5892_v22 = vtrunc.f32 %v3844_v10  ;;  %11810 = vst [vmem:[%s12322_s25 + $0xcc0] sm:$0xff] %v10370_v14  ;;  %v3781_v24 = vmul.f32 0.5, %v1733_v11  ;;  %v3813_v25 = vmul.f32 0.5, %v1765_v12  ;;  %v3845_v26 = vmul.f32 0.5, %v1797_v13  ;;  %v1769_v8 = vld [vmem:[%s12293_s30 + $0x32f8] sm:$0xff]  ;;  %v1802_v14 = vld [vmem:[%s12293_s30 + $0x3400] sm:$0xff] }
 0x4a4   : > { %v5797_v27 = vtrunc.f32 %v3749_v17  ;;  %v10380_v30 = vpack.c.b8 %v10376_v19, %v10372_v15  ;;  %v10382_v31 = vpack.c.f32.eXmY %v5796_v16, %v5828_v20, 312  ;;  %v3750_v33 = vmul.f32 0.5, %v1702_v18  ;;  %v1801_v9 = vld [vmem:[%s12293_s30 + $0x33f8] sm:$0xff]  ;;  %v1834_v19 = vld [vmem:[%s12293_s30 + $0x3500] sm:$0xff] }
 0x4a5   : > { %v10386_v32 = vpack.c.f32.eXmY %v5860_v21, %v5892_v22, 312  ;;  %v5829_v35 = vtrunc.f32 %v3781_v24  ;;  %v5861_v36 = vtrunc.f32 %v3813_v25  ;;  %v5893_v37 = vtrunc.f32 %v3845_v26  ;;  %v1866_v24 = vld [vmem:[%s12293_s30 + $0x3600] sm:$0xff] }
 0x4a6   : > { %v3782_v38 = vmul.f32 0.5, %v1734_v23  ;;  %11811 = vst [vmem:[%s12322_s25 + $0xcc8] sm:$0xff] %v10380_v30  ;;  %v3814_v42 = vmul.f32 0.5, %v1766_v28  ;;  %v3846_v43 = vmul.f32 0.5, %v1798_v29  ;;  %v5798_v44 = vtrunc.f32 %v3750_v33  ;;  %v1898_v25 = vld [vmem:[%s12293_s30 + $0x3700] sm:$0xff]  ;;  %v1803_v30 = vld [vmem:[%s12293_s30 + $0x3408] sm:$0xff] }
 0x4a7   : > { %v10390_v41 = vpack.c.b8 %v10386_v32, %v10382_v31  ;;  %v10392_v46 = vpack.c.f32.eXmY %v5797_v27, %v5829_v35, 312  ;;  %v10396_v47 = vpack.c.f32.eXmY %v5861_v36, %v5893_v37, 312  ;;  %v3751_v49 = vmul.f32 0.5, %v1703_v34  ;;  %v1835_v35 = vld [vmem:[%s12293_s30 + $0x3508] sm:$0xff] }
 0x4a8   : > { %v5830_v48 = vtrunc.f32 %v3782_v38  ;;  %v5862_v51 = vtrunc.f32 %v3814_v42  ;;  %v5894_v52 = vtrunc.f32 %v3846_v43  ;;  %v3783_v53 = vmul.f32 0.5, %v1735_v39  ;;  %v1867_v36 = vld [vmem:[%s12293_s30 + $0x3608] sm:$0xff] }
 0x4a9   : > { %11812 = vst [vmem:[%s12322_s25 + $0xcd0] sm:$0xff] %v10390_v41  ;;  %v3815_v54 = vmul.f32 0.5, %v1767_v40  ;;  %v10400_v58 = vpack.c.b8 %v10396_v47, %v10392_v46  ;;  %v3847_v60 = vmul.f32 0.5, %v1799_v45  ;;  %v5799_v61 = vtrunc.f32 %v3751_v49  ;;  %v1899_v41 = vld [vmem:[%s12293_s30 + $0x3708] sm:$0xff]  ;;  %v1804_v46 = vld [vmem:[%s12293_s30 + $0x3410] sm:$0xff] }
 0x4aa   : > { %v10402_v59 = vpack.c.f32.eXmY %v5798_v44, %v5830_v48, 312  ;;  %v10406_v63 = vpack.c.f32.eXmY %v5862_v51, %v5894_v52, 312  ;;  %v5831_v0 = vtrunc.f32 %v3783_v53  ;;  %v3752_v2 = vmul.f32 0.5, %v1704_v50  ;;  %v1836_v51 = vld [vmem:[%s12293_s30 + $0x3510] sm:$0xff] }
 0x4ab   : > { %v5863_v1 = vtrunc.f32 %v3815_v54  ;;  %11813 = vst [vmem:[%s12322_s25 + $0xcd8] sm:$0xff] %v10400_v58  ;;  %v5895_v3 = vtrunc.f32 %v3847_v60  ;;  %v3784_v4 = vmul.f32 0.5, %v1736_v55  ;;  %v3816_v5 = vmul.f32 0.5, %v1768_v56  ;;  %v1868_v52 = vld [vmem:[%s12293_s30 + $0x3610] sm:$0xff]  ;;  %v1805_v58 = vld [vmem:[%s12293_s30 + $0x3418] sm:$0xff] }
 0x4ac   : > { %v3848_v6 = vmul.f32 0.5, %v1800_v57  ;;  %v10410_v10 = vpack.c.b8 %v10406_v63, %v10402_v59  ;;  %v10412_v11 = vpack.c.f32.eXmY %v5799_v61, %v5831_v0, 312  ;;  %v5800_v12 = vtrunc.f32 %v3752_v2  ;;  %v1900_v53 = vld [vmem:[%s12293_s30 + $0x3710] sm:$0xff] }
 0x4ad   : > { %v3753_v13 = vmul.f32 0.5, %v1705_v62  ;;  %v10416_v15 = vpack.c.f32.eXmY %v5863_v1, %v5895_v3, 312  ;;  %v5832_v16 = vtrunc.f32 %v3784_v4  ;;  %v5864_v17 = vtrunc.f32 %v3816_v5  ;;  %v1837_v3 = vld [vmem:[%s12293_s30 + $0x3518] sm:$0xff] }
 0x4ae   : > { %v5896_v18 = vtrunc.f32 %v3848_v6  ;;  %11814 = vst [vmem:[%s12322_s25 + $0xce0] sm:$0xff] %v10410_v10  ;;  %v3785_v20 = vmul.f32 0.5, %v1737_v7  ;;  %v3817_v21 = vmul.f32 0.5, %v1769_v8  ;;  %v3849_v22 = vmul.f32 0.5, %v1801_v9  ;;  %v1869_v4 = vld [vmem:[%s12293_s30 + $0x3618] sm:$0xff]  ;;  %v1806_v10 = vld [vmem:[%s12293_s30 + $0x3420] sm:$0xff] }
 0x4af   : > { %v5801_v23 = vtrunc.f32 %v3753_v13  ;;  %v10420_v26 = vpack.c.b8 %v10416_v15, %v10412_v11  ;;  %v10422_v27 = vpack.c.f32.eXmY %v5800_v12, %v5832_v16, 312  ;;  %v3850_v29 = vmul.f32 0.5, %v1802_v14  ;;  %v1901_v5 = vld [vmem:[%s12293_s30 + $0x3718] sm:$0xff]  ;;  %v1838_v15 = vld [vmem:[%s12293_s30 + $0x3520] sm:$0xff] }
 0x4b0   : > { %v10426_v28 = vpack.c.f32.eXmY %v5864_v17, %v5896_v18, 312  ;;  %v5833_v31 = vtrunc.f32 %v3785_v20  ;;  %v5865_v32 = vtrunc.f32 %v3817_v21  ;;  %v5897_v33 = vtrunc.f32 %v3849_v22  ;;  %v1870_v20 = vld [vmem:[%s12293_s30 + $0x3620] sm:$0xff] }
 0x4b1   : > { %v3882_v34 = vmul.f32 0.5, %v1834_v19  ;;  %11815 = vst [vmem:[%s12322_s25 + $0xce8] sm:$0xff] %v10420_v26  ;;  %v3914_v38 = vmul.f32 0.5, %v1866_v24  ;;  %v3946_v39 = vmul.f32 0.5, %v1898_v25  ;;  %v5898_v40 = vtrunc.f32 %v3850_v29  ;;  %v1902_v21 = vld [vmem:[%s12293_s30 + $0x3720] sm:$0xff]  ;;  %v1807_v26 = vld [vmem:[%s12293_s30 + $0x3428] sm:$0xff] }
 0x4b2   : > { %v10430_v37 = vpack.c.b8 %v10426_v28, %v10422_v27  ;;  %v10432_v42 = vpack.c.f32.eXmY %v5801_v23, %v5833_v31, 312  ;;  %v10436_v43 = vpack.c.f32.eXmY %v5865_v32, %v5897_v33, 312  ;;  %v3851_v45 = vmul.f32 0.5, %v1803_v30  ;;  %v1839_v31 = vld [vmem:[%s12293_s30 + $0x3528] sm:$0xff] }
 0x4b3   : > { %v5930_v44 = vtrunc.f32 %v3882_v34  ;;  %v5962_v47 = vtrunc.f32 %v3914_v38  ;;  %v5994_v48 = vtrunc.f32 %v3946_v39  ;;  %v3883_v49 = vmul.f32 0.5, %v1835_v35  ;;  %v1871_v32 = vld [vmem:[%s12293_s30 + $0x3628] sm:$0xff] }
 0x4b4   : > { %11816 = vst [vmem:[%s12322_s25 + $0xcf0] sm:$0xff] %v10430_v37  ;;  %v3915_v50 = vmul.f32 0.5, %v1867_v36  ;;  %v10440_v54 = vpack.c.b8 %v10436_v43, %v10432_v42  ;;  %v3947_v56 = vmul.f32 0.5, %v1899_v41  ;;  %v5899_v57 = vtrunc.f32 %v3851_v45  ;;  %v1903_v37 = vld [vmem:[%s12293_s30 + $0x3728] sm:$0xff]  ;;  %v1808_v42 = vld [vmem:[%s12293_s30 + $0x3430] sm:$0xff] }
 0x4b5   : > { %v10442_v55 = vpack.c.f32.eXmY %v5898_v40, %v5930_v44, 312  ;;  %v10446_v59 = vpack.c.f32.eXmY %v5962_v47, %v5994_v48, 312  ;;  %v5931_v60 = vtrunc.f32 %v3883_v49  ;;  %v3852_v62 = vmul.f32 0.5, %v1804_v46  ;;  %v1840_v47 = vld [vmem:[%s12293_s30 + $0x3530] sm:$0xff] }
 0x4b6   : > { %v5963_v61 = vtrunc.f32 %v3915_v50  ;;  %11817 = vst [vmem:[%s12322_s25 + $0xcf8] sm:$0xff] %v10440_v54  ;;  %v5995_v63 = vtrunc.f32 %v3947_v56  ;;  %v3884_v0 = vmul.f32 0.5, %v1836_v51  ;;  %v3916_v1 = vmul.f32 0.5, %v1868_v52  ;;  %v1872_v48 = vld [vmem:[%s12293_s30 + $0x3630] sm:$0xff]  ;;  %v1809_v54 = vld [vmem:[%s12293_s30 + $0x3438] sm:$0xff] }
 0x4b7   : > { %v3948_v2 = vmul.f32 0.5, %v1900_v53  ;;  %v10450_v6 = vpack.c.b8 %v10446_v59, %v10442_v55  ;;  %v10452_v7 = vpack.c.f32.eXmY %v5899_v57, %v5931_v60, 312  ;;  %v5900_v8 = vtrunc.f32 %v3852_v62  ;;  %v1904_v49 = vld [vmem:[%s12293_s30 + $0x3730] sm:$0xff] }
 0x4b8   : > { %v3853_v9 = vmul.f32 0.5, %v1805_v58  ;;  %v10456_v11 = vpack.c.f32.eXmY %v5963_v61, %v5995_v63, 312  ;;  %v5932_v12 = vtrunc.f32 %v3884_v0  ;;  %v5964_v13 = vtrunc.f32 %v3916_v1  ;;  %v1841_v63 = vld [vmem:[%s12293_s30 + $0x3538] sm:$0xff] }
 0x4b9   : > { %v5996_v14 = vtrunc.f32 %v3948_v2  ;;  %11818 = vst [vmem:[%s12322_s25 + $0xd00] sm:$0xff] %v10450_v6  ;;  %v3885_v16 = vmul.f32 0.5, %v1837_v3  ;;  %v3917_v17 = vmul.f32 0.5, %v1869_v4  ;;  %v3949_v18 = vmul.f32 0.5, %v1901_v5  ;;  %v1873_v0 = vld [vmem:[%s12293_s30 + $0x3638] sm:$0xff]  ;;  %v1810_v6 = vld [vmem:[%s12293_s30 + $0x3440] sm:$0xff] }
 0x4ba   : > { %v5901_v19 = vtrunc.f32 %v3853_v9  ;;  %v10460_v22 = vpack.c.b8 %v10456_v11, %v10452_v7  ;;  %v10462_v23 = vpack.c.f32.eXmY %v5900_v8, %v5932_v12, 312  ;;  %v3854_v25 = vmul.f32 0.5, %v1806_v10  ;;  %v1905_v1 = vld [vmem:[%s12293_s30 + $0x3738] sm:$0xff]  ;;  %v1842_v11 = vld [vmem:[%s12293_s30 + $0x3540] sm:$0xff] }
 0x4bb   : > { %v10466_v24 = vpack.c.f32.eXmY %v5964_v13, %v5996_v14, 312  ;;  %v5933_v27 = vtrunc.f32 %v3885_v16  ;;  %v5965_v28 = vtrunc.f32 %v3917_v17  ;;  %v5997_v29 = vtrunc.f32 %v3949_v18  ;;  %v1874_v16 = vld [vmem:[%s12293_s30 + $0x3640] sm:$0xff] }
 0x4bc   : > { %v3886_v30 = vmul.f32 0.5, %v1838_v15  ;;  %11819 = vst [vmem:[%s12322_s25 + $0xd08] sm:$0xff] %v10460_v22  ;;  %v3918_v34 = vmul.f32 0.5, %v1870_v20  ;;  %v3950_v35 = vmul.f32 0.5, %v1902_v21  ;;  %v5902_v36 = vtrunc.f32 %v3854_v25  ;;  %v1906_v17 = vld [vmem:[%s12293_s30 + $0x3740] sm:$0xff]  ;;  %v1811_v22 = vld [vmem:[%s12293_s30 + $0x3448] sm:$0xff] }
 0x4bd   : > { %v10470_v33 = vpack.c.b8 %v10466_v24, %v10462_v23  ;;  %v10472_v38 = vpack.c.f32.eXmY %v5901_v19, %v5933_v27, 312  ;;  %v10476_v39 = vpack.c.f32.eXmY %v5965_v28, %v5997_v29, 312  ;;  %v3855_v41 = vmul.f32 0.5, %v1807_v26  ;;  %v1843_v27 = vld [vmem:[%s12293_s30 + $0x3548] sm:$0xff] }
 0x4be   : > { %v5934_v40 = vtrunc.f32 %v3886_v30  ;;  %v5966_v43 = vtrunc.f32 %v3918_v34  ;;  %v5998_v44 = vtrunc.f32 %v3950_v35  ;;  %v3887_v45 = vmul.f32 0.5, %v1839_v31  ;;  %v1875_v28 = vld [vmem:[%s12293_s30 + $0x3648] sm:$0xff] }
 0x4bf   : > { %11820 = vst [vmem:[%s12322_s25 + $0xd10] sm:$0xff] %v10470_v33  ;;  %v3919_v46 = vmul.f32 0.5, %v1871_v32  ;;  %v10480_v50 = vpack.c.b8 %v10476_v39, %v10472_v38  ;;  %v3951_v52 = vmul.f32 0.5, %v1903_v37  ;;  %v5903_v53 = vtrunc.f32 %v3855_v41  ;;  %v1907_v33 = vld [vmem:[%s12293_s30 + $0x3748] sm:$0xff]  ;;  %v1812_v38 = vld [vmem:[%s12293_s30 + $0x3450] sm:$0xff] }
 0x4c0   : > { %v10482_v51 = vpack.c.f32.eXmY %v5902_v36, %v5934_v40, 312  ;;  %v10486_v55 = vpack.c.f32.eXmY %v5966_v43, %v5998_v44, 312  ;;  %v5935_v56 = vtrunc.f32 %v3887_v45  ;;  %v3856_v58 = vmul.f32 0.5, %v1808_v42  ;;  %v1844_v43 = vld [vmem:[%s12293_s30 + $0x3550] sm:$0xff] }
 0x4c1   : > { %v5967_v57 = vtrunc.f32 %v3919_v46  ;;  %11821 = vst [vmem:[%s12322_s25 + $0xd18] sm:$0xff] %v10480_v50  ;;  %v5999_v59 = vtrunc.f32 %v3951_v52  ;;  %v3888_v60 = vmul.f32 0.5, %v1840_v47  ;;  %v3920_v61 = vmul.f32 0.5, %v1872_v48  ;;  %v1876_v44 = vld [vmem:[%s12293_s30 + $0x3650] sm:$0xff]  ;;  %v1813_v50 = vld [vmem:[%s12293_s30 + $0x3458] sm:$0xff] }
 0x4c2   : > { %v3952_v62 = vmul.f32 0.5, %v1904_v49  ;;  %v10490_v2 = vpack.c.b8 %v10486_v55, %v10482_v51  ;;  %v10492_v3 = vpack.c.f32.eXmY %v5903_v53, %v5935_v56, 312  ;;  %v5904_v4 = vtrunc.f32 %v3856_v58  ;;  %v1908_v45 = vld [vmem:[%s12293_s30 + $0x3750] sm:$0xff] }
 0x4c3   : > { %v3857_v5 = vmul.f32 0.5, %v1809_v54  ;;  %v10496_v7 = vpack.c.f32.eXmY %v5967_v57, %v5999_v59, 312  ;;  %v5936_v8 = vtrunc.f32 %v3888_v60  ;;  %v5968_v9 = vtrunc.f32 %v3920_v61  ;;  %v1845_v59 = vld [vmem:[%s12293_s30 + $0x3558] sm:$0xff] }
 0x4c4   : > { %v6000_v10 = vtrunc.f32 %v3952_v62  ;;  %11822 = vst [vmem:[%s12322_s25 + $0xd20] sm:$0xff] %v10490_v2  ;;  %v3889_v12 = vmul.f32 0.5, %v1841_v63  ;;  %v3921_v13 = vmul.f32 0.5, %v1873_v0  ;;  %v3953_v14 = vmul.f32 0.5, %v1905_v1  ;;  %v1877_v60 = vld [vmem:[%s12293_s30 + $0x3658] sm:$0xff]  ;;  %v1814_v2 = vld [vmem:[%s12293_s30 + $0x3460] sm:$0xff] }
 0x4c5   : > { %v5905_v15 = vtrunc.f32 %v3857_v5  ;;  %v10500_v18 = vpack.c.b8 %v10496_v7, %v10492_v3  ;;  %v10502_v19 = vpack.c.f32.eXmY %v5904_v4, %v5936_v8, 312  ;;  %v3858_v21 = vmul.f32 0.5, %v1810_v6  ;;  %v1909_v61 = vld [vmem:[%s12293_s30 + $0x3758] sm:$0xff]  ;;  %v1846_v7 = vld [vmem:[%s12293_s30 + $0x3560] sm:$0xff] }
 0x4c6   : > { %v10506_v20 = vpack.c.f32.eXmY %v5968_v9, %v6000_v10, 312  ;;  %v5937_v23 = vtrunc.f32 %v3889_v12  ;;  %v5969_v24 = vtrunc.f32 %v3921_v13  ;;  %v6001_v25 = vtrunc.f32 %v3953_v14  ;;  %v1878_v12 = vld [vmem:[%s12293_s30 + $0x3660] sm:$0xff] }
 0x4c7   : > { %v3890_v26 = vmul.f32 0.5, %v1842_v11  ;;  %11823 = vst [vmem:[%s12322_s25 + $0xd28] sm:$0xff] %v10500_v18  ;;  %v3922_v30 = vmul.f32 0.5, %v1874_v16  ;;  %v3954_v31 = vmul.f32 0.5, %v1906_v17  ;;  %v5906_v32 = vtrunc.f32 %v3858_v21  ;;  %v1910_v13 = vld [vmem:[%s12293_s30 + $0x3760] sm:$0xff]  ;;  %v1815_v18 = vld [vmem:[%s12293_s30 + $0x3468] sm:$0xff] }
 0x4c8   : > { %v10510_v29 = vpack.c.b8 %v10506_v20, %v10502_v19  ;;  %v10512_v34 = vpack.c.f32.eXmY %v5905_v15, %v5937_v23, 312  ;;  %v10516_v35 = vpack.c.f32.eXmY %v5969_v24, %v6001_v25, 312  ;;  %v3859_v37 = vmul.f32 0.5, %v1811_v22  ;;  %v1847_v23 = vld [vmem:[%s12293_s30 + $0x3568] sm:$0xff] }
 0x4c9   : > { %v5938_v36 = vtrunc.f32 %v3890_v26  ;;  %v5970_v39 = vtrunc.f32 %v3922_v30  ;;  %v6002_v40 = vtrunc.f32 %v3954_v31  ;;  %v3891_v41 = vmul.f32 0.5, %v1843_v27  ;;  %v1879_v24 = vld [vmem:[%s12293_s30 + $0x3668] sm:$0xff] }
 0x4ca   : > { %11824 = vst [vmem:[%s12322_s25 + $0xd30] sm:$0xff] %v10510_v29  ;;  %v3923_v42 = vmul.f32 0.5, %v1875_v28  ;;  %v10520_v46 = vpack.c.b8 %v10516_v35, %v10512_v34  ;;  %v3955_v48 = vmul.f32 0.5, %v1907_v33  ;;  %v5907_v49 = vtrunc.f32 %v3859_v37  ;;  %v1911_v29 = vld [vmem:[%s12293_s30 + $0x3768] sm:$0xff]  ;;  %v1816_v34 = vld [vmem:[%s12293_s30 + $0x3470] sm:$0xff] }
 0x4cb   : > { %v10522_v47 = vpack.c.f32.eXmY %v5906_v32, %v5938_v36, 312  ;;  %v10526_v51 = vpack.c.f32.eXmY %v5970_v39, %v6002_v40, 312  ;;  %v5939_v52 = vtrunc.f32 %v3891_v41  ;;  %v3860_v54 = vmul.f32 0.5, %v1812_v38  ;;  %v1848_v39 = vld [vmem:[%s12293_s30 + $0x3570] sm:$0xff] }
 0x4cc   : > { %v5971_v53 = vtrunc.f32 %v3923_v42  ;;  %11825 = vst [vmem:[%s12322_s25 + $0xd38] sm:$0xff] %v10520_v46  ;;  %v6003_v55 = vtrunc.f32 %v3955_v48  ;;  %v3892_v56 = vmul.f32 0.5, %v1844_v43  ;;  %v3924_v57 = vmul.f32 0.5, %v1876_v44  ;;  %v1880_v40 = vld [vmem:[%s12293_s30 + $0x3670] sm:$0xff]  ;;  %v1817_v46 = vld [vmem:[%s12293_s30 + $0x3478] sm:$0xff] }
 0x4cd   : > { %v3956_v58 = vmul.f32 0.5, %v1908_v45  ;;  %v10530_v62 = vpack.c.b8 %v10526_v51, %v10522_v47  ;;  %v10532_v63 = vpack.c.f32.eXmY %v5907_v49, %v5939_v52, 312  ;;  %v5908_v0 = vtrunc.f32 %v3860_v54  ;;  %v1912_v41 = vld [vmem:[%s12293_s30 + $0x3770] sm:$0xff] }
 0x4ce   : > { %v3861_v1 = vmul.f32 0.5, %v1813_v50  ;;  %v10536_v3 = vpack.c.f32.eXmY %v5971_v53, %v6003_v55, 312  ;;  %v5940_v4 = vtrunc.f32 %v3892_v56  ;;  %v5972_v5 = vtrunc.f32 %v3924_v57  ;;  %v1849_v55 = vld [vmem:[%s12293_s30 + $0x3578] sm:$0xff] }
 0x4cf   : > { %v6004_v6 = vtrunc.f32 %v3956_v58  ;;  %11826 = vst [vmem:[%s12322_s25 + $0xd40] sm:$0xff] %v10530_v62  ;;  %v3893_v8 = vmul.f32 0.5, %v1845_v59  ;;  %v3925_v9 = vmul.f32 0.5, %v1877_v60  ;;  %v3957_v10 = vmul.f32 0.5, %v1909_v61  ;;  %v1881_v56 = vld [vmem:[%s12293_s30 + $0x3678] sm:$0xff]  ;;  %v1818_v62 = vld [vmem:[%s12293_s30 + $0x3480] sm:$0xff] }
 0x4d0   : > { %v5909_v11 = vtrunc.f32 %v3861_v1  ;;  %v10540_v14 = vpack.c.b8 %v10536_v3, %v10532_v63  ;;  %v10542_v15 = vpack.c.f32.eXmY %v5908_v0, %v5940_v4, 312  ;;  %v3862_v17 = vmul.f32 0.5, %v1814_v2  ;;  %v1913_v57 = vld [vmem:[%s12293_s30 + $0x3778] sm:$0xff]  ;;  %v1850_v3 = vld [vmem:[%s12293_s30 + $0x3580] sm:$0xff] }
 0x4d1   : > { %v10546_v16 = vpack.c.f32.eXmY %v5972_v5, %v6004_v6, 312  ;;  %v5941_v19 = vtrunc.f32 %v3893_v8  ;;  %v5973_v20 = vtrunc.f32 %v3925_v9  ;;  %v6005_v21 = vtrunc.f32 %v3957_v10  ;;  %v1882_v8 = vld [vmem:[%s12293_s30 + $0x3680] sm:$0xff] }
 0x4d2   : > { %v3894_v22 = vmul.f32 0.5, %v1846_v7  ;;  %11827 = vst [vmem:[%s12322_s25 + $0xd48] sm:$0xff] %v10540_v14  ;;  %v3926_v26 = vmul.f32 0.5, %v1878_v12  ;;  %v3958_v27 = vmul.f32 0.5, %v1910_v13  ;;  %v5910_v28 = vtrunc.f32 %v3862_v17  ;;  %v1914_v9 = vld [vmem:[%s12293_s30 + $0x3780] sm:$0xff]  ;;  %v1819_v14 = vld [vmem:[%s12293_s30 + $0x3488] sm:$0xff] }
 0x4d3   : > { %v10550_v25 = vpack.c.b8 %v10546_v16, %v10542_v15  ;;  %v10552_v30 = vpack.c.f32.eXmY %v5909_v11, %v5941_v19, 312  ;;  %v10556_v31 = vpack.c.f32.eXmY %v5973_v20, %v6005_v21, 312  ;;  %v3863_v33 = vmul.f32 0.5, %v1815_v18  ;;  %v1851_v19 = vld [vmem:[%s12293_s30 + $0x3588] sm:$0xff] }
 0x4d4   : > { %v5942_v32 = vtrunc.f32 %v3894_v22  ;;  %v5974_v35 = vtrunc.f32 %v3926_v26  ;;  %v6006_v36 = vtrunc.f32 %v3958_v27  ;;  %v3895_v37 = vmul.f32 0.5, %v1847_v23  ;;  %v1883_v20 = vld [vmem:[%s12293_s30 + $0x3688] sm:$0xff] }
 0x4d5   : > { %11828 = vst [vmem:[%s12322_s25 + $0xd50] sm:$0xff] %v10550_v25  ;;  %v3927_v38 = vmul.f32 0.5, %v1879_v24  ;;  %v10560_v42 = vpack.c.b8 %v10556_v31, %v10552_v30  ;;  %v3959_v44 = vmul.f32 0.5, %v1911_v29  ;;  %v5911_v45 = vtrunc.f32 %v3863_v33  ;;  %v1915_v25 = vld [vmem:[%s12293_s30 + $0x3788] sm:$0xff]  ;;  %v1820_v30 = vld [vmem:[%s12293_s30 + $0x3490] sm:$0xff] }
 0x4d6   : > { %v10562_v43 = vpack.c.f32.eXmY %v5910_v28, %v5942_v32, 312  ;;  %v10566_v47 = vpack.c.f32.eXmY %v5974_v35, %v6006_v36, 312  ;;  %v5943_v48 = vtrunc.f32 %v3895_v37  ;;  %v3864_v50 = vmul.f32 0.5, %v1816_v34  ;;  %v1852_v35 = vld [vmem:[%s12293_s30 + $0x3590] sm:$0xff] }
 0x4d7   : > { %v5975_v49 = vtrunc.f32 %v3927_v38  ;;  %11829 = vst [vmem:[%s12322_s25 + $0xd58] sm:$0xff] %v10560_v42  ;;  %v6007_v51 = vtrunc.f32 %v3959_v44  ;;  %v3896_v52 = vmul.f32 0.5, %v1848_v39  ;;  %v3928_v53 = vmul.f32 0.5, %v1880_v40  ;;  %v1884_v36 = vld [vmem:[%s12293_s30 + $0x3690] sm:$0xff]  ;;  %v1821_v42 = vld [vmem:[%s12293_s30 + $0x3498] sm:$0xff] }
 0x4d8   : > { %v3960_v54 = vmul.f32 0.5, %v1912_v41  ;;  %v10570_v58 = vpack.c.b8 %v10566_v47, %v10562_v43  ;;  %v10572_v59 = vpack.c.f32.eXmY %v5911_v45, %v5943_v48, 312  ;;  %v5912_v60 = vtrunc.f32 %v3864_v50  ;;  %v1916_v37 = vld [vmem:[%s12293_s30 + $0x3790] sm:$0xff] }
 0x4d9   : > { %v3865_v61 = vmul.f32 0.5, %v1817_v46  ;;  %v10576_v63 = vpack.c.f32.eXmY %v5975_v49, %v6007_v51, 312  ;;  %v5944_v0 = vtrunc.f32 %v3896_v52  ;;  %v5976_v1 = vtrunc.f32 %v3928_v53  ;;  %v1853_v51 = vld [vmem:[%s12293_s30 + $0x3598] sm:$0xff] }
 0x4da   : > { %v6008_v2 = vtrunc.f32 %v3960_v54  ;;  %11830 = vst [vmem:[%s12322_s25 + $0xd60] sm:$0xff] %v10570_v58  ;;  %v3897_v4 = vmul.f32 0.5, %v1849_v55  ;;  %v3929_v5 = vmul.f32 0.5, %v1881_v56  ;;  %v3961_v6 = vmul.f32 0.5, %v1913_v57  ;;  %v1885_v52 = vld [vmem:[%s12293_s30 + $0x3698] sm:$0xff]  ;;  %v1822_v58 = vld [vmem:[%s12293_s30 + $0x34a0] sm:$0xff] }
 0x4db   : > { %v5913_v7 = vtrunc.f32 %v3865_v61  ;;  %v10580_v10 = vpack.c.b8 %v10576_v63, %v10572_v59  ;;  %v10582_v11 = vpack.c.f32.eXmY %v5912_v60, %v5944_v0, 312  ;;  %v3866_v13 = vmul.f32 0.5, %v1818_v62  ;;  %v1917_v53 = vld [vmem:[%s12293_s30 + $0x3798] sm:$0xff]  ;;  %v1854_v63 = vld [vmem:[%s12293_s30 + $0x35a0] sm:$0xff] }
 0x4dc   : > { %v10586_v12 = vpack.c.f32.eXmY %v5976_v1, %v6008_v2, 312  ;;  %v5945_v15 = vtrunc.f32 %v3897_v4  ;;  %v5977_v16 = vtrunc.f32 %v3929_v5  ;;  %v6009_v17 = vtrunc.f32 %v3961_v6  ;;  %v1886_v4 = vld [vmem:[%s12293_s30 + $0x36a0] sm:$0xff] }
 0x4dd   : > { %v3898_v18 = vmul.f32 0.5, %v1850_v3  ;;  %11831 = vst [vmem:[%s12322_s25 + $0xd68] sm:$0xff] %v10580_v10  ;;  %v3930_v22 = vmul.f32 0.5, %v1882_v8  ;;  %v3962_v23 = vmul.f32 0.5, %v1914_v9  ;;  %v5914_v24 = vtrunc.f32 %v3866_v13  ;;  %v1918_v5 = vld [vmem:[%s12293_s30 + $0x37a0] sm:$0xff]  ;;  %v1823_v10 = vld [vmem:[%s12293_s30 + $0x34a8] sm:$0xff] }
 0x4de   : > { %v10590_v21 = vpack.c.b8 %v10586_v12, %v10582_v11  ;;  %v10592_v26 = vpack.c.f32.eXmY %v5913_v7, %v5945_v15, 312  ;;  %v10596_v27 = vpack.c.f32.eXmY %v5977_v16, %v6009_v17, 312  ;;  %v3867_v29 = vmul.f32 0.5, %v1819_v14  ;;  %v1855_v15 = vld [vmem:[%s12293_s30 + $0x35a8] sm:$0xff] }
 0x4df   : > { %v5946_v28 = vtrunc.f32 %v3898_v18  ;;  %v5978_v31 = vtrunc.f32 %v3930_v22  ;;  %v6010_v32 = vtrunc.f32 %v3962_v23  ;;  %v3899_v33 = vmul.f32 0.5, %v1851_v19  ;;  %v1887_v16 = vld [vmem:[%s12293_s30 + $0x36a8] sm:$0xff] }
 0x4e0   : > { %11832 = vst [vmem:[%s12322_s25 + $0xd70] sm:$0xff] %v10590_v21  ;;  %v3931_v34 = vmul.f32 0.5, %v1883_v20  ;;  %v10600_v38 = vpack.c.b8 %v10596_v27, %v10592_v26  ;;  %v3963_v40 = vmul.f32 0.5, %v1915_v25  ;;  %v5915_v41 = vtrunc.f32 %v3867_v29  ;;  %v1919_v21 = vld [vmem:[%s12293_s30 + $0x37a8] sm:$0xff]  ;;  %v1824_v26 = vld [vmem:[%s12293_s30 + $0x34b0] sm:$0xff] }
 0x4e1   : > { %v10602_v39 = vpack.c.f32.eXmY %v5914_v24, %v5946_v28, 312  ;;  %v10606_v43 = vpack.c.f32.eXmY %v5978_v31, %v6010_v32, 312  ;;  %v5947_v44 = vtrunc.f32 %v3899_v33  ;;  %v3868_v46 = vmul.f32 0.5, %v1820_v30  ;;  %v1856_v31 = vld [vmem:[%s12293_s30 + $0x35b0] sm:$0xff] }
 0x4e2   : > { %v5979_v45 = vtrunc.f32 %v3931_v34  ;;  %11833 = vst [vmem:[%s12322_s25 + $0xd78] sm:$0xff] %v10600_v38  ;;  %v6011_v47 = vtrunc.f32 %v3963_v40  ;;  %v3900_v48 = vmul.f32 0.5, %v1852_v35  ;;  %v3932_v49 = vmul.f32 0.5, %v1884_v36  ;;  %v1888_v32 = vld [vmem:[%s12293_s30 + $0x36b0] sm:$0xff]  ;;  %v1825_v38 = vld [vmem:[%s12293_s30 + $0x34b8] sm:$0xff] }
 0x4e3   : > { %v3964_v50 = vmul.f32 0.5, %v1916_v37  ;;  %v10610_v54 = vpack.c.b8 %v10606_v43, %v10602_v39  ;;  %v10612_v55 = vpack.c.f32.eXmY %v5915_v41, %v5947_v44, 312  ;;  %v5916_v56 = vtrunc.f32 %v3868_v46  ;;  %v1920_v33 = vld [vmem:[%s12293_s30 + $0x37b0] sm:$0xff] }
 0x4e4   : > { %v3869_v57 = vmul.f32 0.5, %v1821_v42  ;;  %v10616_v59 = vpack.c.f32.eXmY %v5979_v45, %v6011_v47, 312  ;;  %v5948_v60 = vtrunc.f32 %v3900_v48  ;;  %v5980_v61 = vtrunc.f32 %v3932_v49  ;;  %v1857_v47 = vld [vmem:[%s12293_s30 + $0x35b8] sm:$0xff] }
 0x4e5   : > { %v6012_v62 = vtrunc.f32 %v3964_v50  ;;  %11834 = vst [vmem:[%s12322_s25 + $0xd80] sm:$0xff] %v10610_v54  ;;  %v3901_v0 = vmul.f32 0.5, %v1853_v51  ;;  %v3933_v1 = vmul.f32 0.5, %v1885_v52  ;;  %v3965_v2 = vmul.f32 0.5, %v1917_v53  ;;  %v1889_v48 = vld [vmem:[%s12293_s30 + $0x36b8] sm:$0xff]  ;;  %v1826_v54 = vld [vmem:[%s12293_s30 + $0x34c0] sm:$0xff] }
 0x4e6   : > { %v5917_v3 = vtrunc.f32 %v3869_v57  ;;  %v10620_v6 = vpack.c.b8 %v10616_v59, %v10612_v55  ;;  %v10622_v7 = vpack.c.f32.eXmY %v5916_v56, %v5948_v60, 312  ;;  %v3870_v9 = vmul.f32 0.5, %v1822_v58  ;;  %v1921_v49 = vld [vmem:[%s12293_s30 + $0x37b8] sm:$0xff]  ;;  %v1858_v59 = vld [vmem:[%s12293_s30 + $0x35c0] sm:$0xff] }
 0x4e7   : > { %v10626_v8 = vpack.c.f32.eXmY %v5980_v61, %v6012_v62, 312  ;;  %v5949_v11 = vtrunc.f32 %v3901_v0  ;;  %v5981_v12 = vtrunc.f32 %v3933_v1  ;;  %v6013_v13 = vtrunc.f32 %v3965_v2  ;;  %v1890_v0 = vld [vmem:[%s12293_s30 + $0x36c0] sm:$0xff] }
 0x4e8   : > { %v3902_v14 = vmul.f32 0.5, %v1854_v63  ;;  %11835 = vst [vmem:[%s12322_s25 + $0xd88] sm:$0xff] %v10620_v6  ;;  %v3934_v18 = vmul.f32 0.5, %v1886_v4  ;;  %v3966_v19 = vmul.f32 0.5, %v1918_v5  ;;  %v5918_v20 = vtrunc.f32 %v3870_v9  ;;  %v1922_v1 = vld [vmem:[%s12293_s30 + $0x37c0] sm:$0xff]  ;;  %v1827_v6 = vld [vmem:[%s12293_s30 + $0x34c8] sm:$0xff] }
 0x4e9   : > { %v10630_v17 = vpack.c.b8 %v10626_v8, %v10622_v7  ;;  %v10632_v22 = vpack.c.f32.eXmY %v5917_v3, %v5949_v11, 312  ;;  %v10636_v23 = vpack.c.f32.eXmY %v5981_v12, %v6013_v13, 312  ;;  %v3871_v25 = vmul.f32 0.5, %v1823_v10  ;;  %v1859_v11 = vld [vmem:[%s12293_s30 + $0x35c8] sm:$0xff] }
 0x4ea   : > { %v5950_v24 = vtrunc.f32 %v3902_v14  ;;  %v5982_v27 = vtrunc.f32 %v3934_v18  ;;  %v6014_v28 = vtrunc.f32 %v3966_v19  ;;  %v3903_v29 = vmul.f32 0.5, %v1855_v15  ;;  %v1891_v12 = vld [vmem:[%s12293_s30 + $0x36c8] sm:$0xff] }
 0x4eb   : > { %11836 = vst [vmem:[%s12322_s25 + $0xd90] sm:$0xff] %v10630_v17  ;;  %v3935_v30 = vmul.f32 0.5, %v1887_v16  ;;  %v10640_v34 = vpack.c.b8 %v10636_v23, %v10632_v22  ;;  %v3967_v36 = vmul.f32 0.5, %v1919_v21  ;;  %v5919_v37 = vtrunc.f32 %v3871_v25  ;;  %v1923_v17 = vld [vmem:[%s12293_s30 + $0x37c8] sm:$0xff]  ;;  %v1828_v22 = vld [vmem:[%s12293_s30 + $0x34d0] sm:$0xff] }
 0x4ec   : > { %v10642_v35 = vpack.c.f32.eXmY %v5918_v20, %v5950_v24, 312  ;;  %v10646_v39 = vpack.c.f32.eXmY %v5982_v27, %v6014_v28, 312  ;;  %v5951_v40 = vtrunc.f32 %v3903_v29  ;;  %v3872_v42 = vmul.f32 0.5, %v1824_v26  ;;  %v1860_v27 = vld [vmem:[%s12293_s30 + $0x35d0] sm:$0xff] }
 0x4ed   : > { %v5983_v41 = vtrunc.f32 %v3935_v30  ;;  %11837 = vst [vmem:[%s12322_s25 + $0xd98] sm:$0xff] %v10640_v34  ;;  %v6015_v43 = vtrunc.f32 %v3967_v36  ;;  %v3904_v44 = vmul.f32 0.5, %v1856_v31  ;;  %v3936_v45 = vmul.f32 0.5, %v1888_v32  ;;  %v1892_v28 = vld [vmem:[%s12293_s30 + $0x36d0] sm:$0xff]  ;;  %v1829_v34 = vld [vmem:[%s12293_s30 + $0x34d8] sm:$0xff] }
 0x4ee   : > { %v3968_v46 = vmul.f32 0.5, %v1920_v33  ;;  %v10650_v50 = vpack.c.b8 %v10646_v39, %v10642_v35  ;;  %v10652_v51 = vpack.c.f32.eXmY %v5919_v37, %v5951_v40, 312  ;;  %v5920_v52 = vtrunc.f32 %v3872_v42  ;;  %v1924_v29 = vld [vmem:[%s12293_s30 + $0x37d0] sm:$0xff] }
 0x4ef   : > { %v3873_v53 = vmul.f32 0.5, %v1825_v38  ;;  %v10656_v55 = vpack.c.f32.eXmY %v5983_v41, %v6015_v43, 312  ;;  %v5952_v56 = vtrunc.f32 %v3904_v44  ;;  %v5984_v57 = vtrunc.f32 %v3936_v45  ;;  %v1861_v43 = vld [vmem:[%s12293_s30 + $0x35d8] sm:$0xff] }
 0x4f0   : > { %v6016_v58 = vtrunc.f32 %v3968_v46  ;;  %11838 = vst [vmem:[%s12322_s25 + $0xda0] sm:$0xff] %v10650_v50  ;;  %v3905_v60 = vmul.f32 0.5, %v1857_v47  ;;  %v3937_v61 = vmul.f32 0.5, %v1889_v48  ;;  %v3969_v62 = vmul.f32 0.5, %v1921_v49  ;;  %v1893_v44 = vld [vmem:[%s12293_s30 + $0x36d8] sm:$0xff]  ;;  %v1830_v50 = vld [vmem:[%s12293_s30 + $0x34e0] sm:$0xff] }
 0x4f1   : > { %v5921_v63 = vtrunc.f32 %v3873_v53  ;;  %v10660_v2 = vpack.c.b8 %v10656_v55, %v10652_v51  ;;  %v10662_v3 = vpack.c.f32.eXmY %v5920_v52, %v5952_v56, 312  ;;  %v3874_v5 = vmul.f32 0.5, %v1826_v54  ;;  %v1925_v45 = vld [vmem:[%s12293_s30 + $0x37d8] sm:$0xff]  ;;  %v1862_v55 = vld [vmem:[%s12293_s30 + $0x35e0] sm:$0xff] }
 0x4f2   : > { %v10666_v4 = vpack.c.f32.eXmY %v5984_v57, %v6016_v58, 312  ;;  %v5953_v7 = vtrunc.f32 %v3905_v60  ;;  %v5985_v8 = vtrunc.f32 %v3937_v61  ;;  %v6017_v9 = vtrunc.f32 %v3969_v62  ;;  %v1894_v60 = vld [vmem:[%s12293_s30 + $0x36e0] sm:$0xff] }
 0x4f3   : > { %v3906_v10 = vmul.f32 0.5, %v1858_v59  ;;  %11839 = vst [vmem:[%s12322_s25 + $0xda8] sm:$0xff] %v10660_v2  ;;  %v3938_v14 = vmul.f32 0.5, %v1890_v0  ;;  %v3970_v15 = vmul.f32 0.5, %v1922_v1  ;;  %v5922_v16 = vtrunc.f32 %v3874_v5  ;;  %v1926_v61 = vld [vmem:[%s12293_s30 + $0x37e0] sm:$0xff]  ;;  %v1831_v2 = vld [vmem:[%s12293_s30 + $0x34e8] sm:$0xff] }
 0x4f4   : > { %v10670_v13 = vpack.c.b8 %v10666_v4, %v10662_v3  ;;  %v10672_v18 = vpack.c.f32.eXmY %v5921_v63, %v5953_v7, 312  ;;  %v10676_v19 = vpack.c.f32.eXmY %v5985_v8, %v6017_v9, 312  ;;  %v3875_v21 = vmul.f32 0.5, %v1827_v6  ;;  %v1863_v7 = vld [vmem:[%s12293_s30 + $0x35e8] sm:$0xff] }
 0x4f5   : > { %v5954_v20 = vtrunc.f32 %v3906_v10  ;;  %v5986_v23 = vtrunc.f32 %v3938_v14  ;;  %v6018_v24 = vtrunc.f32 %v3970_v15  ;;  %v3907_v25 = vmul.f32 0.5, %v1859_v11  ;;  %v1895_v8 = vld [vmem:[%s12293_s30 + $0x36e8] sm:$0xff] }
 0x4f6   : > { %11840 = vst [vmem:[%s12322_s25 + $0xdb0] sm:$0xff] %v10670_v13  ;;  %v3939_v26 = vmul.f32 0.5, %v1891_v12  ;;  %v10680_v30 = vpack.c.b8 %v10676_v19, %v10672_v18  ;;  %v3971_v32 = vmul.f32 0.5, %v1923_v17  ;;  %v5923_v33 = vtrunc.f32 %v3875_v21  ;;  %v1927_v13 = vld [vmem:[%s12293_s30 + $0x37e8] sm:$0xff]  ;;  %v1832_v18 = vld [vmem:[%s12293_s30 + $0x34f0] sm:$0xff] }
 0x4f7   : > { %v10682_v31 = vpack.c.f32.eXmY %v5922_v16, %v5954_v20, 312  ;;  %v10686_v35 = vpack.c.f32.eXmY %v5986_v23, %v6018_v24, 312  ;;  %v5955_v36 = vtrunc.f32 %v3907_v25  ;;  %v3876_v38 = vmul.f32 0.5, %v1828_v22  ;;  %v1864_v23 = vld [vmem:[%s12293_s30 + $0x35f0] sm:$0xff] }
 0x4f8   : > { %v5987_v37 = vtrunc.f32 %v3939_v26  ;;  %11841 = vst [vmem:[%s12322_s25 + $0xdb8] sm:$0xff] %v10680_v30  ;;  %v6019_v39 = vtrunc.f32 %v3971_v32  ;;  %v3908_v40 = vmul.f32 0.5, %v1860_v27  ;;  %v3940_v41 = vmul.f32 0.5, %v1892_v28  ;;  %v1896_v24 = vld [vmem:[%s12293_s30 + $0x36f0] sm:$0xff]  ;;  %v1833_v30 = vld [vmem:[%s12293_s30 + $0x34f8] sm:$0xff] }
 0x4f9   : > { %v3972_v42 = vmul.f32 0.5, %v1924_v29  ;;  %v10690_v46 = vpack.c.b8 %v10686_v35, %v10682_v31  ;;  %v10692_v47 = vpack.c.f32.eXmY %v5923_v33, %v5955_v36, 312  ;;  %v5924_v48 = vtrunc.f32 %v3876_v38  ;;  %v1928_v25 = vld [vmem:[%s12293_s30 + $0x37f0] sm:$0xff] }
 0x4fa   : > { %v3877_v49 = vmul.f32 0.5, %v1829_v34  ;;  %v10696_v51 = vpack.c.f32.eXmY %v5987_v37, %v6019_v39, 312  ;;  %v5956_v52 = vtrunc.f32 %v3908_v40  ;;  %v5988_v53 = vtrunc.f32 %v3940_v41  ;;  %v1865_v39 = vld [vmem:[%s12293_s30 + $0x35f8] sm:$0xff] }
 0x4fb   : > { %v6020_v54 = vtrunc.f32 %v3972_v42  ;;  %11842 = vst [vmem:[%s12322_s25 + $0xdc0] sm:$0xff] %v10690_v46  ;;  %v3909_v56 = vmul.f32 0.5, %v1861_v43  ;;  %v3941_v57 = vmul.f32 0.5, %v1893_v44  ;;  %v3973_v58 = vmul.f32 0.5, %v1925_v45  ;;  %v1897_v40 = vld [vmem:[%s12293_s30 + $0x36f8] sm:$0xff]  ;;  %v1930_v46 = vld [vmem:[%s12293_s30 + $0x3800] sm:$0xff] }
 0x4fc   : > { %v5925_v59 = vtrunc.f32 %v3877_v49  ;;  %v10700_v62 = vpack.c.b8 %v10696_v51, %v10692_v47  ;;  %v10702_v63 = vpack.c.f32.eXmY %v5924_v48, %v5956_v52, 312  ;;  %v3878_v1 = vmul.f32 0.5, %v1830_v50  ;;  %v1929_v41 = vld [vmem:[%s12293_s30 + $0x37f8] sm:$0xff]  ;;  %v1962_v51 = vld [vmem:[%s12293_s30 + $0x3900] sm:$0xff] }
 0x4fd   : > { %v10706_v0 = vpack.c.f32.eXmY %v5988_v53, %v6020_v54, 312  ;;  %v5957_v3 = vtrunc.f32 %v3909_v56  ;;  %v5989_v4 = vtrunc.f32 %v3941_v57  ;;  %v6021_v5 = vtrunc.f32 %v3973_v58  ;;  %v1994_v56 = vld [vmem:[%s12293_s30 + $0x3a00] sm:$0xff] }
 0x4fe   : > { %v3910_v6 = vmul.f32 0.5, %v1862_v55  ;;  %11843 = vst [vmem:[%s12322_s25 + $0xdc8] sm:$0xff] %v10700_v62  ;;  %v3942_v10 = vmul.f32 0.5, %v1894_v60  ;;  %v3974_v11 = vmul.f32 0.5, %v1926_v61  ;;  %v5926_v12 = vtrunc.f32 %v3878_v1  ;;  %v2026_v57 = vld [vmem:[%s12293_s30 + $0x3b00] sm:$0xff]  ;;  %v1931_v62 = vld [vmem:[%s12293_s30 + $0x3808] sm:$0xff] }
 0x4ff   : > { %v10710_v9 = vpack.c.b8 %v10706_v0, %v10702_v63  ;;  %v10712_v14 = vpack.c.f32.eXmY %v5925_v59, %v5957_v3, 312  ;;  %v10716_v15 = vpack.c.f32.eXmY %v5989_v4, %v6021_v5, 312  ;;  %v3879_v17 = vmul.f32 0.5, %v1831_v2  ;;  %v1963_v3 = vld [vmem:[%s12293_s30 + $0x3908] sm:$0xff] }
 0x500   : > { %v5958_v16 = vtrunc.f32 %v3910_v6  ;;  %v5990_v19 = vtrunc.f32 %v3942_v10  ;;  %v6022_v20 = vtrunc.f32 %v3974_v11  ;;  %v3911_v21 = vmul.f32 0.5, %v1863_v7  ;;  %v1995_v4 = vld [vmem:[%s12293_s30 + $0x3a08] sm:$0xff] }
 0x501   : > { %11844 = vst [vmem:[%s12322_s25 + $0xdd0] sm:$0xff] %v10710_v9  ;;  %v3943_v22 = vmul.f32 0.5, %v1895_v8  ;;  %v10720_v26 = vpack.c.b8 %v10716_v15, %v10712_v14  ;;  %v3975_v28 = vmul.f32 0.5, %v1927_v13  ;;  %v5927_v29 = vtrunc.f32 %v3879_v17  ;;  %v2027_v9 = vld [vmem:[%s12293_s30 + $0x3b08] sm:$0xff]  ;;  %v1932_v14 = vld [vmem:[%s12293_s30 + $0x3810] sm:$0xff] }
 0x502   : > { %v10722_v27 = vpack.c.f32.eXmY %v5926_v12, %v5958_v16, 312  ;;  %v10726_v31 = vpack.c.f32.eXmY %v5990_v19, %v6022_v20, 312  ;;  %v5959_v32 = vtrunc.f32 %v3911_v21  ;;  %v3880_v34 = vmul.f32 0.5, %v1832_v18  ;;  %v1964_v19 = vld [vmem:[%s12293_s30 + $0x3910] sm:$0xff] }
 0x503   : > { %v5991_v33 = vtrunc.f32 %v3943_v22  ;;  %11845 = vst [vmem:[%s12322_s25 + $0xdd8] sm:$0xff] %v10720_v26  ;;  %v6023_v35 = vtrunc.f32 %v3975_v28  ;;  %v3912_v36 = vmul.f32 0.5, %v1864_v23  ;;  %v3944_v37 = vmul.f32 0.5, %v1896_v24  ;;  %v1996_v20 = vld [vmem:[%s12293_s30 + $0x3a10] sm:$0xff]  ;;  %v1933_v26 = vld [vmem:[%s12293_s30 + $0x3818] sm:$0xff] }
 0x504   : > { %v3976_v38 = vmul.f32 0.5, %v1928_v25  ;;  %v10730_v42 = vpack.c.b8 %v10726_v31, %v10722_v27  ;;  %v10732_v43 = vpack.c.f32.eXmY %v5927_v29, %v5959_v32, 312  ;;  %v5928_v44 = vtrunc.f32 %v3880_v34  ;;  %v2028_v21 = vld [vmem:[%s12293_s30 + $0x3b10] sm:$0xff] }
 0x505   : > { %v3881_v45 = vmul.f32 0.5, %v1833_v30  ;;  %v10736_v47 = vpack.c.f32.eXmY %v5991_v33, %v6023_v35, 312  ;;  %v5960_v48 = vtrunc.f32 %v3912_v36  ;;  %v5992_v49 = vtrunc.f32 %v3944_v37  ;;  %v1965_v35 = vld [vmem:[%s12293_s30 + $0x3918] sm:$0xff] }
 0x506   : > { %v6024_v50 = vtrunc.f32 %v3976_v38  ;;  %11846 = vst [vmem:[%s12322_s25 + $0xde0] sm:$0xff] %v10730_v42  ;;  %v3913_v52 = vmul.f32 0.5, %v1865_v39  ;;  %v3945_v53 = vmul.f32 0.5, %v1897_v40  ;;  %v3977_v54 = vmul.f32 0.5, %v1929_v41  ;;  %v1997_v36 = vld [vmem:[%s12293_s30 + $0x3a18] sm:$0xff]  ;;  %v1934_v42 = vld [vmem:[%s12293_s30 + $0x3820] sm:$0xff] }
 0x507   : > { %v5929_v55 = vtrunc.f32 %v3881_v45  ;;  %v10740_v58 = vpack.c.b8 %v10736_v47, %v10732_v43  ;;  %v10742_v59 = vpack.c.f32.eXmY %v5928_v44, %v5960_v48, 312  ;;  %v3978_v61 = vmul.f32 0.5, %v1930_v46  ;;  %v2029_v37 = vld [vmem:[%s12293_s30 + $0x3b18] sm:$0xff]  ;;  %v1966_v47 = vld [vmem:[%s12293_s30 + $0x3920] sm:$0xff] }
 0x508   : > { %v10746_v60 = vpack.c.f32.eXmY %v5992_v49, %v6024_v50, 312  ;;  %v5961_v63 = vtrunc.f32 %v3913_v52  ;;  %v5993_v0 = vtrunc.f32 %v3945_v53  ;;  %v6025_v1 = vtrunc.f32 %v3977_v54  ;;  %v1998_v52 = vld [vmem:[%s12293_s30 + $0x3a20] sm:$0xff] }
 0x509   : > { %v4010_v2 = vmul.f32 0.5, %v1962_v51  ;;  %11847 = vst [vmem:[%s12322_s25 + $0xde8] sm:$0xff] %v10740_v58  ;;  %v4042_v6 = vmul.f32 0.5, %v1994_v56  ;;  %v4074_v7 = vmul.f32 0.5, %v2026_v57  ;;  %v6026_v8 = vtrunc.f32 %v3978_v61  ;;  %v2030_v53 = vld [vmem:[%s12293_s30 + $0x3b20] sm:$0xff]  ;;  %v1935_v58 = vld [vmem:[%s12293_s30 + $0x3828] sm:$0xff] }
 0x50a   : > { %v10750_v5 = vpack.c.b8 %v10746_v60, %v10742_v59  ;;  %v10752_v10 = vpack.c.f32.eXmY %v5929_v55, %v5961_v63, 312  ;;  %v10756_v11 = vpack.c.f32.eXmY %v5993_v0, %v6025_v1, 312  ;;  %v3979_v13 = vmul.f32 0.5, %v1931_v62  ;;  %v1967_v63 = vld [vmem:[%s12293_s30 + $0x3928] sm:$0xff] }
 0x50b   : > { %v6058_v12 = vtrunc.f32 %v4010_v2  ;;  %v6090_v15 = vtrunc.f32 %v4042_v6  ;;  %v6122_v16 = vtrunc.f32 %v4074_v7  ;;  %v4011_v17 = vmul.f32 0.5, %v1963_v3  ;;  %v1999_v0 = vld [vmem:[%s12293_s30 + $0x3a28] sm:$0xff] }
 0x50c   : > { %11848 = vst [vmem:[%s12322_s25 + $0xdf0] sm:$0xff] %v10750_v5  ;;  %v4043_v18 = vmul.f32 0.5, %v1995_v4  ;;  %v10760_v22 = vpack.c.b8 %v10756_v11, %v10752_v10  ;;  %v4075_v24 = vmul.f32 0.5, %v2027_v9  ;;  %v6027_v25 = vtrunc.f32 %v3979_v13  ;;  %v2031_v5 = vld [vmem:[%s12293_s30 + $0x3b28] sm:$0xff]  ;;  %v1936_v10 = vld [vmem:[%s12293_s30 + $0x3830] sm:$0xff] }
 0x50d   : > { %v10762_v23 = vpack.c.f32.eXmY %v6026_v8, %v6058_v12, 312  ;;  %v10766_v27 = vpack.c.f32.eXmY %v6090_v15, %v6122_v16, 312  ;;  %v6059_v28 = vtrunc.f32 %v4011_v17  ;;  %v3980_v30 = vmul.f32 0.5, %v1932_v14  ;;  %v1968_v15 = vld [vmem:[%s12293_s30 + $0x3930] sm:$0xff] }
 0x50e   : > { %v6091_v29 = vtrunc.f32 %v4043_v18  ;;  %11849 = vst [vmem:[%s12322_s25 + $0xdf8] sm:$0xff] %v10760_v22  ;;  %v6123_v31 = vtrunc.f32 %v4075_v24  ;;  %v4012_v32 = vmul.f32 0.5, %v1964_v19  ;;  %v4044_v33 = vmul.f32 0.5, %v1996_v20  ;;  %v2000_v16 = vld [vmem:[%s12293_s30 + $0x3a30] sm:$0xff]  ;;  %v1937_v22 = vld [vmem:[%s12293_s30 + $0x3838] sm:$0xff] }
 0x50f   : > { %v4076_v34 = vmul.f32 0.5, %v2028_v21  ;;  %v10770_v38 = vpack.c.b8 %v10766_v27, %v10762_v23  ;;  %v10772_v39 = vpack.c.f32.eXmY %v6027_v25, %v6059_v28, 312  ;;  %v6028_v40 = vtrunc.f32 %v3980_v30  ;;  %v2032_v17 = vld [vmem:[%s12293_s30 + $0x3b30] sm:$0xff] }
 0x510   : > { %v3981_v41 = vmul.f32 0.5, %v1933_v26  ;;  %v10776_v43 = vpack.c.f32.eXmY %v6091_v29, %v6123_v31, 312  ;;  %v6060_v44 = vtrunc.f32 %v4012_v32  ;;  %v6092_v45 = vtrunc.f32 %v4044_v33  ;;  %v1969_v31 = vld [vmem:[%s12293_s30 + $0x3938] sm:$0xff] }
 0x511   : > { %v6124_v46 = vtrunc.f32 %v4076_v34  ;;  %11850 = vst [vmem:[%s12322_s25 + $0xe00] sm:$0xff] %v10770_v38  ;;  %v4013_v48 = vmul.f32 0.5, %v1965_v35  ;;  %v4045_v49 = vmul.f32 0.5, %v1997_v36  ;;  %v4077_v50 = vmul.f32 0.5, %v2029_v37  ;;  %v2001_v32 = vld [vmem:[%s12293_s30 + $0x3a38] sm:$0xff]  ;;  %v1938_v38 = vld [vmem:[%s12293_s30 + $0x3840] sm:$0xff] }
 0x512   : > { %v6029_v51 = vtrunc.f32 %v3981_v41  ;;  %v10780_v54 = vpack.c.b8 %v10776_v43, %v10772_v39  ;;  %v10782_v55 = vpack.c.f32.eXmY %v6028_v40, %v6060_v44, 312  ;;  %v3982_v57 = vmul.f32 0.5, %v1934_v42  ;;  %v2033_v33 = vld [vmem:[%s12293_s30 + $0x3b38] sm:$0xff]  ;;  %v1970_v43 = vld [vmem:[%s12293_s30 + $0x3940] sm:$0xff] }
 0x513   : > { %v10786_v56 = vpack.c.f32.eXmY %v6092_v45, %v6124_v46, 312  ;;  %v6061_v59 = vtrunc.f32 %v4013_v48  ;;  %v6093_v60 = vtrunc.f32 %v4045_v49  ;;  %v6125_v61 = vtrunc.f32 %v4077_v50  ;;  %v2002_v48 = vld [vmem:[%s12293_s30 + $0x3a40] sm:$0xff] }
 0x514   : > { %v4014_v62 = vmul.f32 0.5, %v1966_v47  ;;  %11851 = vst [vmem:[%s12322_s25 + $0xe08] sm:$0xff] %v10780_v54  ;;  %v4046_v2 = vmul.f32 0.5, %v1998_v52  ;;  %v4078_v3 = vmul.f32 0.5, %v2030_v53  ;;  %v6030_v4 = vtrunc.f32 %v3982_v57  ;;  %v2034_v49 = vld [vmem:[%s12293_s30 + $0x3b40] sm:$0xff]  ;;  %v1939_v54 = vld [vmem:[%s12293_s30 + $0x3848] sm:$0xff] }
 0x515   : > { %v10790_v1 = vpack.c.b8 %v10786_v56, %v10782_v55  ;;  %v10792_v6 = vpack.c.f32.eXmY %v6029_v51, %v6061_v59, 312  ;;  %v10796_v7 = vpack.c.f32.eXmY %v6093_v60, %v6125_v61, 312  ;;  %v3983_v9 = vmul.f32 0.5, %v1935_v58  ;;  %v1971_v59 = vld [vmem:[%s12293_s30 + $0x3948] sm:$0xff] }
 0x516   : > { %v6062_v8 = vtrunc.f32 %v4014_v62  ;;  %v6094_v11 = vtrunc.f32 %v4046_v2  ;;  %v6126_v12 = vtrunc.f32 %v4078_v3  ;;  %v4015_v13 = vmul.f32 0.5, %v1967_v63  ;;  %v2003_v60 = vld [vmem:[%s12293_s30 + $0x3a48] sm:$0xff] }
 0x517   : > { %11852 = vst [vmem:[%s12322_s25 + $0xe10] sm:$0xff] %v10790_v1  ;;  %v4047_v14 = vmul.f32 0.5, %v1999_v0  ;;  %v10800_v18 = vpack.c.b8 %v10796_v7, %v10792_v6  ;;  %v4079_v20 = vmul.f32 0.5, %v2031_v5  ;;  %v6031_v21 = vtrunc.f32 %v3983_v9  ;;  %v2035_v1 = vld [vmem:[%s12293_s30 + $0x3b48] sm:$0xff]  ;;  %v1940_v6 = vld [vmem:[%s12293_s30 + $0x3850] sm:$0xff] }
 0x518   : > { %v10802_v19 = vpack.c.f32.eXmY %v6030_v4, %v6062_v8, 312  ;;  %v10806_v23 = vpack.c.f32.eXmY %v6094_v11, %v6126_v12, 312  ;;  %v6063_v24 = vtrunc.f32 %v4015_v13  ;;  %v3984_v26 = vmul.f32 0.5, %v1936_v10  ;;  %v1972_v11 = vld [vmem:[%s12293_s30 + $0x3950] sm:$0xff] }
 0x519   : > { %v6095_v25 = vtrunc.f32 %v4047_v14  ;;  %11853 = vst [vmem:[%s12322_s25 + $0xe18] sm:$0xff] %v10800_v18  ;;  %v6127_v27 = vtrunc.f32 %v4079_v20  ;;  %v4016_v28 = vmul.f32 0.5, %v1968_v15  ;;  %v4048_v29 = vmul.f32 0.5, %v2000_v16  ;;  %v2004_v12 = vld [vmem:[%s12293_s30 + $0x3a50] sm:$0xff]  ;;  %v1941_v18 = vld [vmem:[%s12293_s30 + $0x3858] sm:$0xff] }
 0x51a   : > { %v4080_v30 = vmul.f32 0.5, %v2032_v17  ;;  %v10810_v34 = vpack.c.b8 %v10806_v23, %v10802_v19  ;;  %v10812_v35 = vpack.c.f32.eXmY %v6031_v21, %v6063_v24, 312  ;;  %v6032_v36 = vtrunc.f32 %v3984_v26  ;;  %v2036_v13 = vld [vmem:[%s12293_s30 + $0x3b50] sm:$0xff] }
 0x51b   : > { %v3985_v37 = vmul.f32 0.5, %v1937_v22  ;;  %v10816_v39 = vpack.c.f32.eXmY %v6095_v25, %v6127_v27, 312  ;;  %v6064_v40 = vtrunc.f32 %v4016_v28  ;;  %v6096_v41 = vtrunc.f32 %v4048_v29  ;;  %v1973_v27 = vld [vmem:[%s12293_s30 + $0x3958] sm:$0xff] }
 0x51c   : > { %v6128_v42 = vtrunc.f32 %v4080_v30  ;;  %11854 = vst [vmem:[%s12322_s25 + $0xe20] sm:$0xff] %v10810_v34  ;;  %v4017_v44 = vmul.f32 0.5, %v1969_v31  ;;  %v4049_v45 = vmul.f32 0.5, %v2001_v32  ;;  %v4081_v46 = vmul.f32 0.5, %v2033_v33  ;;  %v2005_v28 = vld [vmem:[%s12293_s30 + $0x3a58] sm:$0xff]  ;;  %v1942_v34 = vld [vmem:[%s12293_s30 + $0x3860] sm:$0xff] }
 0x51d   : > { %v6033_v47 = vtrunc.f32 %v3985_v37  ;;  %v10820_v50 = vpack.c.b8 %v10816_v39, %v10812_v35  ;;  %v10822_v51 = vpack.c.f32.eXmY %v6032_v36, %v6064_v40, 312  ;;  %v3986_v53 = vmul.f32 0.5, %v1938_v38  ;;  %v2037_v29 = vld [vmem:[%s12293_s30 + $0x3b58] sm:$0xff]  ;;  %v1974_v39 = vld [vmem:[%s12293_s30 + $0x3960] sm:$0xff] }
 0x51e   : > { %v10826_v52 = vpack.c.f32.eXmY %v6096_v41, %v6128_v42, 312  ;;  %v6065_v55 = vtrunc.f32 %v4017_v44  ;;  %v6097_v56 = vtrunc.f32 %v4049_v45  ;;  %v6129_v57 = vtrunc.f32 %v4081_v46  ;;  %v2006_v44 = vld [vmem:[%s12293_s30 + $0x3a60] sm:$0xff] }
 0x51f   : > { %v4018_v58 = vmul.f32 0.5, %v1970_v43  ;;  %11855 = vst [vmem:[%s12322_s25 + $0xe28] sm:$0xff] %v10820_v50  ;;  %v4050_v62 = vmul.f32 0.5, %v2002_v48  ;;  %v4082_v63 = vmul.f32 0.5, %v2034_v49  ;;  %v6034_v0 = vtrunc.f32 %v3986_v53  ;;  %v2038_v45 = vld [vmem:[%s12293_s30 + $0x3b60] sm:$0xff]  ;;  %v1943_v50 = vld [vmem:[%s12293_s30 + $0x3868] sm:$0xff] }
 0x520   : > { %v10830_v61 = vpack.c.b8 %v10826_v52, %v10822_v51  ;;  %v10832_v2 = vpack.c.f32.eXmY %v6033_v47, %v6065_v55, 312  ;;  %v10836_v3 = vpack.c.f32.eXmY %v6097_v56, %v6129_v57, 312  ;;  %v3987_v5 = vmul.f32 0.5, %v1939_v54  ;;  %v1975_v55 = vld [vmem:[%s12293_s30 + $0x3968] sm:$0xff] }
 0x521   : > { %v6066_v4 = vtrunc.f32 %v4018_v58  ;;  %v6098_v7 = vtrunc.f32 %v4050_v62  ;;  %v6130_v8 = vtrunc.f32 %v4082_v63  ;;  %v4019_v9 = vmul.f32 0.5, %v1971_v59  ;;  %v2007_v56 = vld [vmem:[%s12293_s30 + $0x3a68] sm:$0xff] }
 0x522   : > { %11856 = vst [vmem:[%s12322_s25 + $0xe30] sm:$0xff] %v10830_v61  ;;  %v4051_v10 = vmul.f32 0.5, %v2003_v60  ;;  %v10840_v14 = vpack.c.b8 %v10836_v3, %v10832_v2  ;;  %v4083_v16 = vmul.f32 0.5, %v2035_v1  ;;  %v6035_v17 = vtrunc.f32 %v3987_v5  ;;  %v2039_v61 = vld [vmem:[%s12293_s30 + $0x3b68] sm:$0xff]  ;;  %v1944_v2 = vld [vmem:[%s12293_s30 + $0x3870] sm:$0xff] }
 0x523   : > { %v10842_v15 = vpack.c.f32.eXmY %v6034_v0, %v6066_v4, 312  ;;  %v10846_v19 = vpack.c.f32.eXmY %v6098_v7, %v6130_v8, 312  ;;  %v6067_v20 = vtrunc.f32 %v4019_v9  ;;  %v3988_v22 = vmul.f32 0.5, %v1940_v6  ;;  %v1976_v7 = vld [vmem:[%s12293_s30 + $0x3970] sm:$0xff] }
 0x524   : > { %v6099_v21 = vtrunc.f32 %v4051_v10  ;;  %11857 = vst [vmem:[%s12322_s25 + $0xe38] sm:$0xff] %v10840_v14  ;;  %v6131_v23 = vtrunc.f32 %v4083_v16  ;;  %v4020_v24 = vmul.f32 0.5, %v1972_v11  ;;  %v4052_v25 = vmul.f32 0.5, %v2004_v12  ;;  %v2008_v8 = vld [vmem:[%s12293_s30 + $0x3a70] sm:$0xff]  ;;  %v1945_v14 = vld [vmem:[%s12293_s30 + $0x3878] sm:$0xff] }
 0x525   : > { %v4084_v26 = vmul.f32 0.5, %v2036_v13  ;;  %v10850_v30 = vpack.c.b8 %v10846_v19, %v10842_v15  ;;  %v10852_v31 = vpack.c.f32.eXmY %v6035_v17, %v6067_v20, 312  ;;  %v6036_v32 = vtrunc.f32 %v3988_v22  ;;  %v2040_v9 = vld [vmem:[%s12293_s30 + $0x3b70] sm:$0xff] }
 0x526   : > { %v3989_v33 = vmul.f32 0.5, %v1941_v18  ;;  %v10856_v35 = vpack.c.f32.eXmY %v6099_v21, %v6131_v23, 312  ;;  %v6068_v36 = vtrunc.f32 %v4020_v24  ;;  %v6100_v37 = vtrunc.f32 %v4052_v25  ;;  %v1977_v23 = vld [vmem:[%s12293_s30 + $0x3978] sm:$0xff] }
 0x527   : > { %v6132_v38 = vtrunc.f32 %v4084_v26  ;;  %11858 = vst [vmem:[%s12322_s25 + $0xe40] sm:$0xff] %v10850_v30  ;;  %v4021_v40 = vmul.f32 0.5, %v1973_v27  ;;  %v4053_v41 = vmul.f32 0.5, %v2005_v28  ;;  %v4085_v42 = vmul.f32 0.5, %v2037_v29  ;;  %v2009_v24 = vld [vmem:[%s12293_s30 + $0x3a78] sm:$0xff]  ;;  %v1946_v30 = vld [vmem:[%s12293_s30 + $0x3880] sm:$0xff] }
 0x528   : > { %v6037_v43 = vtrunc.f32 %v3989_v33  ;;  %v10860_v46 = vpack.c.b8 %v10856_v35, %v10852_v31  ;;  %v10862_v47 = vpack.c.f32.eXmY %v6036_v32, %v6068_v36, 312  ;;  %v3990_v49 = vmul.f32 0.5, %v1942_v34  ;;  %v2041_v25 = vld [vmem:[%s12293_s30 + $0x3b78] sm:$0xff]  ;;  %v1978_v35 = vld [vmem:[%s12293_s30 + $0x3980] sm:$0xff] }
 0x529   : > { %v10866_v48 = vpack.c.f32.eXmY %v6100_v37, %v6132_v38, 312  ;;  %v6069_v51 = vtrunc.f32 %v4021_v40  ;;  %v6101_v52 = vtrunc.f32 %v4053_v41  ;;  %v6133_v53 = vtrunc.f32 %v4085_v42  ;;  %v2010_v40 = vld [vmem:[%s12293_s30 + $0x3a80] sm:$0xff] }
 0x52a   : > { %v4022_v54 = vmul.f32 0.5, %v1974_v39  ;;  %11859 = vst [vmem:[%s12322_s25 + $0xe48] sm:$0xff] %v10860_v46  ;;  %v4054_v58 = vmul.f32 0.5, %v2006_v44  ;;  %v4086_v59 = vmul.f32 0.5, %v2038_v45  ;;  %v6038_v60 = vtrunc.f32 %v3990_v49  ;;  %v2042_v41 = vld [vmem:[%s12293_s30 + $0x3b80] sm:$0xff]  ;;  %v1947_v46 = vld [vmem:[%s12293_s30 + $0x3888] sm:$0xff] }
 0x52b   : > { %v10870_v57 = vpack.c.b8 %v10866_v48, %v10862_v47  ;;  %v10872_v62 = vpack.c.f32.eXmY %v6037_v43, %v6069_v51, 312  ;;  %v10876_v63 = vpack.c.f32.eXmY %v6101_v52, %v6133_v53, 312  ;;  %v3991_v1 = vmul.f32 0.5, %v1943_v50  ;;  %v1979_v51 = vld [vmem:[%s12293_s30 + $0x3988] sm:$0xff] }
 0x52c   : > { %v6070_v0 = vtrunc.f32 %v4022_v54  ;;  %v6102_v3 = vtrunc.f32 %v4054_v58  ;;  %v6134_v4 = vtrunc.f32 %v4086_v59  ;;  %v4023_v5 = vmul.f32 0.5, %v1975_v55  ;;  %v2011_v52 = vld [vmem:[%s12293_s30 + $0x3a88] sm:$0xff] }
 0x52d   : > { %11860 = vst [vmem:[%s12322_s25 + $0xe50] sm:$0xff] %v10870_v57  ;;  %v4055_v6 = vmul.f32 0.5, %v2007_v56  ;;  %v10880_v10 = vpack.c.b8 %v10876_v63, %v10872_v62  ;;  %v4087_v12 = vmul.f32 0.5, %v2039_v61  ;;  %v6039_v13 = vtrunc.f32 %v3991_v1  ;;  %v2043_v57 = vld [vmem:[%s12293_s30 + $0x3b88] sm:$0xff]  ;;  %v1948_v62 = vld [vmem:[%s12293_s30 + $0x3890] sm:$0xff] }
 0x52e   : > { %v10882_v11 = vpack.c.f32.eXmY %v6038_v60, %v6070_v0, 312  ;;  %v10886_v15 = vpack.c.f32.eXmY %v6102_v3, %v6134_v4, 312  ;;  %v6071_v16 = vtrunc.f32 %v4023_v5  ;;  %v3992_v18 = vmul.f32 0.5, %v1944_v2  ;;  %v1980_v3 = vld [vmem:[%s12293_s30 + $0x3990] sm:$0xff] }
 0x52f   : > { %v6103_v17 = vtrunc.f32 %v4055_v6  ;;  %11861 = vst [vmem:[%s12322_s25 + $0xe58] sm:$0xff] %v10880_v10  ;;  %v6135_v19 = vtrunc.f32 %v4087_v12  ;;  %v4024_v20 = vmul.f32 0.5, %v1976_v7  ;;  %v4056_v21 = vmul.f32 0.5, %v2008_v8  ;;  %v2012_v4 = vld [vmem:[%s12293_s30 + $0x3a90] sm:$0xff]  ;;  %v1949_v10 = vld [vmem:[%s12293_s30 + $0x3898] sm:$0xff] }
 0x530   : > { %v4088_v22 = vmul.f32 0.5, %v2040_v9  ;;  %v10890_v26 = vpack.c.b8 %v10886_v15, %v10882_v11  ;;  %v10892_v27 = vpack.c.f32.eXmY %v6039_v13, %v6071_v16, 312  ;;  %v6040_v28 = vtrunc.f32 %v3992_v18  ;;  %v2044_v5 = vld [vmem:[%s12293_s30 + $0x3b90] sm:$0xff] }
 0x531   : > { %v3993_v29 = vmul.f32 0.5, %v1945_v14  ;;  %v10896_v31 = vpack.c.f32.eXmY %v6103_v17, %v6135_v19, 312  ;;  %v6072_v32 = vtrunc.f32 %v4024_v20  ;;  %v6104_v33 = vtrunc.f32 %v4056_v21  ;;  %v1981_v19 = vld [vmem:[%s12293_s30 + $0x3998] sm:$0xff] }
 0x532   : > { %v6136_v34 = vtrunc.f32 %v4088_v22  ;;  %11862 = vst [vmem:[%s12322_s25 + $0xe60] sm:$0xff] %v10890_v26  ;;  %v4025_v36 = vmul.f32 0.5, %v1977_v23  ;;  %v4057_v37 = vmul.f32 0.5, %v2009_v24  ;;  %v4089_v38 = vmul.f32 0.5, %v2041_v25  ;;  %v2013_v20 = vld [vmem:[%s12293_s30 + $0x3a98] sm:$0xff]  ;;  %v1950_v26 = vld [vmem:[%s12293_s30 + $0x38a0] sm:$0xff] }
 0x533   : > { %v6041_v39 = vtrunc.f32 %v3993_v29  ;;  %v10900_v42 = vpack.c.b8 %v10896_v31, %v10892_v27  ;;  %v10902_v43 = vpack.c.f32.eXmY %v6040_v28, %v6072_v32, 312  ;;  %v3994_v45 = vmul.f32 0.5, %v1946_v30  ;;  %v2045_v21 = vld [vmem:[%s12293_s30 + $0x3b98] sm:$0xff]  ;;  %v1982_v31 = vld [vmem:[%s12293_s30 + $0x39a0] sm:$0xff] }
 0x534   : > { %v10906_v44 = vpack.c.f32.eXmY %v6104_v33, %v6136_v34, 312  ;;  %v6073_v47 = vtrunc.f32 %v4025_v36  ;;  %v6105_v48 = vtrunc.f32 %v4057_v37  ;;  %v6137_v49 = vtrunc.f32 %v4089_v38  ;;  %v2014_v36 = vld [vmem:[%s12293_s30 + $0x3aa0] sm:$0xff] }
 0x535   : > { %v4026_v50 = vmul.f32 0.5, %v1978_v35  ;;  %11863 = vst [vmem:[%s12322_s25 + $0xe68] sm:$0xff] %v10900_v42  ;;  %v4058_v54 = vmul.f32 0.5, %v2010_v40  ;;  %v4090_v55 = vmul.f32 0.5, %v2042_v41  ;;  %v6042_v56 = vtrunc.f32 %v3994_v45  ;;  %v2046_v37 = vld [vmem:[%s12293_s30 + $0x3ba0] sm:$0xff]  ;;  %v1951_v42 = vld [vmem:[%s12293_s30 + $0x38a8] sm:$0xff] }
 0x536   : > { %v10910_v53 = vpack.c.b8 %v10906_v44, %v10902_v43  ;;  %v10912_v58 = vpack.c.f32.eXmY %v6041_v39, %v6073_v47, 312  ;;  %v10916_v59 = vpack.c.f32.eXmY %v6105_v48, %v6137_v49, 312  ;;  %v3995_v61 = vmul.f32 0.5, %v1947_v46  ;;  %v1983_v47 = vld [vmem:[%s12293_s30 + $0x39a8] sm:$0xff] }
 0x537   : > { %v6074_v60 = vtrunc.f32 %v4026_v50  ;;  %v6106_v63 = vtrunc.f32 %v4058_v54  ;;  %v6138_v0 = vtrunc.f32 %v4090_v55  ;;  %v4027_v1 = vmul.f32 0.5, %v1979_v51  ;;  %v2015_v48 = vld [vmem:[%s12293_s30 + $0x3aa8] sm:$0xff] }
 0x538   : > { %11864 = vst [vmem:[%s12322_s25 + $0xe70] sm:$0xff] %v10910_v53  ;;  %v4059_v2 = vmul.f32 0.5, %v2011_v52  ;;  %v10920_v6 = vpack.c.b8 %v10916_v59, %v10912_v58  ;;  %v4091_v8 = vmul.f32 0.5, %v2043_v57  ;;  %v6043_v9 = vtrunc.f32 %v3995_v61  ;;  %v2047_v53 = vld [vmem:[%s12293_s30 + $0x3ba8] sm:$0xff]  ;;  %v1952_v58 = vld [vmem:[%s12293_s30 + $0x38b0] sm:$0xff] }
 0x539   : > { %v10922_v7 = vpack.c.f32.eXmY %v6042_v56, %v6074_v60, 312  ;;  %v10926_v11 = vpack.c.f32.eXmY %v6106_v63, %v6138_v0, 312  ;;  %v6075_v12 = vtrunc.f32 %v4027_v1  ;;  %v3996_v14 = vmul.f32 0.5, %v1948_v62  ;;  %v1984_v63 = vld [vmem:[%s12293_s30 + $0x39b0] sm:$0xff] }
 0x53a   : > { %v6107_v13 = vtrunc.f32 %v4059_v2  ;;  %11865 = vst [vmem:[%s12322_s25 + $0xe78] sm:$0xff] %v10920_v6  ;;  %v6139_v15 = vtrunc.f32 %v4091_v8  ;;  %v4028_v16 = vmul.f32 0.5, %v1980_v3  ;;  %v4060_v17 = vmul.f32 0.5, %v2012_v4  ;;  %v2016_v0 = vld [vmem:[%s12293_s30 + $0x3ab0] sm:$0xff]  ;;  %v1953_v6 = vld [vmem:[%s12293_s30 + $0x38b8] sm:$0xff] }
 0x53b   : > { %v4092_v18 = vmul.f32 0.5, %v2044_v5  ;;  %v10930_v22 = vpack.c.b8 %v10926_v11, %v10922_v7  ;;  %v10932_v23 = vpack.c.f32.eXmY %v6043_v9, %v6075_v12, 312  ;;  %v6044_v24 = vtrunc.f32 %v3996_v14  ;;  %v2048_v1 = vld [vmem:[%s12293_s30 + $0x3bb0] sm:$0xff] }
 0x53c   : > { %v3997_v25 = vmul.f32 0.5, %v1949_v10  ;;  %v10936_v27 = vpack.c.f32.eXmY %v6107_v13, %v6139_v15, 312  ;;  %v6076_v28 = vtrunc.f32 %v4028_v16  ;;  %v6108_v29 = vtrunc.f32 %v4060_v17  ;;  %v1985_v15 = vld [vmem:[%s12293_s30 + $0x39b8] sm:$0xff] }
 0x53d   : > { %v6140_v30 = vtrunc.f32 %v4092_v18  ;;  %11866 = vst [vmem:[%s12322_s25 + $0xe80] sm:$0xff] %v10930_v22  ;;  %v4029_v32 = vmul.f32 0.5, %v1981_v19  ;;  %v4061_v33 = vmul.f32 0.5, %v2013_v20  ;;  %v4093_v34 = vmul.f32 0.5, %v2045_v21  ;;  %v2017_v16 = vld [vmem:[%s12293_s30 + $0x3ab8] sm:$0xff]  ;;  %v1954_v22 = vld [vmem:[%s12293_s30 + $0x38c0] sm:$0xff] }
 0x53e   : > { %v6045_v35 = vtrunc.f32 %v3997_v25  ;;  %v10940_v38 = vpack.c.b8 %v10936_v27, %v10932_v23  ;;  %v10942_v39 = vpack.c.f32.eXmY %v6044_v24, %v6076_v28, 312  ;;  %v3998_v41 = vmul.f32 0.5, %v1950_v26  ;;  %v2049_v17 = vld [vmem:[%s12293_s30 + $0x3bb8] sm:$0xff]  ;;  %v1986_v27 = vld [vmem:[%s12293_s30 + $0x39c0] sm:$0xff] }
 0x53f   : > { %v10946_v40 = vpack.c.f32.eXmY %v6108_v29, %v6140_v30, 312  ;;  %v6077_v43 = vtrunc.f32 %v4029_v32  ;;  %v6109_v44 = vtrunc.f32 %v4061_v33  ;;  %v6141_v45 = vtrunc.f32 %v4093_v34  ;;  %v2018_v32 = vld [vmem:[%s12293_s30 + $0x3ac0] sm:$0xff] }
 0x540   : > { %v4030_v46 = vmul.f32 0.5, %v1982_v31  ;;  %11867 = vst [vmem:[%s12322_s25 + $0xe88] sm:$0xff] %v10940_v38  ;;  %v4062_v50 = vmul.f32 0.5, %v2014_v36  ;;  %v4094_v51 = vmul.f32 0.5, %v2046_v37  ;;  %v6046_v52 = vtrunc.f32 %v3998_v41  ;;  %v2050_v33 = vld [vmem:[%s12293_s30 + $0x3bc0] sm:$0xff]  ;;  %v1955_v38 = vld [vmem:[%s12293_s30 + $0x38c8] sm:$0xff] }
 0x541   : > { %v10950_v49 = vpack.c.b8 %v10946_v40, %v10942_v39  ;;  %v10952_v54 = vpack.c.f32.eXmY %v6045_v35, %v6077_v43, 312  ;;  %v10956_v55 = vpack.c.f32.eXmY %v6109_v44, %v6141_v45, 312  ;;  %v3999_v57 = vmul.f32 0.5, %v1951_v42  ;;  %v1987_v43 = vld [vmem:[%s12293_s30 + $0x39c8] sm:$0xff] }
 0x542   : > { %v6078_v56 = vtrunc.f32 %v4030_v46  ;;  %v6110_v59 = vtrunc.f32 %v4062_v50  ;;  %v6142_v60 = vtrunc.f32 %v4094_v51  ;;  %v4031_v61 = vmul.f32 0.5, %v1983_v47  ;;  %v2019_v44 = vld [vmem:[%s12293_s30 + $0x3ac8] sm:$0xff] }
 0x543   : > { %11868 = vst [vmem:[%s12322_s25 + $0xe90] sm:$0xff] %v10950_v49  ;;  %v4063_v62 = vmul.f32 0.5, %v2015_v48  ;;  %v10960_v2 = vpack.c.b8 %v10956_v55, %v10952_v54  ;;  %v4095_v4 = vmul.f32 0.5, %v2047_v53  ;;  %v6047_v5 = vtrunc.f32 %v3999_v57  ;;  %v2051_v49 = vld [vmem:[%s12293_s30 + $0x3bc8] sm:$0xff]  ;;  %v1956_v54 = vld [vmem:[%s12293_s30 + $0x38d0] sm:$0xff] }
 0x544   : > { %v10962_v3 = vpack.c.f32.eXmY %v6046_v52, %v6078_v56, 312  ;;  %v10966_v7 = vpack.c.f32.eXmY %v6110_v59, %v6142_v60, 312  ;;  %v6079_v8 = vtrunc.f32 %v4031_v61  ;;  %v4000_v10 = vmul.f32 0.5, %v1952_v58  ;;  %v1988_v59 = vld [vmem:[%s12293_s30 + $0x39d0] sm:$0xff] }
 0x545   : > { %v6111_v9 = vtrunc.f32 %v4063_v62  ;;  %11869 = vst [vmem:[%s12322_s25 + $0xe98] sm:$0xff] %v10960_v2  ;;  %v6143_v11 = vtrunc.f32 %v4095_v4  ;;  %v4032_v12 = vmul.f32 0.5, %v1984_v63  ;;  %v4064_v13 = vmul.f32 0.5, %v2016_v0  ;;  %v2020_v60 = vld [vmem:[%s12293_s30 + $0x3ad0] sm:$0xff]  ;;  %v1957_v2 = vld [vmem:[%s12293_s30 + $0x38d8] sm:$0xff] }
 0x546   : > { %v4096_v14 = vmul.f32 0.5, %v2048_v1  ;;  %v10970_v18 = vpack.c.b8 %v10966_v7, %v10962_v3  ;;  %v10972_v19 = vpack.c.f32.eXmY %v6047_v5, %v6079_v8, 312  ;;  %v6048_v20 = vtrunc.f32 %v4000_v10  ;;  %v2052_v61 = vld [vmem:[%s12293_s30 + $0x3bd0] sm:$0xff] }
 0x547   : > { %v4001_v21 = vmul.f32 0.5, %v1953_v6  ;;  %v10976_v23 = vpack.c.f32.eXmY %v6111_v9, %v6143_v11, 312  ;;  %v6080_v24 = vtrunc.f32 %v4032_v12  ;;  %v6112_v25 = vtrunc.f32 %v4064_v13  ;;  %v1989_v11 = vld [vmem:[%s12293_s30 + $0x39d8] sm:$0xff] }
 0x548   : > { %v6144_v26 = vtrunc.f32 %v4096_v14  ;;  %11870 = vst [vmem:[%s12322_s25 + $0xea0] sm:$0xff] %v10970_v18  ;;  %v4033_v28 = vmul.f32 0.5, %v1985_v15  ;;  %v4065_v29 = vmul.f32 0.5, %v2017_v16  ;;  %v4097_v30 = vmul.f32 0.5, %v2049_v17  ;;  %v2021_v12 = vld [vmem:[%s12293_s30 + $0x3ad8] sm:$0xff]  ;;  %v1958_v18 = vld [vmem:[%s12293_s30 + $0x38e0] sm:$0xff] }
 0x549   : > { %v6049_v31 = vtrunc.f32 %v4001_v21  ;;  %v10980_v34 = vpack.c.b8 %v10976_v23, %v10972_v19  ;;  %v10982_v35 = vpack.c.f32.eXmY %v6048_v20, %v6080_v24, 312  ;;  %v4002_v37 = vmul.f32 0.5, %v1954_v22  ;;  %v2053_v13 = vld [vmem:[%s12293_s30 + $0x3bd8] sm:$0xff]  ;;  %v1990_v23 = vld [vmem:[%s12293_s30 + $0x39e0] sm:$0xff] }
 0x54a   : > { %v10986_v36 = vpack.c.f32.eXmY %v6112_v25, %v6144_v26, 312  ;;  %v6081_v39 = vtrunc.f32 %v4033_v28  ;;  %v6113_v40 = vtrunc.f32 %v4065_v29  ;;  %v6145_v41 = vtrunc.f32 %v4097_v30  ;;  %v2022_v28 = vld [vmem:[%s12293_s30 + $0x3ae0] sm:$0xff] }
 0x54b   : > { %v4034_v42 = vmul.f32 0.5, %v1986_v27  ;;  %11871 = vst [vmem:[%s12322_s25 + $0xea8] sm:$0xff] %v10980_v34  ;;  %v4066_v46 = vmul.f32 0.5, %v2018_v32  ;;  %v4098_v47 = vmul.f32 0.5, %v2050_v33  ;;  %v6050_v48 = vtrunc.f32 %v4002_v37  ;;  %v2054_v29 = vld [vmem:[%s12293_s30 + $0x3be0] sm:$0xff]  ;;  %v1959_v34 = vld [vmem:[%s12293_s30 + $0x38e8] sm:$0xff] }
 0x54c   : > { %v10990_v45 = vpack.c.b8 %v10986_v36, %v10982_v35  ;;  %v10992_v50 = vpack.c.f32.eXmY %v6049_v31, %v6081_v39, 312  ;;  %v10996_v51 = vpack.c.f32.eXmY %v6113_v40, %v6145_v41, 312  ;;  %v4003_v53 = vmul.f32 0.5, %v1955_v38  ;;  %v1991_v39 = vld [vmem:[%s12293_s30 + $0x39e8] sm:$0xff] }
 0x54d   : > { %v6082_v52 = vtrunc.f32 %v4034_v42  ;;  %v6114_v55 = vtrunc.f32 %v4066_v46  ;;  %v6146_v56 = vtrunc.f32 %v4098_v47  ;;  %v4035_v57 = vmul.f32 0.5, %v1987_v43  ;;  %v2023_v40 = vld [vmem:[%s12293_s30 + $0x3ae8] sm:$0xff] }
 0x54e   : > { %11872 = vst [vmem:[%s12322_s25 + $0xeb0] sm:$0xff] %v10990_v45  ;;  %v4067_v58 = vmul.f32 0.5, %v2019_v44  ;;  %v11000_v62 = vpack.c.b8 %v10996_v51, %v10992_v50  ;;  %v4099_v0 = vmul.f32 0.5, %v2051_v49  ;;  %v6051_v1 = vtrunc.f32 %v4003_v53  ;;  %v2055_v45 = vld [vmem:[%s12293_s30 + $0x3be8] sm:$0xff]  ;;  %v1960_v50 = vld [vmem:[%s12293_s30 + $0x38f0] sm:$0xff] }
 0x54f   : > { %v11002_v63 = vpack.c.f32.eXmY %v6050_v48, %v6082_v52, 312  ;;  %v11006_v3 = vpack.c.f32.eXmY %v6114_v55, %v6146_v56, 312  ;;  %v6083_v4 = vtrunc.f32 %v4035_v57  ;;  %v4004_v6 = vmul.f32 0.5, %v1956_v54  ;;  %v1992_v55 = vld [vmem:[%s12293_s30 + $0x39f0] sm:$0xff] }
 0x550   : > { %v6115_v5 = vtrunc.f32 %v4067_v58  ;;  %11873 = vst [vmem:[%s12322_s25 + $0xeb8] sm:$0xff] %v11000_v62  ;;  %v6147_v7 = vtrunc.f32 %v4099_v0  ;;  %v4036_v8 = vmul.f32 0.5, %v1988_v59  ;;  %v4068_v9 = vmul.f32 0.5, %v2020_v60  ;;  %v2024_v56 = vld [vmem:[%s12293_s30 + $0x3af0] sm:$0xff]  ;;  %v1961_v62 = vld [vmem:[%s12293_s30 + $0x38f8] sm:$0xff] }
 0x551   : > { %v4100_v10 = vmul.f32 0.5, %v2052_v61  ;;  %v11010_v14 = vpack.c.b8 %v11006_v3, %v11002_v63  ;;  %v11012_v15 = vpack.c.f32.eXmY %v6051_v1, %v6083_v4, 312  ;;  %v6052_v16 = vtrunc.f32 %v4004_v6  ;;  %v2056_v57 = vld [vmem:[%s12293_s30 + $0x3bf0] sm:$0xff] }
 0x552   : > { %v4005_v17 = vmul.f32 0.5, %v1957_v2  ;;  %v11016_v19 = vpack.c.f32.eXmY %v6115_v5, %v6147_v7, 312  ;;  %v6084_v20 = vtrunc.f32 %v4036_v8  ;;  %v6116_v21 = vtrunc.f32 %v4068_v9  ;;  %v1993_v7 = vld [vmem:[%s12293_s30 + $0x39f8] sm:$0xff] }
 0x553   : > { %v6148_v22 = vtrunc.f32 %v4100_v10  ;;  %11874 = vst [vmem:[%s12322_s25 + $0xec0] sm:$0xff] %v11010_v14  ;;  %v4037_v24 = vmul.f32 0.5, %v1989_v11  ;;  %v4069_v25 = vmul.f32 0.5, %v2021_v12  ;;  %v4101_v26 = vmul.f32 0.5, %v2053_v13  ;;  %v2025_v8 = vld [vmem:[%s12293_s30 + $0x3af8] sm:$0xff]  ;;  %v2058_v14 = vld [vmem:[%s12293_s30 + $0x3c00] sm:$0xff] }
 0x554   : > { %v6053_v27 = vtrunc.f32 %v4005_v17  ;;  %v11020_v30 = vpack.c.b8 %v11016_v19, %v11012_v15  ;;  %v11022_v31 = vpack.c.f32.eXmY %v6052_v16, %v6084_v20, 312  ;;  %v4006_v33 = vmul.f32 0.5, %v1958_v18  ;;  %v2057_v9 = vld [vmem:[%s12293_s30 + $0x3bf8] sm:$0xff]  ;;  %v2090_v19 = vld [vmem:[%s12293_s30 + $0x3d00] sm:$0xff] }
 0x555   : > { %v11026_v32 = vpack.c.f32.eXmY %v6116_v21, %v6148_v22, 312  ;;  %v6085_v35 = vtrunc.f32 %v4037_v24  ;;  %v6117_v36 = vtrunc.f32 %v4069_v25  ;;  %v6149_v37 = vtrunc.f32 %v4101_v26  ;;  %v2122_v24 = vld [vmem:[%s12293_s30 + $0x3e00] sm:$0xff] }
 0x556   : > { %v4038_v38 = vmul.f32 0.5, %v1990_v23  ;;  %11875 = vst [vmem:[%s12322_s25 + $0xec8] sm:$0xff] %v11020_v30  ;;  %v4070_v42 = vmul.f32 0.5, %v2022_v28  ;;  %v4102_v43 = vmul.f32 0.5, %v2054_v29  ;;  %v6054_v44 = vtrunc.f32 %v4006_v33  ;;  %v2154_v25 = vld [vmem:[%s12293_s30 + $0x3f00] sm:$0xff]  ;;  %v2059_v30 = vld [vmem:[%s12293_s30 + $0x3c08] sm:$0xff] }
 0x557   : > { %v11030_v41 = vpack.c.b8 %v11026_v32, %v11022_v31  ;;  %v11032_v46 = vpack.c.f32.eXmY %v6053_v27, %v6085_v35, 312  ;;  %v11036_v47 = vpack.c.f32.eXmY %v6117_v36, %v6149_v37, 312  ;;  %v4007_v49 = vmul.f32 0.5, %v1959_v34  ;;  %v2091_v35 = vld [vmem:[%s12293_s30 + $0x3d08] sm:$0xff] }
 0x558   : > { %v6086_v48 = vtrunc.f32 %v4038_v38  ;;  %v6118_v51 = vtrunc.f32 %v4070_v42  ;;  %v6150_v52 = vtrunc.f32 %v4102_v43  ;;  %v4039_v53 = vmul.f32 0.5, %v1991_v39  ;;  %v2123_v36 = vld [vmem:[%s12293_s30 + $0x3e08] sm:$0xff] }
 0x559   : > { %11876 = vst [vmem:[%s12322_s25 + $0xed0] sm:$0xff] %v11030_v41  ;;  %v4071_v54 = vmul.f32 0.5, %v2023_v40  ;;  %v11040_v58 = vpack.c.b8 %v11036_v47, %v11032_v46  ;;  %v4103_v60 = vmul.f32 0.5, %v2055_v45  ;;  %v6055_v61 = vtrunc.f32 %v4007_v49  ;;  %v2155_v41 = vld [vmem:[%s12293_s30 + $0x3f08] sm:$0xff]  ;;  %v2060_v46 = vld [vmem:[%s12293_s30 + $0x3c10] sm:$0xff] }
 0x55a   : > { %v11042_v59 = vpack.c.f32.eXmY %v6054_v44, %v6086_v48, 312  ;;  %v11046_v63 = vpack.c.f32.eXmY %v6118_v51, %v6150_v52, 312  ;;  %v6087_v0 = vtrunc.f32 %v4039_v53  ;;  %v4008_v2 = vmul.f32 0.5, %v1960_v50  ;;  %v2092_v51 = vld [vmem:[%s12293_s30 + $0x3d10] sm:$0xff] }
 0x55b   : > { %v6119_v1 = vtrunc.f32 %v4071_v54  ;;  %11877 = vst [vmem:[%s12322_s25 + $0xed8] sm:$0xff] %v11040_v58  ;;  %v6151_v3 = vtrunc.f32 %v4103_v60  ;;  %v4040_v4 = vmul.f32 0.5, %v1992_v55  ;;  %v4072_v5 = vmul.f32 0.5, %v2024_v56  ;;  %v2124_v52 = vld [vmem:[%s12293_s30 + $0x3e10] sm:$0xff]  ;;  %v2061_v58 = vld [vmem:[%s12293_s30 + $0x3c18] sm:$0xff] }
 0x55c   : > { %v4104_v6 = vmul.f32 0.5, %v2056_v57  ;;  %v11050_v10 = vpack.c.b8 %v11046_v63, %v11042_v59  ;;  %v11052_v11 = vpack.c.f32.eXmY %v6055_v61, %v6087_v0, 312  ;;  %v6056_v12 = vtrunc.f32 %v4008_v2  ;;  %v2156_v53 = vld [vmem:[%s12293_s30 + $0x3f10] sm:$0xff] }
 0x55d   : > { %v4009_v13 = vmul.f32 0.5, %v1961_v62  ;;  %v11056_v15 = vpack.c.f32.eXmY %v6119_v1, %v6151_v3, 312  ;;  %v6088_v16 = vtrunc.f32 %v4040_v4  ;;  %v6120_v17 = vtrunc.f32 %v4072_v5  ;;  %v2093_v3 = vld [vmem:[%s12293_s30 + $0x3d18] sm:$0xff] }
 0x55e   : > { %v6152_v18 = vtrunc.f32 %v4104_v6  ;;  %11878 = vst [vmem:[%s12322_s25 + $0xee0] sm:$0xff] %v11050_v10  ;;  %v4041_v20 = vmul.f32 0.5, %v1993_v7  ;;  %v4073_v21 = vmul.f32 0.5, %v2025_v8  ;;  %v4105_v22 = vmul.f32 0.5, %v2057_v9  ;;  %v2125_v4 = vld [vmem:[%s12293_s30 + $0x3e18] sm:$0xff]  ;;  %v2062_v10 = vld [vmem:[%s12293_s30 + $0x3c20] sm:$0xff] }
 0x55f   : > { %v6057_v23 = vtrunc.f32 %v4009_v13  ;;  %v11060_v26 = vpack.c.b8 %v11056_v15, %v11052_v11  ;;  %v11062_v27 = vpack.c.f32.eXmY %v6056_v12, %v6088_v16, 312  ;;  %v4106_v29 = vmul.f32 0.5, %v2058_v14  ;;  %v2157_v5 = vld [vmem:[%s12293_s30 + $0x3f18] sm:$0xff]  ;;  %v2094_v15 = vld [vmem:[%s12293_s30 + $0x3d20] sm:$0xff] }
 0x560   : > { %v11066_v28 = vpack.c.f32.eXmY %v6120_v17, %v6152_v18, 312  ;;  %v6089_v31 = vtrunc.f32 %v4041_v20  ;;  %v6121_v32 = vtrunc.f32 %v4073_v21  ;;  %v6153_v33 = vtrunc.f32 %v4105_v22  ;;  %v2126_v20 = vld [vmem:[%s12293_s30 + $0x3e20] sm:$0xff] }
 0x561   : > { %v4138_v34 = vmul.f32 0.5, %v2090_v19  ;;  %11879 = vst [vmem:[%s12322_s25 + $0xee8] sm:$0xff] %v11060_v26  ;;  %v4170_v38 = vmul.f32 0.5, %v2122_v24  ;;  %v4202_v39 = vmul.f32 0.5, %v2154_v25  ;;  %v6154_v40 = vtrunc.f32 %v4106_v29  ;;  %v2158_v21 = vld [vmem:[%s12293_s30 + $0x3f20] sm:$0xff]  ;;  %v2063_v26 = vld [vmem:[%s12293_s30 + $0x3c28] sm:$0xff] }
 0x562   : > { %v11070_v37 = vpack.c.b8 %v11066_v28, %v11062_v27  ;;  %v11072_v42 = vpack.c.f32.eXmY %v6057_v23, %v6089_v31, 312  ;;  %v11076_v43 = vpack.c.f32.eXmY %v6121_v32, %v6153_v33, 312  ;;  %v4107_v45 = vmul.f32 0.5, %v2059_v30  ;;  %v2095_v31 = vld [vmem:[%s12293_s30 + $0x3d28] sm:$0xff] }
 0x563   : > { %v6186_v44 = vtrunc.f32 %v4138_v34  ;;  %v6218_v47 = vtrunc.f32 %v4170_v38  ;;  %v6250_v48 = vtrunc.f32 %v4202_v39  ;;  %v4139_v49 = vmul.f32 0.5, %v2091_v35  ;;  %v2127_v32 = vld [vmem:[%s12293_s30 + $0x3e28] sm:$0xff] }
 0x564   : > { %11880 = vst [vmem:[%s12322_s25 + $0xef0] sm:$0xff] %v11070_v37  ;;  %v4171_v50 = vmul.f32 0.5, %v2123_v36  ;;  %v11080_v54 = vpack.c.b8 %v11076_v43, %v11072_v42  ;;  %v4203_v56 = vmul.f32 0.5, %v2155_v41  ;;  %v6155_v57 = vtrunc.f32 %v4107_v45  ;;  %v2159_v37 = vld [vmem:[%s12293_s30 + $0x3f28] sm:$0xff]  ;;  %v2064_v42 = vld [vmem:[%s12293_s30 + $0x3c30] sm:$0xff] }
 0x565   : > { %v11082_v55 = vpack.c.f32.eXmY %v6154_v40, %v6186_v44, 312  ;;  %v11086_v59 = vpack.c.f32.eXmY %v6218_v47, %v6250_v48, 312  ;;  %v6187_v60 = vtrunc.f32 %v4139_v49  ;;  %v4108_v62 = vmul.f32 0.5, %v2060_v46  ;;  %v2096_v47 = vld [vmem:[%s12293_s30 + $0x3d30] sm:$0xff] }
 0x566   : > { %v6219_v61 = vtrunc.f32 %v4171_v50  ;;  %11881 = vst [vmem:[%s12322_s25 + $0xef8] sm:$0xff] %v11080_v54  ;;  %v6251_v63 = vtrunc.f32 %v4203_v56  ;;  %v4140_v0 = vmul.f32 0.5, %v2092_v51  ;;  %v4172_v1 = vmul.f32 0.5, %v2124_v52  ;;  %v2128_v48 = vld [vmem:[%s12293_s30 + $0x3e30] sm:$0xff]  ;;  %v2065_v54 = vld [vmem:[%s12293_s30 + $0x3c38] sm:$0xff] }
 0x567   : > { %v4204_v2 = vmul.f32 0.5, %v2156_v53  ;;  %v11090_v6 = vpack.c.b8 %v11086_v59, %v11082_v55  ;;  %v11092_v7 = vpack.c.f32.eXmY %v6155_v57, %v6187_v60, 312  ;;  %v6156_v8 = vtrunc.f32 %v4108_v62  ;;  %v2160_v49 = vld [vmem:[%s12293_s30 + $0x3f30] sm:$0xff] }
 0x568   : > { %v4109_v9 = vmul.f32 0.5, %v2061_v58  ;;  %v11096_v11 = vpack.c.f32.eXmY %v6219_v61, %v6251_v63, 312  ;;  %v6188_v12 = vtrunc.f32 %v4140_v0  ;;  %v6220_v13 = vtrunc.f32 %v4172_v1  ;;  %v2097_v63 = vld [vmem:[%s12293_s30 + $0x3d38] sm:$0xff] }
 0x569   : > { %v6252_v14 = vtrunc.f32 %v4204_v2  ;;  %11882 = vst [vmem:[%s12322_s25 + $0xf00] sm:$0xff] %v11090_v6  ;;  %v4141_v16 = vmul.f32 0.5, %v2093_v3  ;;  %v4173_v17 = vmul.f32 0.5, %v2125_v4  ;;  %v4205_v18 = vmul.f32 0.5, %v2157_v5  ;;  %v2129_v0 = vld [vmem:[%s12293_s30 + $0x3e38] sm:$0xff]  ;;  %v2066_v6 = vld [vmem:[%s12293_s30 + $0x3c40] sm:$0xff] }
 0x56a   : > { %v6157_v19 = vtrunc.f32 %v4109_v9  ;;  %v11100_v22 = vpack.c.b8 %v11096_v11, %v11092_v7  ;;  %v11102_v23 = vpack.c.f32.eXmY %v6156_v8, %v6188_v12, 312  ;;  %v4110_v25 = vmul.f32 0.5, %v2062_v10  ;;  %v2161_v1 = vld [vmem:[%s12293_s30 + $0x3f38] sm:$0xff]  ;;  %v2098_v11 = vld [vmem:[%s12293_s30 + $0x3d40] sm:$0xff] }
 0x56b   : > { %v11106_v24 = vpack.c.f32.eXmY %v6220_v13, %v6252_v14, 312  ;;  %v6189_v27 = vtrunc.f32 %v4141_v16  ;;  %v6221_v28 = vtrunc.f32 %v4173_v17  ;;  %v6253_v29 = vtrunc.f32 %v4205_v18  ;;  %v2130_v16 = vld [vmem:[%s12293_s30 + $0x3e40] sm:$0xff] }
 0x56c   : > { %v4142_v30 = vmul.f32 0.5, %v2094_v15  ;;  %11883 = vst [vmem:[%s12322_s25 + $0xf08] sm:$0xff] %v11100_v22  ;;  %v4174_v34 = vmul.f32 0.5, %v2126_v20  ;;  %v4206_v35 = vmul.f32 0.5, %v2158_v21  ;;  %v6158_v36 = vtrunc.f32 %v4110_v25  ;;  %v2162_v17 = vld [vmem:[%s12293_s30 + $0x3f40] sm:$0xff]  ;;  %v2067_v22 = vld [vmem:[%s12293_s30 + $0x3c48] sm:$0xff] }
 0x56d   : > { %v11110_v33 = vpack.c.b8 %v11106_v24, %v11102_v23  ;;  %v11112_v38 = vpack.c.f32.eXmY %v6157_v19, %v6189_v27, 312  ;;  %v11116_v39 = vpack.c.f32.eXmY %v6221_v28, %v6253_v29, 312  ;;  %v4111_v41 = vmul.f32 0.5, %v2063_v26  ;;  %v2099_v27 = vld [vmem:[%s12293_s30 + $0x3d48] sm:$0xff] }
 0x56e   : > { %v6190_v40 = vtrunc.f32 %v4142_v30  ;;  %v6222_v43 = vtrunc.f32 %v4174_v34  ;;  %v6254_v44 = vtrunc.f32 %v4206_v35  ;;  %v4143_v45 = vmul.f32 0.5, %v2095_v31  ;;  %v2131_v28 = vld [vmem:[%s12293_s30 + $0x3e48] sm:$0xff] }
 0x56f   : > { %11884 = vst [vmem:[%s12322_s25 + $0xf10] sm:$0xff] %v11110_v33  ;;  %v4175_v46 = vmul.f32 0.5, %v2127_v32  ;;  %v11120_v50 = vpack.c.b8 %v11116_v39, %v11112_v38  ;;  %v4207_v52 = vmul.f32 0.5, %v2159_v37  ;;  %v6159_v53 = vtrunc.f32 %v4111_v41  ;;  %v2163_v33 = vld [vmem:[%s12293_s30 + $0x3f48] sm:$0xff]  ;;  %v2068_v38 = vld [vmem:[%s12293_s30 + $0x3c50] sm:$0xff] }
 0x570   : > { %v11122_v51 = vpack.c.f32.eXmY %v6158_v36, %v6190_v40, 312  ;;  %v11126_v55 = vpack.c.f32.eXmY %v6222_v43, %v6254_v44, 312  ;;  %v6191_v56 = vtrunc.f32 %v4143_v45  ;;  %v4112_v58 = vmul.f32 0.5, %v2064_v42  ;;  %v2100_v43 = vld [vmem:[%s12293_s30 + $0x3d50] sm:$0xff] }
 0x571   : > { %v6223_v57 = vtrunc.f32 %v4175_v46  ;;  %11885 = vst [vmem:[%s12322_s25 + $0xf18] sm:$0xff] %v11120_v50  ;;  %v6255_v59 = vtrunc.f32 %v4207_v52  ;;  %v4144_v60 = vmul.f32 0.5, %v2096_v47  ;;  %v4176_v61 = vmul.f32 0.5, %v2128_v48  ;;  %v2132_v44 = vld [vmem:[%s12293_s30 + $0x3e50] sm:$0xff]  ;;  %v2069_v50 = vld [vmem:[%s12293_s30 + $0x3c58] sm:$0xff] }
 0x572   : > { %v4208_v62 = vmul.f32 0.5, %v2160_v49  ;;  %v11130_v2 = vpack.c.b8 %v11126_v55, %v11122_v51  ;;  %v11132_v3 = vpack.c.f32.eXmY %v6159_v53, %v6191_v56, 312  ;;  %v6160_v4 = vtrunc.f32 %v4112_v58  ;;  %v2164_v45 = vld [vmem:[%s12293_s30 + $0x3f50] sm:$0xff] }
 0x573   : > { %v4113_v5 = vmul.f32 0.5, %v2065_v54  ;;  %v11136_v7 = vpack.c.f32.eXmY %v6223_v57, %v6255_v59, 312  ;;  %v6192_v8 = vtrunc.f32 %v4144_v60  ;;  %v6224_v9 = vtrunc.f32 %v4176_v61  ;;  %v2101_v59 = vld [vmem:[%s12293_s30 + $0x3d58] sm:$0xff] }
 0x574   : > { %v6256_v10 = vtrunc.f32 %v4208_v62  ;;  %11886 = vst [vmem:[%s12322_s25 + $0xf20] sm:$0xff] %v11130_v2  ;;  %v4145_v12 = vmul.f32 0.5, %v2097_v63  ;;  %v4177_v13 = vmul.f32 0.5, %v2129_v0  ;;  %v4209_v14 = vmul.f32 0.5, %v2161_v1  ;;  %v2133_v60 = vld [vmem:[%s12293_s30 + $0x3e58] sm:$0xff]  ;;  %v2070_v2 = vld [vmem:[%s12293_s30 + $0x3c60] sm:$0xff] }
 0x575   : > { %v6161_v15 = vtrunc.f32 %v4113_v5  ;;  %v11140_v18 = vpack.c.b8 %v11136_v7, %v11132_v3  ;;  %v11142_v19 = vpack.c.f32.eXmY %v6160_v4, %v6192_v8, 312  ;;  %v4114_v21 = vmul.f32 0.5, %v2066_v6  ;;  %v2165_v61 = vld [vmem:[%s12293_s30 + $0x3f58] sm:$0xff]  ;;  %v2102_v7 = vld [vmem:[%s12293_s30 + $0x3d60] sm:$0xff] }
 0x576   : > { %v11146_v20 = vpack.c.f32.eXmY %v6224_v9, %v6256_v10, 312  ;;  %v6193_v23 = vtrunc.f32 %v4145_v12  ;;  %v6225_v24 = vtrunc.f32 %v4177_v13  ;;  %v6257_v25 = vtrunc.f32 %v4209_v14  ;;  %v2134_v12 = vld [vmem:[%s12293_s30 + $0x3e60] sm:$0xff] }
 0x577   : > { %v4146_v26 = vmul.f32 0.5, %v2098_v11  ;;  %11887 = vst [vmem:[%s12322_s25 + $0xf28] sm:$0xff] %v11140_v18  ;;  %v4178_v30 = vmul.f32 0.5, %v2130_v16  ;;  %v4210_v31 = vmul.f32 0.5, %v2162_v17  ;;  %v6162_v32 = vtrunc.f32 %v4114_v21  ;;  %v2166_v13 = vld [vmem:[%s12293_s30 + $0x3f60] sm:$0xff]  ;;  %v2071_v18 = vld [vmem:[%s12293_s30 + $0x3c68] sm:$0xff] }
 0x578   : > { %v11150_v29 = vpack.c.b8 %v11146_v20, %v11142_v19  ;;  %v11152_v34 = vpack.c.f32.eXmY %v6161_v15, %v6193_v23, 312  ;;  %v11156_v35 = vpack.c.f32.eXmY %v6225_v24, %v6257_v25, 312  ;;  %v4115_v37 = vmul.f32 0.5, %v2067_v22  ;;  %v2103_v23 = vld [vmem:[%s12293_s30 + $0x3d68] sm:$0xff] }
 0x579   : > { %v6194_v36 = vtrunc.f32 %v4146_v26  ;;  %v6226_v39 = vtrunc.f32 %v4178_v30  ;;  %v6258_v40 = vtrunc.f32 %v4210_v31  ;;  %v4147_v41 = vmul.f32 0.5, %v2099_v27  ;;  %v2135_v24 = vld [vmem:[%s12293_s30 + $0x3e68] sm:$0xff] }
 0x57a   : > { %11888 = vst [vmem:[%s12322_s25 + $0xf30] sm:$0xff] %v11150_v29  ;;  %v4179_v42 = vmul.f32 0.5, %v2131_v28  ;;  %v11160_v46 = vpack.c.b8 %v11156_v35, %v11152_v34  ;;  %v4211_v48 = vmul.f32 0.5, %v2163_v33  ;;  %v6163_v49 = vtrunc.f32 %v4115_v37  ;;  %v2167_v29 = vld [vmem:[%s12293_s30 + $0x3f68] sm:$0xff]  ;;  %v2072_v34 = vld [vmem:[%s12293_s30 + $0x3c70] sm:$0xff] }
 0x57b   : > { %v11162_v47 = vpack.c.f32.eXmY %v6162_v32, %v6194_v36, 312  ;;  %v11166_v51 = vpack.c.f32.eXmY %v6226_v39, %v6258_v40, 312  ;;  %v6195_v52 = vtrunc.f32 %v4147_v41  ;;  %v4116_v54 = vmul.f32 0.5, %v2068_v38  ;;  %v2104_v39 = vld [vmem:[%s12293_s30 + $0x3d70] sm:$0xff] }
 0x57c   : > { %v6227_v53 = vtrunc.f32 %v4179_v42  ;;  %11889 = vst [vmem:[%s12322_s25 + $0xf38] sm:$0xff] %v11160_v46  ;;  %v6259_v55 = vtrunc.f32 %v4211_v48  ;;  %v4148_v56 = vmul.f32 0.5, %v2100_v43  ;;  %v4180_v57 = vmul.f32 0.5, %v2132_v44  ;;  %v2136_v40 = vld [vmem:[%s12293_s30 + $0x3e70] sm:$0xff]  ;;  %v2073_v46 = vld [vmem:[%s12293_s30 + $0x3c78] sm:$0xff] }
 0x57d   : > { %v4212_v58 = vmul.f32 0.5, %v2164_v45  ;;  %v11170_v62 = vpack.c.b8 %v11166_v51, %v11162_v47  ;;  %v11172_v63 = vpack.c.f32.eXmY %v6163_v49, %v6195_v52, 312  ;;  %v6164_v0 = vtrunc.f32 %v4116_v54  ;;  %v2168_v41 = vld [vmem:[%s12293_s30 + $0x3f70] sm:$0xff] }
 0x57e   : > { %v4117_v1 = vmul.f32 0.5, %v2069_v50  ;;  %v11176_v3 = vpack.c.f32.eXmY %v6227_v53, %v6259_v55, 312  ;;  %v6196_v4 = vtrunc.f32 %v4148_v56  ;;  %v6228_v5 = vtrunc.f32 %v4180_v57  ;;  %v2105_v55 = vld [vmem:[%s12293_s30 + $0x3d78] sm:$0xff] }
 0x57f   : > { %v6260_v6 = vtrunc.f32 %v4212_v58  ;;  %11890 = vst [vmem:[%s12322_s25 + $0xf40] sm:$0xff] %v11170_v62  ;;  %v4149_v8 = vmul.f32 0.5, %v2101_v59  ;;  %v4181_v9 = vmul.f32 0.5, %v2133_v60  ;;  %v4213_v10 = vmul.f32 0.5, %v2165_v61  ;;  %v2137_v56 = vld [vmem:[%s12293_s30 + $0x3e78] sm:$0xff]  ;;  %v2074_v62 = vld [vmem:[%s12293_s30 + $0x3c80] sm:$0xff] }
 0x580   : > { %v6165_v11 = vtrunc.f32 %v4117_v1  ;;  %v11180_v14 = vpack.c.b8 %v11176_v3, %v11172_v63  ;;  %v11182_v15 = vpack.c.f32.eXmY %v6164_v0, %v6196_v4, 312  ;;  %v4118_v17 = vmul.f32 0.5, %v2070_v2  ;;  %v2169_v57 = vld [vmem:[%s12293_s30 + $0x3f78] sm:$0xff]  ;;  %v2106_v3 = vld [vmem:[%s12293_s30 + $0x3d80] sm:$0xff] }
 0x581   : > { %v11186_v16 = vpack.c.f32.eXmY %v6228_v5, %v6260_v6, 312  ;;  %v6197_v19 = vtrunc.f32 %v4149_v8  ;;  %v6229_v20 = vtrunc.f32 %v4181_v9  ;;  %v6261_v21 = vtrunc.f32 %v4213_v10  ;;  %v2138_v8 = vld [vmem:[%s12293_s30 + $0x3e80] sm:$0xff] }
 0x582   : > { %v4150_v22 = vmul.f32 0.5, %v2102_v7  ;;  %11891 = vst [vmem:[%s12322_s25 + $0xf48] sm:$0xff] %v11180_v14  ;;  %v4182_v26 = vmul.f32 0.5, %v2134_v12  ;;  %v4214_v27 = vmul.f32 0.5, %v2166_v13  ;;  %v6166_v28 = vtrunc.f32 %v4118_v17  ;;  %v2170_v9 = vld [vmem:[%s12293_s30 + $0x3f80] sm:$0xff]  ;;  %v2075_v14 = vld [vmem:[%s12293_s30 + $0x3c88] sm:$0xff] }
 0x583   : > { %v11190_v25 = vpack.c.b8 %v11186_v16, %v11182_v15  ;;  %v11192_v30 = vpack.c.f32.eXmY %v6165_v11, %v6197_v19, 312  ;;  %v11196_v31 = vpack.c.f32.eXmY %v6229_v20, %v6261_v21, 312  ;;  %v4119_v33 = vmul.f32 0.5, %v2071_v18  ;;  %v2107_v19 = vld [vmem:[%s12293_s30 + $0x3d88] sm:$0xff] }
 0x584   : > { %v6198_v32 = vtrunc.f32 %v4150_v22  ;;  %v6230_v35 = vtrunc.f32 %v4182_v26  ;;  %v6262_v36 = vtrunc.f32 %v4214_v27  ;;  %v4151_v37 = vmul.f32 0.5, %v2103_v23  ;;  %v2139_v20 = vld [vmem:[%s12293_s30 + $0x3e88] sm:$0xff] }
 0x585   : > { %11892 = vst [vmem:[%s12322_s25 + $0xf50] sm:$0xff] %v11190_v25  ;;  %v4183_v38 = vmul.f32 0.5, %v2135_v24  ;;  %v11200_v42 = vpack.c.b8 %v11196_v31, %v11192_v30  ;;  %v4215_v44 = vmul.f32 0.5, %v2167_v29  ;;  %v6167_v45 = vtrunc.f32 %v4119_v33  ;;  %v2171_v25 = vld [vmem:[%s12293_s30 + $0x3f88] sm:$0xff]  ;;  %v2076_v30 = vld [vmem:[%s12293_s30 + $0x3c90] sm:$0xff] }
 0x586   : > { %v11202_v43 = vpack.c.f32.eXmY %v6166_v28, %v6198_v32, 312  ;;  %v11206_v47 = vpack.c.f32.eXmY %v6230_v35, %v6262_v36, 312  ;;  %v6199_v48 = vtrunc.f32 %v4151_v37  ;;  %v4120_v50 = vmul.f32 0.5, %v2072_v34  ;;  %v2108_v35 = vld [vmem:[%s12293_s30 + $0x3d90] sm:$0xff] }
 0x587   : > { %v6231_v49 = vtrunc.f32 %v4183_v38  ;;  %11893 = vst [vmem:[%s12322_s25 + $0xf58] sm:$0xff] %v11200_v42  ;;  %v6263_v51 = vtrunc.f32 %v4215_v44  ;;  %v4152_v52 = vmul.f32 0.5, %v2104_v39  ;;  %v4184_v53 = vmul.f32 0.5, %v2136_v40  ;;  %v2140_v36 = vld [vmem:[%s12293_s30 + $0x3e90] sm:$0xff]  ;;  %v2077_v42 = vld [vmem:[%s12293_s30 + $0x3c98] sm:$0xff] }
 0x588   : > { %v4216_v54 = vmul.f32 0.5, %v2168_v41  ;;  %v11210_v58 = vpack.c.b8 %v11206_v47, %v11202_v43  ;;  %v11212_v59 = vpack.c.f32.eXmY %v6167_v45, %v6199_v48, 312  ;;  %v6168_v60 = vtrunc.f32 %v4120_v50  ;;  %v2172_v37 = vld [vmem:[%s12293_s30 + $0x3f90] sm:$0xff] }
 0x589   : > { %v4121_v61 = vmul.f32 0.5, %v2073_v46  ;;  %v11216_v63 = vpack.c.f32.eXmY %v6231_v49, %v6263_v51, 312  ;;  %v6200_v0 = vtrunc.f32 %v4152_v52  ;;  %v6232_v1 = vtrunc.f32 %v4184_v53  ;;  %v2109_v51 = vld [vmem:[%s12293_s30 + $0x3d98] sm:$0xff] }
 0x58a   : > { %v6264_v2 = vtrunc.f32 %v4216_v54  ;;  %11894 = vst [vmem:[%s12322_s25 + $0xf60] sm:$0xff] %v11210_v58  ;;  %v4153_v4 = vmul.f32 0.5, %v2105_v55  ;;  %v4185_v5 = vmul.f32 0.5, %v2137_v56  ;;  %v4217_v6 = vmul.f32 0.5, %v2169_v57  ;;  %v2141_v52 = vld [vmem:[%s12293_s30 + $0x3e98] sm:$0xff]  ;;  %v2078_v58 = vld [vmem:[%s12293_s30 + $0x3ca0] sm:$0xff] }
 0x58b   : > { %v6169_v7 = vtrunc.f32 %v4121_v61  ;;  %v11220_v10 = vpack.c.b8 %v11216_v63, %v11212_v59  ;;  %v11222_v11 = vpack.c.f32.eXmY %v6168_v60, %v6200_v0, 312  ;;  %v4122_v13 = vmul.f32 0.5, %v2074_v62  ;;  %v2173_v53 = vld [vmem:[%s12293_s30 + $0x3f98] sm:$0xff]  ;;  %v2110_v63 = vld [vmem:[%s12293_s30 + $0x3da0] sm:$0xff] }
 0x58c   : > { %v11226_v12 = vpack.c.f32.eXmY %v6232_v1, %v6264_v2, 312  ;;  %v6201_v15 = vtrunc.f32 %v4153_v4  ;;  %v6233_v16 = vtrunc.f32 %v4185_v5  ;;  %v6265_v17 = vtrunc.f32 %v4217_v6  ;;  %v2142_v4 = vld [vmem:[%s12293_s30 + $0x3ea0] sm:$0xff] }
 0x58d   : > { %v4154_v18 = vmul.f32 0.5, %v2106_v3  ;;  %11895 = vst [vmem:[%s12322_s25 + $0xf68] sm:$0xff] %v11220_v10  ;;  %v4186_v22 = vmul.f32 0.5, %v2138_v8  ;;  %v4218_v23 = vmul.f32 0.5, %v2170_v9  ;;  %v6170_v24 = vtrunc.f32 %v4122_v13  ;;  %v2174_v5 = vld [vmem:[%s12293_s30 + $0x3fa0] sm:$0xff]  ;;  %v2079_v10 = vld [vmem:[%s12293_s30 + $0x3ca8] sm:$0xff] }
 0x58e   : > { %v11230_v21 = vpack.c.b8 %v11226_v12, %v11222_v11  ;;  %v11232_v26 = vpack.c.f32.eXmY %v6169_v7, %v6201_v15, 312  ;;  %v11236_v27 = vpack.c.f32.eXmY %v6233_v16, %v6265_v17, 312  ;;  %v4123_v29 = vmul.f32 0.5, %v2075_v14  ;;  %v2111_v15 = vld [vmem:[%s12293_s30 + $0x3da8] sm:$0xff] }
 0x58f   : > { %v6202_v28 = vtrunc.f32 %v4154_v18  ;;  %v6234_v31 = vtrunc.f32 %v4186_v22  ;;  %v6266_v32 = vtrunc.f32 %v4218_v23  ;;  %v4155_v33 = vmul.f32 0.5, %v2107_v19  ;;  %v2143_v16 = vld [vmem:[%s12293_s30 + $0x3ea8] sm:$0xff] }
 0x590   : > { %11896 = vst [vmem:[%s12322_s25 + $0xf70] sm:$0xff] %v11230_v21  ;;  %v4187_v34 = vmul.f32 0.5, %v2139_v20  ;;  %v11240_v38 = vpack.c.b8 %v11236_v27, %v11232_v26  ;;  %v4219_v40 = vmul.f32 0.5, %v2171_v25  ;;  %v6171_v41 = vtrunc.f32 %v4123_v29  ;;  %v2175_v21 = vld [vmem:[%s12293_s30 + $0x3fa8] sm:$0xff]  ;;  %v2080_v26 = vld [vmem:[%s12293_s30 + $0x3cb0] sm:$0xff] }
 0x591   : > { %v11242_v39 = vpack.c.f32.eXmY %v6170_v24, %v6202_v28, 312  ;;  %v11246_v43 = vpack.c.f32.eXmY %v6234_v31, %v6266_v32, 312  ;;  %v6203_v44 = vtrunc.f32 %v4155_v33  ;;  %v4124_v46 = vmul.f32 0.5, %v2076_v30  ;;  %v2112_v31 = vld [vmem:[%s12293_s30 + $0x3db0] sm:$0xff] }
 0x592   : > { %v6235_v45 = vtrunc.f32 %v4187_v34  ;;  %11897 = vst [vmem:[%s12322_s25 + $0xf78] sm:$0xff] %v11240_v38  ;;  %v6267_v47 = vtrunc.f32 %v4219_v40  ;;  %v4156_v48 = vmul.f32 0.5, %v2108_v35  ;;  %v4188_v49 = vmul.f32 0.5, %v2140_v36  ;;  %v2144_v32 = vld [vmem:[%s12293_s30 + $0x3eb0] sm:$0xff]  ;;  %v2081_v38 = vld [vmem:[%s12293_s30 + $0x3cb8] sm:$0xff] }
 0x593   : > { %v4220_v50 = vmul.f32 0.5, %v2172_v37  ;;  %v11250_v54 = vpack.c.b8 %v11246_v43, %v11242_v39  ;;  %v11252_v55 = vpack.c.f32.eXmY %v6171_v41, %v6203_v44, 312  ;;  %v6172_v56 = vtrunc.f32 %v4124_v46  ;;  %v2176_v33 = vld [vmem:[%s12293_s30 + $0x3fb0] sm:$0xff] }
 0x594   : > { %v4125_v57 = vmul.f32 0.5, %v2077_v42  ;;  %v11256_v59 = vpack.c.f32.eXmY %v6235_v45, %v6267_v47, 312  ;;  %v6204_v60 = vtrunc.f32 %v4156_v48  ;;  %v6236_v61 = vtrunc.f32 %v4188_v49  ;;  %v2113_v47 = vld [vmem:[%s12293_s30 + $0x3db8] sm:$0xff] }
 0x595   : > { %v6268_v62 = vtrunc.f32 %v4220_v50  ;;  %11898 = vst [vmem:[%s12322_s25 + $0xf80] sm:$0xff] %v11250_v54  ;;  %v4157_v0 = vmul.f32 0.5, %v2109_v51  ;;  %v4189_v1 = vmul.f32 0.5, %v2141_v52  ;;  %v4221_v2 = vmul.f32 0.5, %v2173_v53  ;;  %v2145_v48 = vld [vmem:[%s12293_s30 + $0x3eb8] sm:$0xff]  ;;  %v2082_v54 = vld [vmem:[%s12293_s30 + $0x3cc0] sm:$0xff] }
 0x596   : > { %v6173_v3 = vtrunc.f32 %v4125_v57  ;;  %v11260_v6 = vpack.c.b8 %v11256_v59, %v11252_v55  ;;  %v11262_v7 = vpack.c.f32.eXmY %v6172_v56, %v6204_v60, 312  ;;  %v4126_v9 = vmul.f32 0.5, %v2078_v58  ;;  %v2177_v49 = vld [vmem:[%s12293_s30 + $0x3fb8] sm:$0xff]  ;;  %v2114_v59 = vld [vmem:[%s12293_s30 + $0x3dc0] sm:$0xff] }
 0x597   : > { %v11266_v8 = vpack.c.f32.eXmY %v6236_v61, %v6268_v62, 312  ;;  %v6205_v11 = vtrunc.f32 %v4157_v0  ;;  %v6237_v12 = vtrunc.f32 %v4189_v1  ;;  %v6269_v13 = vtrunc.f32 %v4221_v2  ;;  %v2146_v0 = vld [vmem:[%s12293_s30 + $0x3ec0] sm:$0xff] }
 0x598   : > { %v4158_v14 = vmul.f32 0.5, %v2110_v63  ;;  %11899 = vst [vmem:[%s12322_s25 + $0xf88] sm:$0xff] %v11260_v6  ;;  %v4190_v18 = vmul.f32 0.5, %v2142_v4  ;;  %v4222_v19 = vmul.f32 0.5, %v2174_v5  ;;  %v6174_v20 = vtrunc.f32 %v4126_v9  ;;  %v2178_v1 = vld [vmem:[%s12293_s30 + $0x3fc0] sm:$0xff]  ;;  %v2083_v6 = vld [vmem:[%s12293_s30 + $0x3cc8] sm:$0xff] }
 0x599   : > { %v11270_v17 = vpack.c.b8 %v11266_v8, %v11262_v7  ;;  %v11272_v22 = vpack.c.f32.eXmY %v6173_v3, %v6205_v11, 312  ;;  %v11276_v23 = vpack.c.f32.eXmY %v6237_v12, %v6269_v13, 312  ;;  %v4127_v25 = vmul.f32 0.5, %v2079_v10  ;;  %v2115_v11 = vld [vmem:[%s12293_s30 + $0x3dc8] sm:$0xff] }
 0x59a   : > { %v6206_v24 = vtrunc.f32 %v4158_v14  ;;  %v6238_v27 = vtrunc.f32 %v4190_v18  ;;  %v6270_v28 = vtrunc.f32 %v4222_v19  ;;  %v4159_v29 = vmul.f32 0.5, %v2111_v15  ;;  %v2147_v12 = vld [vmem:[%s12293_s30 + $0x3ec8] sm:$0xff] }
 0x59b   : > { %11900 = vst [vmem:[%s12322_s25 + $0xf90] sm:$0xff] %v11270_v17  ;;  %v4191_v30 = vmul.f32 0.5, %v2143_v16  ;;  %v11280_v34 = vpack.c.b8 %v11276_v23, %v11272_v22  ;;  %v4223_v36 = vmul.f32 0.5, %v2175_v21  ;;  %v6175_v37 = vtrunc.f32 %v4127_v25  ;;  %v2179_v17 = vld [vmem:[%s12293_s30 + $0x3fc8] sm:$0xff]  ;;  %v2084_v22 = vld [vmem:[%s12293_s30 + $0x3cd0] sm:$0xff] }
 0x59c   : > { %v11282_v35 = vpack.c.f32.eXmY %v6174_v20, %v6206_v24, 312  ;;  %v11286_v39 = vpack.c.f32.eXmY %v6238_v27, %v6270_v28, 312  ;;  %v6207_v40 = vtrunc.f32 %v4159_v29  ;;  %v4128_v42 = vmul.f32 0.5, %v2080_v26  ;;  %v2116_v27 = vld [vmem:[%s12293_s30 + $0x3dd0] sm:$0xff] }
 0x59d   : > { %v6239_v41 = vtrunc.f32 %v4191_v30  ;;  %11901 = vst [vmem:[%s12322_s25 + $0xf98] sm:$0xff] %v11280_v34  ;;  %v6271_v43 = vtrunc.f32 %v4223_v36  ;;  %v4160_v44 = vmul.f32 0.5, %v2112_v31  ;;  %v4192_v45 = vmul.f32 0.5, %v2144_v32  ;;  %v2148_v28 = vld [vmem:[%s12293_s30 + $0x3ed0] sm:$0xff]  ;;  %v2085_v34 = vld [vmem:[%s12293_s30 + $0x3cd8] sm:$0xff] }
 0x59e   : > { %v4224_v46 = vmul.f32 0.5, %v2176_v33  ;;  %v11290_v50 = vpack.c.b8 %v11286_v39, %v11282_v35  ;;  %v11292_v51 = vpack.c.f32.eXmY %v6175_v37, %v6207_v40, 312  ;;  %v6176_v52 = vtrunc.f32 %v4128_v42  ;;  %v2180_v29 = vld [vmem:[%s12293_s30 + $0x3fd0] sm:$0xff] }
 0x59f   : > { %v4129_v53 = vmul.f32 0.5, %v2081_v38  ;;  %v11296_v55 = vpack.c.f32.eXmY %v6239_v41, %v6271_v43, 312  ;;  %v6208_v56 = vtrunc.f32 %v4160_v44  ;;  %v6240_v57 = vtrunc.f32 %v4192_v45  ;;  %v2117_v43 = vld [vmem:[%s12293_s30 + $0x3dd8] sm:$0xff] }
 0x5a0   : > { %v6272_v58 = vtrunc.f32 %v4224_v46  ;;  %11902 = vst [vmem:[%s12322_s25 + $0xfa0] sm:$0xff] %v11290_v50  ;;  %v4161_v60 = vmul.f32 0.5, %v2113_v47  ;;  %v4193_v61 = vmul.f32 0.5, %v2145_v48  ;;  %v4225_v62 = vmul.f32 0.5, %v2177_v49  ;;  %v2149_v44 = vld [vmem:[%s12293_s30 + $0x3ed8] sm:$0xff]  ;;  %v2086_v50 = vld [vmem:[%s12293_s30 + $0x3ce0] sm:$0xff] }
 0x5a1   : > { %v6177_v63 = vtrunc.f32 %v4129_v53  ;;  %v11300_v2 = vpack.c.b8 %v11296_v55, %v11292_v51  ;;  %v11302_v3 = vpack.c.f32.eXmY %v6176_v52, %v6208_v56, 312  ;;  %v4130_v5 = vmul.f32 0.5, %v2082_v54  ;;  %v2181_v45 = vld [vmem:[%s12293_s30 + $0x3fd8] sm:$0xff]  ;;  %v2118_v55 = vld [vmem:[%s12293_s30 + $0x3de0] sm:$0xff] }
 0x5a2   : > { %v11306_v4 = vpack.c.f32.eXmY %v6240_v57, %v6272_v58, 312  ;;  %v6209_v7 = vtrunc.f32 %v4161_v60  ;;  %v6241_v8 = vtrunc.f32 %v4193_v61  ;;  %v6273_v9 = vtrunc.f32 %v4225_v62  ;;  %v2150_v60 = vld [vmem:[%s12293_s30 + $0x3ee0] sm:$0xff] }
 0x5a3   : > { %v4162_v10 = vmul.f32 0.5, %v2114_v59  ;;  %11903 = vst [vmem:[%s12322_s25 + $0xfa8] sm:$0xff] %v11300_v2  ;;  %v4194_v14 = vmul.f32 0.5, %v2146_v0  ;;  %v4226_v15 = vmul.f32 0.5, %v2178_v1  ;;  %v6178_v16 = vtrunc.f32 %v4130_v5  ;;  %v2182_v61 = vld [vmem:[%s12293_s30 + $0x3fe0] sm:$0xff]  ;;  %v2087_v2 = vld [vmem:[%s12293_s30 + $0x3ce8] sm:$0xff] }
 0x5a4   : > { %v11310_v13 = vpack.c.b8 %v11306_v4, %v11302_v3  ;;  %v11312_v18 = vpack.c.f32.eXmY %v6177_v63, %v6209_v7, 312  ;;  %v11316_v19 = vpack.c.f32.eXmY %v6241_v8, %v6273_v9, 312  ;;  %v4131_v21 = vmul.f32 0.5, %v2083_v6  ;;  %v2119_v7 = vld [vmem:[%s12293_s30 + $0x3de8] sm:$0xff] }
 0x5a5   : > { %v6210_v20 = vtrunc.f32 %v4162_v10  ;;  %v6242_v23 = vtrunc.f32 %v4194_v14  ;;  %v6274_v24 = vtrunc.f32 %v4226_v15  ;;  %v4163_v25 = vmul.f32 0.5, %v2115_v11  ;;  %v2151_v8 = vld [vmem:[%s12293_s30 + $0x3ee8] sm:$0xff] }
 0x5a6   : > { %11904 = vst [vmem:[%s12322_s25 + $0xfb0] sm:$0xff] %v11310_v13  ;;  %v4195_v26 = vmul.f32 0.5, %v2147_v12  ;;  %v11320_v30 = vpack.c.b8 %v11316_v19, %v11312_v18  ;;  %v4227_v32 = vmul.f32 0.5, %v2179_v17  ;;  %v6179_v33 = vtrunc.f32 %v4131_v21  ;;  %v2183_v13 = vld [vmem:[%s12293_s30 + $0x3fe8] sm:$0xff]  ;;  %v2088_v18 = vld [vmem:[%s12293_s30 + $0x3cf0] sm:$0xff] }
 0x5a7   : > { %v11322_v31 = vpack.c.f32.eXmY %v6178_v16, %v6210_v20, 312  ;;  %v11326_v35 = vpack.c.f32.eXmY %v6242_v23, %v6274_v24, 312  ;;  %v6211_v36 = vtrunc.f32 %v4163_v25  ;;  %v4132_v38 = vmul.f32 0.5, %v2084_v22  ;;  %v2120_v23 = vld [vmem:[%s12293_s30 + $0x3df0] sm:$0xff] }
 0x5a8   : > { %v6243_v37 = vtrunc.f32 %v4195_v26  ;;  %11905 = vst [vmem:[%s12322_s25 + $0xfb8] sm:$0xff] %v11320_v30  ;;  %v6275_v39 = vtrunc.f32 %v4227_v32  ;;  %v4164_v40 = vmul.f32 0.5, %v2116_v27  ;;  %v4196_v41 = vmul.f32 0.5, %v2148_v28  ;;  %v2152_v24 = vld [vmem:[%s12293_s30 + $0x3ef0] sm:$0xff]  ;;  %v2089_v30 = vld [vmem:[%s12293_s30 + $0x3cf8] sm:$0xff] }
 0x5a9   : > { %v4228_v42 = vmul.f32 0.5, %v2180_v29  ;;  %v11330_v46 = vpack.c.b8 %v11326_v35, %v11322_v31  ;;  %v11332_v47 = vpack.c.f32.eXmY %v6179_v33, %v6211_v36, 312  ;;  %v6180_v48 = vtrunc.f32 %v4132_v38  ;;  %v2184_v25 = vld [vmem:[%s12293_s30 + $0x3ff0] sm:$0xff] }
 0x5aa   : > { %v4133_v49 = vmul.f32 0.5, %v2085_v34  ;;  %v11336_v51 = vpack.c.f32.eXmY %v6243_v37, %v6275_v39, 312  ;;  %v6212_v52 = vtrunc.f32 %v4164_v40  ;;  %v6244_v53 = vtrunc.f32 %v4196_v41  ;;  %v2121_v39 = vld [vmem:[%s12293_s30 + $0x3df8] sm:$0xff] }
 0x5ab   : > { %v6276_v54 = vtrunc.f32 %v4228_v42  ;;  %11906 = vst [vmem:[%s12322_s25 + $0xfc0] sm:$0xff] %v11330_v46  ;;  %v4165_v56 = vmul.f32 0.5, %v2117_v43  ;;  %v4197_v57 = vmul.f32 0.5, %v2149_v44  ;;  %v4229_v58 = vmul.f32 0.5, %v2181_v45  ;;  %v2153_v40 = vld [vmem:[%s12293_s30 + $0x3ef8] sm:$0xff] }
 0x5ac   : > { %v6181_v59 = vtrunc.f32 %v4133_v49  ;;  %v11340_v62 = vpack.c.b8 %v11336_v51, %v11332_v47  ;;  %v11342_v63 = vpack.c.f32.eXmY %v6180_v48, %v6212_v52, 312  ;;  %v4134_v1 = vmul.f32 0.5, %v2086_v50  ;;  %v2185_v41 = vld [vmem:[%s12293_s30 + $0x3ff8] sm:$0xff] }
 0x5ad   : > { %v11346_v0 = vpack.c.f32.eXmY %v6244_v53, %v6276_v54, 312  ;;  %v6213_v3 = vtrunc.f32 %v4165_v56  ;;  %v6245_v4 = vtrunc.f32 %v4197_v57  ;;  %v6277_v5 = vtrunc.f32 %v4229_v58 }
 0x5ae   : > { %v4166_v6 = vmul.f32 0.5, %v2118_v55  ;;  %11907 = vst [vmem:[%s12322_s25 + $0xfc8] sm:$0xff] %v11340_v62  ;;  %v4198_v10 = vmul.f32 0.5, %v2150_v60  ;;  %v4230_v11 = vmul.f32 0.5, %v2182_v61  ;;  %v6182_v12 = vtrunc.f32 %v4134_v1 }
 0x5af   : > { %v11350_v9 = vpack.c.b8 %v11346_v0, %v11342_v63  ;;  %v11352_v14 = vpack.c.f32.eXmY %v6181_v59, %v6213_v3, 312  ;;  %v11356_v15 = vpack.c.f32.eXmY %v6245_v4, %v6277_v5, 312  ;;  %v4135_v17 = vmul.f32 0.5, %v2087_v2 }
 0x5b0   : > { %v6214_v16 = vtrunc.f32 %v4166_v6  ;;  %v6246_v19 = vtrunc.f32 %v4198_v10  ;;  %v6278_v20 = vtrunc.f32 %v4230_v11  ;;  %v4167_v21 = vmul.f32 0.5, %v2119_v7 }
 0x5b1   : > { %11908 = vst [vmem:[%s12322_s25 + $0xfd0] sm:$0xff] %v11350_v9  ;;  %v4199_v22 = vmul.f32 0.5, %v2151_v8  ;;  %v11360_v26 = vpack.c.b8 %v11356_v15, %v11352_v14  ;;  %v4231_v28 = vmul.f32 0.5, %v2183_v13  ;;  %v6183_v29 = vtrunc.f32 %v4135_v17 }
 0x5b2   : > { %v11362_v27 = vpack.c.f32.eXmY %v6182_v12, %v6214_v16, 312  ;;  %v11366_v31 = vpack.c.f32.eXmY %v6246_v19, %v6278_v20, 312  ;;  %v6215_v32 = vtrunc.f32 %v4167_v21  ;;  %v4136_v34 = vmul.f32 0.5, %v2088_v18 }
 0x5b3   : > { %v6247_v33 = vtrunc.f32 %v4199_v22  ;;  %11909 = vst [vmem:[%s12322_s25 + $0xfd8] sm:$0xff] %v11360_v26  ;;  %v6279_v35 = vtrunc.f32 %v4231_v28  ;;  %v4168_v36 = vmul.f32 0.5, %v2120_v23  ;;  %v4200_v37 = vmul.f32 0.5, %v2152_v24 }
 0x5b4   : > { %v4232_v38 = vmul.f32 0.5, %v2184_v25  ;;  %v11370_v42 = vpack.c.b8 %v11366_v31, %v11362_v27  ;;  %v11372_v43 = vpack.c.f32.eXmY %v6183_v29, %v6215_v32, 312  ;;  %v6184_v44 = vtrunc.f32 %v4136_v34 }
 0x5b5   : > { %v4137_v45 = vmul.f32 0.5, %v2089_v30  ;;  %v11376_v46 = vpack.c.f32.eXmY %v6247_v33, %v6279_v35, 312  ;;  %v6216_v47 = vtrunc.f32 %v4168_v36  ;;  %v6248_v48 = vtrunc.f32 %v4200_v37 }
 0x5b6   : > { %v6280_v49 = vtrunc.f32 %v4232_v38  ;;  %11910 = vst [vmem:[%s12322_s25 + $0xfe0] sm:$0xff] %v11370_v42  ;;  %v4169_v50 = vmul.f32 0.5, %v2121_v39  ;;  %v4201_v51 = vmul.f32 0.5, %v2153_v40  ;;  %v4233_v52 = vmul.f32 0.5, %v2185_v41 }
 0x5b7   : > { %v6185_v53 = vtrunc.f32 %v4137_v45  ;;  %v11380_v54 = vpack.c.b8 %v11376_v46, %v11372_v43  ;;  %v11382_v55 = vpack.c.f32.eXmY %v6184_v44, %v6216_v47, 312 }
 0x5b8   : > { %v11386_v56 = vpack.c.f32.eXmY %v6248_v48, %v6280_v49, 312  ;;  %v6217_v57 = vtrunc.f32 %v4169_v50  ;;  %v6249_v58 = vtrunc.f32 %v4201_v51  ;;  %v6281_v59 = vtrunc.f32 %v4233_v52 }
 0x5b9   : > { %11911 = vst [vmem:[%s12322_s25 + $0xfe8] sm:$0xff] %v11380_v54 }
 0x5ba   : > { %v11390_v60 = vpack.c.b8 %v11386_v56, %v11382_v55  ;;  %v11392_v61 = vpack.c.f32.eXmY %v6185_v53, %v6217_v57, 312  ;;  %v11396_v62 = vpack.c.f32.eXmY %v6249_v58, %v6281_v59, 312 }
 0x5bc   : > { %11912 = vst [vmem:[%s12322_s25 + $0xff0] sm:$0xff] %v11390_v60  ;;  %v11400_v63 = vpack.c.b8 %v11396_v62, %v11392_v61 }
 0x5be   : > { %11913 = vst [vmem:[%s12322_s25 + $0xff8] sm:$0xff] %v11400_v63 }
 0x5bf   : > { %12115 = shalt.err (!%p12112_p1)
}
 0x5c0   : > { %s12116_s14 = scalar_lea.hbm %s14868_s3, 65536  ;;  %s12120_s21 = scalar_lea.hbm %s14915_s1, 1048576 }
 0x5c1   : > { %p12117_p3 = scmp.ne.s32.totalorder %s14868_s3, %s12116_s14  ;;  %p12121_p0 = scmp.lt.u32.totalorder %s14868_s3, %s14915_s1 }
 0x5c2   : > { %p12122_p2 = scmp.lt.u32.totalorder %s12120_s21, %s12116_s14  ;;  %p12124_p6 = scmp.lt.u32.totalorder %s12116_s14, %s14868_s3 }
 0x5c3   : > { %p12118_p4 = pnand %p12117_p3, %p14922_p10 }
 0x5c4   : > { %p12123_p7 = por %p12122_p2, %p12121_p0 }
 0x5c5   : > { %p12119_p5 = pneg %p12118_p4 }
 0x5c6   : > { %p12125_p11 = por %p12124_p6, %p12123_p7 }
 0x5c8   : > { %p12126_p12 = pnand %p12125_p11, %p12119_p5 }
 0x5ca   : > { %12129 = shalt.err (!%p12126_p12)
}
 0x5cb   : > { %s12174_s26 = smov 4096   ;;  %s12175_s30 = smov 256  }
 0x5cc   : > { %12024 = dma.vmem_to_hbm [thread:$0]  (%p14922_p10), %s14870_s28, 65536, %s14868_s3, %s11915_s4, %s12174_s26, %s12174_s26, %s12175_s30  }
 0x5cd PF: > { %p12035_p8 = scmp.ge.s32.totalorder %s12168_s9, 2  ;;  %s11944_s17 = sand.u32 1, %s12156_s6  }
 0x5ce   : > { %p14923_p9 = scmp.ne.s32.totalorder %s14920_s19, 0  ;;  %s11945_s25 = scalar_lea.sflag [#allocation4], %s11944_s17 }
 0x5d0   : > { %p12031_p13 = pnand %p12035_p8, %p14923_p9 }
 0x5d2   : > { %12151 = dma.done.wait (!%p12031_p13), %s11945_s25, 65536  }
 0x5d3   : > { %12153 = vsyncadd (!%p12031_p13), %s11945_s25, 4294901760  ;;  %p14_p1 = scmp.ge.s32.totalorder %s12211_s12, 18   ;;  %s14924_s6 = smov %s12160_s7 }
 0x5d4   : > { %s14925_s7 = smov %s12164_s8  ;;  %s14926_s8 = smov %s12223_s15 }
 0x5d5   : > { %s14927_s9 = smov %s12211_s12  ;;  %16 = sbr.rel (!%p14_p1) target bundleno = 5 (0x5), region = 69 }
 0x5dc   :  { %11950 = vsyncpa [#allocation3], 1 }
 0x5dd   :  { %11952 = vsyncpa [#allocation3 + $0x1], 1 }
 0x5de   :  { %11953 = vsyncpa [#allocation4], 1 }
 0x5df   :  { %11955 = vsyncpa [#allocation4 + $0x1], 1 }

</bundles_post_ra>
